<compile_context>
chip_gen: v5e
topology: v5e:2x2
jax: 0.10.0
libtpu: 0.0.40
codegen_flags: <defaults>
</compile_context>

<pallas_src>
import functools

import jax
import jax.numpy as jnp
from jax import lax
from jax.experimental import pallas as pl
from jax.experimental.pallas import tpu as pltpu

LANE = 128                      # channel dims padded to multiples of the lane width
TM_1X1 = 512                    # rows of flattened (N*H*W) per grid step (1x1 convs)
BN_EPS = 1e-5                   # nn.BatchNorm2d default
_VMEM_LIMIT = 32 * 1024 * 1024  # safe scoped-VMEM request on v5e/v6e/v7x


def _rup(x, m=LANE):
    return (x + m - 1) // m * m


# ------------------------------ Pallas kernels -------------------------------

def _mm_bn_silu_kernel(x_ref, w_ref, s_ref, b_ref, o_ref):
    # (TM, K) @ (K, Cout) on the MXU (bf16 in, f32 accumulate), BN affine + SiLU epilogue.
    acc = jnp.dot(x_ref[...], w_ref[...], preferred_element_type=jnp.float32)
    y = acc * s_ref[...] + b_ref[...]
    o_ref[...] = (y * jax.nn.sigmoid(y)).astype(o_ref.dtype)


def _cat_mm_bn_silu_kernel(a_ref, b_ref, wa_ref, wb_ref, s_ref, bias_ref, o_ref):
    # Fused channel-concat + 1x1 conv: cat([a, b], -1) @ W == a @ Wa + b @ Wb.
    acc = jnp.dot(a_ref[...], wa_ref[...], preferred_element_type=jnp.float32)
    acc = acc + jnp.dot(b_ref[...], wb_ref[...], preferred_element_type=jnp.float32)
    y = acc * s_ref[...] + bias_ref[...]
    o_ref[...] = (y * jax.nn.sigmoid(y)).astype(o_ref.dtype)


def _conv3x3_body(x_ref, w_ref, s_ref, b_ref, o_ref, residual):
    # x_ref: (H+2, W+2, Cin)  zero-padded image, resident in VMEM across row tiles
    # w_ref: (9*Cin, Cout)    taps stacked in (kh, kw) order
    # o_ref: (TR, W, Cout)    one row tile of the output
    tr, W, cout = o_ref.shape
    cin = x_ref.shape[-1]
    r0 = pl.program_id(1) * tr
    acc = jnp.zeros((tr * W, cout), jnp.float32)
    for kh in range(3):
        rows = x_ref[pl.ds(r0 + kh, tr), :, :]                 # (TR, W+2, Cin)
        for kw in range(3):
            patch = rows[:, kw:kw + W, :].reshape(tr * W, cin)  # in-kernel im2col tap
            t = kh * 3 + kw
            w_tap = w_ref[t * cin:(t + 1) * cin, :]
            acc = acc + jnp.dot(patch, w_tap, preferred_element_type=jnp.float32)
    y = acc * s_ref[...] + b_ref[...]
    y = y * jax.nn.sigmoid(y)
    if residual is not None:
        y = y + residual.reshape(tr * W, cout).astype(jnp.float32)
    o_ref[...] = y.reshape(tr, W, cout).astype(o_ref.dtype)


def _conv3x3_kernel(x_ref, w_ref, s_ref, b_ref, o_ref):
    _conv3x3_body(x_ref, w_ref, s_ref, b_ref, o_ref, None)


def _conv3x3_res_kernel(x_ref, w_ref, s_ref, b_ref, r_ref, o_ref):
    _conv3x3_body(x_ref, w_ref, s_ref, b_ref, o_ref, r_ref[...])


# ------------------------- parameter prep (padding / folding) -------------------------

def _bn_fold(bn, cout_p):
    scale = bn["gamma"] / jnp.sqrt(bn["var"] + BN_EPS)
    bias = bn["beta"] - bn["mean"] * scale
    pad = cout_p - scale.shape[0]
    scale = jnp.pad(scale, (0, pad)).reshape(1, cout_p).astype(jnp.float32)
    bias = jnp.pad(bias, (0, pad)).reshape(1, cout_p).astype(jnp.float32)
    return scale, bias                                   # pad channels: scale=bias=0 -> silu(0)=0


def _prep_w1x1(w, cin_p, cout_p):
    cout, cin = w.shape[0], w.shape[1]
    w2d = w[:, :, 0, 0].T                                # (Cin, Cout)
    w2d = jnp.pad(w2d, ((0, cin_p - cin), (0, cout_p - cout)))
    return w2d.astype(jnp.bfloat16)


def _prep_w3x3(w, cin_p, cout_p):
    cout, cin = w.shape[0], w.shape[1]
    wt = jnp.transpose(w, (2, 3, 1, 0))                  # (3, 3, Cin, Cout)
    wt = jnp.pad(wt, ((0, 0), (0, 0), (0, cin_p - cin), (0, cout_p - cout)))
    return wt.reshape(9 * cin_p, cout_p).astype(jnp.bfloat16)


# ------------------------- Conv + BN + SiLU wrappers -------------------------

def conv1x1_bn_silu(x2d, p, cout):
    """SiLU(BN(x2d @ W)) on channel-padded, bf16, row-flattened activations."""
    M, cin_p = x2d.shape
    cout_p = _rup(cout)
    w = _prep_w1x1(p["w"], cin_p, cout_p)
    s, b = _bn_fold(p["bn"], cout_p)
    tm = TM_1X1 if M >= TM_1X1 else M
    return pl.pallas_call(
        _mm_bn_silu_kernel,
        out_shape=jax.ShapeDtypeStruct((M, cout_p), jnp.bfloat16),
        grid=(pl.cdiv(M, tm),),
        in_specs=[
            pl.BlockSpec((tm, cin_p), lambda i: (i, 0)),
            pl.BlockSpec((cin_p, cout_p), lambda i: (0, 0)),
            pl.BlockSpec((1, cout_p), lambda i: (0, 0)),
            pl.BlockSpec((1, cout_p), lambda i: (0, 0)),
        ],
        out_specs=pl.BlockSpec((tm, cout_p), lambda i: (i, 0)),
        compiler_params=pltpu.CompilerParams(
            dimension_semantics=("parallel",),
            vmem_limit_bytes=_VMEM_LIMIT),
    )(x2d, w, s, b)


def concat_conv1x1_bn_silu(a2d, b2d, p, cout):
    """cv3 with the channel concat fused: SiLU(BN(cat([a, b], -1) @ W))."""
    M, c_p = a2d.shape
    cout_p = _rup(cout)
    w = p["w"][:, :, 0, 0].T                             # (2*c_, Cout)
    c_ = w.shape[0] // 2
    wa = jnp.pad(w[:c_], ((0, c_p - c_), (0, cout_p - cout))).astype(jnp.bfloat16)
    wb = jnp.pad(w[c_:], ((0, c_p - c_), (0, cout_p - cout))).astype(jnp.bfloat16)
    s, bias = _bn_fold(p["bn"], cout_p)
    tm = TM_1X1 if M >= TM_1X1 else M
    return pl.pallas_call(
        _cat_mm_bn_silu_kernel,
        out_shape=jax.ShapeDtypeStruct((M, cout_p), jnp.bfloat16),
        grid=(pl.cdiv(M, tm),),
        in_specs=[
            pl.BlockSpec((tm, c_p), lambda i: (i, 0)),
            pl.BlockSpec((tm, c_p), lambda i: (i, 0)),
            pl.BlockSpec((c_p, cout_p), lambda i: (0, 0)),
            pl.BlockSpec((c_p, cout_p), lambda i: (0, 0)),
            pl.BlockSpec((1, cout_p), lambda i: (0, 0)),
            pl.BlockSpec((1, cout_p), lambda i: (0, 0)),
        ],
        out_specs=pl.BlockSpec((tm, cout_p), lambda i: (i, 0)),
        compiler_params=pltpu.CompilerParams(
            dimension_semantics=("parallel",),
            vmem_limit_bytes=_VMEM_LIMIT),
    )(a2d, b2d, wa, wb, s, bias)


def _pick_row_tile(H, W):
    # largest row tile dividing H with ~<=2048 output rows per MXU call
    tr = H
    while tr % 2 == 0 and tr * W > 2048:
        tr //= 2
    return tr


def conv3x3_bn_silu(x_img, p, cout, residual=None):
    """3x3 stride-1 'same' conv + BN + SiLU (+ fused residual), NHWC channel-padded bf16."""
    N, H, W, cin_p = x_img.shape
    cout_p = _rup(cout)
    w = _prep_w3x3(p["w"], cin_p, cout_p)
    s, b = _bn_fold(p["bn"], cout_p)
    xp = jnp.pad(x_img, ((0, 0), (1, 1), (1, 1), (0, 0)))     # 1-pixel halo only (no im2col)
    tr = _pick_row_tile(H, W)

    in_specs = [
        pl.BlockSpec((None, H + 2, W + 2, cin_p), lambda n, r: (n, 0, 0, 0)),
        pl.BlockSpec((9 * cin_p, cout_p), lambda n, r: (0, 0)),
        pl.BlockSpec((1, cout_p), lambda n, r: (0, 0)),
        pl.BlockSpec((1, cout_p), lambda n, r: (0, 0)),
    ]
    args = [xp, w, s, b]
    kernel = _conv3x3_kernel
    if residual is not None:
        in_specs.append(pl.BlockSpec((None, tr, W, cout_p), lambda n, r: (n, r, 0, 0)))
        args.append(residual)
        kernel = _conv3x3_res_kernel

    return pl.pallas_call(
        kernel,
        out_shape=jax.ShapeDtypeStruct((N, H, W, cout_p), jnp.bfloat16),
        grid=(N, H // tr),
        in_specs=in_specs,
        out_specs=pl.BlockSpec((None, tr, W, cout_p), lambda n, r: (n, r, 0, 0)),
        compiler_params=pltpu.CompilerParams(
            dimension_semantics=("parallel", "parallel"),
            vmem_limit_bytes=_VMEM_LIMIT),
    )(*args)


# --------------------------------- C3 module ---------------------------------

def init_params(key, c1, c2, n=1, e=0.5):
    c_ = int(c2 * e)

    def conv_p(key, cin, cout, k):
        kw_, kg, kb, km, kv = jax.random.split(key, 5)
        return {
            "w": jax.random.normal(kw_, (cout, cin, k, k), jnp.float32) * 0.2,
            "bn": {
                "gamma": jax.random.uniform(kg, (cout,), jnp.float32, 0.5, 1.5),
                "beta": jax.random.normal(kb, (cout,), jnp.float32) * 0.1,
                "mean": jax.random.normal(km, (cout,), jnp.float32) * 0.1,
                "var": jax.random.uniform(kv, (cout,), jnp.float32, 0.5, 1.5),
            },
        }

    keys = jax.random.split(key, 3 + 2 * n)
    return {
        "cv1": conv_p(keys[0], c1, c_, 1),
        "cv2": conv_p(keys[1], c1, c_, 1),
        "cv3": conv_p(keys[2], 2 * c_, c2, 1),
        "m": [
            {"cv1": conv_p(keys[3 + 2 * i], c_, c_, 1),       # Bottleneck e=1.0
             "cv2": conv_p(keys[4 + 2 * i], c_, c_, 3)}
            for i in range(n)
        ],
    }


@functools.partial(jax.jit, static_argnames=("shortcut",))
def c3_forward(x_nchw, params, shortcut=True):
    N, C1, H, W = x_nchw.shape
    c_ = params["cv1"]["w"].shape[0]
    c2 = params["cv3"]["w"].shape[0]
    c1_p, c_p = _rup(C1), _rup(c_)
    M = N * H * W

    x = jnp.transpose(x_nchw, (0, 2, 3, 1))                       # NCHW -> NHWC
    x = jnp.pad(x, ((0, 0), (0, 0), (0, 0), (0, c1_p - C1))).astype(jnp.bfloat16)
    x2d = x.reshape(M, c1_p)

    y1 = conv1x1_bn_silu(x2d, params["cv1"], c_)                  # (M, c_p)
    y2 = conv1x1_bn_silu(x2d, params["cv2"], c_)                  # (M, c_p)

    for blk in params["m"]:
        t = conv1x1_bn_silu(y1, blk["cv1"], c_)
        res = y1.reshape(N, H, W, c_p) if shortcut else None      # c1 == c2 in Bottleneck
        y1 = conv3x3_bn_silu(t.reshape(N, H, W, c_p), blk["cv2"], c_,
                             residual=res).reshape(M, c_p)

    out2d = concat_conv1x1_bn_silu(y1, y2, params["cv3"], c2)     # concat fused into cv3
    out = out2d.reshape(N, H, W, -1)[:, :, :, :c2]
    return jnp.transpose(out, (0, 3, 1, 2)).astype(jnp.float32)   # NHWC -> NCHW


# ----------------------------- pure-JAX reference -----------------------------

def _ref_conv(x_nhwc, p, k):
    w = jnp.transpose(p["w"], (2, 3, 1, 0))                       # OIHW -> HWIO
    pad = k // 2
    y = lax.conv_general_dilated(
        x_nhwc, w, window_strides=(1, 1),
        padding=((pad, pad), (pad, pad)),
        dimension_numbers=("NHWC", "HWIO", "NHWC"))
    bn = p["bn"]
    scale = bn["gamma"] / jnp.sqrt(bn["var"] + BN_EPS)
    bias = bn["beta"] - bn["mean"] * scale
    y = y * scale + bias
    return y * jax.nn.sigmoid(y)


def c3_reference(x_nchw, params, shortcut=True):
    x = jnp.transpose(x_nchw, (0, 2, 3, 1))
    y1 = _ref_conv(x, params["cv1"], 1)
    for b in params["m"]:
        t = _ref_conv(y1, b["cv1"], 1)
        y = _ref_conv(t, b["cv2"], 3)
        y1 = y1 + y if shortcut else y
    y2 = _ref_conv(x, params["cv2"], 1)
    out = _ref_conv(jnp.concatenate([y1, y2], axis=-1), params["cv3"], 1)
    return jnp.transpose(out, (0, 3, 1, 2))


# ------------------------------------ main ------------------------------------

if __name__ == "__main__":
    key = jax.random.PRNGKey(0)
    kx, kp = jax.random.split(key)

    N, C1, H, W = 2, 4, 16, 16      # input: NCHW like PyTorch
    C2, n = 8, 1
    x = jax.random.normal(kx, (N, C1, H, W), jnp.float32)
    params = init_params(kp, C1, C2, n=n, e=0.5)

    out = jax.block_until_ready(c3_forward(x, params, shortcut=True))
    assert out.shape == (N, C2, H, W), out.shape

    ref = jax.block_until_ready(c3_reference(x, params, shortcut=True))
    err = float(jnp.max(jnp.abs(out - ref)))
    # bf16 operands / bf16 intermediate storage (f32 accumulate) => relaxed tolerance
    assert jnp.allclose(out, ref, atol=5e-2, rtol=5e-2), err

    print("KERNEL_OK")
</pallas_src>

<mosaic_0001>
module attributes {stable_mosaic.version = 11 : i64} {
  func.func @_mm_bn_silu_kernel(%arg0: i32, %arg1: memref<512x128xbf16, #tpu.memory_space<vmem>>, %arg2: memref<128x128xbf16, #tpu.memory_space<vmem>>, %arg3: memref<1x128xf32, #tpu.memory_space<vmem>>, %arg4: memref<1x128xf32, #tpu.memory_space<vmem>>, %arg5: memref<512x128xbf16, #tpu.memory_space<vmem>>) attributes {dimension_semantics = [#tpu.dimension_semantics<parallel>], iteration_bounds = array<i64: 1>, scalar_prefetch = 0 : i64, scratch_operands = 0 : i64, tpu.core_type = #tpu.core_type<tc>, window_params = [{transform_indices = @transform_0, window_bounds = array<i64: 512, 128>}, {pipeline_mode = #tpu.pipeline_mode<synchronous>, transform_indices = @transform_1, window_bounds = array<i64: 128, 128>}, {pipeline_mode = #tpu.pipeline_mode<synchronous>, transform_indices = @transform_2, window_bounds = array<i64: 1, 128>}, {pipeline_mode = #tpu.pipeline_mode<synchronous>, transform_indices = @transform_3, window_bounds = array<i64: 1, 128>}, {transform_indices = @transform_4, window_bounds = array<i64: 512, 128>}]} {
    %c0 = arith.constant 0 : index
    %c0_0 = arith.constant 0 : index
    %0 = vector.load %arg1[%c0, %c0_0] : memref<512x128xbf16, #tpu.memory_space<vmem>>, vector<512x128xbf16>
    %c0_1 = arith.constant 0 : index
    %c0_2 = arith.constant 0 : index
    %1 = vector.load %arg2[%c0_1, %c0_2] : memref<128x128xbf16, #tpu.memory_space<vmem>>, vector<128x128xbf16>
    %cst = arith.constant dense<0.000000e+00> : vector<512x128xf32>
    %2 = tpu.matmul %0, %1, %cst {dimension_numbers = #tpu.dot_dimension_numbers<[1], [0], [0], [1], [0, 0, 1, 1], [], []>} : vector<512x128xbf16>, vector<128x128xbf16>, vector<512x128xf32> -> vector<512x128xf32>
    %c0_3 = arith.constant 0 : index
    %c0_4 = arith.constant 0 : index
    %3 = vector.load %arg3[%c0_3, %c0_4] : memref<1x128xf32, #tpu.memory_space<vmem>>, vector<1x128xf32>
    %4 = vector.broadcast %3 : vector<1x128xf32> to vector<512x128xf32>
    %5 = arith.mulf %2, %4 : vector<512x128xf32>
    %c0_5 = arith.constant 0 : index
    %c0_6 = arith.constant 0 : index
    %6 = vector.load %arg4[%c0_5, %c0_6] : memref<1x128xf32, #tpu.memory_space<vmem>>, vector<1x128xf32>
    %7 = vector.broadcast %6 : vector<1x128xf32> to vector<512x128xf32>
    %8 = arith.addf %5, %7 : vector<512x128xf32>
    %9 = arith.negf %8 : vector<512x128xf32>
    %10 = math.exp %9 : vector<512x128xf32>
    %cst_7 = arith.constant 1.000000e+00 : f32
    %11 = vector.broadcast %cst_7 : f32 to vector<512x128xf32>
    %12 = arith.addf %11, %10 : vector<512x128xf32>
    %13 = arith.divf %11, %12 : vector<512x128xf32>
    %14 = arith.mulf %8, %13 : vector<512x128xf32>
    %15 = arith.truncf %14 : vector<512x128xf32> to vector<512x128xbf16>
    %c0_8 = arith.constant 0 : index
    %c0_9 = arith.constant 0 : index
    %16 = vector.load %arg5[%c0_8, %c0_9] : memref<512x128xbf16, #tpu.memory_space<vmem>>, vector<512x128xbf16>
    tpu.vector_store %arg5[%c0_8, %c0_9], %15 {strides = array<i32>} : memref<512x128xbf16, #tpu.memory_space<vmem>>, vector<512x128xbf16>,
    return
  }
  func.func @transform_0(%arg0: i32) -> (i32, i32) {
    %c0_i32 = arith.constant 0 : i32
    %c0_i32_0 = arith.constant 0 : i32
    return %arg0, %c0_i32 : i32, i32
  }
  func.func @transform_1(%arg0: i32) -> (i32, i32) {
    %c0_i32 = arith.constant 0 : i32
    %c0_i32_0 = arith.constant 0 : i32
    %c0_i32_1 = arith.constant 0 : i32
    return %c0_i32, %c0_i32_0 : i32, i32
  }
  func.func @transform_2(%arg0: i32) -> (i32, i32) {
    %c0_i32 = arith.constant 0 : i32
    %c0_i32_0 = arith.constant 0 : i32
    %c0_i32_1 = arith.constant 0 : i32
    return %c0_i32, %c0_i32_0 : i32, i32
  }
  func.func @transform_3(%arg0: i32) -> (i32, i32) {
    %c0_i32 = arith.constant 0 : i32
    %c0_i32_0 = arith.constant 0 : i32
    %c0_i32_1 = arith.constant 0 : i32
    return %c0_i32, %c0_i32_0 : i32, i32
  }
  func.func @transform_4(%arg0: i32) -> (i32, i32) {
    %c0_i32 = arith.constant 0 : i32
    %c0_i32_0 = arith.constant 0 : i32
    return %arg0, %c0_i32 : i32, i32
  }
}

module attributes {stable_mosaic.version = 11 : i64} {
  func.func @_conv3x3_res_kernel(%arg0: i32, %arg1: i32, %arg2: memref<1x18x18x128xbf16, #tpu.memory_space<vmem>>, %arg3: memref<1152x128xbf16, #tpu.memory_space<vmem>>, %arg4: memref<1x128xf32, #tpu.memory_space<vmem>>, %arg5: memref<1x128xf32, #tpu.memory_space<vmem>>, %arg6: memref<1x16x16x128xbf16, #tpu.memory_space<vmem>>, %arg7: memref<1x16x16x128xbf16, #tpu.memory_space<vmem>>) attributes {dimension_semantics = [#tpu.dimension_semantics<parallel>, #tpu.dimension_semantics<parallel>], iteration_bounds = array<i64: 2, 1>, scalar_prefetch = 0 : i64, scratch_operands = 0 : i64, tpu.core_type = #tpu.core_type<tc>, window_params = [{transform_indices = @transform_0, window_bounds = array<i64: 1, 18, 18, 128>}, {pipeline_mode = #tpu.pipeline_mode<synchronous>, transform_indices = @transform_1, window_bounds = array<i64: 1152, 128>}, {pipeline_mode = #tpu.pipeline_mode<synchronous>, transform_indices = @transform_2, window_bounds = array<i64: 1, 128>}, {pipeline_mode = #tpu.pipeline_mode<synchronous>, transform_indices = @transform_3, window_bounds = array<i64: 1, 128>}, {transform_indices = @transform_4, window_bounds = array<i64: 1, 16, 16, 128>}, {transform_indices = @transform_5, window_bounds = array<i64: 1, 16, 16, 128>}]} {
    %c0 = arith.constant 0 : index
    %c0_0 = arith.constant 0 : index
    %c0_1 = arith.constant 0 : index
    %c0_2 = arith.constant 0 : index
    %0 = vector.load %arg6[%c0, %c0_0, %c0_1, %c0_2] : memref<1x16x16x128xbf16, #tpu.memory_space<vmem>>, vector<1x16x16x128xbf16>
    %1 = vector.shape_cast %0 : vector<1x16x16x128xbf16> to vector<16x16x128xbf16>
    %c16_i32 = arith.constant 16 : i32
    %2 = arith.muli %arg1, %c16_i32 : i32
    %cst = arith.constant 0.000000e+00 : f32
    %3 = vector.broadcast %cst : f32 to vector<256x128xf32>
    %c0_i32 = arith.constant 0 : i32
    %4 = arith.addi %2, %c0_i32 : i32
    %c0_3 = arith.constant 0 : index
    %5 = arith.index_cast %4 : i32 to index
    %c0_4 = arith.constant 0 : index
    %c0_5 = arith.constant 0 : index
    %6 = vector.load %arg2[%c0_3, %5, %c0_4, %c0_5] : memref<1x18x18x128xbf16, #tpu.memory_space<vmem>>, vector<1x16x18x128xbf16>
    %7 = vector.shape_cast %6 : vector<1x16x18x128xbf16> to vector<16x18x128xbf16>
    %8 = vector.extract_strided_slice %7 {offsets = [0, 0, 0], sizes = [16, 16, 128], strides = [1, 1, 1]} : vector<16x18x128xbf16> to vector<16x16x128xbf16>
    %9 = vector.shape_cast %8 : vector<16x16x128xbf16> to vector<256x128xbf16>
    %c0_6 = arith.constant 0 : index
    %c0_7 = arith.constant 0 : index
    %10 = vector.load %arg3[%c0_6, %c0_7] : memref<1152x128xbf16, #tpu.memory_space<vmem>>, vector<128x128xbf16>
    %cst_8 = arith.constant dense<0.000000e+00> : vector<256x128xf32>
    %11 = tpu.matmul %9, %10, %cst_8 {dimension_numbers = #tpu.dot_dimension_numbers<[1], [0], [0], [1], [0, 0, 1, 1], [], []>} : vector<256x128xbf16>, vector<128x128xbf16>, vector<256x128xf32> -> vector<256x128xf32>
    %12 = arith.addf %3, %11 : vector<256x128xf32>
    %13 = vector.extract_strided_slice %7 {offsets = [0, 1, 0], sizes = [16, 16, 128], strides = [1, 1, 1]} : vector<16x18x128xbf16> to vector<16x16x128xbf16>
    %14 = vector.shape_cast %13 : vector<16x16x128xbf16> to vector<256x128xbf16>
    %c128 = arith.constant 128 : index
    %c0_9 = arith.constant 0 : index
    %15 = vector.load %arg3[%c128, %c0_9] : memref<1152x128xbf16, #tpu.memory_space<vmem>>, vector<128x128xbf16>
    %cst_10 = arith.constant dense<0.000000e+00> : vector<256x128xf32>
    %16 = tpu.matmul %14, %15, %cst_10 {dimension_numbers = #tpu.dot_dimension_numbers<[1], [0], [0], [1], [0, 0, 1, 1], [], []>} : vector<256x128xbf16>, vector<128x128xbf16>, vector<256x128xf32> -> vector<256x128xf32>
    %17 = arith.addf %12, %16 : vector<256x128xf32>
    %18 = vector.extract_strided_slice %7 {offsets = [0, 2, 0], sizes = [16, 16, 128], strides = [1, 1, 1]} : vector<16x18x128xbf16> to vector<16x16x128xbf16>
    %19 = vector.shape_cast %18 : vector<16x16x128xbf16> to vector<256x128xbf16>
    %c256 = arith.constant 256 : index
    %c0_11 = arith.constant 0 : index
    %20 = vector.load %arg3[%c256, %c0_11] : memref<1152x128xbf16, #tpu.memory_space<vmem>>, vector<128x128xbf16>
    %cst_12 = arith.constant dense<0.000000e+00> : vector<256x128xf32>
    %21 = tpu.matmul %19, %20, %cst_12 {dimension_numbers = #tpu.dot_dimension_numbers<[1], [0], [0], [1], [0, 0, 1, 1], [], []>} : vector<256x128xbf16>, vector<128x128xbf16>, vector<256x128xf32> -> vector<256x128xf32>
    %22 = arith.addf %17, %21 : vector<256x128xf32>
    %c1_i32 = arith.constant 1 : i32
    %23 = arith.addi %2, %c1_i32 : i32
    %c0_13 = arith.constant 0 : index
    %24 = arith.index_cast %23 : i32 to index
    %c0_14 = arith.constant 0 : index
    %c0_15 = arith.constant 0 : index
    %25 = vector.load %arg2[%c0_13, %24, %c0_14, %c0_15] : memref<1x18x18x128xbf16, #tpu.memory_space<vmem>>, vector<1x16x18x128xbf16>
    %26 = vector.shape_cast %25 : vector<1x16x18x128xbf16> to vector<16x18x128xbf16>
    %27 = vector.extract_strided_slice %26 {offsets = [0, 0, 0], sizes = [16, 16, 128], strides = [1, 1, 1]} : vector<16x18x128xbf16> to vector<16x16x128xbf16>
    %28 = vector.shape_cast %27 : vector<16x16x128xbf16> to vector<256x128xbf16>
    %c384 = arith.constant 384 : index
    %c0_16 = arith.constant 0 : index
    %29 = vector.load %arg3[%c384, %c0_16] : memref<1152x128xbf16, #tpu.memory_space<vmem>>, vector<128x128xbf16>
    %cst_17 = arith.constant dense<0.000000e+00> : vector<256x128xf32>
    %30 = tpu.matmul %28, %29, %cst_17 {dimension_numbers = #tpu.dot_dimension_numbers<[1], [0], [0], [1], [0, 0, 1, 1], [], []>} : vector<256x128xbf16>, vector<128x128xbf16>, vector<256x128xf32> -> vector<256x128xf32>
    %31 = arith.addf %22, %30 : vector<256x128xf32>
    %32 = vector.extract_strided_slice %26 {offsets = [0, 1, 0], sizes = [16, 16, 128], strides = [1, 1, 1]} : vector<16x18x128xbf16> to vector<16x16x128xbf16>
    %33 = vector.shape_cast %32 : vector<16x16x128xbf16> to vector<256x128xbf16>
    %c512 = arith.constant 512 : index
    %c0_18 = arith.constant 0 : index
    %34 = vector.load %arg3[%c512, %c0_18] : memref<1152x128xbf16, #tpu.memory_space<vmem>>, vector<128x128xbf16>
    %cst_19 = arith.constant dense<0.000000e+00> : vector<256x128xf32>
    %35 = tpu.matmul %33, %34, %cst_19 {dimension_numbers = #tpu.dot_dimension_numbers<[1], [0], [0], [1], [0, 0, 1, 1], [], []>} : vector<256x128xbf16>, vector<128x128xbf16>, vector<256x128xf32> -> vector<256x128xf32>
    %36 = arith.addf %31, %35 : vector<256x128xf32>
    %37 = vector.extract_strided_slice %26 {offsets = [0, 2, 0], sizes = [16, 16, 128], strides = [1, 1, 1]} : vector<16x18x128xbf16> to vector<16x16x128xbf16>
    %38 = vector.shape_cast %37 : vector<16x16x128xbf16> to vector<256x128xbf16>
    %c640 = arith.constant 640 : index
    %c0_20 = arith.constant 0 : index
    %39 = vector.load %arg3[%c640, %c0_20] : memref<1152x128xbf16, #tpu.memory_space<vmem>>, vector<128x128xbf16>
    %cst_21 = arith.constant dense<0.000000e+00> : vector<256x128xf32>
    %40 = tpu.matmul %38, %39, %cst_21 {dimension_numbers = #tpu.dot_dimension_numbers<[1], [0], [0], [1], [0, 0, 1, 1], [], []>} : vector<256x128xbf16>, vector<128x128xbf16>, vector<256x128xf32> -> vector<256x128xf32>
    %41 = arith.addf %36, %40 : vector<256x128xf32>
    %c2_i32 = arith.constant 2 : i32
    %42 = arith.addi %2, %c2_i32 : i32
    %c0_22 = arith.constant 0 : index
    %43 = arith.index_cast %42 : i32 to index
    %c0_23 = arith.constant 0 : index
    %c0_24 = arith.constant 0 : index
    %44 = vector.load %arg2[%c0_22, %43, %c0_23, %c0_24] : memref<1x18x18x128xbf16, #tpu.memory_space<vmem>>, vector<1x16x18x128xbf16>
    %45 = vector.shape_cast %44 : vector<1x16x18x128xbf16> to vector<16x18x128xbf16>
    %46 = vector.extract_strided_slice %45 {offsets = [0, 0, 0], sizes = [16, 16, 128], strides = [1, 1, 1]} : vector<16x18x128xbf16> to vector<16x16x128xbf16>
    %47 = vector.shape_cast %46 : vector<16x16x128xbf16> to vector<256x128xbf16>
    %c768 = arith.constant 768 : index
    %c0_25 = arith.constant 0 : index
    %48 = vector.load %arg3[%c768, %c0_25] : memref<1152x128xbf16, #tpu.memory_space<vmem>>, vector<128x128xbf16>
    %cst_26 = arith.constant dense<0.000000e+00> : vector<256x128xf32>
    %49 = tpu.matmul %47, %48, %cst_26 {dimension_numbers = #tpu.dot_dimension_numbers<[1], [0], [0], [1], [0, 0, 1, 1], [], []>} : vector<256x128xbf16>, vector<128x128xbf16>, vector<256x128xf32> -> vector<256x128xf32>
    %50 = arith.addf %41, %49 : vector<256x128xf32>
    %51 = vector.extract_strided_slice %45 {offsets = [0, 1, 0], sizes = [16, 16, 128], strides = [1, 1, 1]} : vector<16x18x128xbf16> to vector<16x16x128xbf16>
    %52 = vector.shape_cast %51 : vector<16x16x128xbf16> to vector<256x128xbf16>
    %c896 = arith.constant 896 : index
    %c0_27 = arith.constant 0 : index
    %53 = vector.load %arg3[%c896, %c0_27] : memref<1152x128xbf16, #tpu.memory_space<vmem>>, vector<128x128xbf16>
    %cst_28 = arith.constant dense<0.000000e+00> : vector<256x128xf32>
    %54 = tpu.matmul %52, %53, %cst_28 {dimension_numbers = #tpu.dot_dimension_numbers<[1], [0], [0], [1], [0, 0, 1, 1], [], []>} : vector<256x128xbf16>, vector<128x128xbf16>, vector<256x128xf32> -> vector<256x128xf32>
    %55 = arith.addf %50, %54 : vector<256x128xf32>
    %56 = vector.extract_strided_slice %45 {offsets = [0, 2, 0], sizes = [16, 16, 128], strides = [1, 1, 1]} : vector<16x18x128xbf16> to vector<16x16x128xbf16>
    %57 = vector.shape_cast %56 : vector<16x16x128xbf16> to vector<256x128xbf16>
    %c1024 = arith.constant 1024 : index
    %c0_29 = arith.constant 0 : index
    %58 = vector.load %arg3[%c1024, %c0_29] : memref<1152x128xbf16, #tpu.memory_space<vmem>>, vector<128x128xbf16>
    %cst_30 = arith.constant dense<0.000000e+00> : vector<256x128xf32>
    %59 = tpu.matmul %57, %58, %cst_30 {dimension_numbers = #tpu.dot_dimension_numbers<[1], [0], [0], [1], [0, 0, 1, 1], [], []>} : vector<256x128xbf16>, vector<128x128xbf16>, vector<256x128xf32> -> vector<256x128xf32>
    %60 = arith.addf %55, %59 : vector<256x128xf32>
    %c0_31 = arith.constant 0 : index
    %c0_32 = arith.constant 0 : index
    %61 = vector.load %arg4[%c0_31, %c0_32] : memref<1x128xf32, #tpu.memory_space<vmem>>, vector<1x128xf32>
    %62 = vector.broadcast %61 : vector<1x128xf32> to vector<256x128xf32>
    %63 = arith.mulf %60, %62 : vector<256x128xf32>
    %c0_33 = arith.constant 0 : index
    %c0_34 = arith.constant 0 : index
    %64 = vector.load %arg5[%c0_33, %c0_34] : memref<1x128xf32, #tpu.memory_space<vmem>>, vector<1x128xf32>
    %65 = vector.broadcast %64 : vector<1x128xf32> to vector<256x128xf32>
    %66 = arith.addf %63, %65 : vector<256x128xf32>
    %67 = arith.negf %66 : vector<256x128xf32>
    %68 = math.exp %67 : vector<256x128xf32>
    %cst_35 = arith.constant 1.000000e+00 : f32
    %69 = vector.broadcast %cst_35 : f32 to vector<256x128xf32>
    %70 = arith.addf %69, %68 : vector<256x128xf32>
    %71 = arith.divf %69, %70 : vector<256x128xf32>
    %72 = arith.mulf %66, %71 : vector<256x128xf32>
    %73 = vector.shape_cast %1 : vector<16x16x128xbf16> to vector<256x128xbf16>
    %74 = arith.extf %73 : vector<256x128xbf16> to vector<256x128xf32>
    %75 = arith.addf %72, %74 : vector<256x128xf32>
    %76 = vector.shape_cast %75 : vector<256x128xf32> to vector<16x16x128xf32>
    %77 = arith.truncf %76 : vector<16x16x128xf32> to vector<16x16x128xbf16>
    %c0_36 = arith.constant 0 : index
    %c0_37 = arith.constant 0 : index
    %c0_38 = arith.constant 0 : index
    %c0_39 = arith.constant 0 : index
    %78 = vector.load %arg7[%c0_36, %c0_37, %c0_38, %c0_39] : memref<1x16x16x128xbf16, #tpu.memory_space<vmem>>, vector<1x16x16x128xbf16>
    %79 = vector.shape_cast %78 : vector<1x16x16x128xbf16> to vector<16x16x128xbf16>
    %80 = vector.shape_cast %77 : vector<16x16x128xbf16> to vector<1x16x16x128xbf16>
    tpu.vector_store %arg7[%c0_36, %c0_37, %c0_38, %c0_39], %80 {strides = array<i32>} : memref<1x16x16x128xbf16, #tpu.memory_space<vmem>>, vector<1x16x16x128xbf16>,
    return
  }
  func.func @transform_0(%arg0: i32, %arg1: i32) -> (i32, i32, i32, i32) {
    %c0_i32 = arith.constant 0 : i32
    %c0_i32_0 = arith.constant 0 : i32
    %c0_i32_1 = arith.constant 0 : i32
    %c0_i32_2 = arith.constant 0 : i32
    return %arg0, %c0_i32, %c0_i32_0, %c0_i32_1 : i32, i32, i32, i32
  }
  func.func @transform_1(%arg0: i32, %arg1: i32) -> (i32, i32) {
    %c0_i32 = arith.constant 0 : i32
    %c0_i32_0 = arith.constant 0 : i32
    %c0_i32_1 = arith.constant 0 : i32
    return %c0_i32, %c0_i32_0 : i32, i32
  }
  func.func @transform_2(%arg0: i32, %arg1: i32) -> (i32, i32) {
    %c0_i32 = arith.constant 0 : i32
    %c0_i32_0 = arith.constant 0 : i32
    %c0_i32_1 = arith.constant 0 : i32
    return %c0_i32, %c0_i32_0 : i32, i32
  }
  func.func @transform_3(%arg0: i32, %arg1: i32) -> (i32, i32) {
    %c0_i32 = arith.constant 0 : i32
    %c0_i32_0 = arith.constant 0 : i32
    %c0_i32_1 = arith.constant 0 : i32
    return %c0_i32, %c0_i32_0 : i32, i32
  }
  func.func @transform_4(%arg0: i32, %arg1: i32) -> (i32, i32, i32, i32) {
    %c0_i32 = arith.constant 0 : i32
    %c0_i32_0 = arith.constant 0 : i32
    %c0_i32_1 = arith.constant 0 : i32
    return %arg0, %arg1, %c0_i32, %c0_i32_0 : i32, i32, i32, i32
  }
  func.func @transform_5(%arg0: i32, %arg1: i32) -> (i32, i32, i32, i32) {
    %c0_i32 = arith.constant 0 : i32
    %c0_i32_0 = arith.constant 0 : i32
    %c0_i32_1 = arith.constant 0 : i32
    return %arg0, %arg1, %c0_i32, %c0_i32_0 : i32, i32, i32, i32
  }
}

module attributes {stable_mosaic.version = 11 : i64} {
  func.func @_cat_mm_bn_silu_kernel(%arg0: i32, %arg1: memref<512x128xbf16, #tpu.memory_space<vmem>>, %arg2: memref<512x128xbf16, #tpu.memory_space<vmem>>, %arg3: memref<128x128xbf16, #tpu.memory_space<vmem>>, %arg4: memref<128x128xbf16, #tpu.memory_space<vmem>>, %arg5: memref<1x128xf32, #tpu.memory_space<vmem>>, %arg6: memref<1x128xf32, #tpu.memory_space<vmem>>, %arg7: memref<512x128xbf16, #tpu.memory_space<vmem>>) attributes {dimension_semantics = [#tpu.dimension_semantics<parallel>], iteration_bounds = array<i64: 1>, scalar_prefetch = 0 : i64, scratch_operands = 0 : i64, tpu.core_type = #tpu.core_type<tc>, window_params = [{transform_indices = @transform_0, window_bounds = array<i64: 512, 128>}, {transform_indices = @transform_1, window_bounds = array<i64: 512, 128>}, {pipeline_mode = #tpu.pipeline_mode<synchronous>, transform_indices = @transform_2, window_bounds = array<i64: 128, 128>}, {pipeline_mode = #tpu.pipeline_mode<synchronous>, transform_indices = @transform_3, window_bounds = array<i64: 128, 128>}, {pipeline_mode = #tpu.pipeline_mode<synchronous>, transform_indices = @transform_4, window_bounds = array<i64: 1, 128>}, {pipeline_mode = #tpu.pipeline_mode<synchronous>, transform_indices = @transform_5, window_bounds = array<i64: 1, 128>}, {transform_indices = @transform_6, window_bounds = array<i64: 512, 128>}]} {
    %c0 = arith.constant 0 : index
    %c0_0 = arith.constant 0 : index
    %0 = vector.load %arg1[%c0, %c0_0] : memref<512x128xbf16, #tpu.memory_space<vmem>>, vector<512x128xbf16>
    %c0_1 = arith.constant 0 : index
    %c0_2 = arith.constant 0 : index
    %1 = vector.load %arg3[%c0_1, %c0_2] : memref<128x128xbf16, #tpu.memory_space<vmem>>, vector<128x128xbf16>
    %cst = arith.constant dense<0.000000e+00> : vector<512x128xf32>
    %2 = tpu.matmul %0, %1, %cst {dimension_numbers = #tpu.dot_dimension_numbers<[1], [0], [0], [1], [0, 0, 1, 1], [], []>} : vector<512x128xbf16>, vector<128x128xbf16>, vector<512x128xf32> -> vector<512x128xf32>
    %c0_3 = arith.constant 0 : index
    %c0_4 = arith.constant 0 : index
    %3 = vector.load %arg2[%c0_3, %c0_4] : memref<512x128xbf16, #tpu.memory_space<vmem>>, vector<512x128xbf16>
    %c0_5 = arith.constant 0 : index
    %c0_6 = arith.constant 0 : index
    %4 = vector.load %arg4[%c0_5, %c0_6] : memref<128x128xbf16, #tpu.memory_space<vmem>>, vector<128x128xbf16>
    %cst_7 = arith.constant dense<0.000000e+00> : vector<512x128xf32>
    %5 = tpu.matmul %3, %4, %cst_7 {dimension_numbers = #tpu.dot_dimension_numbers<[1], [0], [0], [1], [0, 0, 1, 1], [], []>} : vector<512x128xbf16>, vector<128x128xbf16>, vector<512x128xf32> -> vector<512x128xf32>
    %6 = arith.addf %2, %5 : vector<512x128xf32>
    %c0_8 = arith.constant 0 : index
    %c0_9 = arith.constant 0 : index
    %7 = vector.load %arg5[%c0_8, %c0_9] : memref<1x128xf32, #tpu.memory_space<vmem>>, vector<1x128xf32>
    %8 = vector.broadcast %7 : vector<1x128xf32> to vector<512x128xf32>
    %9 = arith.mulf %6, %8 : vector<512x128xf32>
    %c0_10 = arith.constant 0 : index
    %c0_11 = arith.constant 0 : index
    %10 = vector.load %arg6[%c0_10, %c0_11] : memref<1x128xf32, #tpu.memory_space<vmem>>, vector<1x128xf32>
    %11 = vector.broadcast %10 : vector<1x128xf32> to vector<512x128xf32>
    %12 = arith.addf %9, %11 : vector<512x128xf32>
    %13 = arith.negf %12 : vector<512x128xf32>
    %14 = math.exp %13 : vector<512x128xf32>
    %cst_12 = arith.constant 1.000000e+00 : f32
    %15 = vector.broadcast %cst_12 : f32 to vector<512x128xf32>
    %16 = arith.addf %15, %14 : vector<512x128xf32>
    %17 = arith.divf %15, %16 : vector<512x128xf32>
    %18 = arith.mulf %12, %17 : vector<512x128xf32>
    %19 = arith.truncf %18 : vector<512x128xf32> to vector<512x128xbf16>
    %c0_13 = arith.constant 0 : index
    %c0_14 = arith.constant 0 : index
    %20 = vector.load %arg7[%c0_13, %c0_14] : memref<512x128xbf16, #tpu.memory_space<vmem>>, vector<512x128xbf16>
    tpu.vector_store %arg7[%c0_13, %c0_14], %19 {strides = array<i32>} : memref<512x128xbf16, #tpu.memory_space<vmem>>, vector<512x128xbf16>,
    return
  }
  func.func @transform_0(%arg0: i32) -> (i32, i32) {
    %c0_i32 = arith.constant 0 : i32
    %c0_i32_0 = arith.constant 0 : i32
    return %arg0, %c0_i32 : i32, i32
  }
  func.func @transform_1(%arg0: i32) -> (i32, i32) {
    %c0_i32 = arith.constant 0 : i32
    %c0_i32_0 = arith.constant 0 : i32
    return %arg0, %c0_i32 : i32, i32
  }
  func.func @transform_2(%arg0: i32) -> (i32, i32) {
    %c0_i32 = arith.constant 0 : i32
    %c0_i32_0 = arith.constant 0 : i32
    %c0_i32_1 = arith.constant 0 : i32
    return %c0_i32, %c0_i32_0 : i32, i32
  }
  func.func @transform_3(%arg0: i32) -> (i32, i32) {
    %c0_i32 = arith.constant 0 : i32
    %c0_i32_0 = arith.constant 0 : i32
    %c0_i32_1 = arith.constant 0 : i32
    return %c0_i32, %c0_i32_0 : i32, i32
  }
  func.func @transform_4(%arg0: i32) -> (i32, i32) {
    %c0_i32 = arith.constant 0 : i32
    %c0_i32_0 = arith.constant 0 : i32
    %c0_i32_1 = arith.constant 0 : i32
    return %c0_i32, %c0_i32_0 : i32, i32
  }
  func.func @transform_5(%arg0: i32) -> (i32, i32) {
    %c0_i32 = arith.constant 0 : i32
    %c0_i32_0 = arith.constant 0 : i32
    %c0_i32_1 = arith.constant 0 : i32
    return %c0_i32, %c0_i32_0 : i32, i32
  }
  func.func @transform_6(%arg0: i32) -> (i32, i32) {
    %c0_i32 = arith.constant 0 : i32
    %c0_i32_0 = arith.constant 0 : i32
    return %arg0, %c0_i32 : i32, i32
  }
}

</mosaic_0001>

<bundles_post_ra>
// kernel: c3_forward.5
= control target key start
LH: loop header
LB: loop body
LE: loop exit
PB: predicated region body
PF: predicated region fallthrough
CT: control target
= control target key end

     0   :  { %s4826_s1 = inlined_call_operand.vmem [shape: bf16[128,128], index: 1, kind: input, shape index: {}]   ;;  %s4827_s2 = inlined_call_operand.vmem [shape: f32[1,128], index: 2, kind: input, shape index: {}]   ;;  %s4828_s3 = inlined_call_operand.vmem [shape: f32[1,128], index: 3, kind: input, shape index: {}]   ;;  %s4829_s0 = inlined_call_operand.vmem [shape: bf16[512,128], index: 0, kind: input, shape index: {}]   ;;  %s4830_s4 = inlined_call_operand.vmem [shape: bf16[512,128], index: 4, kind: output, shape index: {}]  }
   0x1   :  { %v2317_v0 = vld [vmem:[%s4826_s1 + $0x38] sm:$0xff]  ;;  %v2316_v1 = vld [vmem:[%s4826_s1 + $0x30] sm:$0xff]  ;;  %v2315_v2 = vld [vmem:[%s4826_s1 + $0x28] sm:$0xff] }
   0x2   :  { %337 = vmatpush.bf16.msra.mxu0 %v2317_v0  ;;  %2509 = vmatpush.bf16.msra.mxu1 %v2317_v0  ;;  %v2314_v3 = vld [vmem:[%s4826_s1 + $0x20] sm:$0xff]  ;;  %v2313_v4 = vld [vmem:[%s4826_s1 + $0x18] sm:$0xff]  ;;  %v2312_v5 = vld [vmem:[%s4826_s1 + $0x10] sm:$0xff] }
   0x3   :  { %2510 = vmatpush.bf16.msra.mxu2 %v2317_v0  ;;  %2511 = vmatpush.bf16.msra.mxu3 %v2317_v0  ;;  %v2311_v6 = vld [vmem:[%s4826_s1 + $0x8] sm:$0xff]  ;;  %v2310_v7 = vld [vmem:[%s4826_s1] sm:$0xff]  ;;  %v2280_v16 = vld [vmem:[%s4829_s0 + $0x10] sm:$0xff] }
   0x4   :  { %v2278_v8 = vld [vmem:[%s4829_s0] sm:$0xff]  ;;  %v2279_v12 = vld [vmem:[%s4829_s0 + $0x8] sm:$0xff]  ;;  %v2288_v17 = vld [vmem:[%s4829_s0 + $0x50] sm:$0xff] }
   0x5   :  { %v2286_v9 = vld [vmem:[%s4829_s0 + $0x40] sm:$0xff]  ;;  %v2287_v13 = vld [vmem:[%s4829_s0 + $0x48] sm:$0xff]  ;;  %v2296_v18 = vld [vmem:[%s4829_s0 + $0x90] sm:$0xff] }
   0x6   :  { %338 = vmatpush.bf16.msra.mxu0 %v2316_v1  ;;  %2512 = vmatpush.bf16.msra.mxu1 %v2316_v1  ;;  %v2294_v10 = vld [vmem:[%s4829_s0 + $0x80] sm:$0xff]  ;;  %v2295_v14 = vld [vmem:[%s4829_s0 + $0x88] sm:$0xff]  ;;  %v2304_v19 = vld [vmem:[%s4829_s0 + $0xd0] sm:$0xff] }
   0x7   :  { %2513 = vmatpush.bf16.msra.mxu2 %v2316_v1  ;;  %2514 = vmatpush.bf16.msra.mxu3 %v2316_v1  ;;  %v2302_v11 = vld [vmem:[%s4829_s0 + $0xc0] sm:$0xff]  ;;  %v2303_v15 = vld [vmem:[%s4829_s0 + $0xc8] sm:$0xff]  ;;  %v2281_v20 = vld [vmem:[%s4829_s0 + $0x18] sm:$0xff] }
   0x8   :  { %v2289_v21 = vld [vmem:[%s4829_s0 + $0x58] sm:$0xff]  ;;  %v2282_v24 = vld [vmem:[%s4829_s0 + $0x20] sm:$0xff]  ;;  %v2283_v28 = vld [vmem:[%s4829_s0 + $0x28] sm:$0xff] }
   0x9   :  { %v2297_v22 = vld [vmem:[%s4829_s0 + $0x98] sm:$0xff]  ;;  %v2290_v25 = vld [vmem:[%s4829_s0 + $0x60] sm:$0xff]  ;;  %v2291_v29 = vld [vmem:[%s4829_s0 + $0x68] sm:$0xff] }
   0xa   :  { %339 = vmatpush.bf16.msra.mxu0 %v2315_v2  ;;  %2515 = vmatpush.bf16.msra.mxu1 %v2315_v2  ;;  %v2305_v23 = vld [vmem:[%s4829_s0 + $0xd8] sm:$0xff]  ;;  %v2298_v26 = vld [vmem:[%s4829_s0 + $0xa0] sm:$0xff]  ;;  %v2299_v30 = vld [vmem:[%s4829_s0 + $0xa8] sm:$0xff] }
   0xb   :  { %2516 = vmatpush.bf16.msra.mxu2 %v2315_v2  ;;  %2517 = vmatpush.bf16.msra.mxu3 %v2315_v2  ;;  %v2306_v27 = vld [vmem:[%s4829_s0 + $0xe0] sm:$0xff]  ;;  %v2307_v31 = vld [vmem:[%s4829_s0 + $0xe8] sm:$0xff]  ;;  %v2284_v32 = vld [vmem:[%s4829_s0 + $0x30] sm:$0xff] }
   0xc   :  { %v2292_v33 = vld [vmem:[%s4829_s0 + $0x70] sm:$0xff]  ;;  %v2285_v36 = vld [vmem:[%s4829_s0 + $0x38] sm:$0xff]  ;;  %v2943_v40 = vld [vmem:[%s4827_s2] ss:$0 sm:$0xff] }
   0xd   :  { %v2300_v34 = vld [vmem:[%s4829_s0 + $0xb0] sm:$0xff]  ;;  %v2293_v37 = vld [vmem:[%s4829_s0 + $0x78] sm:$0xff]  ;;  %v2948_v41 = vld [vmem:[%s4828_s3] ss:$0 sm:$0xff] }
   0xe   :  { %340 = vmatpush.bf16.msra.mxu0 %v2314_v3  ;;  %2518 = vmatpush.bf16.msra.mxu1 %v2314_v3  ;;  %v2308_v35 = vld [vmem:[%s4829_s0 + $0xf0] sm:$0xff]  ;;  %v2301_v38 = vld [vmem:[%s4829_s0 + $0xb8] sm:$0xff] }
   0xf   :  { %2519 = vmatpush.bf16.msra.mxu2 %v2314_v3  ;;  %2520 = vmatpush.bf16.msra.mxu3 %v2314_v3  ;;  %v2309_v39 = vld [vmem:[%s4829_s0 + $0xf8] sm:$0xff] }
  0x12   :  { %341 = vmatpush.bf16.msra.mxu0 %v2313_v4  ;;  %2521 = vmatpush.bf16.msra.mxu1 %v2313_v4 }
  0x13   :  { %2522 = vmatpush.bf16.msra.mxu2 %v2313_v4  ;;  %2523 = vmatpush.bf16.msra.mxu3 %v2313_v4 }
  0x16   :  { %342 = vmatpush.bf16.msra.mxu0 %v2312_v5  ;;  %2524 = vmatpush.bf16.msra.mxu1 %v2312_v5 }
  0x17   :  { %2525 = vmatpush.bf16.msra.mxu2 %v2312_v5  ;;  %2526 = vmatpush.bf16.msra.mxu3 %v2312_v5 }
  0x1a   :  { %343 = vmatpush.bf16.msra.mxu0 %v2311_v6  ;;  %2527 = vmatpush.bf16.msra.mxu1 %v2311_v6 }
  0x1b   :  { %2528 = vmatpush.bf16.msra.mxu2 %v2311_v6  ;;  %2529 = vmatpush.bf16.msra.mxu3 %v2311_v6 }
  0x1e   :  { %344 = vmatpush.bf16.msra.mxu0 %v2310_v7  ;;  %2530 = vmatpush.bf16.msra.mxu1 %v2310_v7 }
  0x1f   :  { %2531 = vmatpush.bf16.msra.mxu2 %v2310_v7  ;;  %2532 = vmatpush.bf16.msra.mxu3 %v2310_v7 }
  0x21   :  { %345 = vmatmul.bf16.vlgmr.msra.gmra.mxu0 %v2278_v8  ;;  %385 = vmatmul.bf16.vlgmr.msra.gmra.mxu1 %v2286_v9 }
  0x22   :  { %425 = vmatmul.bf16.vlgmr.msra.gmra.mxu2 %v2294_v10  ;;  %465 = vmatmul.bf16.vlgmr.msra.gmra.mxu3 %v2302_v11 }
  0x31   :  { %350 = vmatmul.bf16.gmra.mxu0 %v2279_v12  ;;  %390 = vmatmul.bf16.gmra.mxu1 %v2287_v13 }
  0x32   :  { %430 = vmatmul.bf16.gmra.mxu2 %v2295_v14  ;;  %470 = vmatmul.bf16.gmra.mxu3 %v2303_v15 }
  0x41   :  { %355 = vmatmul.bf16.gmra.mxu0 %v2280_v16  ;;  %395 = vmatmul.bf16.gmra.mxu1 %v2288_v17 }
  0x42   :  { %435 = vmatmul.bf16.gmra.mxu2 %v2296_v18  ;;  %475 = vmatmul.bf16.gmra.mxu3 %v2304_v19 }
  0x51   :  { %360 = vmatmul.bf16.gmra.mxu0 %v2281_v20  ;;  %400 = vmatmul.bf16.gmra.mxu1 %v2289_v21 }
  0x52   :  { %440 = vmatmul.bf16.gmra.mxu2 %v2297_v22  ;;  %480 = vmatmul.bf16.gmra.mxu3 %v2305_v23 }
  0x61   :  { %365 = vmatmul.bf16.gmra.mxu0 %v2282_v24  ;;  %405 = vmatmul.bf16.gmra.mxu1 %v2290_v25 }
  0x62   :  { %445 = vmatmul.bf16.gmra.mxu2 %v2298_v26  ;;  %485 = vmatmul.bf16.gmra.mxu3 %v2306_v27 }
  0x71   :  { %370 = vmatmul.bf16.gmra.mxu0 %v2283_v28  ;;  %410 = vmatmul.bf16.gmra.mxu1 %v2291_v29 }
  0x72   :  { %450 = vmatmul.bf16.gmra.mxu2 %v2299_v30  ;;  %490 = vmatmul.bf16.gmra.mxu3 %v2307_v31 }
  0x81   :  { %375 = vmatmul.bf16.gmra.mxu0 %v2284_v32  ;;  %415 = vmatmul.bf16.gmra.mxu1 %v2292_v33 }
  0x82   :  { %455 = vmatmul.bf16.gmra.mxu2 %v2300_v34  ;;  %495 = vmatmul.bf16.gmra.mxu3 %v2308_v35 }
  0x91   :  { %380 = vmatmul.bf16.gmra.mxu0 %v2285_v36  ;;  %420 = vmatmul.bf16.gmra.mxu1 %v2293_v37 }
  0x92   :  { %460 = vmatmul.bf16.gmra.mxu2 %v2301_v38  ;;  %500 = vmatmul.bf16.gmra.mxu3 %v2309_v39 }
  0x9e   :  { %v346_v42 = vpop.f32.mrf.mxu0  ;;  %v386_v43 = vpop.f32.mrf.mxu1 }
  0x9f   :  { %v510_v44 = vmul.f32 %v2943_v40, %v346_v42  ;;  %v526_v45 = vmul.f32 %v2943_v40, %v386_v43 }
  0xa1   :  { %v2953_v46 = vadd.f32 %v2948_v41, %v510_v44  ;;  %v2956_v47 = vadd.f32 %v2948_v41, %v526_v45 }
  0xa3   :  { %v2214_v48 = vmul.f32 -1.442695, %v2953_v46  ;;  %v2230_v49 = vmul.f32 -1.442695, %v2956_v47 }
  0xa5   :  { %2535 = vpow2.f32 %v2214_v48  ;;  %v426_v50 = vpop.f32.mrf.mxu2  ;;  %v466_v51 = vpop.f32.mrf.mxu3 }
  0xa6   :  { %2537 = vpow2.f32 %v2230_v49  ;;  %v542_v52 = vmul.f32 %v2943_v40, %v426_v50  ;;  %v558_v53 = vmul.f32 %v2943_v40, %v466_v51  ;;  %v348_v54 = vpop.f32.mrf.mxu0  ;;  %v388_v55 = vpop.f32.mrf.mxu1 }
  0xa7   :  { %v511_v56 = vmul.f32 %v2943_v40, %v348_v54  ;;  %v527_v57 = vmul.f32 %v2943_v40, %v388_v55 }
  0xa8   :  { %v2965_v58 = vadd.f32 %v2948_v41, %v542_v52  ;;  %v2968_v59 = vadd.f32 %v2948_v41, %v558_v53 }
  0xa9   :  { %v2971_v60 = vadd.f32 %v2948_v41, %v511_v56  ;;  %v2974_v61 = vadd.f32 %v2948_v41, %v527_v57 }
  0xaa   :  { %v2246_v62 = vmul.f32 -1.442695, %v2965_v58  ;;  %v2262_v63 = vmul.f32 -1.442695, %v2968_v59 }
  0xab   :  { %v2536_v0 = vpop.eup %2535  ;;  %v2215_v3 = vmul.f32 -1.442695, %v2971_v60  ;;  %v2231_v5 = vmul.f32 -1.442695, %v2974_v61 }
  0xac   :  { %v2538_v1 = vpop.eup %2537  ;;  %v2978_v2 = vadd.f32 1.0, %v2536_v0  ;;  %2539 = vpow2.f32 %v2246_v62 }
  0xad   :  { %v2981_v4 = vadd.f32 1.0, %v2538_v1  ;;  %2541 = vpow2.f32 %v2262_v63  ;;  %v428_v6 = vpop.f32.mrf.mxu2  ;;  %v468_v10 = vpop.f32.mrf.mxu3 }
  0xae   :  { %2543 = vrcp.f32 %v2978_v2  ;;  %v543_v7 = vmul.f32 %v2943_v40, %v428_v6  ;;  %v909_v14 = vand.u32 2147483648, %v2978_v2  ;;  %v907_v18 = vand.u32 2147483647, %v2978_v2  ;;  %v351_v20 = vpop.f32.mrf.mxu0  ;;  %v391_v21 = vpop.f32.mrf.mxu1 }
  0xaf   :  { %2545 = vrcp.f32 %v2981_v4  ;;  %v559_v19 = vmul.f32 %v2943_v40, %v468_v10  ;;  %vm903_vm0 = vweird.f32 %v2978_v2  ;;  %v1149_v24 = vand.u32 2147483648, %v2981_v4 }
  0xb0   :  { %2547 = vpow2.f32 %v2215_v3  ;;  %v2988_v9 = vadd.f32 %v2948_v41, %v543_v7  ;;  %vm1143_vm1 = vweird.f32 %v2981_v4  ;;  %v1147_v28 = vand.u32 2147483647, %v2981_v4 }
  0xb1   :  { %2549 = vpow2.f32 %v2231_v5  ;;  %v910_v29 = vor.u32 1.1754944e-38, %v909_v14  ;;  %v512_v31 = vmul.f32 %v2943_v40, %v351_v20  ;;  %v528_v32 = vmul.f32 %v2943_v40, %v391_v21 }
  0xb2   :  { %v2540_v8 = vpop.eup %2539  ;;  %v2247_v25 = vmul.f32 -1.442695, %v2988_v9  ;;  %vm3015_vm2 = vcmp.eq.f32.partialorder %v907_v18, 8.507059e+37  ;;  %v3024_v37 = vadd.f32 %v2948_v41, %v559_v19  ;;  %v1150_v39 = vor.u32 1.1754944e-38, %v1149_v24 }
  0xb3   :  { %v2542_v11 = vpop.eup %2541  ;;  %v2990_v12 = vadd.f32 1.0, %v2540_v8  ;;  %vm3031_vm4 = vcmp.eq.f32.partialorder %v1147_v28, 8.507059e+37  ;;  %v3042_v51 = vadd.f32 %v2948_v41, %v512_v31  ;;  %v3045_v52 = vadd.f32 %v2948_v41, %v528_v32 }
  0xb4   :  { %v2992_v13 = vpop.eup %2543  ;;  %v2995_v15 = vadd.f32 1.0, %v2542_v11  ;;  %v2263_v55 = vmul.f32 -1.442695, %v3024_v37 }
  0xb5   :  { %v2997_v16 = vpop.eup %2545  ;;  %v899_v17 = vmul.f32 %v2992_v13, %v2978_v2  ;;  %2551 = vrcp.f32 %v2990_v12  ;;  %vm904_vm3 = vweird.f32 %v2992_v13  ;;  %v1389_v45 = vand.u32 2147483648, %v2990_v12 }
  0xb6   :  { %v2548_v22 = vpop.eup %2547  ;;  %v1139_v23 = vmul.f32 %v2997_v16, %v2981_v4  ;;  %2553 = vrcp.f32 %v2995_v15  ;;  %v1629_v48 = vand.u32 2147483648, %v2995_v15  ;;  %v1387_v50 = vand.u32 2147483647, %v2990_v12  ;;  %vm3057_vm6 = vmor %vm903_vm0, %vm904_vm3  ;;  %v353_v56 = vpop.f32.mrf.mxu0 }
  0xb7   :  { %v2550_v26 = vpop.eup %2549  ;;  %v900_v27 = vsub.f32 1.0, %v899_v17  ;;  %v3019_v35 = vadd.f32 1.0, %v2548_v22  ;;  %2555 = vpow2.f32 %v2247_v25  ;;  %vm1144_vm5 = vweird.f32 %v2997_v16 }
  0xb8   :  { %v1140_v30 = vsub.f32 1.0, %v1139_v23  ;;  %v3021_v36 = vadd.f32 1.0, %v2550_v26  ;;  %vm1383_vm7 = vweird.f32 %v2990_v12  ;;  %v1390_v1 = vor.u32 1.1754944e-38, %v1389_v45  ;;  %vm3073_vm8 = vmor %vm1143_vm1, %vm1144_vm5 }
  0xb9   :  { %v901_v33 = vmul.f32 %v2992_v13, %v900_v27  ;;  %2557 = vrcp.f32 %v3019_v35  ;;  %v922_v63 = vand.u32 2147483647, %v3019_v35  ;;  %v1627_v3 = vand.u32 2147483647, %v2995_v15  ;;  %v431_v27 = vpop.f32.mrf.mxu2 }
  0xba   :  { %v1141_v38 = vmul.f32 %v2997_v16, %v1140_v30  ;;  %2559 = vrcp.f32 %v3021_v36  ;;  %v3069_v2 = vor.u32 1.1754944e-38, %v1629_v48  ;;  %vm3079_vm10 = vcmp.eq.f32.partialorder %v1387_v50, 8.507059e+37  ;;  %v471_v48 = vpop.f32.mrf.mxu3 }
  0xbb   :  { %v3028_v42 = vpop.eup %2551  ;;  %v902_v43 = vadd.f32 %v2992_v13, %v901_v33  ;;  %vm918_vm11 = vweird.f32 %v3019_v35  ;;  %v924_v10 = vand.u32 2147483648, %v3019_v35  ;;  %2561 = vpow2.f32 %v2263_v55 }
  0xbc   :  { %v1379_v49 = vmul.f32 %v3028_v42, %v2990_v12  ;;  %v3047_v53 = vpop.eup %2553  ;;  %v1142_v54 = vadd.f32 %v2997_v16, %v1141_v38  ;;  %vm1384_vm9 = vweird.f32 %v3028_v42  ;;  %vm3094_vm12 = vcmp.eq.f32.partialorder %v922_v63, 8.507059e+37 }
  0xbd   :  { %v1619_v62 = vmul.f32 %v3047_v53, %v2995_v15  ;;  %v906_v0 = vsel %vm3057_vm6, %v2992_v13, %v902_v43  ;;  %v2556_v5 = vpop.eup %2555  ;;  %vm1623_vm13 = vweird.f32 %v2995_v15  ;;  %v1164_v22 = vand.u32 2147483648, %v3021_v36  ;;  %vm3112_vm15 = vmor %vm1383_vm7, %vm1384_vm9 }
  0xbe   :  { %v1380_v57 = vsub.f32 1.0, %v1379_v49  ;;  %v1146_v4 = vsel %vm3073_vm8, %v2997_v16, %v1142_v54  ;;  %v3088_v14 = vadd.f32 1.0, %v2556_v5  ;;  %v911_v17 = vsel %vm3015_vm2, %v910_v29, %v906_v0 }
  0xbf   :  { %v2558_v11 = vpop.eup %2557  ;;  %v1620_v13 = vsub.f32 1.0, %v1619_v62  ;;  %v1162_v16 = vand.u32 2147483647, %v3021_v36  ;;  %v2216_v23 = vmul.f32 -1.442695, %v3042_v51  ;;  %v1151_v24 = vsel %vm3031_vm4, %v1150_v39, %v1146_v4 }
  0xc0   :  { %v1381_v7 = vmul.f32 %v3028_v42, %v1380_v57  ;;  %v914_v19 = vmul.f32 %v2558_v11, %v3019_v35  ;;  %v2560_v21 = vpop.eup %2559  ;;  %2563 = vrcp.f32 %v3088_v14  ;;  %vm1158_vm14 = vweird.f32 %v3021_v36 }
  0xc1   :  { %v1154_v26 = vmul.f32 %v2560_v21, %v3021_v36  ;;  %v1858_v28 = vmul.f32 %v911_v17, %v2953_v46  ;;  %v1621_v30 = vmul.f32 %v3047_v53, %v1620_v13  ;;  %vm1624_vm0 = vweird.f32 %v3047_v53  ;;  %v2562_v34 = vpop.eup %2561 }
  0xc2   :  { %v1382_v18 = vadd.f32 %v3028_v42, %v1381_v7  ;;  %v915_v25 = vsub.f32 1.0, %v914_v19  ;;  %v925_v31 = vor.u32 1.1754944e-38, %v924_v10  ;;  %vm919_vm1 = vweird.f32 %v2558_v11  ;;  %vm3155_vm8 = vmor %vm1623_vm13, %vm1624_vm0  ;;  %v433_v19 = vpop.f32.mrf.mxu2 }
  0xc3   :  { %v1155_v46 = vsub.f32 1.0, %v1154_v26  ;;  %v1874_v38 = vmul.f32 %v1151_v24, %v2956_v47  ;;  %vm3122_vm2 = vcmp.eq.f32.partialorder %v1627_v3, 8.507059e+37  ;;  %vm3126_vm3 = vcmp.eq.f32.partialorder %v1162_v16, 8.507059e+37  ;;  %vm920_vm6 = vmor %vm918_vm11, %vm919_vm1 }
  0xc4   :  { %v1386_v32 = vsel %vm3112_vm15, %v3028_v42, %v1382_v18  ;;  %v916_v33 = vmul.f32 %v2558_v11, %v915_v25  ;;  %v1165_v43 = vor.u32 1.1754944e-38, %v1164_v22  ;;  %2565 = vpow2.f32 %v2216_v23  ;;  %v393_v18 = vpop.f32.mrf.mxu1 }
  0xc5   :  { %v1156_v45 = vmul.f32 %v2560_v21, %v1155_v46  ;;  %vm1159_vm4 = vweird.f32 %v2560_v21  ;;  %vm1398_vm5 = vweird.f32 %v3088_v14  ;;  %v3131_v42 = vadd.f32 1.0, %v2562_v34 }
  0xc6   :  { %v917_v44 = vadd.f32 %v2558_v11, %v916_v33  ;;  %v2564_v49 = vpop.eup %2563  ;;  %v1391_v47 = vsel %vm3079_vm10, %v1390_v1, %v1386_v32  ;;  %v1622_v50 = vadd.f32 %v3047_v53, %v1621_v30  ;;  %v2232_v54 = vmul.f32 -1.442695, %v3045_v52  ;;  %vm1160_vm7 = vmor %vm1158_vm14, %vm1159_vm4  ;;  %v473_v33 = vpop.f32.mrf.mxu3 }
  0xc7   :  { %v544_v55 = vmul.f32 %v2943_v40, %v431_v27  ;;  %v1157_v62 = vadd.f32 %v2560_v21, %v1156_v45  ;;  %v1394_v63 = vmul.f32 %v2564_v49, %v3088_v14  ;;  %v1402_v0 = vand.u32 2147483647, %v3088_v14 }
  0xc8   :  { %v921_v57 = vsel %vm920_vm6, %v2558_v11, %v917_v44  ;;  %v1404_v35 = vand.u32 2147483648, %v3088_v14  ;;  %2567 = vrcp.f32 %v3131_v42  ;;  %v560_v3 = vmul.f32 %v2943_v40, %v471_v48 }
  0xc9   :  { %v926_v1 = vsel %vm3094_vm12, %v925_v31, %v921_v57  ;;  %v1161_v7 = vsel %vm1160_vm7, %v2560_v21, %v1157_v62  ;;  %v1395_v8 = vsub.f32 1.0, %v1394_v63  ;;  %v513_v36 = vmul.f32 %v2943_v40, %v353_v56 }
  0xca   :  { %v1859_v6 = vmul.f32 %v926_v1, %v2971_v60  ;;  %v2566_v10 = vpop.eup %2565  ;;  %v1626_v11 = vsel %vm3155_vm8, %v3047_v53, %v1622_v50  ;;  %v1166_v4 = vsel %vm3126_vm3, %v1165_v43, %v1161_v7  ;;  %2569 = vpow2.f32 %v2232_v54 }
  0xcb   :  { %v3167_v15 = vadd.f32 %v2948_v41, %v544_v55  ;;  %v1875_v17 = vmul.f32 %v1166_v4, %v2974_v61  ;;  %v1396_v60 = vmul.f32 %v2564_v49, %v1395_v8  ;;  %vm1399_vm9 = vweird.f32 %v2564_v49 }
  0xcc   :  { %v2321_v13 = vpack.c.bf16 %v1859_v6, %v1858_v28  ;;  %v1890_v20 = vmul.f32 %v1391_v47, %v2965_v58  ;;  %v3171_v21 = vadd.f32 1.0, %v2566_v10  ;;  %v3175_v16 = vadd.f32 %v2948_v41, %v560_v3  ;;  %vm1400_vm10 = vmor %vm1398_vm5, %vm1399_vm9 }
  0xcd   :  { %v2248_v53 = vmul.f32 -1.442695, %v3167_v15  ;;  %v1631_v22 = vsel %vm3122_vm2, %v3069_v2, %v1626_v11  ;;  %v2361_v61 = vpack.c.bf16 %v1875_v17, %v1874_v38  ;;  %v1397_v23 = vadd.f32 %v2564_v49, %v1396_v60 }
  0xce   :  { %2322 = vst [vmem:[%s4830_s4] sm:$0xff] %v2321_v13   ;;  %v3184_v24 = vadd.f32 %v2948_v41, %v513_v36  ;;  %v2568_v58 = vpop.eup %2567  ;;  %v1405_v25 = vor.u32 1.1754944e-38, %v1404_v35  ;;  %2571 = vrcp.f32 %v3171_v21  ;;  %v529_v26 = vmul.f32 %v2943_v40, %v393_v18 }
  0xcf   :  { %v545_v2 = vmul.f32 %v2943_v40, %v433_v19  ;;  %2485 = vst [vmem:[%s4830_s4 + $0x40] sm:$0xff] %v2361_v61   ;;  %v1401_v27 = vsel %vm1400_vm10, %v2564_v49, %v1397_v23  ;;  %vm1403_vm11 = vcmp.eq.f32.partialorder %v1402_v0, 8.507059e+37  ;;  %v1634_v28 = vmul.f32 %v2568_v58, %v3131_v42 }
  0xd0   :  { %2573 = vpow2.f32 %v2248_v53  ;;  %v2570_v29 = vpop.eup %2569  ;;  %v1406_v30 = vsel %vm1403_vm11, %v1405_v25, %v1401_v27  ;;  %v1642_v14 = vand.u32 2147483647, %v3131_v42  ;;  %v1644_v31 = vand.u32 2147483648, %v3131_v42 }
  0xd1   :  { %v2264_v32 = vmul.f32 -1.442695, %v3175_v16  ;;  %v1891_v46 = vmul.f32 %v1406_v30, %v2988_v9  ;;  %v1635_v34 = vsub.f32 1.0, %v1634_v28  ;;  %v3199_v38 = vadd.f32 1.0, %v2570_v29 }
  0xd2   :  { %v2217_v12 = vmul.f32 -1.442695, %v3184_v24  ;;  %vm1639_vm12 = vweird.f32 %v2568_v58  ;;  %v3203_v39 = vadd.f32 %v2948_v41, %v529_v26  ;;  %v3206_v43 = vadd.f32 %v2948_v41, %v545_v2 }
  0xd3   :  { %2575 = vpow2.f32 %v2264_v32  ;;  %v2401_v44 = vpack.c.bf16 %v1891_v46, %v1890_v20  ;;  %v1636_v45 = vmul.f32 %v2568_v58, %v1635_v34  ;;  %v561_v48 = vmul.f32 %v2943_v40, %v473_v33 }
  0xd4   :  { %2577 = vrcp.f32 %v3199_v38  ;;  %v3210_v9 = vpop.eup %2571  ;;  %v2233_v49 = vmul.f32 -1.442695, %v3203_v39  ;;  %v1906_v50 = vmul.f32 %v1631_v22, %v2968_v59  ;;  %vm1638_vm13 = vweird.f32 %v3131_v42 }
  0xd5   :  { %2579 = vpow2.f32 %v2217_v12  ;;  %2493 = vst [vmem:[%s4830_s4 + $0x80] sm:$0xff] %v2401_v44   ;;  %v1637_v54 = vadd.f32 %v2568_v58, %v1636_v45  ;;  %v929_v55 = vmul.f32 %v3210_v9, %v3171_v21  ;;  %vm1640_vm14 = vmor %vm1638_vm13, %vm1639_vm12  ;;  %v1645_v56 = vor.u32 1.1754944e-38, %v1644_v31 }
  0xd6   :  { %v2574_v47 = vpop.eup %2573  ;;  %2581 = vpow2.f32 %v2233_v49  ;;  %v2249_v62 = vmul.f32 -1.442695, %v3206_v43  ;;  %vm1643_vm15 = vcmp.eq.f32.partialorder %v1642_v14, 8.507059e+37  ;;  %v3225_v0 = vadd.f32 %v2948_v41, %v561_v48 }
  0xd7   :  { %v3221_v57 = vadd.f32 1.0, %v2574_v47  ;;  %v1641_v63 = vsel %vm1640_vm14, %v2568_v58, %v1637_v54  ;;  %v930_v59 = vsub.f32 1.0, %v929_v55  ;;  %vm933_vm0 = vweird.f32 %v3171_v21 }
  0xd8   :  { %v1646_v35 = vsel %vm1643_vm15, %v1645_v56, %v1641_v63  ;;  %v937_v42 = vand.u32 2147483647, %v3171_v21  ;;  %v939_v7 = vand.u32 2147483648, %v3171_v21  ;;  %v1177_v11 = vand.u32 2147483647, %v3199_v38 }
  0xd9   :  { %v2576_v1 = vpop.eup %2575  ;;  %2583 = vrcp.f32 %v3221_v57  ;;  %v1907_v5 = vmul.f32 %v1646_v35, %v3024_v37  ;;  %v931_v6 = vmul.f32 %v3210_v9, %v930_v59  ;;  %v2265_v4 = vmul.f32 -1.442695, %v3225_v0 }
  0xda   :  { %v3230_v3 = vpop.eup %2577  ;;  %v3235_v8 = vadd.f32 1.0, %v2576_v1  ;;  %2585 = vpow2.f32 %v2249_v62  ;;  %vm934_vm1 = vweird.f32 %v3210_v9  ;;  %vm3244_vm2 = vcmp.eq.f32.partialorder %v937_v42, 8.507059e+37 }
  0xdb   :  { %v2580_v36 = vpop.eup %2579  ;;  %v1169_v10 = vmul.f32 %v3230_v3, %v3199_v38  ;;  %v2441_v13 = vpack.c.bf16 %v1907_v5, %v1906_v50  ;;  %v932_v17 = vadd.f32 %v3210_v9, %v931_v6  ;;  %v1179_v19 = vand.u32 2147483648, %v3199_v38  ;;  %vm3260_vm3 = vmor %vm933_vm0, %vm934_vm1  ;;  %v356_v5 = vpop.f32.mrf.mxu0 }
  0xdc   :  { %2587 = vrcp.f32 %v3235_v8  ;;  %v2582_v37 = vpop.eup %2581  ;;  %v1417_v20 = vand.u32 2147483647, %v3221_v57  ;;  %v1419_v53 = vand.u32 2147483648, %v3221_v57  ;;  %v3254_v22 = vadd.f32 1.0, %v2580_v36  ;;  %v396_v6 = vpop.f32.mrf.mxu1 }
  0xdd   :  { %v1170_v18 = vsub.f32 1.0, %v1169_v10  ;;  %2501 = vst [vmem:[%s4830_s4 + $0xc0] sm:$0xff] %v2441_v13   ;;  %v3256_v61 = vadd.f32 1.0, %v2582_v37  ;;  %2589 = vpow2.f32 %v2265_v4  ;;  %v940_v25 = vor.u32 1.1754944e-38, %v939_v7 }
  0xde   :  { %vm1173_vm4 = vweird.f32 %v3199_v38  ;;  %vm3266_vm5 = vcmp.eq.f32.partialorder %v1177_v11, 8.507059e+37  ;;  %v936_v27 = vsel %vm3260_vm3, %v3210_v9, %v932_v17  ;;  %vm1174_vm6 = vweird.f32 %v3230_v3  ;;  %v436_v11 = vpop.f32.mrf.mxu2 }
  0xdf   :  { %v2584_v23 = vpop.eup %2583  ;;  %v1171_v26 = vmul.f32 %v3230_v3, %v1170_v18  ;;  %2591 = vrcp.f32 %v3254_v22  ;;  %v1180_v30 = vor.u32 1.1754944e-38, %v1179_v19  ;;  %vm1413_vm7 = vweird.f32 %v3221_v57  ;;  %vm3290_vm9 = vmor %vm1173_vm4, %vm1174_vm6 }
  0xe0   :  { %v1409_v21 = vmul.f32 %v2584_v23, %v3221_v57  ;;  %v2586_v28 = vpop.eup %2585  ;;  %v1659_v14 = vand.u32 2147483648, %v3235_v8  ;;  %vm3281_vm8 = vcmp.eq.f32.partialorder %v1417_v20, 8.507059e+37  ;;  %v1420_v46 = vor.u32 1.1754944e-38, %v1419_v53 }
  0xe1   :  { %v1172_v29 = vadd.f32 %v3230_v3, %v1171_v26  ;;  %2593 = vrcp.f32 %v3256_v61  ;;  %v941_v34 = vsel %vm3244_vm2, %v940_v25, %v936_v27  ;;  %vm1653_vm10 = vweird.f32 %v3235_v8 }
  0xe2   :  { %v3279_v31 = vpop.eup %2587  ;;  %v1410_v32 = vsub.f32 1.0, %v1409_v21  ;;  %v1657_v45 = vand.u32 2147483647, %v3235_v8  ;;  %v952_v48 = vand.u32 2147483647, %v3254_v22  ;;  %vm1414_vm11 = vweird.f32 %v2584_v23 }
  0xe3   :  { %v1649_v44 = vmul.f32 %v3279_v31, %v3235_v8  ;;  %v2590_v9 = vpop.eup %2589  ;;  %v1176_v49 = vsel %vm3290_vm9, %v3230_v3, %v1172_v29  ;;  %v954_v38 = vand.u32 2147483648, %v3254_v22  ;;  %v3303_v54 = vor.u32 1.1754944e-38, %v1659_v14  ;;  %vm1415_vm14 = vmor %vm1413_vm7, %vm1414_vm11 }
  0xe4   :  { %v1411_v47 = vmul.f32 %v2584_v23, %v1410_v32  ;;  %v1192_v55 = vand.u32 2147483647, %v3256_v61  ;;  %v3306_v56 = vadd.f32 1.0, %v2586_v28  ;;  %v3309_v63 = vmul.f32 %v941_v34, %v3042_v51 }
  0xe5   :  { %v1650_v50 = vsub.f32 1.0, %v1649_v44  ;;  %v2592_v62 = vpop.eup %2591  ;;  %vm1654_vm12 = vweird.f32 %v3279_v31  ;;  %vm948_vm13 = vweird.f32 %v3254_v22  ;;  %v1181_v1 = vsel %vm3266_vm5, %v1180_v30, %v1176_v49  ;;  %v476_v44 = vpop.f32.mrf.mxu3 }
  0xe6   :  { %v1412_v59 = vadd.f32 %v2584_v23, %v1411_v47  ;;  %v944_v42 = vmul.f32 %v2592_v62, %v3254_v22  ;;  %vm3319_vm15 = vcmp.eq.f32.partialorder %v952_v48, 8.507059e+37  ;;  %vm1188_vm0 = vweird.f32 %v3256_v61  ;;  %vm3351_vm3 = vmor %vm1653_vm10, %vm1654_vm12 }
  0xe7   :  { %v1651_v35 = vmul.f32 %v3279_v31, %v1650_v50  ;;  %v3324_v51 = vadd.f32 1.0, %v2590_v9  ;;  %v2594_v7 = vpop.eup %2593  ;;  %v955_v10 = vor.u32 1.1754944e-38, %v954_v38  ;;  %v1194_v57 = vand.u32 2147483648, %v3256_v61 }
  0xe8   :  { %v1416_v36 = vsel %vm1415_vm14, %v2584_v23, %v1412_v59  ;;  %2595 = vrcp.f32 %v3306_v56  ;;  %v945_v17 = vsub.f32 1.0, %v944_v42  ;;  %v1184_v37 = vmul.f32 %v2594_v7, %v3256_v61 }
  0xe9   :  { %v1421_v4 = vsel %vm3281_vm8, %v1420_v46, %v1416_v36  ;;  %v3331_v13 = vadd.f32 %v3279_v31, %v1651_v35  ;;  %vm3334_vm1 = vcmp.eq.f32.partialorder %v1192_v55, 8.507059e+37  ;;  %vm949_vm2 = vweird.f32 %v2592_v62  ;;  %v438_v35 = vpop.f32.mrf.mxu2 }
  0xea   :  { %v1434_v18 = vand.u32 2147483648, %v3306_v56  ;;  %v514_v19 = vmul.f32 %v2943_v40, %v356_v5  ;;  %v530_v20 = vmul.f32 %v2943_v40, %v396_v6  ;;  %v946_v53 = vmul.f32 %v2592_v62, %v945_v17  ;;  %vm950_vm7 = vmor %vm948_vm13, %vm949_vm2 }
  0xeb   :  { %v1185_v23 = vsub.f32 1.0, %v1184_v37  ;;  %v1432_v58 = vand.u32 2147483647, %v3306_v56  ;;  %2597 = vrcp.f32 %v3324_v51  ;;  %v1876_v25 = vmul.f32 %v1181_v1, %v3045_v52  ;;  %v398_v1 = vpop.f32.mrf.mxu1 }
  0xec   :  { %v3345_v26 = vmul.f32 %v1421_v4, %v3167_v15  ;;  %vm1189_vm4 = vweird.f32 %v2594_v7  ;;  %v1195_v27 = vor.u32 1.1754944e-38, %v1194_v57  ;;  %v1656_v21 = vsel %vm3351_vm3, %v3279_v31, %v3331_v13 }
  0xed   :  { %v947_v28 = vadd.f32 %v2592_v62, %v946_v53  ;;  %v1186_v52 = vmul.f32 %v2594_v7, %v1185_v23  ;;  %vm1428_vm5 = vweird.f32 %v3306_v56  ;;  %v1435_v15 = vor.u32 1.1754944e-38, %v1434_v18  ;;  %vm1190_vm9 = vmor %vm1188_vm0, %vm1189_vm4  ;;  %v478_v2 = vpop.f32.mrf.mxu3 }
  0xee   :  { %v2596_v29 = vpop.eup %2595  ;;  %vm3360_vm6 = vcmp.eq.f32.partialorder %v1657_v45, 8.507059e+37  ;;  %v1672_v8 = vand.u32 2147483647, %v3324_v51  ;;  %v3369_v14 = vadd.f32 %v2948_v41, %v514_v19  ;;  %v3372_v31 = vadd.f32 %v2948_v41, %v530_v20 }
  0xef   :  { %v546_v32 = vmul.f32 %v2943_v40, %v436_v11  ;;  %v951_v33 = vsel %vm950_vm7, %v2592_v62, %v947_v28  ;;  %v1187_v46 = vadd.f32 %v2594_v7, %v1186_v52  ;;  %v1424_v34 = vmul.f32 %v2596_v29, %v3306_v56  ;;  %v358_v62 = vpop.f32.mrf.mxu0 }
  0xf0   :  { %vm3376_vm8 = vcmp.eq.f32.partialorder %v1432_v58, 8.507059e+37  ;;  %v1674_v22 = vand.u32 2147483648, %v3324_v51  ;;  %v956_v45 = vsel %vm3319_vm15, %v955_v10, %v951_v33  ;;  %vm1429_vm10 = vweird.f32 %v2596_v29 }
  0xf1   :  { %v2218_v48 = vmul.f32 -1.442695, %v3369_v14  ;;  %v2234_v9 = vmul.f32 -1.442695, %v3372_v31  ;;  %v2598_v49 = vpop.eup %2597  ;;  %v1861_v47 = vmul.f32 %v956_v45, %v3184_v24  ;;  %v1191_v38 = vsel %vm1190_vm9, %v2594_v7, %v1187_v46  ;;  %vm1430_vm12 = vmor %vm1428_vm5, %vm1429_vm10 }
  0xf2   :  { %v1425_v50 = vsub.f32 1.0, %v1424_v34  ;;  %v3390_v55 = vadd.f32 %v2948_v41, %v546_v32  ;;  %v1196_v59 = vsel %vm3334_vm1, %v1195_v27, %v1191_v38  ;;  %v1664_v61 = vmul.f32 %v2598_v49, %v3324_v51 }
  0xf3   :  { %vm1669_vm11 = vweird.f32 %v2598_v49  ;;  %2599 = vpow2.f32 %v2218_v48  ;;  %v2326_v42 = vpack.c.bf16 %v1861_v47, %v3309_v63  ;;  %v1877_v3 = vmul.f32 %v1196_v59, %v3203_v39 }
  0xf4   :  { %v1426_v24 = vmul.f32 %v2596_v29, %v1425_v50  ;;  %2601 = vpow2.f32 %v2234_v9  ;;  %v1665_v5 = vsub.f32 1.0, %v1664_v61  ;;  %v2250_v6 = vmul.f32 -1.442695, %v3390_v55 }
  0xf5   :  { %v562_v7 = vmul.f32 %v2943_v40, %v476_v44  ;;  %v515_v36 = vmul.f32 %v2943_v40, %v358_v62  ;;  %2478 = vst [vmem:[%s4830_s4 + $0x8] sm:$0xff] %v2326_v42   ;;  %v2366_v10 = vpack.c.bf16 %v1877_v3, %v1876_v25  ;;  %v531_v11 = vmul.f32 %v2943_v40, %v398_v1  ;;  %v401_v62 = vpop.f32.mrf.mxu1 }
  0xf6   :  { %v1427_v57 = vadd.f32 %v2596_v29, %v1426_v24  ;;  %v547_v63 = vmul.f32 %v2943_v40, %v438_v35  ;;  %v1666_v39 = vmul.f32 %v2598_v49, %v1665_v5  ;;  %2603 = vpow2.f32 %v2250_v6 }
  0xf7   :  { %v3409_v4 = vadd.f32 %v2948_v41, %v562_v7  ;;  %v3412_v13 = vadd.f32 %v2948_v41, %v515_v36  ;;  %v1661_v17 = vsel %vm3360_vm6, %v3303_v54, %v1656_v21  ;;  %2486 = vst [vmem:[%s4830_s4 + $0x48] sm:$0xff] %v2366_v10   ;;  %vm1668_vm13 = vweird.f32 %v3324_v51 }
  0xf8   :  { %v1431_v37 = vsel %vm1430_vm12, %v2596_v29, %v1427_v57  ;;  %vm3421_vm14 = vcmp.eq.f32.partialorder %v1672_v8, 8.507059e+37  ;;  %v1667_v19 = vadd.f32 %v2598_v49, %v1666_v39  ;;  %v3429_v54 = vadd.f32 %v2948_v41, %v531_v11  ;;  %vm1670_vm15 = vmor %vm1668_vm13, %vm1669_vm11 }
  0xf9   :  { %v2600_v60 = vpop.eup %2599  ;;  %v1436_v18 = vsel %vm3376_vm8, %v1435_v15, %v1431_v37  ;;  %v2266_v20 = vmul.f32 -1.442695, %v3409_v4  ;;  %v1675_v51 = vor.u32 1.1754944e-38, %v1674_v22  ;;  %v3436_v25 = vadd.f32 %v2948_v41, %v547_v63 }
  0xfa   :  { %v2602_v53 = vpop.eup %2601  ;;  %v1893_v23 = vmul.f32 %v1436_v18, %v3206_v43  ;;  %v3433_v58 = vadd.f32 1.0, %v2600_v60  ;;  %v1671_v27 = vsel %vm1670_vm15, %v2598_v49, %v1667_v19  ;;  %v2219_v28 = vmul.f32 -1.442695, %v3412_v13  ;;  %v361_v49 = vpop.f32.mrf.mxu0 }
  0xfb   :  { %v3438_v21 = vadd.f32 1.0, %v2602_v53  ;;  %2605 = vpow2.f32 %v2266_v20  ;;  %v1908_v52 = vmul.f32 %v1661_v17, %v3175_v16  ;;  %v1676_v43 = vsel %vm3421_vm14, %v1675_v51, %v1671_v27 }
  0xfc   :  { %v2406_v15 = vpack.c.bf16 %v1893_v23, %v3345_v26  ;;  %2607 = vrcp.f32 %v3433_v58  ;;  %v2604_v29 = vpop.eup %2603  ;;  %v1909_v30 = vmul.f32 %v1676_v43, %v3225_v0  ;;  %v2235_v8 = vmul.f32 -1.442695, %v3429_v54 }
  0xfd   :  { %2609 = vrcp.f32 %v3438_v21  ;;  %v563_v32 = vmul.f32 %v2943_v40, %v478_v2  ;;  %v3453_v16 = vadd.f32 1.0, %v2604_v29  ;;  %v2251_v33 = vmul.f32 -1.442695, %v3436_v25 }
  0xfe   :  { %2494 = vst [vmem:[%s4830_s4 + $0x88] sm:$0xff] %v2406_v15   ;;  %v2446_v26 = vpack.c.bf16 %v1909_v30, %v1908_v52  ;;  %2611 = vpow2.f32 %v2219_v28  ;;  %v969_v0 = vand.u32 2147483648, %v3433_v58  ;;  %v967_v22 = vand.u32 2147483647, %v3433_v58  ;;  %v3643_v30 = vld [vmem:[%s4828_s3] ss:$0 sm:$0xff] }
  0xff   :  { %2613 = vrcp.f32 %v3453_v16  ;;  %v3462_v34 = vadd.f32 %v2948_v41, %v563_v32  ;;  %v1209_v44 = vand.u32 2147483648, %v3438_v21  ;;  %vm963_vm0 = vweird.f32 %v3433_v58 }
 0x100   :  { %2502 = vst [vmem:[%s4830_s4 + $0xc8] sm:$0xff] %v2446_v26   ;;  %2615 = vpow2.f32 %v2235_v8  ;;  %vm1203_vm1 = vweird.f32 %v3438_v21  ;;  %v1207_v38 = vand.u32 2147483647, %v3438_v21  ;;  %v1449_v50 = vand.u32 2147483648, %v3453_v16 }
 0x101   :  { %v2606_v46 = vpop.eup %2605  ;;  %2617 = vpow2.f32 %v2251_v33  ;;  %v970_v1 = vor.u32 1.1754944e-38, %v969_v0  ;;  %v1447_v35 = vand.u32 2147483647, %v3453_v16  ;;  %v2267_v42 = vmul.f32 -1.442695, %v3462_v34 }
 0x102   :  { %v3464_v12 = vpop.eup %2607  ;;  %v3468_v45 = vadd.f32 1.0, %v2606_v46  ;;  %vm3485_vm2 = vcmp.eq.f32.partialorder %v967_v22, 8.507059e+37  ;;  %v1210_v6 = vor.u32 1.1754944e-38, %v1209_v44  ;;  %v516_v36 = vmul.f32 %v2943_v40, %v361_v49 }
 0x103   :  { %v3470_v48 = vpop.eup %2609  ;;  %v959_v9 = vmul.f32 %v3464_v12, %v3433_v58  ;;  %vm1443_vm3 = vweird.f32 %v3453_v16  ;;  %v532_v63 = vmul.f32 %v2943_v40, %v401_v62  ;;  %vm964_vm4 = vweird.f32 %v3464_v12 }
 0x104   :  { %v1199_v47 = vmul.f32 %v3470_v48, %v3438_v21  ;;  %2619 = vrcp.f32 %v3468_v45  ;;  %v2612_v59 = vpop.eup %2611  ;;  %vm3499_vm5 = vcmp.eq.f32.partialorder %v1207_v38, 8.507059e+37  ;;  %v1450_v37 = vor.u32 1.1754944e-38, %v1449_v50  ;;  %vm3523_vm8 = vmor %vm963_vm0, %vm964_vm4 }
 0x105   :  { %v960_v61 = vsub.f32 1.0, %v959_v9  ;;  %v3483_v3 = vpop.eup %2613  ;;  %v3489_v7 = vadd.f32 1.0, %v2612_v59  ;;  %vm3505_vm6 = vcmp.eq.f32.partialorder %v1447_v35, 8.507059e+37  ;;  %v1689_v40 = vand.u32 2147483648, %v3468_v45 }
 0x106   :  { %v1200_v5 = vsub.f32 1.0, %v1199_v47  ;;  %v2616_v10 = vpop.eup %2615  ;;  %v1439_v11 = vmul.f32 %v3483_v3, %v3453_v16  ;;  %vm1204_vm7 = vweird.f32 %v3470_v48  ;;  %v3517_v51 = vadd.f32 %v2948_v41, %v516_v36 }
 0x107   :  { %v961_v57 = vmul.f32 %v3464_v12, %v960_v61  ;;  %2621 = vrcp.f32 %v3489_v7  ;;  %v2618_v56 = vpop.eup %2617  ;;  %v3514_v23 = vadd.f32 1.0, %v2616_v10  ;;  %vm1444_vm9 = vweird.f32 %v3483_v3  ;;  %vm3542_vm11 = vmor %vm1203_vm1, %vm1204_vm7 }
 0x108   :  { %v1201_v39 = vmul.f32 %v3470_v48, %v1200_v5  ;;  %v1440_v18 = vsub.f32 1.0, %v1439_v11  ;;  %2623 = vpow2.f32 %v2267_v42  ;;  %vm1683_vm10 = vweird.f32 %v3468_v45  ;;  %vm3557_vm12 = vmor %vm1443_vm3, %vm1444_vm9 }
 0x109   :  { %v962_v60 = vadd.f32 %v3464_v12, %v961_v57  ;;  %v1687_v52 = vand.u32 2147483647, %v3468_v45  ;;  %v982_v58 = vand.u32 2147483647, %v3489_v7  ;;  %v984_v43 = vand.u32 2147483648, %v3489_v7 }
 0x10a   :  { %v3510_v20 = vpop.eup %2619  ;;  %v1202_v53 = vadd.f32 %v3470_v48, %v1201_v39  ;;  %v1441_v27 = vmul.f32 %v3483_v3, %v1440_v18  ;;  %v3538_v29 = vadd.f32 1.0, %v2618_v56  ;;  %v1690_v26 = vor.u32 1.1754944e-38, %v1689_v40 }
 0x10b   :  { %v1679_v28 = vmul.f32 %v3510_v20, %v3468_v45  ;;  %v966_v15 = vsel %vm3523_vm8, %v3464_v12, %v962_v60  ;;  %v3548_v33 = vadd.f32 %v2948_v41, %v532_v63  ;;  %vm978_vm13 = vweird.f32 %v3489_v7  ;;  %v441_v45 = vpop.f32.mrf.mxu2 }
 0x10c   :  { %v1442_v8 = vadd.f32 %v3483_v3, %v1441_v27  ;;  %v1206_v0 = vsel %vm3542_vm11, %v3470_v48, %v1202_v53  ;;  %2625 = vrcp.f32 %v3514_v23  ;;  %v2220_v41 = vmul.f32 -1.442695, %v3517_v51 }
 0x10d   :  { %v1680_v32 = vsub.f32 1.0, %v1679_v28  ;;  %v2622_v46 = vpop.eup %2621  ;;  %v971_v22 = vsel %vm3485_vm2, %v970_v1, %v966_v15  ;;  %vm3570_vm14 = vcmp.eq.f32.partialorder %v1687_v52, 8.507059e+37  ;;  %vm1684_vm15 = vweird.f32 %v3510_v20  ;;  %v481_v52 = vpop.f32.mrf.mxu3 }
 0x10e   :  { %v2624_v12 = vpop.eup %2623  ;;  %v1446_v44 = vsel %vm3557_vm12, %v3483_v3, %v1442_v8  ;;  %v974_v9 = vmul.f32 %v2622_v46, %v3489_v7  ;;  %vm3576_vm0 = vcmp.eq.f32.partialorder %v982_v58, 8.507059e+37  ;;  %v985_v47 = vor.u32 1.1754944e-38, %v984_v43  ;;  %vm3599_vm2 = vmor %vm1683_vm10, %vm1684_vm15  ;;  %v3634_v7 = vld [vmem:[%s4827_s2] ss:$0 sm:$0xff] }
 0x10f   :  { %v1681_v16 = vmul.f32 %v3510_v20, %v1680_v32  ;;  %2627 = vrcp.f32 %v3538_v29  ;;  %v1211_v38 = vsel %vm3499_vm5, %v1210_v6, %v1206_v0  ;;  %v1222_v59 = vand.u32 2147483647, %v3514_v23  ;;  %v363_v32 = vpop.f32.mrf.mxu0 }
 0x110   :  { %v975_v62 = vsub.f32 1.0, %v974_v9  ;;  %v1862_v61 = vmul.f32 %v971_v22, %v3369_v14  ;;  %v1451_v1 = vsel %vm3505_vm6, %v1450_v37, %v1446_v44  ;;  %vm979_vm1 = vweird.f32 %v2622_v46  ;;  %v403_v9 = vpop.f32.mrf.mxu1 }
 0x111   :  { %v1682_v50 = vadd.f32 %v3510_v20, %v1681_v16  ;;  %v3588_v35 = vadd.f32 1.0, %v2624_v12  ;;  %v1224_v3 = vand.u32 2147483648, %v3514_v23  ;;  %2629 = vpow2.f32 %v2220_v41  ;;  %vm980_vm5 = vmor %vm978_vm13, %vm979_vm1 }
 0x112   :  { %v976_v42 = vmul.f32 %v2622_v46, %v975_v62  ;;  %v2236_v24 = vmul.f32 -1.442695, %v3548_v33  ;;  %v2626_v5 = vpop.eup %2625  ;;  %v3593_v6 = vmul.f32 %v1211_v38, %v3372_v31  ;;  %vm1218_vm3 = vweird.f32 %v3514_v23 }
 0x113   :  { %v1462_v36 = vand.u32 2147483647, %v3538_v29  ;;  %2631 = vrcp.f32 %v3588_v35  ;;  %v1686_v10 = vsel %vm3599_vm2, %v3510_v20, %v1682_v50  ;;  %v1214_v57 = vmul.f32 %v2626_v5, %v3514_v23 }
 0x114   :  { %v977_v31 = vadd.f32 %v2622_v46, %v976_v42  ;;  %vm3610_vm4 = vcmp.eq.f32.partialorder %v1222_v59, 8.507059e+37  ;;  %v3615_v39 = vmul.f32 %v1451_v1, %v3390_v55  ;;  %vm1458_vm6 = vweird.f32 %v3538_v29 }
 0x115   :  { %v2628_v63 = vpop.eup %2627  ;;  %v1464_v17 = vand.u32 2147483648, %v3538_v29  ;;  %2633 = vpow2.f32 %v2236_v24  ;;  %v1215_v56 = vsub.f32 1.0, %v1214_v57  ;;  %v1225_v60 = vor.u32 1.1754944e-38, %v1224_v3 }
 0x116   :  { %v981_v37 = vsel %vm980_vm5, %v2622_v46, %v977_v31  ;;  %v1454_v18 = vmul.f32 %v2628_v63, %v3538_v29  ;;  %v1691_v19 = vsel %vm3570_vm14, %v1690_v26, %v1686_v10  ;;  %vm3627_vm7 = vcmp.eq.f32.partialorder %v1462_v36, 8.507059e+37  ;;  %v443_v36 = vpop.f32.mrf.mxu2  ;;  %v483_v31 = vpop.f32.mrf.mxu3 }
 0x117   :  { %v986_v55 = vsel %vm3576_vm0, %v985_v47, %v981_v37  ;;  %v548_v20 = vmul.f32 %v3634_v7, %v441_v45  ;;  %v2630_v53 = vpop.eup %2629  ;;  %v1216_v27 = vmul.f32 %v2626_v5, %v1215_v56  ;;  %vm1219_vm8 = vweird.f32 %v2626_v5 }
 0x118   :  { %v1863_v2 = vmul.f32 %v986_v55, %v3412_v13  ;;  %v1455_v28 = vsub.f32 1.0, %v1454_v18  ;;  %vm1459_vm9 = vweird.f32 %v2628_v63  ;;  %v1465_v58 = vor.u32 1.1754944e-38, %v1464_v17  ;;  %vm1220_vm10 = vmor %vm1218_vm3, %vm1219_vm8  ;;  %v366_v17 = vpop.f32.mrf.mxu0 }
 0x119   :  { %v2632_v15 = vpop.eup %2631  ;;  %v3638_v43 = vadd.f32 1.0, %v2630_v53  ;;  %v3646_v8 = vadd.f32 %v3643_v30, %v548_v20  ;;  %v1217_v13 = vadd.f32 %v2626_v5, %v1216_v27  ;;  %v3650_v41 = vmul.f32 %v1691_v19, %v3409_v4  ;;  %vm1460_vm11 = vmor %vm1458_vm6, %vm1459_vm9 }
 0x11a   :  { %v2331_v26 = vpack.c.bf16 %v1863_v2, %v1862_v61  ;;  %v1456_v46 = vmul.f32 %v2628_v63, %v1455_v28  ;;  %v1694_v0 = vmul.f32 %v2632_v15, %v3588_v35  ;;  %v1702_v12 = vand.u32 2147483647, %v3588_v35  ;;  %v406_v2 = vpop.f32.mrf.mxu1 }
 0x11b   :  { %v2634_v21 = vpop.eup %2633  ;;  %v1704_v22 = vand.u32 2147483648, %v3588_v35  ;;  %2635 = vrcp.f32 %v3638_v43  ;;  %v1221_v44 = vsel %vm1220_vm10, %v2626_v5, %v1217_v13  ;;  %v564_v4 = vmul.f32 %v3634_v7, %v481_v52 }
 0x11c   :  { %2479 = vst [vmem:[%s4830_s4 + $0x10] sm:$0xff] %v2331_v26   ;;  %v1457_v16 = vadd.f32 %v2628_v63, %v1456_v46  ;;  %v1695_v48 = vsub.f32 1.0, %v1694_v0  ;;  %v1226_v23 = vsel %vm3610_vm4, %v1225_v60, %v1221_v44  ;;  %v3667_v49 = vadd.f32 1.0, %v2634_v21 }
 0x11d   :  { %v2252_v47 = vmul.f32 -1.442695, %v3646_v8  ;;  %v517_v38 = vmul.f32 %v3634_v7, %v363_v32  ;;  %v1879_v50 = vmul.f32 %v1226_v23, %v3429_v54  ;;  %vm1699_vm12 = vweird.f32 %v2632_v15 }
 0x11e   :  { %v1461_v62 = vsel %vm1460_vm11, %v2628_v63, %v1457_v16  ;;  %v1696_v59 = vmul.f32 %v2632_v15, %v1695_v48  ;;  %vm1698_vm13 = vweird.f32 %v3588_v35  ;;  %vm3675_vm14 = vcmp.eq.f32.partialorder %v1702_v12, 8.507059e+37 }
 0x11f   :  { %v1466_v61 = vsel %vm3627_vm7, %v1465_v58, %v1461_v62  ;;  %2637 = vrcp.f32 %v3667_v49  ;;  %v2371_v29 = vpack.c.bf16 %v1879_v50, %v3593_v6  ;;  %v533_v54 = vmul.f32 %v3634_v7, %v403_v9  ;;  %vm1700_vm15 = vmor %vm1698_vm13, %vm1699_vm12 }
 0x120   :  { %v1895_v42 = vmul.f32 %v1466_v61, %v3436_v25  ;;  %v1697_v3 = vadd.f32 %v2632_v15, %v1696_v59  ;;  %v1705_v5 = vor.u32 1.1754944e-38, %v1704_v22  ;;  %2639 = vpow2.f32 %v2252_v47 }
 0x121   :  { %v3683_v24 = vpop.eup %2635  ;;  %v3686_v35 = vadd.f32 %v3643_v30, %v564_v4  ;;  %v3689_v14 = vadd.f32 %v3643_v30, %v517_v38  ;;  %2487 = vst [vmem:[%s4830_s4 + $0x50] sm:$0xff] %v2371_v29   ;;  %vm993_vm0 = vweird.f32 %v3638_v43  ;;  %v997_v11 = vand.u32 2147483647, %v3638_v43 }
 0x122   :  { %v2411_v25 = vpack.c.bf16 %v1895_v42, %v3615_v39  ;;  %v1701_v6 = vsel %vm1700_vm15, %v2632_v15, %v1697_v3  ;;  %v989_v10 = vmul.f32 %v3683_v24, %v3638_v43  ;;  %v3708_v56 = vadd.f32 %v3643_v30, %v533_v54 }
 0x123   :  { %v1706_v57 = vsel %vm3675_vm14, %v1705_v5, %v1701_v6  ;;  %v2268_v45 = vmul.f32 -1.442695, %v3686_v35  ;;  %v2221_v63 = vmul.f32 -1.442695, %v3689_v14  ;;  %v549_v60 = vmul.f32 %v3634_v7, %v443_v36 }
 0x124   :  { %2495 = vst [vmem:[%s4830_s4 + $0x90] sm:$0xff] %v2411_v25   ;;  %v1911_v39 = vmul.f32 %v1706_v57, %v3462_v34  ;;  %v990_v37 = vsub.f32 1.0, %v989_v10  ;;  %v999_v19 = vand.u32 2147483648, %v3638_v43  ;;  %vm1233_vm1 = vweird.f32 %v3667_v49 }
 0x125   :  { %v2638_v18 = vpop.eup %2637  ;;  %2641 = vpow2.f32 %v2268_v45  ;;  %v565_v55 = vmul.f32 %v3634_v7, %v483_v31  ;;  %v518_v53 = vmul.f32 %v3634_v7, %v366_v17  ;;  %v2237_v28 = vmul.f32 -1.442695, %v3708_v56  ;;  %v486_v17 = vpop.f32.mrf.mxu3 }
 0x126   :  { %v2451_v40 = vpack.c.bf16 %v1911_v39, %v3650_v41  ;;  %v991_v20 = vmul.f32 %v3683_v24, %v990_v37  ;;  %v1229_v34 = vmul.f32 %v2638_v18, %v3667_v49  ;;  %v2640_v27 = vpop.eup %2639  ;;  %2643 = vpow2.f32 %v2221_v63 }
 0x127   :  { %v3720_v52 = vadd.f32 %v3643_v30, %v549_v60  ;;  %v3723_v15 = vadd.f32 %v3643_v30, %v565_v55  ;;  %vm994_vm2 = vweird.f32 %v3683_v24  ;;  %v3730_v26 = vadd.f32 1.0, %v2640_v27 }
 0x128   :  { %2503 = vst [vmem:[%s4830_s4 + $0xd0] sm:$0xff] %v2451_v40   ;;  %v992_v58 = vadd.f32 %v3683_v24, %v991_v20  ;;  %v1230_v32 = vsub.f32 1.0, %v1229_v34  ;;  %2645 = vpow2.f32 %v2237_v28  ;;  %v534_v0 = vmul.f32 %v3634_v7, %v406_v2  ;;  %vm3739_vm4 = vmor %vm993_vm0, %vm994_vm2 }
 0x129   :  { %v2253_v13 = vmul.f32 -1.442695, %v3720_v52  ;;  %v2269_v46 = vmul.f32 -1.442695, %v3723_v15  ;;  %vm1234_vm3 = vweird.f32 %v2638_v18  ;;  %v1239_v41 = vand.u32 2147483648, %v3667_v49 }
 0x12a   :  { %v1231_v21 = vmul.f32 %v2638_v18, %v1230_v32  ;;  %2647 = vrcp.f32 %v3730_v26  ;;  %v1237_v44 = vand.u32 2147483647, %v3667_v49  ;;  %v3745_v16 = vadd.f32 %v3643_v30, %v518_v53  ;;  %vm1235_vm6 = vmor %vm1233_vm1, %vm1234_vm3 }
 0x12b   :  { %v2642_v12 = vpop.eup %2641  ;;  %2649 = vpow2.f32 %v2253_v13  ;;  %v996_v48 = vsel %vm3739_vm4, %v3683_v24, %v992_v58  ;;  %vm998_vm5 = vcmp.eq.f32.partialorder %v997_v11, 8.507059e+37  ;;  %v1000_v43 = vor.u32 1.1754944e-38, %v999_v19 }
 0x12c   :  { %v1232_v4 = vadd.f32 %v2638_v18, %v1231_v21  ;;  %v3750_v9 = vadd.f32 1.0, %v2642_v12  ;;  %2651 = vpow2.f32 %v2269_v46  ;;  %v2644_v23 = vpop.eup %2643  ;;  %v3756_v47 = vadd.f32 %v3643_v30, %v534_v0 }
 0x12d   :  { %v1240_v50 = vor.u32 1.1754944e-38, %v1239_v41  ;;  %v1479_v62 = vand.u32 2147483648, %v3730_v26  ;;  %v1001_v61 = vsel %vm998_vm5, %v1000_v43, %v996_v48  ;;  %vm1238_vm7 = vcmp.eq.f32.partialorder %v1237_v44, 8.507059e+37 }
 0x12e   :  { %v1236_v38 = vsel %vm1235_vm6, %v2638_v18, %v1232_v4  ;;  %2653 = vrcp.f32 %v3750_v9  ;;  %v2646_v59 = vpop.eup %2645  ;;  %v3760_v1 = vadd.f32 1.0, %v2644_v23  ;;  %v2222_v29 = vmul.f32 -1.442695, %v3745_v16 }
 0x12f   :  { %v1241_v49 = vsel %vm1238_vm7, %v1240_v50, %v1236_v38  ;;  %v1477_v3 = vand.u32 2147483647, %v3730_v26  ;;  %v3766_v54 = vadd.f32 1.0, %v2646_v59  ;;  %vm1473_vm8 = vweird.f32 %v3730_v26 }
 0x130   :  { %v3763_v42 = vpop.eup %2647  ;;  %2655 = vrcp.f32 %v3760_v1  ;;  %v2238_v36 = vmul.f32 -1.442695, %v3756_v47  ;;  %v3774_v6 = vmul.f32 %v1001_v61, %v3517_v51  ;;  %v1480_v10 = vor.u32 1.1754944e-38, %v1479_v62 }
 0x131   :  { %v2650_v24 = vpop.eup %2649  ;;  %v1469_v5 = vmul.f32 %v3763_v42, %v3730_v26  ;;  %v1719_v31 = vand.u32 2147483648, %v3750_v9  ;;  %2657 = vrcp.f32 %v3766_v54  ;;  %v3779_v57 = vmul.f32 %v1241_v49, %v3548_v33 }
 0x132   :  { %v2652_v25 = vpop.eup %2651  ;;  %v1717_v45 = vand.u32 2147483647, %v3750_v9  ;;  %2659 = vpow2.f32 %v2222_v29  ;;  %vm3784_vm9 = vcmp.eq.f32.partialorder %v1477_v3, 8.507059e+37  ;;  %vm1713_vm10 = vweird.f32 %v3750_v9 }
 0x133   :  { %v1470_v11 = vsub.f32 1.0, %v1469_v5  ;;  %v1012_v51 = vand.u32 2147483647, %v3760_v1  ;;  %v1014_v39 = vand.u32 2147483648, %v3760_v1  ;;  %v3791_v37 = vadd.f32 1.0, %v2650_v24 }
 0x134   :  { %v3782_v63 = vpop.eup %2653  ;;  %v3793_v33 = vadd.f32 1.0, %v2652_v25  ;;  %vm1474_vm11 = vweird.f32 %v3763_v42  ;;  %2661 = vpow2.f32 %v2238_v36  ;;  %v1720_v19 = vor.u32 1.1754944e-38, %v1719_v31  ;;  %v446_v25 = vpop.f32.mrf.mxu2 }
 0x135   :  { %v1471_v60 = vmul.f32 %v3763_v42, %v1470_v11  ;;  %v1709_v18 = vmul.f32 %v3782_v63, %v3750_v9  ;;  %v1252_v55 = vand.u32 2147483647, %v3766_v54  ;;  %v1254_v40 = vand.u32 2147483648, %v3766_v54  ;;  %vm3819_vm0 = vmor %vm1473_vm8, %vm1474_vm11 }
 0x136   :  { %2663 = vrcp.f32 %v3791_v37  ;;  %v2656_v20 = vpop.eup %2655  ;;  %vm1008_vm12 = vweird.f32 %v3760_v1  ;;  %vm3805_vm13 = vcmp.eq.f32.partialorder %v1717_v45, 8.507059e+37  ;;  %vm3810_vm14 = vcmp.eq.f32.partialorder %v1012_v51, 8.507059e+37 }
 0x137   :  { %v1472_v34 = vadd.f32 %v3763_v42, %v1471_v60  ;;  %v1710_v53 = vsub.f32 1.0, %v1709_v18  ;;  %2665 = vrcp.f32 %v3793_v33  ;;  %v2658_v2 = vpop.eup %2657  ;;  %v1004_v28 = vmul.f32 %v2656_v20, %v3760_v1 }
 0x138   :  { %v1015_v32 = vor.u32 1.1754944e-38, %v1014_v39  ;;  %vm1248_vm15 = vweird.f32 %v3766_v54  ;;  %v2660_v13 = vpop.eup %2659  ;;  %vm1714_vm1 = vweird.f32 %v3782_v63  ;;  %v1244_v21 = vmul.f32 %v2658_v2, %v3766_v54  ;;  %v368_v54 = vpop.f32.mrf.mxu0 }
 0x139   :  { %v1711_v0 = vmul.f32 %v3782_v63, %v1710_v53  ;;  %v1492_v41 = vand.u32 2147483647, %v3791_v37  ;;  %v1476_v12 = vsel %vm3819_vm0, %v3763_v42, %v1472_v34  ;;  %v1005_v22 = vsub.f32 1.0, %v1004_v28  ;;  %vm3846_vm6 = vmor %vm1713_vm10, %vm1714_vm1 }
 0x13a   :  { %vm3830_vm2 = vcmp.eq.f32.partialorder %v1252_v55, 8.507059e+37  ;;  %v1255_v26 = vor.u32 1.1754944e-38, %v1254_v40  ;;  %v2662_v48 = vpop.eup %2661  ;;  %v1245_v23 = vsub.f32 1.0, %v1244_v21  ;;  %vm1488_vm3 = vweird.f32 %v3791_v37 }
 0x13b   :  { %v1712_v4 = vadd.f32 %v3782_v63, %v1711_v0  ;;  %v1494_v43 = vand.u32 2147483648, %v3791_v37  ;;  %v1006_v50 = vmul.f32 %v2656_v20, %v1005_v22  ;;  %vm1009_vm4 = vweird.f32 %v2656_v20 }
 0x13c   :  { %v2664_v38 = vpop.eup %2663  ;;  %vm1728_vm5 = vweird.f32 %v3793_v33  ;;  %v3838_v62 = vadd.f32 1.0, %v2660_v13  ;;  %v1481_v61 = vsel %vm3784_vm9, %v1480_v10, %v1476_v12  ;;  %v1246_v42 = vmul.f32 %v2658_v2, %v1245_v23  ;;  %vm1010_vm9 = vmor %vm1008_vm12, %vm1009_vm4  ;;  %v448_v44 = vpop.f32.mrf.mxu2 }
 0x13d   :  { %v2666_v59 = vpop.eup %2665  ;;  %vm1249_vm7 = vweird.f32 %v2658_v2  ;;  %v1484_v49 = vmul.f32 %v2664_v38, %v3791_v37  ;;  %vm3851_vm8 = vcmp.eq.f32.partialorder %v1492_v41, 8.507059e+37  ;;  %v1716_v24 = vsel %vm3846_vm6, %v3782_v63, %v1712_v4 }
 0x13e   :  { %v1007_v5 = vadd.f32 %v2656_v20, %v1006_v50  ;;  %v1724_v36 = vmul.f32 %v2666_v59, %v3793_v33  ;;  %v1732_v9 = vand.u32 2147483647, %v3793_v33  ;;  %v1247_v10 = vadd.f32 %v2658_v2, %v1246_v42  ;;  %vm1250_vm10 = vmor %vm1248_vm15, %vm1249_vm7 }
 0x13f   :  { %v1485_v31 = vsub.f32 1.0, %v1484_v49  ;;  %v1734_v11 = vand.u32 2147483648, %v3793_v33  ;;  %v3864_v45 = vadd.f32 1.0, %v2662_v48  ;;  %vm1489_vm11 = vweird.f32 %v2664_v38 }
 0x140   :  { %v1011_v51 = vsel %vm1010_vm9, %v2656_v20, %v1007_v5  ;;  %v1725_v63 = vsub.f32 1.0, %v1724_v36  ;;  %2667 = vrcp.f32 %v3838_v62  ;;  %v1721_v1 = vsel %vm3805_vm13, %v1720_v19, %v1716_v24  ;;  %v408_v19 = vpop.f32.mrf.mxu1  ;;  %vm1490_vm13 = vmor %vm1488_vm3, %vm1489_vm11  ;;  %v371_v36 = vpop.f32.mrf.mxu0 }
 0x141   :  { %v1016_v39 = vsel %vm3810_vm14, %v1015_v32, %v1011_v51  ;;  %v1251_v60 = vsel %vm1250_vm10, %v2658_v2, %v1247_v10  ;;  %v1486_v18 = vmul.f32 %v2664_v38, %v1485_v31  ;;  %vm1729_vm12 = vweird.f32 %v2666_v59 }
 0x142   :  { %v1865_v55 = vmul.f32 %v1016_v39, %v3689_v14  ;;  %v1256_v40 = vsel %vm3830_vm2, %v1255_v26, %v1251_v60  ;;  %v1726_v20 = vmul.f32 %v2666_v59, %v1725_v63  ;;  %v1495_v28 = vor.u32 1.1754944e-38, %v1494_v43  ;;  %vm1730_vm15 = vmor %vm1728_vm5, %vm1729_vm12  ;;  %v488_v43 = vpop.f32.mrf.mxu3 }
 0x143   :  { %v1881_v34 = vmul.f32 %v1256_v40, %v3708_v56  ;;  %v1487_v53 = vadd.f32 %v2664_v38, %v1486_v18  ;;  %2669 = vrcp.f32 %v3864_v45  ;;  %v1896_v27 = vmul.f32 %v1481_v61, %v3646_v8 }
 0x144   :  { %v2336_v2 = vpack.c.bf16 %v1865_v55, %v3774_v6  ;;  %v1727_v14 = vadd.f32 %v2666_v59, %v1726_v20  ;;  %vm1733_vm14 = vcmp.eq.f32.partialorder %v1732_v9, 8.507059e+37  ;;  %v1912_v58 = vmul.f32 %v1721_v1, %v3686_v35 }
 0x145   :  { %v2376_v32 = vpack.c.bf16 %v1881_v34, %v3779_v57  ;;  %v1491_v56 = vsel %vm1490_vm13, %v2664_v38, %v1487_v53  ;;  %v1735_v13 = vor.u32 1.1754944e-38, %v1734_v11  ;;  %vm1023_vm0 = vweird.f32 %v3838_v62 }
 0x146   :  { %v3889_v46 = vpop.eup %2667  ;;  %2480 = vst [vmem:[%s4830_s4 + $0x18] sm:$0xff] %v2336_v2   ;;  %v1496_v8 = vsel %vm3851_vm8, %v1495_v28, %v1491_v56  ;;  %v1731_v6 = vsel %vm1730_vm15, %v2666_v59, %v1727_v14  ;;  %v550_v35 = vmul.f32 %v3634_v7, %v446_v25  ;;  %v566_v57 = vmul.f32 %v3634_v7, %v486_v17 }
 0x147   :  { %2488 = vst [vmem:[%s4830_s4 + $0x58] sm:$0xff] %v2376_v32   ;;  %v1897_v37 = vmul.f32 %v1496_v8, %v3720_v52  ;;  %v1736_v33 = vsel %vm1733_vm14, %v1735_v13, %v1731_v6  ;;  %v1019_v0 = vmul.f32 %v3889_v46, %v3838_v62  ;;  %v1027_v21 = vand.u32 2147483647, %v3838_v62 }
 0x148   :  { %v1913_v41 = vmul.f32 %v1736_v33, %v3723_v15  ;;  %v1029_v12 = vand.u32 2147483648, %v3838_v62  ;;  %vm1263_vm1 = vweird.f32 %v3864_v45  ;;  %v3910_v22 = vadd.f32 %v3643_v30, %v550_v35  ;;  %v411_v10 = vpop.f32.mrf.mxu1  ;;  %v451_v62 = vpop.f32.mrf.mxu2 }
 0x149   :  { %v3912_v26 = vpop.eup %2669  ;;  %v2416_v48 = vpack.c.bf16 %v1897_v37, %v1896_v27  ;;  %v1020_v52 = vsub.f32 1.0, %v1019_v0  ;;  %v3915_v4 = vadd.f32 %v3643_v30, %v566_v57  ;;  %v519_v23 = vmul.f32 %v3634_v7, %v368_v54 }
 0x14a   :  { %v2456_v38 = vpack.c.bf16 %v1913_v41, %v1912_v58  ;;  %v1259_v15 = vmul.f32 %v3912_v26, %v3864_v45  ;;  %v1269_v50 = vand.u32 2147483648, %v3864_v45  ;;  %v2254_v59 = vmul.f32 -1.442695, %v3910_v22  ;;  %v491_v6 = vpop.f32.mrf.mxu3 }
 0x14b   :  { %2496 = vst [vmem:[%s4830_s4 + $0x98] sm:$0xff] %v2416_v48   ;;  %v1021_v61 = vmul.f32 %v3889_v46, %v1020_v52  ;;  %v2270_v29 = vmul.f32 -1.442695, %v3915_v4  ;;  %v3928_v42 = vadd.f32 %v3643_v30, %v519_v23  ;;  %v535_v49 = vmul.f32 %v3634_v7, %v408_v19 }
 0x14c   :  { %2504 = vst [vmem:[%s4830_s4 + $0xd8] sm:$0xff] %v2456_v38   ;;  %v1260_v3 = vsub.f32 1.0, %v1259_v15  ;;  %2671 = vpow2.f32 %v2254_v59  ;;  %v551_v24 = vmul.f32 %v3634_v7, %v448_v44  ;;  %v567_v5 = vmul.f32 %v3634_v7, %v488_v43 }
 0x14d   :  { %vm1024_vm2 = vweird.f32 %v3889_v46  ;;  %2673 = vpow2.f32 %v2270_v29  ;;  %v2223_v9 = vmul.f32 -1.442695, %v3928_v42  ;;  %v3939_v25 = vadd.f32 %v3643_v30, %v535_v49 }
 0x14e   :  { %v1022_v31 = vadd.f32 %v3889_v46, %v1021_v61  ;;  %v1261_v11 = vmul.f32 %v3912_v26, %v1260_v3  ;;  %v3944_v17 = vadd.f32 %v3643_v30, %v551_v24  ;;  %v3947_v51 = vadd.f32 %v3643_v30, %v567_v5  ;;  %vm3960_vm4 = vmor %vm1023_vm0, %vm1024_vm2 }
 0x14f   :  { %vm1264_vm3 = vweird.f32 %v3912_v26  ;;  %2675 = vpow2.f32 %v2223_v9  ;;  %v2239_v63 = vmul.f32 -1.442695, %v3939_v25  ;;  %v520_v1 = vmul.f32 %v3634_v7, %v371_v36 }
 0x150   :  { %v1262_v39 = vadd.f32 %v3912_v26, %v1261_v11  ;;  %v2255_v60 = vmul.f32 -1.442695, %v3944_v17  ;;  %v2271_v18 = vmul.f32 -1.442695, %v3947_v51  ;;  %v536_v55 = vmul.f32 %v3634_v7, %v411_v10  ;;  %vm3970_vm5 = vmor %vm1263_vm1, %vm1264_vm3 }
 0x151   :  { %v1267_v20 = vand.u32 2147483647, %v3864_v45  ;;  %2677 = vpow2.f32 %v2239_v63  ;;  %v1026_v34 = vsel %vm3960_vm4, %v3889_v46, %v1022_v31  ;;  %v1030_v53 = vor.u32 1.1754944e-38, %v1029_v12 }
 0x152   :  { %v2672_v54 = vpop.eup %2671  ;;  %2679 = vpow2.f32 %v2255_v60  ;;  %v1266_v27 = vsel %vm3970_vm5, %v3912_v26, %v1262_v39  ;;  %v3980_v14 = vadd.f32 %v3643_v30, %v520_v1  ;;  %vm1028_vm6 = vcmp.eq.f32.partialorder %v1027_v21, 8.507059e+37 }
 0x153   :  { %v2674_v19 = vpop.eup %2673  ;;  %v3977_v2 = vadd.f32 1.0, %v2672_v54  ;;  %2681 = vpow2.f32 %v2271_v18  ;;  %v1270_v58 = vor.u32 1.1754944e-38, %v1269_v50  ;;  %v3985_v32 = vadd.f32 %v3643_v30, %v536_v55 }
 0x154   :  { %v3982_v45 = vadd.f32 1.0, %v2674_v19  ;;  %v1031_v13 = vsel %vm1028_vm6, %v1030_v53, %v1026_v34  ;;  %vm1268_vm7 = vcmp.eq.f32.partialorder %v1267_v20, 8.507059e+37  ;;  %v552_v46 = vmul.f32 %v3634_v7, %v451_v62 }
 0x155   :  { %v2676_v56 = vpop.eup %2675  ;;  %2683 = vrcp.f32 %v3977_v2  ;;  %v1271_v8 = vsel %vm1268_vm7, %v1270_v58, %v1266_v27  ;;  %v2224_v37 = vmul.f32 -1.442695, %v3980_v14  ;;  %v3994_v0 = vmul.f32 %v1031_v13, %v3745_v16 }
 0x156   :  { %2685 = vrcp.f32 %v3982_v45  ;;  %v3990_v57 = vadd.f32 1.0, %v2676_v56  ;;  %v2240_v41 = vmul.f32 -1.442695, %v3985_v32  ;;  %v4000_v44 = vmul.f32 %v1271_v8, %v3756_v47 }
 0x157   :  { %v2678_v35 = vpop.eup %2677  ;;  %v4004_v26 = vadd.f32 %v3643_v30, %v552_v46  ;;  %v4007_v48 = vmul.f32 %v3634_v7, %v491_v6  ;;  %v1507_v52 = vand.u32 2147483647, %v3977_v2  ;;  %v1509_v16 = vand.u32 2147483648, %v3977_v2 }
 0x158   :  { %v2680_v33 = vpop.eup %2679  ;;  %v3996_v21 = vadd.f32 1.0, %v2678_v35  ;;  %2687 = vrcp.f32 %v3990_v57  ;;  %v1749_v23 = vand.u32 2147483648, %v3982_v45  ;;  %vm1503_vm8 = vweird.f32 %v3977_v2 }
 0x159   :  { %v2682_v12 = vpop.eup %2681  ;;  %v1044_v47 = vand.u32 2147483648, %v3990_v57  ;;  %v4017_v38 = vadd.f32 1.0, %v2680_v33  ;;  %v1747_v61 = vand.u32 2147483647, %v3982_v45  ;;  %v1042_v29 = vand.u32 2147483647, %v3990_v57 }
 0x15a   :  { %2689 = vrcp.f32 %v3996_v21  ;;  %v4019_v15 = vadd.f32 1.0, %v2682_v12  ;;  %vm1743_vm9 = vweird.f32 %v3982_v45  ;;  %v1282_v3 = vand.u32 2147483647, %v3996_v21 }
 0x15b   :  { %v4013_v43 = vpop.eup %2683  ;;  %2691 = vpow2.f32 %v2224_v37  ;;  %v1284_v24 = vand.u32 2147483648, %v3996_v21  ;;  %v1510_v36 = vor.u32 1.1754944e-38, %v1509_v16  ;;  %v4033_v9 = vor.u32 1.1754944e-38, %v1749_v23 }
 0x15c   :  { %v4021_v50 = vpop.eup %2685  ;;  %v1499_v59 = vmul.f32 %v4013_v43, %v3977_v2  ;;  %2693 = vpow2.f32 %v2240_v41  ;;  %vm4036_vm10 = vcmp.eq.f32.partialorder %v1507_v52, 8.507059e+37  ;;  %vm1038_vm11 = vweird.f32 %v3990_v57 }
 0x15d   :  { %v1739_v49 = vmul.f32 %v4021_v50, %v3982_v45  ;;  %2695 = vrcp.f32 %v4017_v38  ;;  %v1045_v63 = vor.u32 1.1754944e-38, %v1044_v47  ;;  %vm1278_vm12 = vweird.f32 %v3996_v21 }
 0x15e   :  { %v1500_v5 = vsub.f32 1.0, %v1499_v59  ;;  %2697 = vrcp.f32 %v4019_v15  ;;  %v2688_v10 = vpop.eup %2687  ;;  %vm1504_vm13 = vweird.f32 %v4013_v43  ;;  %vm4045_vm14 = vcmp.eq.f32.partialorder %v1042_v29, 8.507059e+37 }
 0x15f   :  { %v1740_v11 = vsub.f32 1.0, %v1739_v49  ;;  %v1034_v60 = vmul.f32 %v2688_v10, %v3990_v57  ;;  %v1522_v55 = vand.u32 2147483647, %v4017_v38  ;;  %vm1744_vm15 = vweird.f32 %v4021_v50  ;;  %vm4072_vm5 = vmor %vm1503_vm8, %vm1504_vm13 }
 0x160   :  { %v2690_v1 = vpop.eup %2689  ;;  %v1501_v39 = vmul.f32 %v4013_v43, %v1500_v5  ;;  %vm4052_vm0 = vcmp.eq.f32.partialorder %v1747_v61, 8.507059e+37  ;;  %vm4057_vm1 = vcmp.eq.f32.partialorder %v1282_v3, 8.507059e+37  ;;  %v1285_v28 = vor.u32 1.1754944e-38, %v1284_v24  ;;  %vm4091_vm8 = vmor %vm1743_vm9, %vm1744_vm15  ;;  %v373_v24 = vpop.f32.mrf.mxu0 }
 0x161   :  { %v2692_v40 = vpop.eup %2691  ;;  %v1741_v20 = vmul.f32 %v4021_v50, %v1740_v11  ;;  %v1274_v34 = vmul.f32 %v2690_v1, %v3996_v21  ;;  %v1035_v27 = vsub.f32 1.0, %v1034_v60  ;;  %vm1518_vm2 = vweird.f32 %v4017_v38 }
 0x162   :  { %v2694_v62 = vpop.eup %2693  ;;  %v1502_v19 = vadd.f32 %v4013_v43, %v1501_v39  ;;  %v1524_v58 = vand.u32 2147483648, %v4017_v38  ;;  %v1762_v56 = vand.u32 2147483647, %v4019_v15  ;;  %vm1039_vm3 = vweird.f32 %v2688_v10 }
 0x163   :  { %v2696_v13 = vpop.eup %2695  ;;  %v1742_v46 = vadd.f32 %v4021_v50, %v1741_v20  ;;  %v1275_v8 = vsub.f32 1.0, %v1274_v34  ;;  %vm1758_vm4 = vweird.f32 %v4019_v15  ;;  %v1764_v6 = vand.u32 2147483648, %v4019_v15  ;;  %vm1040_vm13 = vmor %vm1038_vm11, %vm1039_vm3 }
 0x164   :  { %v2698_v35 = vpop.eup %2697  ;;  %v1036_v33 = vmul.f32 %v2688_v10, %v1035_v27  ;;  %v1514_v41 = vmul.f32 %v2696_v13, %v4017_v38  ;;  %vm4077_vm6 = vcmp.eq.f32.partialorder %v1522_v55, 8.507059e+37  ;;  %v4081_v52 = vadd.f32 1.0, %v2692_v40  ;;  %v413_v55 = vpop.f32.mrf.mxu1 }
 0x165   :  { %v1506_v16 = vsel %vm4072_vm5, %v4013_v43, %v1502_v19  ;;  %v1276_v23 = vmul.f32 %v2690_v1, %v1275_v8  ;;  %vm1279_vm7 = vweird.f32 %v2690_v1  ;;  %v1754_v2 = vmul.f32 %v2698_v35, %v4019_v15  ;;  %v493_v27 = vpop.f32.mrf.mxu3 }
 0x166   :  { %v1037_v59 = vadd.f32 %v2688_v10, %v1036_v33  ;;  %v1515_v61 = vsub.f32 1.0, %v1514_v41  ;;  %v1525_v29 = vor.u32 1.1754944e-38, %v1524_v58  ;;  %v4095_v49 = vadd.f32 1.0, %v2694_v62  ;;  %vm1280_vm9 = vmor %vm1278_vm12, %vm1279_vm7  ;;  %v453_v62 = vpop.f32.mrf.mxu2 }
 0x167   :  { %v1746_v43 = vsel %vm4091_vm8, %v4021_v50, %v1742_v46  ;;  %v1277_v3 = vadd.f32 %v2690_v1, %v1276_v23  ;;  %vm1519_vm5 = vweird.f32 %v2696_v13  ;;  %v1755_v45 = vsub.f32 1.0, %v1754_v2 }
 0x168   :  { %v1511_v5 = vsel %vm4036_vm10, %v1510_v36, %v1506_v16  ;;  %v1041_v11 = vsel %vm1040_vm13, %v2688_v10, %v1037_v59  ;;  %v1516_v39 = vmul.f32 %v2696_v13, %v1515_v61  ;;  %2699 = vrcp.f32 %v4081_v52  ;;  %vm1520_vm10 = vmor %vm1518_vm2, %vm1519_vm5  ;;  %v376_v8 = vpop.f32.mrf.mxu0 }
 0x169   :  { %v1046_v50 = vsel %vm4045_vm14, %v1045_v63, %v1041_v11  ;;  %v1281_v57 = vsel %vm1280_vm9, %v2690_v1, %v1277_v3  ;;  %v1756_v60 = vmul.f32 %v2698_v35, %v1755_v45  ;;  %vm1759_vm11 = vweird.f32 %v2698_v35 }
 0x16a   :  { %v1751_v31 = vsel %vm4052_vm0, %v4033_v9, %v1746_v43  ;;  %v1867_v36 = vmul.f32 %v1046_v50, %v3928_v42  ;;  %v1286_v21 = vsel %vm4057_vm1, %v1285_v28, %v1281_v57  ;;  %v1517_v10 = vadd.f32 %v2696_v13, %v1516_v39  ;;  %vm1760_vm14 = vmor %vm1758_vm4, %vm1759_vm11 }
 0x16b   :  { %v1883_v40 = vmul.f32 %v1286_v21, %v3939_v25  ;;  %v1757_v63 = vadd.f32 %v2698_v35, %v1756_v60  ;;  %vm1763_vm12 = vcmp.eq.f32.partialorder %v1762_v56, 8.507059e+37  ;;  %2701 = vrcp.f32 %v4095_v49 }
 0x16c   :  { %v1898_v1 = vmul.f32 %v1511_v5, %v3910_v22  ;;  %v2341_v9 = vpack.c.bf16 %v1867_v36, %v3994_v0  ;;  %v1521_v18 = vsel %vm1520_vm10, %v2696_v13, %v1517_v10  ;;  %v1765_v42 = vor.u32 1.1754944e-38, %v1764_v6  ;;  %v416_v16 = vpop.f32.mrf.mxu1 }
 0x16d   :  { %v1914_v20 = vmul.f32 %v1751_v31, %v3915_v4  ;;  %v2381_v25 = vpack.c.bf16 %v1883_v40, %v4000_v44  ;;  %v1526_v38 = vsel %vm4077_vm6, %v1525_v29, %v1521_v18  ;;  %v1761_v54 = vsel %vm1760_vm14, %v2698_v35, %v1757_v63 }
 0x16e   :  { %v4130_v34 = vpop.eup %2699  ;;  %2481 = vst [vmem:[%s4830_s4 + $0x20] sm:$0xff] %v2341_v9   ;;  %v1899_v22 = vmul.f32 %v1526_v38, %v3944_v17  ;;  %v1766_v0 = vsel %vm1763_vm12, %v1765_v42, %v1761_v54  ;;  %vm1053_vm15 = vweird.f32 %v4081_v52  ;;  %v2256_v15 = vmul.f32 -1.442695, %v4004_v26 }
 0x16f   :  { %2489 = vst [vmem:[%s4830_s4 + $0x60] sm:$0xff] %v2381_v25   ;;  %v1915_v4 = vmul.f32 %v1766_v0, %v3947_v51  ;;  %v1049_v44 = vmul.f32 %v4130_v34, %v4081_v52  ;;  %v1057_v53 = vand.u32 2147483647, %v4081_v52  ;;  %v1059_v28 = vand.u32 2147483648, %v4081_v52 }
 0x170   :  { %v2421_v17 = vpack.c.bf16 %v1899_v22, %v1898_v1  ;;  %vm1293_vm0 = vweird.f32 %v4095_v49  ;;  %2703 = vpow2.f32 %v2256_v15  ;;  %v4149_v19 = vadd.f32 %v3643_v30, %v4007_v48  ;;  %v456_v15 = vpop.f32.mrf.mxu2 }
 0x171   :  { %v2702_v58 = vpop.eup %2701  ;;  %v2461_v56 = vpack.c.bf16 %v1915_v4, %v1914_v20  ;;  %v1050_v51 = vsub.f32 1.0, %v1049_v44  ;;  %v521_v13 = vmul.f32 %v3634_v7, %v373_v24  ;;  %v537_v46 = vmul.f32 %v3634_v7, %v413_v55 }
 0x172   :  { %2497 = vst [vmem:[%s4830_s4 + $0xa0] sm:$0xff] %v2421_v17   ;;  %vm1054_vm1 = vweird.f32 %v4130_v34  ;;  %v1289_v6 = vmul.f32 %v2702_v58, %v4095_v49  ;;  %v2272_v48 = vmul.f32 -1.442695, %v4149_v19  ;;  %v553_v35 = vmul.f32 %v3634_v7, %v453_v62 }
 0x173   :  { %2505 = vst [vmem:[%s4830_s4 + $0xe0] sm:$0xff] %v2461_v56   ;;  %v1051_v37 = vmul.f32 %v4130_v34, %v1050_v51  ;;  %v4165_v33 = vadd.f32 %v3643_v30, %v521_v13  ;;  %v4168_v41 = vadd.f32 %v3643_v30, %v537_v46  ;;  %v569_v12 = vmul.f32 %v3634_v7, %v493_v27  ;;  %vm4193_vm3 = vmor %vm1053_vm15, %vm1054_vm1  ;;  %v4245_v13 = vld [vmem:[%s4827_s2] ss:$0 sm:$0xff] }
 0x174   :  { %v1290_v23 = vsub.f32 1.0, %v1289_v6  ;;  %2705 = vpow2.f32 %v2272_v48  ;;  %v4172_v2 = vadd.f32 %v3643_v30, %v553_v35  ;;  %v522_v47 = vmul.f32 %v3634_v7, %v376_v8 }
 0x175   :  { %v1052_v59 = vadd.f32 %v4130_v34, %v1051_v37  ;;  %v2225_v61 = vmul.f32 -1.442695, %v4165_v33  ;;  %v2241_v29 = vmul.f32 -1.442695, %v4168_v41  ;;  %v4179_v43 = vadd.f32 %v3643_v30, %v569_v12 }
 0x176   :  { %v2704_v3 = vpop.eup %2703  ;;  %v1291_v45 = vmul.f32 %v2702_v58, %v1290_v23  ;;  %v2257_v24 = vmul.f32 -1.442695, %v4172_v2  ;;  %v4183_v5 = vadd.f32 %v3643_v30, %v522_v47  ;;  %v538_v11 = vmul.f32 %v3634_v7, %v416_v16 }
 0x177   :  { %vm1294_vm2 = vweird.f32 %v2702_v58  ;;  %v4186_v39 = vadd.f32 1.0, %v2704_v3  ;;  %2707 = vpow2.f32 %v2225_v61  ;;  %v2273_v50 = vmul.f32 -1.442695, %v4179_v43 }
 0x178   :  { %v1292_v60 = vadd.f32 %v2702_v58, %v1291_v45  ;;  %v1299_v55 = vand.u32 2147483648, %v4095_v49  ;;  %2709 = vpow2.f32 %v2241_v29  ;;  %v1056_v7 = vsel %vm4193_vm3, %v4130_v34, %v1052_v59  ;;  %vm4205_vm4 = vmor %vm1293_vm0, %vm1294_vm2 }
 0x179   :  { %v1297_v31 = vand.u32 2147483647, %v4095_v49  ;;  %2711 = vrcp.f32 %v4186_v39  ;;  %v1060_v21 = vor.u32 1.1754944e-38, %v1059_v28  ;;  %v2226_v10 = vmul.f32 -1.442695, %v4183_v5  ;;  %v496_v28 = vpop.f32.mrf.mxu3 }
 0x17a   :  { %v2706_v36 = vpop.eup %2705  ;;  %2713 = vpow2.f32 %v2257_v24  ;;  %v4211_v40 = vadd.f32 %v3643_v30, %v538_v11  ;;  %vm1058_vm6 = vcmp.eq.f32.partialorder %v1057_v53, 8.507059e+37  ;;  %v1296_v63 = vsel %vm4205_vm4, %v2702_v58, %v1292_v60  ;;  %v378_v58 = vpop.f32.mrf.mxu0 }
 0x17b   :  { %v4215_v1 = vadd.f32 1.0, %v2706_v36  ;;  %2715 = vpow2.f32 %v2273_v50  ;;  %v1061_v9 = vsel %vm1058_vm6, %v1060_v21, %v1056_v7  ;;  %v1300_v18 = vor.u32 1.1754944e-38, %v1299_v55 }
 0x17c   :  { %vm1298_vm7 = vcmp.eq.f32.partialorder %v1297_v31, 8.507059e+37  ;;  %v1539_v42 = vand.u32 2147483648, %v4186_v39  ;;  %v2242_v30 = vmul.f32 -1.442695, %v4211_v40  ;;  %v4225_v34 = vmul.f32 %v1061_v9, %v3980_v14 }
 0x17d   :  { %v2708_v49 = vpop.eup %2707  ;;  %2717 = vrcp.f32 %v4215_v1  ;;  %v1301_v25 = vsel %vm1298_vm7, %v1300_v18, %v1296_v63  ;;  %v1779_v22 = vand.u32 2147483648, %v4215_v1  ;;  %vm1533_vm8 = vweird.f32 %v4186_v39 }
 0x17e   :  { %v2710_v20 = vpop.eup %2709  ;;  %v4219_v38 = vadd.f32 1.0, %v2708_v49  ;;  %2719 = vpow2.f32 %v2226_v10  ;;  %v1537_v53 = vand.u32 2147483647, %v4186_v39  ;;  %v4236_v14 = vmul.f32 %v1301_v25, %v3985_v32 }
 0x17f   :  { %v4222_v54 = vpop.eup %2711  ;;  %v4228_v0 = vadd.f32 1.0, %v2710_v20  ;;  %v1540_v17 = vor.u32 1.1754944e-38, %v1539_v42  ;;  %v1777_v27 = vand.u32 2147483647, %v4215_v1  ;;  %v4248_v46 = vmul.f32 %v4245_v13, %v456_v15 }
 0x180   :  { %v2714_v4 = vpop.eup %2713  ;;  %v1529_v44 = vmul.f32 %v4222_v54, %v4186_v39  ;;  %2721 = vrcp.f32 %v4219_v38  ;;  %v4252_v8 = vor.u32 1.1754944e-38, %v1779_v22  ;;  %v1072_v6 = vand.u32 2147483647, %v4219_v38 }
 0x181   :  { %v2716_v62 = vpop.eup %2715  ;;  %2723 = vrcp.f32 %v4228_v0  ;;  %v4240_v51 = vadd.f32 1.0, %v2714_v4  ;;  %v4258_v35 = vmul.f32 %v4245_v13, %v496_v28  ;;  %vm4261_vm13 = vcmp.eq.f32.partialorder %v1537_v53, 8.507059e+37  ;;  %v498_v52 = vpop.f32.mrf.mxu3 }
 0x182   :  { %v1530_v56 = vsub.f32 1.0, %v1529_v44  ;;  %2725 = vpow2.f32 %v2242_v30  ;;  %v4255_v48 = vadd.f32 1.0, %v2716_v62  ;;  %vm1773_vm5 = vweird.f32 %v4215_v1 }
 0x183   :  { %v4250_v32 = vpop.eup %2717  ;;  %v1074_v47 = vand.u32 2147483648, %v4219_v38  ;;  %v4270_v59 = vmul.f32 %v4245_v13, %v378_v58  ;;  %vm1534_vm9 = vweird.f32 %v4222_v54  ;;  %v1312_v61 = vand.u32 2147483647, %v4228_v0 }
 0x184   :  { %v2720_v37 = vpop.eup %2719  ;;  %v1531_v12 = vmul.f32 %v4222_v54, %v1530_v56  ;;  %v1769_v23 = vmul.f32 %v4250_v32, %v4215_v1  ;;  %v1314_v29 = vand.u32 2147483648, %v4228_v0  ;;  %2727 = vrcp.f32 %v4240_v51  ;;  %vm4294_vm14 = vmor %vm1533_vm8, %vm1534_vm9 }
 0x185   :  { %vm1068_vm11 = vweird.f32 %v4219_v38  ;;  %2729 = vrcp.f32 %v4255_v48  ;;  %vm4280_vm10 = vcmp.eq.f32.partialorder %v1072_v6, 8.507059e+37  ;;  %vm1308_vm12 = vweird.f32 %v4228_v0 }
 0x186   :  { %v2722_v3 = vpop.eup %2721  ;;  %v1532_v45 = vadd.f32 %v4222_v54, %v1531_v12  ;;  %v1770_v24 = vsub.f32 1.0, %v1769_v23  ;;  %v4285_v60 = vadd.f32 1.0, %v2720_v37  ;;  %v1075_v31 = vor.u32 1.1754944e-38, %v1074_v47 }
 0x187   :  { %v2724_v11 = vpop.eup %2723  ;;  %v1064_v50 = vmul.f32 %v2722_v3, %v4219_v38  ;;  %v1552_v21 = vand.u32 2147483647, %v4240_v51  ;;  %vm1774_vm15 = vweird.f32 %v4250_v32  ;;  %vm4299_vm0 = vcmp.eq.f32.partialorder %v1312_v61, 8.507059e+37 }
 0x188   :  { %v2726_v55 = vpop.eup %2725  ;;  %v1771_v7 = vmul.f32 %v4250_v32, %v1770_v24  ;;  %v1304_v36 = vmul.f32 %v2724_v11, %v4228_v0  ;;  %v1315_v9 = vor.u32 1.1754944e-38, %v1314_v29  ;;  %v1536_v18 = vsel %vm4294_vm14, %v4222_v54, %v1532_v45  ;;  %vm4325_vm7 = vmor %vm1773_vm5, %vm1774_vm15 }
 0x189   :  { %v1065_v10 = vsub.f32 1.0, %v1064_v50  ;;  %vm4306_vm1 = vcmp.eq.f32.partialorder %v1777_v27, 8.507059e+37  ;;  %vm1548_vm2 = vweird.f32 %v4240_v51  ;;  %v1554_v42 = vand.u32 2147483648, %v4240_v51 }
 0x18a   :  { %v1305_v39 = vsub.f32 1.0, %v1304_v36  ;;  %v2728_v20 = vpop.eup %2727  ;;  %v1772_v25 = vadd.f32 %v4250_v32, %v1771_v7  ;;  %vm1069_vm3 = vweird.f32 %v2722_v3  ;;  %2731 = vrcp.f32 %v4285_v60 }
 0x18b   :  { %v1066_v30 = vmul.f32 %v2722_v3, %v1065_v10  ;;  %v2730_v22 = vpop.eup %2729  ;;  %vm1309_vm4 = vweird.f32 %v2724_v11  ;;  %v1544_v54 = vmul.f32 %v2728_v20, %v4240_v51  ;;  %vm4315_vm6 = vcmp.eq.f32.partialorder %v1552_v21, 8.507059e+37  ;;  %vm1070_vm9 = vmor %vm1068_vm11, %vm1069_vm3 }
 0x18c   :  { %v1306_v15 = vmul.f32 %v2724_v11, %v1305_v39  ;;  %v1541_v44 = vsel %vm4261_vm13, %v1540_v17, %v1536_v18  ;;  %v1784_v62 = vmul.f32 %v2730_v22, %v4255_v48  ;;  %vm1788_vm8 = vweird.f32 %v4255_v48  ;;  %vm1310_vm13 = vmor %vm1308_vm12, %vm1309_vm4 }
 0x18d   :  { %v1067_v28 = vadd.f32 %v2722_v3, %v1066_v30  ;;  %v1545_v58 = vsub.f32 1.0, %v1544_v54  ;;  %v1792_v17 = vand.u32 2147483647, %v4255_v48  ;;  %v1794_v56 = vand.u32 2147483648, %v4255_v48 }
 0x18e   :  { %v1307_v27 = vadd.f32 %v2724_v11, %v1306_v15  ;;  %v1776_v1 = vsel %vm4325_vm7, %v4250_v32, %v1772_v25  ;;  %vm1549_vm5 = vweird.f32 %v2728_v20  ;;  %v1785_v37 = vsub.f32 1.0, %v1784_v62 }
 0x18f   :  { %v1071_v6 = vsel %vm1070_vm9, %v2722_v3, %v1067_v28  ;;  %v1546_v16 = vmul.f32 %v2728_v20, %v1545_v58  ;;  %v4343_v23 = vadd.f32 1.0, %v2726_v55  ;;  %vm1789_vm11 = vweird.f32 %v2730_v22 }
 0x190   :  { %v1076_v38 = vsel %vm4280_vm10, %v1075_v31, %v1071_v6  ;;  %v1311_v12 = vsel %vm1310_vm13, %v2724_v11, %v1307_v27  ;;  %v4345_v47 = vpop.eup %2731  ;;  %v1786_v29 = vmul.f32 %v2730_v22, %v1785_v37  ;;  %v1555_v45 = vor.u32 1.1754944e-38, %v1554_v42  ;;  %v418_v11 = vpop.f32.mrf.mxu1  ;;  %vm1550_vm10 = vmor %vm1548_vm2, %vm1549_vm5 }
 0x191   :  { %v1869_v61 = vmul.f32 %v1076_v38, %v4165_v33  ;;  %v1316_v32 = vsel %vm4299_vm0, %v1315_v9, %v1311_v12  ;;  %v1547_v3 = vadd.f32 %v2728_v20, %v1546_v16  ;;  %v1079_v24 = vmul.f32 %v4345_v47, %v4285_v60  ;;  %vm1790_vm12 = vmor %vm1788_vm8, %vm1789_vm11 }
 0x192   :  { %v1885_v0 = vmul.f32 %v1316_v32, %v4168_v41  ;;  %v1781_v50 = vsel %vm4306_vm1, %v4252_v8, %v1776_v1  ;;  %v1787_v33 = vadd.f32 %v2730_v22, %v1786_v29  ;;  %2733 = vrcp.f32 %v4343_v23  ;;  %v458_v41 = vpop.f32.mrf.mxu2 }
 0x193   :  { %v2346_v57 = vpack.c.bf16 %v1869_v61, %v4225_v34  ;;  %v1551_v7 = vsel %vm1550_vm10, %v2728_v20, %v1547_v3  ;;  %v1795_v31 = vor.u32 1.1754944e-38, %v1794_v56  ;;  %v1080_v36 = vsub.f32 1.0, %v1079_v24 }
 0x194   :  { %v2386_v55 = vpack.c.bf16 %v1885_v0, %v4236_v14  ;;  %v1900_v8 = vmul.f32 %v1541_v44, %v4004_v26  ;;  %v1556_v34 = vsel %vm4315_vm6, %v1555_v45, %v1551_v7  ;;  %v1791_v51 = vsel %vm1790_vm12, %v2730_v22, %v1787_v33  ;;  %v4378_v26 = vld [vmem:[%s4828_s3] ss:$0 sm:$0xff]  ;;  %v501_v0 = vpop.f32.mrf.mxu3 }
 0x195   :  { %2482 = vst [vmem:[%s4830_s4 + $0x28] sm:$0xff] %v2346_v57   ;;  %vm1793_vm14 = vcmp.eq.f32.partialorder %v1792_v17, 8.507059e+37  ;;  %v1901_v14 = vmul.f32 %v1556_v34, %v4172_v2  ;;  %vm1083_vm15 = vweird.f32 %v4285_v60  ;;  %v4382_v21 = vadd.f32 %v4378_v26, %v4248_v46 }
 0x196   :  { %2490 = vst [vmem:[%s4830_s4 + $0x68] sm:$0xff] %v2386_v55   ;;  %v1796_v48 = vsel %vm1793_vm14, %v1795_v31, %v1791_v51  ;;  %v1916_v10 = vmul.f32 %v1781_v50, %v4149_v19  ;;  %v1081_v9 = vmul.f32 %v4345_v47, %v1080_v36  ;;  %v4389_v2 = vadd.f32 %v4378_v26, %v4258_v35 }
 0x197   :  { %v1917_v63 = vmul.f32 %v1796_v48, %v4179_v43  ;;  %v2426_v18 = vpack.c.bf16 %v1901_v14, %v1900_v8  ;;  %v1087_v49 = vand.u32 2147483647, %v4285_v60  ;;  %v2258_v39 = vmul.f32 -1.442695, %v4382_v21 }
 0x198   :  { %v4395_v46 = vadd.f32 %v4378_v26, %v4270_v59  ;;  %v2734_v42 = vpop.eup %2733  ;;  %v2274_v19 = vmul.f32 -1.442695, %v4389_v2  ;;  %v539_v43 = vmul.f32 %v4245_v13, %v418_v11  ;;  %v555_v25 = vmul.f32 %v4245_v13, %v458_v41  ;;  %v381_v59 = vpop.f32.mrf.mxu0 }
 0x199   :  { %v2466_v20 = vpack.c.bf16 %v1917_v63, %v1916_v10  ;;  %2498 = vst [vmem:[%s4830_s4 + $0xa8] sm:$0xff] %v2426_v18   ;;  %vm1084_vm0 = vweird.f32 %v4345_v47  ;;  %v1089_v35 = vand.u32 2147483648, %v4285_v60  ;;  %v1319_v30 = vmul.f32 %v2734_v42, %v4343_v23  ;;  %v421_v28 = vpop.f32.mrf.mxu1 }
 0x19a   :  { %2735 = vpow2.f32 %v2258_v39  ;;  %v1082_v22 = vadd.f32 %v4345_v47, %v1081_v9  ;;  %v2227_v15 = vmul.f32 -1.442695, %v4395_v46  ;;  %v4412_v54 = vadd.f32 %v4378_v26, %v539_v43  ;;  %v461_v17 = vpop.f32.mrf.mxu2  ;;  %vm4426_vm2 = vmor %vm1083_vm15, %vm1084_vm0 }
 0x19b   :  { %2506 = vst [vmem:[%s4830_s4 + $0xe8] sm:$0xff] %v2466_v20   ;;  %2737 = vpow2.f32 %v2274_v19  ;;  %v1320_v4 = vsub.f32 1.0, %v1319_v30  ;;  %vm1323_vm1 = vweird.f32 %v4343_v23  ;;  %v4416_v44 = vadd.f32 %v4378_v26, %v555_v25 }
 0x19c   :  { %v571_v53 = vmul.f32 %v4245_v13, %v498_v52  ;;  %v1329_v62 = vand.u32 2147483648, %v4343_v23  ;;  %2739 = vpow2.f32 %v2227_v15  ;;  %v2243_v27 = vmul.f32 -1.442695, %v4412_v54 }
 0x19d   :  { %v524_v58 = vmul.f32 %v4245_v13, %v381_v59  ;;  %v1321_v1 = vmul.f32 %v2734_v42, %v1320_v4  ;;  %vm1324_vm3 = vweird.f32 %v2734_v42  ;;  %v2259_v6 = vmul.f32 -1.442695, %v4416_v44 }
 0x19e   :  { %v4432_v37 = vadd.f32 %v4378_v26, %v571_v53  ;;  %v1086_v38 = vsel %vm4426_vm2, %v4345_v47, %v1082_v22  ;;  %v1327_v12 = vand.u32 2147483647, %v4343_v23  ;;  %2741 = vpow2.f32 %v2243_v27  ;;  %vm4444_vm6 = vmor %vm1323_vm1, %vm1324_vm3 }
 0x19f   :  { %v540_v60 = vmul.f32 %v4245_v13, %v421_v28  ;;  %v1322_v61 = vadd.f32 %v2734_v42, %v1321_v1  ;;  %2743 = vpow2.f32 %v2259_v6  ;;  %v556_v29 = vmul.f32 %v4245_v13, %v461_v17 }
 0x1a0   :  { %v2736_v16 = vpop.eup %2735  ;;  %v2275_v32 = vmul.f32 -1.442695, %v4432_v37  ;;  %vm1088_vm4 = vcmp.eq.f32.partialorder %v1087_v49, 8.507059e+37  ;;  %v1090_v45 = vor.u32 1.1754944e-38, %v1089_v35  ;;  %v4451_v11 = vadd.f32 %v4378_v26, %v524_v58 }
 0x1a1   :  { %v2738_v3 = vpop.eup %2737  ;;  %v4448_v24 = vadd.f32 1.0, %v2736_v16  ;;  %v1326_v50 = vsel %vm4444_vm6, %v2734_v42, %v1322_v61  ;;  %v1330_v57 = vor.u32 1.1754944e-38, %v1329_v62  ;;  %v4459_v23 = vadd.f32 %v4378_v26, %v540_v60 }
 0x1a2   :  { %v4455_v33 = vadd.f32 1.0, %v2738_v3  ;;  %2745 = vpow2.f32 %v2275_v32  ;;  %v2740_v41 = vpop.eup %2739  ;;  %v1091_v55 = vsel %vm1088_vm4, %v1090_v45, %v1086_v38  ;;  %v572_v7 = vmul.f32 %v4245_v13, %v501_v0 }
 0x1a3   :  { %2747 = vrcp.f32 %v4448_v24  ;;  %vm1328_vm7 = vcmp.eq.f32.partialorder %v1327_v12, 8.507059e+37  ;;  %v4464_v31 = vadd.f32 %v4378_v26, %v556_v29  ;;  %v4466_v34 = vadd.f32 1.0, %v2740_v41 }
 0x1a4   :  { %2749 = vrcp.f32 %v4455_v33  ;;  %v2742_v36 = vpop.eup %2741  ;;  %v1331_v8 = vsel %vm1328_vm7, %v1330_v57, %v1326_v50  ;;  %v2228_v51 = vmul.f32 -1.442695, %v4451_v11  ;;  %v4470_v48 = vmul.f32 %v1091_v55, %v4183_v5 }
 0x1a5   :  { %v2744_v14 = vpop.eup %2743  ;;  %v1569_v52 = vand.u32 2147483648, %v4448_v24  ;;  %v4473_v10 = vadd.f32 1.0, %v2742_v36  ;;  %v1809_v63 = vand.u32 2147483648, %v4455_v33  ;;  %2751 = vrcp.f32 %v4466_v34 }
 0x1a6   :  { %v2244_v9 = vmul.f32 -1.442695, %v4459_v23  ;;  %v4479_v18 = vadd.f32 %v4378_v26, %v572_v7  ;;  %v4482_v39 = vmul.f32 %v1331_v8, %v4211_v40  ;;  %v1567_v5 = vand.u32 2147483647, %v4448_v24 }
 0x1a7   :  { %2753 = vrcp.f32 %v4473_v10  ;;  %v4487_v42 = vmul.f32 -1.442695, %v4464_v31  ;;  %v1807_v19 = vand.u32 2147483647, %v4455_v33  ;;  %v4492_v43 = vadd.f32 1.0, %v2744_v14 }
 0x1a8   :  { %v2746_v49 = vpop.eup %2745  ;;  %2755 = vpow2.f32 %v2228_v51  ;;  %vm1563_vm8 = vweird.f32 %v4448_v24  ;;  %v4501_v30 = vor.u32 1.1754944e-38, %v1569_v52  ;;  %v1102_v59 = vand.u32 2147483647, %v4466_v34 }
 0x1a9   :  { %v4489_v20 = vpop.eup %2747  ;;  %v4494_v25 = vadd.f32 1.0, %v2746_v49  ;;  %v1104_v22 = vand.u32 2147483648, %v4466_v34  ;;  %vm1803_vm9 = vweird.f32 %v4455_v33  ;;  %v4508_v4 = vor.u32 1.1754944e-38, %v1809_v63 }
 0x1aa   :  { %v4496_v35 = vpop.eup %2749  ;;  %v1559_v40 = vmul.f32 %v4489_v20, %v4448_v24  ;;  %v1342_v53 = vand.u32 2147483647, %v4473_v10  ;;  %v4512_v28 = vmul.f32 -1.442695, %v4479_v18  ;;  %vm1098_vm13 = vweird.f32 %v4466_v34 }
 0x1ab   :  { %v1799_v15 = vmul.f32 %v4496_v35, %v4455_v33  ;;  %v1344_v27 = vand.u32 2147483648, %v4473_v10  ;;  %2757 = vrcp.f32 %v4492_v43  ;;  %v2752_v58 = vpop.eup %2751  ;;  %vm1564_vm5 = vweird.f32 %v4489_v20 }
 0x1ac   :  { %v1560_v62 = vsub.f32 1.0, %v1559_v40  ;;  %vm1338_vm11 = vweird.f32 %v4473_v10  ;;  %2759 = vrcp.f32 %v4494_v25  ;;  %v1094_v6 = vmul.f32 %v2752_v58, %v4466_v34  ;;  %vm4552_vm3 = vmor %vm1563_vm8, %vm1564_vm5 }
 0x1ad   :  { %v1800_v17 = vsub.f32 1.0, %v1799_v15  ;;  %v2754_v56 = vpop.eup %2753  ;;  %vm4522_vm10 = vcmp.eq.f32.partialorder %v1102_v59, 8.507059e+37  ;;  %v1105_v12 = vor.u32 1.1754944e-38, %v1104_v22  ;;  %vm1804_vm12 = vweird.f32 %v4496_v35 }
 0x1ae   :  { %v1561_v1 = vmul.f32 %v4489_v20, %v1560_v62  ;;  %v2756_v60 = vpop.eup %2755  ;;  %v1334_v61 = vmul.f32 %v2754_v56, %v4473_v10  ;;  %vm4529_vm14 = vcmp.eq.f32.partialorder %v1342_v53, 8.507059e+37  ;;  %v1095_v29 = vsub.f32 1.0, %v1094_v6  ;;  %vm4562_vm7 = vmor %vm1803_vm9, %vm1804_vm12 }
 0x1af   :  { %v1801_v16 = vmul.f32 %v4496_v35, %v1800_v17  ;;  %v1345_v0 = vor.u32 1.1754944e-38, %v1344_v27  ;;  %v1582_v3 = vand.u32 2147483647, %v4492_v43  ;;  %v1584_v45 = vand.u32 2147483648, %v4492_v43 }
 0x1b0   :  { %v1562_v47 = vadd.f32 %v4489_v20, %v1561_v1  ;;  %vm4536_vm15 = vcmp.eq.f32.partialorder %v1567_v5, 8.507059e+37  ;;  %vm4540_vm0 = vcmp.eq.f32.partialorder %v1807_v19, 8.507059e+37  ;;  %v1335_v41 = vsub.f32 1.0, %v1334_v61 }
 0x1b1   :  { %2761 = vpow2.f32 %v2244_v9  ;;  %v2758_v55 = vpop.eup %2757  ;;  %v1802_v7 = vadd.f32 %v4496_v35, %v1801_v16  ;;  %v1096_v36 = vmul.f32 %v2752_v58, %v1095_v29  ;;  %vm1099_vm2 = vweird.f32 %v2752_v58  ;;  %v423_v29 = vpop.f32.mrf.mxu1 }
 0x1b2   :  { %v4546_v8 = vadd.f32 1.0, %v2756_v60  ;;  %v2760_v51 = vpop.eup %2759  ;;  %v1336_v52 = vmul.f32 %v2754_v56, %v1335_v41  ;;  %vm1339_vm4 = vweird.f32 %v2754_v56  ;;  %v1574_v63 = vmul.f32 %v2758_v55, %v4492_v43  ;;  %vm1100_vm8 = vmor %vm1098_vm13, %vm1099_vm2 }
 0x1b3   :  { %vm1818_vm6 = vweird.f32 %v4494_v25  ;;  %v1097_v49 = vadd.f32 %v2752_v58, %v1096_v36  ;;  %vm4566_vm1 = vcmp.eq.f32.partialorder %v1582_v3, 8.507059e+37  ;;  %v1585_v5 = vor.u32 1.1754944e-38, %v1584_v45  ;;  %vm1340_vm9 = vmor %vm1338_vm11, %vm1339_vm4 }
 0x1b4   :  { %v1822_v19 = vand.u32 2147483647, %v4494_v25  ;;  %v1566_v40 = vsel %vm4552_vm3, %v4489_v20, %v1562_v47  ;;  %v1337_v33 = vadd.f32 %v2754_v56, %v1336_v52  ;;  %v1575_v59 = vsub.f32 1.0, %v1574_v63 }
 0x1b5   :  { %v1814_v22 = vmul.f32 %v2760_v51, %v4494_v25  ;;  %v1806_v15 = vsel %vm4562_vm7, %v4496_v35, %v1802_v7  ;;  %v1101_v53 = vsel %vm1100_vm8, %v2752_v58, %v1097_v49  ;;  %vm1579_vm5 = vweird.f32 %v2758_v55  ;;  %v503_v7 = vpop.f32.mrf.mxu3 }
 0x1b6   :  { %2763 = vrcp.f32 %v4546_v8  ;;  %v1106_v34 = vsel %vm4522_vm10, %v1105_v12, %v1101_v53  ;;  %v1341_v62 = vsel %vm1340_vm9, %v2754_v56, %v1337_v33  ;;  %v1576_v27 = vmul.f32 %v2758_v55, %v1575_v59 }
 0x1b7   :  { %v2762_v20 = vpop.eup %2761  ;;  %v1815_v17 = vsub.f32 1.0, %v1814_v22  ;;  %v1871_v1 = vmul.f32 %v1106_v34, %v4395_v46  ;;  %v1346_v35 = vsel %vm4529_vm14, %v1345_v0, %v1341_v62  ;;  %vm1819_vm13 = vweird.f32 %v2760_v51  ;;  %v463_v0 = vpop.f32.mrf.mxu2 }
 0x1b8   :  { %v1824_v58 = vand.u32 2147483648, %v4494_v25  ;;  %v1887_v10 = vmul.f32 %v1346_v35, %v4412_v54  ;;  %v1577_v6 = vadd.f32 %v2758_v55, %v1576_v27  ;;  %v4591_v16 = vadd.f32 1.0, %v2762_v20  ;;  %vm1820_vm12 = vmor %vm1818_vm6, %vm1819_vm13 }
 0x1b9   :  { %v1816_v60 = vmul.f32 %v2760_v51, %v1815_v17  ;;  %v1571_v56 = vsel %vm4536_vm15, %v4501_v30, %v1566_v40  ;;  %v1811_v46 = vsel %vm4540_vm0, %v4508_v4, %v1806_v15  ;;  %v2351_v38 = vpack.c.bf16 %v1871_v1, %v4470_v48 }
 0x1ba   :  { %vm4967_vm11 = vweird.f32 %v4492_v43  ;;  %2765 = vpow2.f32 %v4487_v42  ;;  %v2391_v54 = vpack.c.bf16 %v1887_v10, %v4482_v39  ;;  %v1825_v42 = vor.u32 1.1754944e-38, %v1824_v58  ;;  %v383_v43 = vpop.f32.mrf.mxu0 }
 0x1bb   :  { %vm1580_vm10 = vmor %vm4967_vm11, %vm1579_vm5  ;;  %v1817_v61 = vadd.f32 %v2760_v51, %v1816_v60  ;;  %2767 = vrcp.f32 %v4591_v16  ;;  %2483 = vst [vmem:[%s4830_s4 + $0x30] sm:$0xff] %v2351_v38   ;;  %v1902_v39 = vmul.f32 %v1571_v56, %v4382_v21  ;;  %vm1823_vm14 = vcmp.eq.f32.partialorder %v1822_v19, 8.507059e+37 }
 0x1bc   :  { %v1581_v12 = vsel %vm1580_vm10, %v2758_v55, %v1577_v6  ;;  %v4606_v32 = vpop.eup %2763  ;;  %2491 = vst [vmem:[%s4830_s4 + $0x70] sm:$0xff] %v2391_v54   ;;  %v1918_v3 = vmul.f32 %v1811_v46, %v4389_v2  ;;  %2769 = vpow2.f32 %v4512_v28  ;;  %v525_v50 = vmul.f32 %v4245_v13, %v383_v43 }
 0x1bd   :  { %v1586_v48 = vsel %vm4566_vm1, %v1585_v5, %v1581_v12  ;;  %v1821_v4 = vsel %vm1820_vm12, %v2760_v51, %v1817_v61  ;;  %v1109_v21 = vmul.f32 %v4606_v32, %v4546_v8  ;;  %v557_v41 = vmul.f32 %v4245_v13, %v463_v0 }
 0x1be   :  { %v1903_v30 = vmul.f32 %v1586_v48, %v4416_v44  ;;  %v1826_v45 = vsel %vm1823_vm14, %v1825_v42, %v1821_v4  ;;  %v541_v44 = vmul.f32 %v4245_v13, %v423_v29  ;;  %v573_v24 = vmul.f32 %v4245_v13, %v503_v7 }
 0x1bf   :  { %v1919_v47 = vmul.f32 %v1826_v45, %v4432_v37  ;;  %v4637_v37 = vadd.f32 %v4378_v26, %v525_v50  ;;  %v4643_v51 = vadd.f32 %v4378_v26, %v557_v41  ;;  %v1110_v14 = vsub.f32 1.0, %v1109_v21 }
 0x1c0   :  { %v2431_v25 = vpack.c.bf16 %v1903_v30, %v1902_v39  ;;  %v2766_v57 = vpop.eup %2765  ;;  %v4640_v36 = vadd.f32 %v4378_v26, %v541_v44  ;;  %v4660_v59 = vadd.f32 %v4378_v26, %v573_v24  ;;  %v1119_v15 = vand.u32 2147483648, %v4546_v8 }
 0x1c1   :  { %v4629_v55 = vpop.eup %2767  ;;  %v2471_v2 = vpack.c.bf16 %v1919_v47, %v1918_v3  ;;  %v4634_v28 = vadd.f32 1.0, %v2766_v57  ;;  %v2229_v9 = vmul.f32 -1.442695, %v4637_v37  ;;  %v2261_v19 = vmul.f32 -1.442695, %v4643_v51 }
 0x1c2   :  { %2499 = vst [vmem:[%s4830_s4 + $0xb0] sm:$0xff] %v2431_v25   ;;  %v2770_v52 = vpop.eup %2769  ;;  %v1349_v63 = vmul.f32 %v4629_v55, %v4591_v16  ;;  %v2245_v49 = vmul.f32 -1.442695, %v4640_v36  ;;  %v1111_v40 = vmul.f32 %v4606_v32, %v1110_v14  ;;  %vm1113_vm15 = vweird.f32 %v4546_v8 }
 0x1c3   :  { %2507 = vst [vmem:[%s4830_s4 + $0xf0] sm:$0xff] %v2471_v2   ;;  %2771 = vrcp.f32 %v4634_v28  ;;  %v4654_v5 = vadd.f32 1.0, %v2770_v52  ;;  %vm1114_vm0 = vweird.f32 %v4606_v32  ;;  %v2277_v20 = vmul.f32 -1.442695, %v4660_v59 }
 0x1c4   :  { %2773 = vpow2.f32 %v2229_v9  ;;  %v1350_v33 = vsub.f32 1.0, %v1349_v63  ;;  %v1112_v53 = vadd.f32 %v4606_v32, %v1111_v40  ;;  %v1117_v17 = vand.u32 2147483647, %v4546_v8  ;;  %vm4677_vm1 = vmor %vm1113_vm15, %vm1114_vm0 }
 0x1c5   :  { %2775 = vrcp.f32 %v4654_v5  ;;  %v1120_v1 = vor.u32 1.1754944e-38, %v1119_v15  ;;  %vm1353_vm2 = vweird.f32 %v4591_v16  ;;  %vm1354_vm3 = vweird.f32 %v4629_v55 }
 0x1c6   :  { %2777 = vpow2.f32 %v2245_v49  ;;  %v1351_v26 = vmul.f32 %v4629_v55, %v1350_v33  ;;  %v1357_v6 = vand.u32 2147483647, %v4591_v16  ;;  %v1359_v60 = vand.u32 2147483648, %v4591_v16  ;;  %vm4708_vm7 = vmor %vm1353_vm2, %vm1354_vm3 }
 0x1c7   :  { %2779 = vpow2.f32 %v2261_v19  ;;  %v1116_v8 = vsel %vm4677_vm1, %v4606_v32, %v1112_v53  ;;  %v1597_v46 = vand.u32 2147483647, %v4634_v28  ;;  %vm1118_vm4 = vcmp.eq.f32.partialorder %v1117_v17, 8.507059e+37 }
 0x1c8   :  { %2781 = vpow2.f32 %v2277_v20  ;;  %v1352_v54 = vadd.f32 %v4629_v55, %v1351_v26  ;;  %v1599_v42 = vand.u32 2147483648, %v4634_v28  ;;  %v1121_v43 = vsel %vm1118_vm4, %v1120_v1, %v1116_v8 }
 0x1c9   :  { %v4662_v22 = vpop.eup %2771  ;;  %vm4699_vm6 = vcmp.eq.f32.partialorder %v1357_v6, 8.507059e+37  ;;  %v1360_v39 = vor.u32 1.1754944e-38, %v1359_v60  ;;  %vm1593_vm8 = vweird.f32 %v4634_v28  ;;  %vm4713_vm9 = vcmp.eq.f32.partialorder %v1597_v46, 8.507059e+37 }
 0x1ca   :  { %v1589_v13 = vmul.f32 %v4662_v22, %v4634_v28  ;;  %v2774_v34 = vpop.eup %2773  ;;  %v1356_v3 = vsel %vm4708_vm7, %v4629_v55, %v1352_v54  ;;  %vm1594_vm5 = vweird.f32 %v4662_v22  ;;  %v4725_v47 = vmul.f32 %v1121_v43, %v4451_v11 }
 0x1cb   :  { %v4672_v27 = vpop.eup %2775  ;;  %v4675_v35 = vadd.f32 1.0, %v2774_v34  ;;  %v1600_v21 = vor.u32 1.1754944e-38, %v1599_v42  ;;  %vm1833_vm13 = vweird.f32 %v4654_v5  ;;  %v1837_v44 = vand.u32 2147483647, %v4654_v5  ;;  %vm4738_vm11 = vmor %vm1593_vm8, %vm1594_vm5 }
 0x1cc   :  { %v1590_v62 = vsub.f32 1.0, %v1589_v13  ;;  %v2778_v58 = vpop.eup %2777  ;;  %v1829_v38 = vmul.f32 %v4672_v27, %v4654_v5  ;;  %v1839_v41 = vand.u32 2147483648, %v4654_v5  ;;  %v1361_v2 = vsel %vm4699_vm6, %v1360_v39, %v1356_v3 }
 0x1cd   :  { %v2780_v56 = vpop.eup %2779  ;;  %2783 = vrcp.f32 %v4675_v35  ;;  %v4694_v61 = vadd.f32 1.0, %v2778_v58  ;;  %v1132_v16 = vand.u32 2147483647, %v4675_v35  ;;  %v1134_v50 = vand.u32 2147483648, %v4675_v35 }
 0x1ce   :  { %v1591_v12 = vmul.f32 %v4662_v22, %v1590_v62  ;;  %v4696_v48 = vadd.f32 1.0, %v2780_v56  ;;  %v2782_v30 = vpop.eup %2781  ;;  %v1830_v0 = vsub.f32 1.0, %v1829_v38  ;;  %vm1834_vm10 = vweird.f32 %v4672_v27 }
 0x1cf   :  { %2785 = vrcp.f32 %v4694_v61  ;;  %v4728_v57 = vadd.f32 1.0, %v2782_v30  ;;  %vm1128_vm12 = vweird.f32 %v4675_v35  ;;  %vm4749_vm14 = vcmp.eq.f32.partialorder %v1132_v16, 8.507059e+37  ;;  %vm4778_vm7 = vmor %vm1833_vm13, %vm1834_vm10 }
 0x1d0   :  { %2787 = vrcp.f32 %v4696_v48  ;;  %v1592_v45 = vadd.f32 %v4662_v22, %v1591_v12  ;;  %v1831_v7 = vmul.f32 %v4672_v27, %v1830_v0  ;;  %v1135_v49 = vor.u32 1.1754944e-38, %v1134_v50 }
 0x1d1   :  { %2789 = vrcp.f32 %v4728_v57  ;;  %v1372_v19 = vand.u32 2147483647, %v4694_v61  ;;  %v1374_v40 = vand.u32 2147483648, %v4694_v61  ;;  %vm1368_vm0 = vweird.f32 %v4694_v61 }
 0x1d2   :  { %v1596_v52 = vsel %vm4738_vm11, %v4662_v22, %v1592_v45  ;;  %v1832_v13 = vadd.f32 %v4672_v27, %v1831_v7  ;;  %v1612_v20 = vand.u32 2147483647, %v4696_v48  ;;  %vm4762_vm1 = vcmp.eq.f32.partialorder %v1837_v44, 8.507059e+37 }
 0x1d3   :  { %v2784_v25 = vpop.eup %2783  ;;  %v1601_v15 = vsel %vm4713_vm9, %v1600_v21, %v1596_v52  ;;  %vm1608_vm2 = vweird.f32 %v4696_v48  ;;  %v1614_v17 = vand.u32 2147483648, %v4696_v48  ;;  %vm4770_vm6 = vcmp.eq.f32.partialorder %v1372_v19, 8.507059e+37 }
 0x1d4   :  { %v1124_v55 = vmul.f32 %v2784_v25, %v4675_v35  ;;  %vm1129_vm15 = vweird.f32 %v2784_v25  ;;  %v1375_v6 = vor.u32 1.1754944e-38, %v1374_v40  ;;  %v1836_v46 = vsel %vm4778_vm7, %v4672_v27, %v1832_v13 }
 0x1d5   :  { %v2786_v14 = vpop.eup %2785  ;;  %vm1130_vm3 = vmor %vm1128_vm12, %vm1129_vm15  ;;  %vm4788_vm9 = vcmp.eq.f32.partialorder %v1612_v20, 8.507059e+37  ;;  %v1615_v43 = vor.u32 1.1754944e-38, %v1614_v17  ;;  %v1852_v27 = vand.u32 2147483647, %v4728_v57  ;;  %v1854_v30 = vand.u32 2147483648, %v4728_v57 }
 0x1d6   :  { %v1125_v63 = vsub.f32 1.0, %v1124_v55  ;;  %v2788_v9 = vpop.eup %2787  ;;  %v1364_v24 = vmul.f32 %v2786_v14, %v4694_v61  ;;  %vm1369_vm4 = vweird.f32 %v2786_v14  ;;  %v1888_v0 = vmul.f32 %v1361_v2, %v4459_v23 }
 0x1d7   :  { %v1604_v22 = vmul.f32 %v2788_v9, %v4696_v48  ;;  %v2790_v1 = vpop.eup %2789  ;;  %vm1609_vm8 = vweird.f32 %v2788_v9  ;;  %vm1370_vm5 = vmor %vm1368_vm0, %vm1369_vm4  ;;  %v1840_v3 = vor.u32 1.1754944e-38, %v1839_v41  ;;  %v1904_v16 = vmul.f32 %v1601_v15, %v4464_v31 }
 0x1d8   :  { %v1126_v33 = vmul.f32 %v2784_v25, %v1125_v63  ;;  %v1365_v53 = vsub.f32 1.0, %v1364_v24  ;;  %v1844_v35 = vmul.f32 %v2790_v1, %v4728_v57  ;;  %vm1610_vm13 = vmor %vm1608_vm2, %vm1609_vm8  ;;  %vm1849_vm11 = vweird.f32 %v2790_v1 }
 0x1d9   :  { %v1605_v62 = vsub.f32 1.0, %v1604_v22  ;;  %vm1848_vm10 = vweird.f32 %v4728_v57  ;;  %v1841_v23 = vsel %vm4762_vm1, %v1840_v3, %v1836_v46 }
 0x1da   :  { %v1127_v26 = vadd.f32 %v2784_v25, %v1126_v33  ;;  %v1366_v58 = vmul.f32 %v2786_v14, %v1365_v53  ;;  %v1845_v32 = vsub.f32 1.0, %v1844_v35  ;;  %vm1850_vm12 = vmor %vm1848_vm10, %vm1849_vm11 }
 0x1db   :  { %v1606_v8 = vmul.f32 %v2788_v9, %v1605_v62 }
 0x1dc   :  { %v1131_v56 = vsel %vm1130_vm3, %v2784_v25, %v1127_v26  ;;  %v1367_v54 = vadd.f32 %v2786_v14, %v1366_v58  ;;  %v1846_v61 = vmul.f32 %v2790_v1, %v1845_v32 }
 0x1dd   :  { %v1136_v38 = vsel %vm4749_vm14, %v1135_v49, %v1131_v56  ;;  %v1607_v42 = vadd.f32 %v2788_v9, %v1606_v8  ;;  %vm1853_vm14 = vcmp.eq.f32.partialorder %v1852_v27, 8.507059e+37 }
 0x1de   :  { %v1873_v5 = vmul.f32 %v1136_v38, %v4637_v37  ;;  %v1371_v39 = vsel %vm1370_vm5, %v2786_v14, %v1367_v54 }
 0x1df   :  { %v1376_v37 = vsel %vm4770_vm6, %v1375_v6, %v1371_v39  ;;  %v1611_v29 = vsel %vm1610_vm13, %v2788_v9, %v1607_v42 }
 0x1e0   :  { %v2356_v4 = vpack.c.bf16 %v1873_v5, %v4725_v47  ;;  %v1889_v45 = vmul.f32 %v1376_v37, %v4640_v36  ;;  %v1616_v48 = vsel %vm4788_vm9, %v1615_v43, %v1611_v29  ;;  %v1847_v47 = vadd.f32 %v2790_v1, %v1846_v61 }
 0x1e1   :  { %v1905_v25 = vmul.f32 %v1616_v48, %v4643_v51  ;;  %v1855_v36 = vor.u32 1.1754944e-38, %v1854_v30  ;;  %v1920_v51 = vmul.f32 %v1841_v23, %v4479_v18 }
 0x1e2   :  { %2484 = vst [vmem:[%s4830_s4 + $0x38] sm:$0xff] %v2356_v4   ;;  %v2396_v21 = vpack.c.bf16 %v1889_v45, %v1888_v0  ;;  %v1851_v44 = vsel %vm1850_vm12, %v2790_v1, %v1847_v47 }
 0x1e3   :  { %v2436_v50 = vpack.c.bf16 %v1905_v25, %v1904_v16  ;;  %v1856_v31 = vsel %vm1853_vm14, %v1855_v36, %v1851_v44 }
 0x1e4   :  { %2492 = vst [vmem:[%s4830_s4 + $0x78] sm:$0xff] %v2396_v21   ;;  %v1921_v57 = vmul.f32 %v1856_v31, %v4660_v59 }
 0x1e5   :  { %2500 = vst [vmem:[%s4830_s4 + $0xb8] sm:$0xff] %v2436_v50  }
 0x1e6   :  { %v2476_v41 = vpack.c.bf16 %v1921_v57, %v1920_v51 }
 0x1e8   :  { %2508 = vst [vmem:[%s4830_s4 + $0xf8] sm:$0xff] %v2476_v41  }

// kernel: c3_forward.9
= control target key start
LH: loop header
LB: loop body
LE: loop exit
PB: predicated region body
PF: predicated region fallthrough
CT: control target
= control target key end

     0   :  { %s5613_s3 = inlined_call_operand.vmem [shape: bf16[128,128], index: 3, kind: input, shape index: {}]   ;;  %s5614_s2 = inlined_call_operand.vmem [shape: bf16[128,128], index: 2, kind: input, shape index: {}]   ;;  %s5615_s1 = inlined_call_operand.vmem [shape: bf16[512,128], index: 1, kind: input, shape index: {}]   ;;  %s5616_s0 = inlined_call_operand.vmem [shape: bf16[512,128], index: 0, kind: input, shape index: {}]   ;;  %s5617_s4 = inlined_call_operand.vmem [shape: f32[1,128], index: 4, kind: input, shape index: {}]   ;;  %s5618_s5 = inlined_call_operand.vmem [shape: f32[1,128], index: 5, kind: input, shape index: {}]   ;;  %s5619_s6 = inlined_call_operand.vmem [shape: bf16[512,128], index: 6, kind: output, shape index: {}]  }
   0x1   :  { %v3012_v0 = vld [vmem:[%s5613_s3 + $0x38] sm:$0xff]  ;;  %v3011_v2 = vld [vmem:[%s5613_s3 + $0x30] sm:$0xff]  ;;  %v3010_v4 = vld [vmem:[%s5613_s3 + $0x28] sm:$0xff] }
   0x2   :  { %v2972_v1 = vld [vmem:[%s5614_s2 + $0x38] sm:$0xff]  ;;  %423 = vmatpush.bf16.msra.mxu0 %v3012_v0  ;;  %3204 = vmatpush.bf16.msra.mxu2 %v3012_v0  ;;  %v2971_v3 = vld [vmem:[%s5614_s2 + $0x30] sm:$0xff]  ;;  %v2970_v5 = vld [vmem:[%s5614_s2 + $0x28] sm:$0xff] }
   0x3   :  { %832 = vmatpush.bf16.msra.mxu1 %v2972_v1  ;;  %3212 = vmatpush.bf16.msra.mxu3 %v2972_v1  ;;  %v3009_v6 = vld [vmem:[%s5613_s3 + $0x20] sm:$0xff]  ;;  %v3008_v8 = vld [vmem:[%s5613_s3 + $0x18] sm:$0xff]  ;;  %v3007_v10 = vld [vmem:[%s5613_s3 + $0x10] sm:$0xff] }
   0x4   :  { %v2969_v7 = vld [vmem:[%s5614_s2 + $0x20] sm:$0xff]  ;;  %v2968_v9 = vld [vmem:[%s5614_s2 + $0x18] sm:$0xff]  ;;  %v2967_v11 = vld [vmem:[%s5614_s2 + $0x10] sm:$0xff] }
   0x5   :  { %v3006_v12 = vld [vmem:[%s5613_s3 + $0x8] sm:$0xff]  ;;  %v3005_v14 = vld [vmem:[%s5613_s3] sm:$0xff]  ;;  %v2975_v24 = vld [vmem:[%s5615_s1 + $0x10] sm:$0xff] }
   0x6   :  { %424 = vmatpush.bf16.msra.mxu0 %v3011_v2  ;;  %3205 = vmatpush.bf16.msra.mxu2 %v3011_v2  ;;  %v2966_v13 = vld [vmem:[%s5614_s2 + $0x8] sm:$0xff]  ;;  %v2965_v15 = vld [vmem:[%s5614_s2] sm:$0xff]  ;;  %v2991_v25 = vld [vmem:[%s5615_s1 + $0x90] sm:$0xff] }
   0x7   :  { %833 = vmatpush.bf16.msra.mxu1 %v2971_v3  ;;  %3213 = vmatpush.bf16.msra.mxu3 %v2971_v3  ;;  %v2973_v16 = vld [vmem:[%s5615_s1] sm:$0xff]  ;;  %v2974_v20 = vld [vmem:[%s5615_s1 + $0x8] sm:$0xff]  ;;  %v2935_v26 = vld [vmem:[%s5616_s0 + $0x10] sm:$0xff] }
   0x8   :  { %v2989_v17 = vld [vmem:[%s5615_s1 + $0x80] sm:$0xff]  ;;  %v2990_v21 = vld [vmem:[%s5615_s1 + $0x88] sm:$0xff]  ;;  %v2951_v27 = vld [vmem:[%s5616_s0 + $0x90] sm:$0xff] }
   0x9   :  { %v2933_v18 = vld [vmem:[%s5616_s0] sm:$0xff]  ;;  %v2934_v22 = vld [vmem:[%s5616_s0 + $0x8] sm:$0xff]  ;;  %v2976_v28 = vld [vmem:[%s5615_s1 + $0x18] sm:$0xff] }
   0xa   :  { %425 = vmatpush.bf16.msra.mxu0 %v3010_v4  ;;  %3206 = vmatpush.bf16.msra.mxu2 %v3010_v4  ;;  %v2949_v19 = vld [vmem:[%s5616_s0 + $0x80] sm:$0xff]  ;;  %v2950_v23 = vld [vmem:[%s5616_s0 + $0x88] sm:$0xff]  ;;  %v2992_v29 = vld [vmem:[%s5615_s1 + $0x98] sm:$0xff] }
   0xb   :  { %834 = vmatpush.bf16.msra.mxu1 %v2970_v5  ;;  %3214 = vmatpush.bf16.msra.mxu3 %v2970_v5  ;;  %v2936_v30 = vld [vmem:[%s5616_s0 + $0x18] sm:$0xff]  ;;  %v2977_v32 = vld [vmem:[%s5615_s1 + $0x20] sm:$0xff]  ;;  %v2978_v36 = vld [vmem:[%s5615_s1 + $0x28] sm:$0xff] }
   0xc   :  { %v2952_v31 = vld [vmem:[%s5616_s0 + $0x98] sm:$0xff]  ;;  %v2993_v33 = vld [vmem:[%s5615_s1 + $0xa0] sm:$0xff]  ;;  %v2994_v37 = vld [vmem:[%s5615_s1 + $0xa8] sm:$0xff] }
   0xd   :  { %v2937_v34 = vld [vmem:[%s5616_s0 + $0x20] sm:$0xff]  ;;  %v2938_v38 = vld [vmem:[%s5616_s0 + $0x28] sm:$0xff]  ;;  %v2979_v40 = vld [vmem:[%s5615_s1 + $0x30] sm:$0xff] }
   0xe   :  { %426 = vmatpush.bf16.msra.mxu0 %v3009_v6  ;;  %3207 = vmatpush.bf16.msra.mxu2 %v3009_v6  ;;  %v2953_v35 = vld [vmem:[%s5616_s0 + $0xa0] sm:$0xff]  ;;  %v2954_v39 = vld [vmem:[%s5616_s0 + $0xa8] sm:$0xff]  ;;  %v2995_v41 = vld [vmem:[%s5615_s1 + $0xb0] sm:$0xff] }
   0xf   :  { %835 = vmatpush.bf16.msra.mxu1 %v2969_v7  ;;  %3215 = vmatpush.bf16.msra.mxu3 %v2969_v7  ;;  %v2939_v42 = vld [vmem:[%s5616_s0 + $0x30] sm:$0xff]  ;;  %v2980_v44 = vld [vmem:[%s5615_s1 + $0x38] sm:$0xff]  ;;  %v2981_v48 = vld [vmem:[%s5615_s1 + $0x40] sm:$0xff] }
  0x10   :  { %v2955_v43 = vld [vmem:[%s5616_s0 + $0xb0] sm:$0xff]  ;;  %v2996_v45 = vld [vmem:[%s5615_s1 + $0xb8] sm:$0xff]  ;;  %v2997_v49 = vld [vmem:[%s5615_s1 + $0xc0] sm:$0xff] }
  0x11   :  { %v2940_v46 = vld [vmem:[%s5616_s0 + $0x38] sm:$0xff]  ;;  %v3672_v51 = vld [vmem:[%s5617_s4] ss:$0 sm:$0xff] }
  0x12   :  { %427 = vmatpush.bf16.msra.mxu0 %v3008_v8  ;;  %3208 = vmatpush.bf16.msra.mxu2 %v3008_v8  ;;  %v2956_v47 = vld [vmem:[%s5616_s0 + $0xb8] sm:$0xff]  ;;  %v2941_v52 = vld [vmem:[%s5616_s0 + $0x40] sm:$0xff] }
  0x13   :  { %836 = vmatpush.bf16.msra.mxu1 %v2968_v9  ;;  %3216 = vmatpush.bf16.msra.mxu3 %v2968_v9  ;;  %v2957_v53 = vld [vmem:[%s5616_s0 + $0xc0] sm:$0xff]  ;;  %v2982_v9 = vld [vmem:[%s5615_s1 + $0x48] sm:$0xff] }
  0x14   :  { %v3683_v56 = vld [vmem:[%s5618_s5] ss:$0 sm:$0xff] }
  0x16   :  { %428 = vmatpush.bf16.msra.mxu0 %v3007_v10  ;;  %3209 = vmatpush.bf16.msra.mxu2 %v3007_v10  ;;  %v2998_v10 = vld [vmem:[%s5615_s1 + $0xc8] sm:$0xff] }
  0x17   :  { %837 = vmatpush.bf16.msra.mxu1 %v2967_v11  ;;  %3217 = vmatpush.bf16.msra.mxu3 %v2967_v11 }
  0x1a   :  { %429 = vmatpush.bf16.msra.mxu0 %v3006_v12  ;;  %3210 = vmatpush.bf16.msra.mxu2 %v3006_v12 }
  0x1b   :  { %838 = vmatpush.bf16.msra.mxu1 %v2966_v13  ;;  %3218 = vmatpush.bf16.msra.mxu3 %v2966_v13 }
  0x1e   :  { %430 = vmatpush.bf16.msra.mxu0 %v3005_v14  ;;  %3211 = vmatpush.bf16.msra.mxu2 %v3005_v14 }
  0x1f   :  { %839 = vmatpush.bf16.msra.mxu1 %v2965_v15  ;;  %3219 = vmatpush.bf16.msra.mxu3 %v2965_v15  ;;  %v2942_v15 = vld [vmem:[%s5616_s0 + $0x48] sm:$0xff] }
  0x21   :  { %431 = vmatmul.bf16.vlgmr.msra.gmra.mxu0 %v2973_v16  ;;  %511 = vmatmul.bf16.vlgmr.msra.gmra.mxu2 %v2989_v17  ;;  %v2958_v16 = vld [vmem:[%s5616_s0 + $0xc8] sm:$0xff] }
  0x22   :  { %840 = vmatmul.bf16.vlgmr.msra.gmra.mxu1 %v2933_v18  ;;  %920 = vmatmul.bf16.vlgmr.msra.gmra.mxu3 %v2949_v19 }
  0x31   :  { %436 = vmatmul.bf16.gmra.mxu0 %v2974_v20  ;;  %516 = vmatmul.bf16.gmra.mxu2 %v2990_v21 }
  0x32   :  { %845 = vmatmul.bf16.gmra.mxu1 %v2934_v22  ;;  %925 = vmatmul.bf16.gmra.mxu3 %v2950_v23 }
  0x41   :  { %441 = vmatmul.bf16.gmra.mxu0 %v2975_v24  ;;  %521 = vmatmul.bf16.gmra.mxu2 %v2991_v25 }
  0x42   :  { %850 = vmatmul.bf16.gmra.mxu1 %v2935_v26  ;;  %930 = vmatmul.bf16.gmra.mxu3 %v2951_v27 }
  0x51   :  { %446 = vmatmul.bf16.gmra.mxu0 %v2976_v28  ;;  %526 = vmatmul.bf16.gmra.mxu2 %v2992_v29 }
  0x52   :  { %855 = vmatmul.bf16.gmra.mxu1 %v2936_v30  ;;  %935 = vmatmul.bf16.gmra.mxu3 %v2952_v31 }
  0x61   :  { %451 = vmatmul.bf16.gmra.mxu0 %v2977_v32  ;;  %531 = vmatmul.bf16.gmra.mxu2 %v2993_v33 }
  0x62   :  { %860 = vmatmul.bf16.gmra.mxu1 %v2937_v34  ;;  %940 = vmatmul.bf16.gmra.mxu3 %v2953_v35 }
  0x71   :  { %456 = vmatmul.bf16.gmra.mxu0 %v2978_v36  ;;  %536 = vmatmul.bf16.gmra.mxu2 %v2994_v37 }
  0x72   :  { %865 = vmatmul.bf16.gmra.mxu1 %v2938_v38  ;;  %945 = vmatmul.bf16.gmra.mxu3 %v2954_v39 }
  0x81   :  { %461 = vmatmul.bf16.gmra.mxu0 %v2979_v40  ;;  %541 = vmatmul.bf16.gmra.mxu2 %v2995_v41 }
  0x82   :  { %870 = vmatmul.bf16.gmra.mxu1 %v2939_v42  ;;  %950 = vmatmul.bf16.gmra.mxu3 %v2955_v43 }
  0x91   :  { %466 = vmatmul.bf16.gmra.mxu0 %v2980_v44  ;;  %546 = vmatmul.bf16.gmra.mxu2 %v2996_v45 }
  0x92   :  { %875 = vmatmul.bf16.gmra.mxu1 %v2940_v46  ;;  %955 = vmatmul.bf16.gmra.mxu3 %v2956_v47 }
  0x9e   :  { %v432_v50 = vpop.f32.mrf.mxu0 }
  0x9f   :  { %v841_v54 = vpop.f32.mrf.mxu1 }
  0xa0   :  { %v842_v55 = vadd.f32 %v841_v54, %v432_v50 }
  0xa1   :  { %471 = vmatmul.bf16.gmra.mxu0 %v2981_v48  ;;  %551 = vmatmul.bf16.gmra.mxu2 %v2997_v49 }
  0xa2   :  { %v1005_v57 = vmul.f32 %v3672_v51, %v842_v55  ;;  %880 = vmatmul.bf16.gmra.mxu1 %v2941_v52  ;;  %960 = vmatmul.bf16.gmra.mxu3 %v2957_v53  ;;  %v2983_v52 = vld [vmem:[%s5615_s1 + $0x50] sm:$0xff] }
  0xa3   :  { %v2999_v53 = vld [vmem:[%s5615_s1 + $0xd0] sm:$0xff] }
  0xa4   :  { %v3687_v58 = vadd.f32 %v3683_v56, %v1005_v57  ;;  %v512_v59 = vpop.f32.mrf.mxu2 }
  0xa5   :  { %v921_v60 = vpop.f32.mrf.mxu3 }
  0xa6   :  { %v2869_v61 = vmul.f32 -1.442695, %v3687_v58  ;;  %v922_v62 = vadd.f32 %v921_v60, %v512_v59  ;;  %v434_v63 = vpop.f32.mrf.mxu0 }
  0xa7   :  { %v843_v0 = vpop.f32.mrf.mxu1 }
  0xa8   :  { %3222 = vpow2.f32 %v2869_v61  ;;  %v1037_v1 = vmul.f32 %v3672_v51, %v922_v62  ;;  %v844_v2 = vadd.f32 %v843_v0, %v434_v63  ;;  %v2943_v61 = vld [vmem:[%s5616_s0 + $0x50] sm:$0xff] }
  0xa9   :  { %v2959_v62 = vld [vmem:[%s5616_s0 + $0xd0] sm:$0xff] }
  0xaa   :  { %v3692_v3 = vadd.f32 %v3683_v56, %v1037_v1  ;;  %v1006_v4 = vmul.f32 %v3672_v51, %v844_v2 }
  0xac   :  { %v2901_v5 = vmul.f32 -1.442695, %v3692_v3  ;;  %v3697_v6 = vadd.f32 %v3683_v56, %v1006_v4  ;;  %v514_v7 = vpop.f32.mrf.mxu2 }
  0xad   :  { %v923_v8 = vpop.f32.mrf.mxu3 }
  0xae   :  { %v3223_v11 = vpop.eup %3222  ;;  %3224 = vpow2.f32 %v2901_v5  ;;  %v2870_v12 = vmul.f32 -1.442695, %v3697_v6  ;;  %v924_v13 = vadd.f32 %v923_v8, %v514_v7  ;;  %v437_v14 = vpop.f32.mrf.mxu0 }
  0xaf   :  { %v3712_v17 = vadd.f32 1.0, %v3223_v11  ;;  %v846_v18 = vpop.f32.mrf.mxu1 }
  0xb0   :  { %3226 = vpow2.f32 %v2870_v12  ;;  %v1038_v19 = vmul.f32 %v3672_v51, %v924_v13  ;;  %v847_v20 = vadd.f32 %v846_v18, %v437_v14 }
  0xb1   :  { %3228 = vrcp.f32 %v3712_v17  ;;  %476 = vmatmul.bf16.gmra.mxu0 %v2982_v9  ;;  %556 = vmatmul.bf16.gmra.mxu2 %v2998_v10  ;;  %v1402_v40 = vand.u32 2147483647, %v3712_v17  ;;  %v1404_v47 = vand.u32 2147483648, %v3712_v17  ;;  %vm1398_vm0 = vweird.f32 %v3712_v17 }
  0xb2   :  { %v3717_v21 = vadd.f32 %v3683_v56, %v1038_v19  ;;  %v1007_v22 = vmul.f32 %v3672_v51, %v847_v20  ;;  %885 = vmatmul.bf16.gmra.mxu1 %v2942_v15  ;;  %965 = vmatmul.bf16.gmra.mxu3 %v2958_v16 }
  0xb3   :  { %vm3765_vm1 = vcmp.eq.f32.partialorder %v1402_v40, 8.507059e+37  ;;  %v1405_v11 = vor.u32 1.1754944e-38, %v1404_v47 }
  0xb4   :  { %v3225_v23 = vpop.eup %3224  ;;  %v2902_v24 = vmul.f32 -1.442695, %v3717_v21  ;;  %v3722_v25 = vadd.f32 %v3683_v56, %v1007_v22  ;;  %v517_v26 = vpop.f32.mrf.mxu2 }
  0xb5   :  { %v3724_v27 = vadd.f32 1.0, %v3225_v23  ;;  %v926_v28 = vpop.f32.mrf.mxu3 }
  0xb6   :  { %v3227_v29 = vpop.eup %3226  ;;  %3230 = vpow2.f32 %v2902_v24  ;;  %v2871_v30 = vmul.f32 -1.442695, %v3722_v25  ;;  %v927_v31 = vadd.f32 %v926_v28, %v517_v26  ;;  %v439_v32 = vpop.f32.mrf.mxu0 }
  0xb7   :  { %v3727_v33 = vpop.eup %3228  ;;  %3232 = vrcp.f32 %v3724_v27  ;;  %v848_v34 = vpop.f32.mrf.mxu1  ;;  %v3732_v36 = vadd.f32 1.0, %v3227_v29  ;;  %v1882_v57 = vand.u32 2147483647, %v3724_v27  ;;  %v1884_v59 = vand.u32 2147483648, %v3724_v27 }
  0xb8   :  { %v1394_v35 = vmul.f32 %v3727_v33, %v3712_v17  ;;  %3234 = vpow2.f32 %v2871_v30  ;;  %v1039_v37 = vmul.f32 %v3672_v51, %v927_v31  ;;  %v849_v38 = vadd.f32 %v848_v34, %v439_v32 }
  0xb9   :  { %3236 = vrcp.f32 %v3732_v36  ;;  %v1417_v0 = vand.u32 2147483647, %v3732_v36  ;;  %v1419_v1 = vand.u32 2147483648, %v3732_v36  ;;  %vm1399_vm2 = vweird.f32 %v3727_v33 }
  0xba   :  { %v1395_v39 = vsub.f32 1.0, %v1394_v35  ;;  %v3738_v41 = vadd.f32 %v3683_v56, %v1039_v37  ;;  %v1008_v42 = vmul.f32 %v3672_v51, %v849_v38  ;;  %vm1878_vm3 = vweird.f32 %v3724_v27  ;;  %vm3792_vm6 = vmor %vm1398_vm0, %vm1399_vm2 }
  0xbb   :  { %v1885_v14 = vor.u32 1.1754944e-38, %v1884_v59  ;;  %vm1413_vm4 = vweird.f32 %v3732_v36  ;;  %vm3784_vm5 = vcmp.eq.f32.partialorder %v1417_v0, 8.507059e+37  ;;  %v1420_v18 = vor.u32 1.1754944e-38, %v1419_v1 }
  0xbc   :  { %v3231_v43 = vpop.eup %3230  ;;  %v519_v44 = vpop.f32.mrf.mxu2  ;;  %v1396_v46 = vmul.f32 %v3727_v33, %v1395_v39  ;;  %v2903_v49 = vmul.f32 -1.442695, %v3738_v41  ;;  %v3773_v2 = vadd.f32 %v3683_v56, %v1008_v42  ;;  %vm3797_vm8 = vcmp.eq.f32.partialorder %v1882_v57, 8.507059e+37 }
  0xbd   :  { %v3741_v45 = vpop.eup %3232  ;;  %v3745_v48 = vadd.f32 1.0, %v3231_v43  ;;  %v928_v50 = vpop.f32.mrf.mxu3 }
  0xbe   :  { %v3235_v54 = vpop.eup %3234  ;;  %v1874_v55 = vmul.f32 %v3741_v45, %v3724_v27  ;;  %v442_v60 = vpop.f32.mrf.mxu0  ;;  %v929_v9 = vadd.f32 %v928_v50, %v519_v44  ;;  %v1397_v10 = vadd.f32 %v3727_v33, %v1396_v46  ;;  %vm1879_vm7 = vweird.f32 %v3741_v45 }
  0xbf   :  { %3238 = vrcp.f32 %v3745_v48  ;;  %v851_v4 = vpop.f32.mrf.mxu1  ;;  %v3237_v5 = vpop.eup %3236  ;;  %v3775_v8 = vadd.f32 1.0, %v3235_v54  ;;  %v2872_v22 = vmul.f32 -1.442695, %v3773_v2  ;;  %v1897_v30 = vand.u32 2147483647, %v3745_v48  ;;  %vm3832_vm12 = vmor %vm1878_vm3, %vm1879_vm7 }
  0xc0   :  { %v1875_v7 = vsub.f32 1.0, %v1874_v55  ;;  %3240 = vpow2.f32 %v2903_v49  ;;  %v1409_v12 = vmul.f32 %v3237_v5, %v3732_v36  ;;  %v1040_v23 = vmul.f32 %v3672_v51, %v929_v9 }
  0xc1   :  { %481 = vmatmul.bf16.gmra.mxu0 %v2983_v52  ;;  %561 = vmatmul.bf16.gmra.mxu2 %v2999_v53  ;;  %3242 = vrcp.f32 %v3775_v8  ;;  %v852_v24 = vadd.f32 %v851_v4, %v442_v60  ;;  %v1401_v17 = vsel %vm3792_vm6, %v3727_v33, %v1397_v10  ;;  %vm1414_vm9 = vweird.f32 %v3237_v5  ;;  %v2984_v10 = vld [vmem:[%s5615_s1 + $0x58] sm:$0xff] }
  0xc2   :  { %v1876_v13 = vmul.f32 %v3741_v45, %v1875_v7  ;;  %890 = vmatmul.bf16.gmra.mxu1 %v2943_v61  ;;  %970 = vmatmul.bf16.gmra.mxu3 %v2959_v62  ;;  %v1410_v15 = vsub.f32 1.0, %v1409_v12  ;;  %vm1893_vm10 = vweird.f32 %v3745_v48  ;;  %3244 = vpow2.f32 %v2872_v22  ;;  %vm1415_vm11 = vmor %vm1413_vm4, %vm1414_vm9 }
  0xc3   :  { %v1899_v39 = vand.u32 2147483648, %v3745_v48  ;;  %v3816_v33 = vadd.f32 %v3683_v56, %v1040_v23  ;;  %v1406_v44 = vsel %vm3765_vm1, %v1405_v11, %v1401_v17  ;;  %v1009_v47 = vmul.f32 %v3672_v51, %v852_v24  ;;  %v3000_v11 = vld [vmem:[%s5615_s1 + $0xd8] sm:$0xff] }
  0xc4   :  { %v522_v26 = vpop.f32.mrf.mxu2  ;;  %v1411_v29 = vmul.f32 %v3237_v5, %v1410_v15  ;;  %v1877_v34 = vadd.f32 %v3741_v45, %v1876_v13  ;;  %vm3836_vm13 = vcmp.eq.f32.partialorder %v1897_v30, 8.507059e+37  ;;  %v2353_v57 = vmul.f32 %v1406_v44, %v3687_v58  ;;  %v2960_v15 = vld [vmem:[%s5616_s0 + $0xd8] sm:$0xff] }
  0xc5   :  { %v3239_v28 = vpop.eup %3238  ;;  %v931_v31 = vpop.f32.mrf.mxu3  ;;  %v2904_v61 = vmul.f32 -1.442695, %v3816_v33  ;;  %v1900_v0 = vor.u32 1.1754944e-38, %v1899_v39  ;;  %v3852_v1 = vadd.f32 %v3683_v56, %v1009_v47  ;;  %v1432_v19 = vand.u32 2147483647, %v3775_v8 }
  0xc6   :  { %v3241_v32 = vpop.eup %3240  ;;  %v1889_v35 = vmul.f32 %v3239_v28, %v3745_v48  ;;  %v3810_v37 = vpop.f32.mrf.mxu0  ;;  %v1412_v38 = vadd.f32 %v3237_v5, %v1411_v29  ;;  %v932_v49 = vadd.f32 %v931_v31, %v522_v26  ;;  %v1881_v54 = vsel %vm3832_vm12, %v3741_v45, %v1877_v34 }
  0xc7   :  { %v3813_v40 = vadd.f32 1.0, %v3241_v32  ;;  %v3818_v42 = vpop.f32.mrf.mxu1  ;;  %v3820_v43 = vpop.eup %3242  ;;  %vm1894_vm14 = vweird.f32 %v3239_v28  ;;  %v2873_v13 = vmul.f32 -1.442695, %v3852_v1  ;;  %v1434_v23 = vand.u32 2147483648, %v3775_v8 }
  0xc8   :  { %v1890_v46 = vsub.f32 1.0, %v1889_v35  ;;  %v1416_v52 = vsel %vm1415_vm11, %v3237_v5, %v1412_v38  ;;  %v1424_v36 = vmul.f32 %v3820_v43, %v3775_v8  ;;  %v3245_v62 = vpop.eup %3244  ;;  %v1041_v45 = vmul.f32 %v3672_v51, %v932_v49  ;;  %vm1895_vm15 = vmor %vm1893_vm10, %vm1894_vm14 }
  0xc9   :  { %3246 = vrcp.f32 %v3813_v40  ;;  %v1421_v27 = vsel %vm3784_vm5, %v1420_v18, %v1416_v52  ;;  %v1886_v5 = vsel %vm3797_vm8, %v1885_v14, %v1881_v54  ;;  %v2944_v14 = vld [vmem:[%s5616_s0 + $0x58] sm:$0xff]  ;;  %vm1428_vm0 = vweird.f32 %v3775_v8 }
  0xca   :  { %v1891_v55 = vmul.f32 %v3239_v28, %v1890_v46  ;;  %v2354_v59 = vmul.f32 %v1421_v27, %v3697_v6  ;;  %v1425_v60 = vsub.f32 1.0, %v1424_v36  ;;  %v3860_v6 = vadd.f32 1.0, %v3245_v62 }
  0xcb   :  { %3248 = vpow2.f32 %v2904_v61  ;;  %v3870_v48 = vadd.f32 %v3683_v56, %v1041_v45  ;;  %v2385_v20 = vmul.f32 %v1886_v5, %v3692_v3  ;;  %v1912_v17 = vand.u32 2147483647, %v3813_v40 }
  0xcc   :  { %v1892_v63 = vadd.f32 %v3239_v28, %v1891_v55  ;;  %v524_v4 = vpop.f32.mrf.mxu2  ;;  %v3016_v7 = vpack.c.bf16 %v2354_v59, %v2353_v57  ;;  %v1426_v58 = vmul.f32 %v3820_v43, %v1425_v60  ;;  %3250 = vrcp.f32 %v3860_v6 }
  0xcd   :  { %v933_v9 = vpop.f32.mrf.mxu3  ;;  %3252 = vpow2.f32 %v2873_v13  ;;  %v2905_v29 = vmul.f32 -1.442695, %v3870_v48  ;;  %vm1429_vm1 = vweird.f32 %v3820_v43  ;;  %vm3897_vm2 = vcmp.eq.f32.partialorder %v1432_v19, 8.507059e+37 }
  0xce   :  { %v1896_v12 = vsel %vm1895_vm15, %v3239_v28, %v1892_v63  ;;  %3017 = vst [vmem:[%s5619_s6] sm:$0xff] %v3016_v7   ;;  %v447_v26 = vpop.f32.mrf.mxu0  ;;  %v1427_v3 = vadd.f32 %v3820_v43, %v1426_v58  ;;  %v1914_v32 = vand.u32 2147483648, %v3813_v40  ;;  %v854_v34 = vadd.f32 %v3818_v42, %v3810_v37  ;;  %vm3913_vm4 = vmor %vm1428_vm0, %vm1429_vm1 }
  0xcf   :  { %v3878_v16 = vpop.eup %3246  ;;  %v1901_v18 = vsel %vm3836_vm13, %v1900_v0, %v1896_v12  ;;  %v856_v28 = vpop.f32.mrf.mxu1  ;;  %3254 = vpow2.f32 %v2905_v29  ;;  %v1435_v38 = vor.u32 1.1754944e-38, %v1434_v23  ;;  %vm1908_vm3 = vweird.f32 %v3813_v40  ;;  %v3001_v23 = vld [vmem:[%s5615_s1 + $0xe0] sm:$0xff] }
  0xd0   :  { %v2386_v22 = vmul.f32 %v1901_v18, %v3717_v21  ;;  %v1904_v24 = vmul.f32 %v3878_v16, %v3813_v40  ;;  %v934_v44 = vadd.f32 %v933_v9, %v524_v4  ;;  %vm1909_vm5 = vweird.f32 %v3878_v16 }
  0xd1   :  { %486 = vmatmul.bf16.gmra.mxu0 %v2984_v10  ;;  %566 = vmatmul.bf16.gmra.mxu2 %v3000_v11  ;;  %v3249_v35 = vpop.eup %3248  ;;  %vm3918_vm6 = vcmp.eq.f32.partialorder %v1912_v17, 8.507059e+37  ;;  %v1010_v49 = vmul.f32 %v3672_v51, %v854_v34  ;;  %v1431_v50 = vsel %vm3913_vm4, %v3820_v43, %v1427_v3  ;;  %v1915_v55 = vor.u32 1.1754944e-38, %v1914_v32  ;;  %vm3945_vm8 = vmor %vm1908_vm3, %vm1909_vm5  ;;  %v2945_v17 = vld [vmem:[%s5616_s0 + $0x60] sm:$0xff] }
  0xd2   :  { %v3096_v30 = vpack.c.bf16 %v2386_v22, %v2385_v20  ;;  %v1905_v21 = vsub.f32 1.0, %v1904_v24  ;;  %895 = vmatmul.bf16.gmra.mxu1 %v2944_v14  ;;  %975 = vmatmul.bf16.gmra.mxu3 %v2960_v15  ;;  %v3251_v46 = vpop.eup %3250  ;;  %v3922_v42 = vadd.f32 1.0, %v3249_v35  ;;  %v1042_v53 = vmul.f32 %v3672_v51, %v934_v44 }
  0xd3   :  { %v1439_v52 = vmul.f32 %v3251_v46, %v3860_v6  ;;  %v3253_v27 = vpop.eup %3252  ;;  %vm1443_vm7 = vweird.f32 %v3860_v6  ;;  %v1447_v57 = vand.u32 2147483647, %v3860_v6  ;;  %v3937_v43 = vadd.f32 %v3683_v56, %v1010_v49 }
  0xd4   :  { %3188 = vst [vmem:[%s5619_s6 + $0x80] sm:$0xff] %v3096_v30   ;;  %v1906_v39 = vmul.f32 %v3878_v16, %v1905_v21  ;;  %v527_v36 = vpop.f32.mrf.mxu2  ;;  %3256 = vrcp.f32 %v3922_v42  ;;  %v3934_v60 = vadd.f32 1.0, %v3253_v27  ;;  %v857_v61 = vadd.f32 %v856_v28, %v447_v26  ;;  %v2961_v21 = vld [vmem:[%s5616_s0 + $0xe0] sm:$0xff] }
  0xd5   :  { %v936_v54 = vpop.f32.mrf.mxu3  ;;  %v1440_v59 = vsub.f32 1.0, %v1439_v52  ;;  %v3255_v62 = vpop.eup %3254  ;;  %v1436_v63 = vsel %vm3897_vm2, %v1435_v38, %v1431_v50  ;;  %vm1444_vm9 = vweird.f32 %v3251_v46  ;;  %v1449_v45 = vand.u32 2147483648, %v3860_v6 }
  0xd6   :  { %v1907_v8 = vadd.f32 %v3878_v16, %v1906_v39  ;;  %v3951_v4 = vadd.f32 %v3683_v56, %v1042_v53  ;;  %v1927_v58 = vand.u32 2147483647, %v3922_v42  ;;  %3258 = vrcp.f32 %v3934_v60  ;;  %v449_v40 = vpop.f32.mrf.mxu0  ;;  %vm1445_vm11 = vmor %vm1443_vm7, %vm1444_vm9 }
  0xd7   :  { %v1441_v7 = vmul.f32 %v3251_v46, %v1440_v59  ;;  %v858_v9 = vpop.f32.mrf.mxu1  ;;  %vm3958_vm10 = vcmp.eq.f32.partialorder %v1447_v57, 8.507059e+37  ;;  %v1929_v11 = vand.u32 2147483648, %v3922_v42  ;;  %v3963_v12 = vadd.f32 1.0, %v3255_v62 }
  0xd8   :  { %v1911_v5 = vsel %vm3945_vm8, %v3878_v16, %v1907_v8  ;;  %v2874_v13 = vmul.f32 -1.442695, %v3937_v43  ;;  %v2355_v14 = vmul.f32 %v1436_v63, %v3722_v25  ;;  %v2906_v16 = vmul.f32 -1.442695, %v3951_v4  ;;  %v2985_v25 = vld [vmem:[%s5615_s1 + $0x60] sm:$0xff] }
  0xd9   :  { %v1442_v15 = vadd.f32 %v3251_v46, %v1441_v7  ;;  %v1011_v18 = vmul.f32 %v3672_v51, %v857_v61  ;;  %v1916_v20 = vsel %vm3918_vm6, %v1915_v55, %v1911_v5  ;;  %v1450_v22 = vor.u32 1.1754944e-38, %v1449_v45 }
  0xda   :  { %v3257_v19 = vpop.eup %3256  ;;  %vm1923_vm12 = vweird.f32 %v3922_v42  ;;  %3260 = vrcp.f32 %v3963_v12  ;;  %vm3983_vm13 = vcmp.eq.f32.partialorder %v1927_v58, 8.507059e+37  ;;  %v937_v6 = vadd.f32 %v936_v54, %v527_v36 }
  0xdb   :  { %v1446_v24 = vsel %vm1445_vm11, %v3251_v46, %v1442_v15  ;;  %v1919_v26 = vmul.f32 %v3257_v19, %v3922_v42  ;;  %v1930_v30 = vor.u32 1.1754944e-38, %v1929_v11  ;;  %3262 = vpow2.f32 %v2874_v13 }
  0xdc   :  { %v1451_v29 = vsel %vm3958_vm10, %v1450_v22, %v1446_v24  ;;  %v3993_v3 = vadd.f32 %v3683_v56, %v1011_v18  ;;  %v3998_v31 = vpop.eup %3258  ;;  %v1464_v35 = vand.u32 2147483648, %v3934_v60  ;;  %3264 = vpow2.f32 %v2906_v16  ;;  %v529_v38 = vpop.f32.mrf.mxu2 }
  0xdd   :  { %v2356_v32 = vmul.f32 %v1451_v29, %v3773_v2  ;;  %v1920_v34 = vsub.f32 1.0, %v1919_v26  ;;  %v938_v39 = vpop.f32.mrf.mxu3  ;;  %v2387_v44 = vmul.f32 %v1916_v20, %v3738_v41  ;;  %vm1924_vm14 = vweird.f32 %v3257_v19 }
  0xde   :  { %v1454_v46 = vmul.f32 %v3998_v31, %v3934_v60  ;;  %v2875_v47 = vmul.f32 -1.442695, %v3993_v3  ;;  %v1043_v2 = vmul.f32 %v3672_v51, %v937_v6  ;;  %v859_v50 = vadd.f32 %v858_v9, %v449_v40  ;;  %v452_v55 = vpop.f32.mrf.mxu0  ;;  %vm1925_vm0 = vmor %vm1923_vm12, %vm1924_vm14 }
  0xdf   :  { %v3021_v37 = vpack.c.bf16 %v2356_v32, %v2355_v14  ;;  %v1921_v49 = vmul.f32 %v3257_v19, %v1920_v34  ;;  %vm1458_vm15 = vweird.f32 %v3934_v60  ;;  %v1462_v41 = vand.u32 2147483647, %v3934_v60  ;;  %v861_v57 = vpop.f32.mrf.mxu1  ;;  %v3002_v32 = vld [vmem:[%s5615_s1 + $0xe8] sm:$0xff] }
  0xe0   :  { %v4007_v8 = vpop.eup %3260  ;;  %v1455_v52 = vsub.f32 1.0, %v1454_v46  ;;  %3266 = vpow2.f32 %v2875_v47  ;;  %v1465_v36 = vor.u32 1.1754944e-38, %v1464_v35  ;;  %v4017_v27 = vadd.f32 %v3683_v56, %v1043_v2 }
  0xe1   :  { %491 = vmatmul.bf16.gmra.mxu0 %v2985_v25  ;;  %571 = vmatmul.bf16.gmra.mxu2 %v3001_v23  ;;  %3173 = vst [vmem:[%s5619_s6 + $0x8] sm:$0xff] %v3021_v37   ;;  %v1922_v53 = vadd.f32 %v3257_v19, %v1921_v49  ;;  %v1934_v54 = vmul.f32 %v4007_v8, %v3963_v12  ;;  %v3263_v59 = vpop.eup %3262  ;;  %vm1459_vm1 = vweird.f32 %v3998_v31  ;;  %v1942_v7 = vand.u32 2147483647, %v3963_v12  ;;  %v2962_v49 = vld [vmem:[%s5616_s0 + $0xe8] sm:$0xff] }
  0xe2   :  { %900 = vmatmul.bf16.gmra.mxu1 %v2945_v17  ;;  %980 = vmatmul.bf16.gmra.mxu3 %v2961_v21  ;;  %v1456_v61 = vmul.f32 %v3998_v31, %v1455_v52  ;;  %v1012_v62 = vmul.f32 %v3672_v51, %v859_v50  ;;  %v939_v63 = vadd.f32 %v938_v39, %v529_v38  ;;  %v3265_v0 = vpop.eup %3264  ;;  %v4026_v58 = vadd.f32 1.0, %v3263_v59  ;;  %vm4036_vm2 = vmor %vm1458_vm15, %vm1459_vm1  ;;  %v2946_v39 = vld [vmem:[%s5616_s0 + $0x68] sm:$0xff] }
  0xe3   :  { %v1926_v45 = vsel %vm1925_vm0, %v3257_v19, %v1922_v53  ;;  %v1935_v5 = vsub.f32 1.0, %v1934_v54  ;;  %v4031_v9 = vadd.f32 1.0, %v3265_v0  ;;  %v862_v10 = vadd.f32 %v861_v57, %v452_v55 }
  0xe4   :  { %v1931_v40 = vsel %vm3983_vm13, %v1930_v30, %v1926_v45  ;;  %v1457_v42 = vadd.f32 %v3998_v31, %v1456_v61  ;;  %3268 = vrcp.f32 %v4026_v58  ;;  %v2907_v15 = vmul.f32 -1.442695, %v4017_v27  ;;  %v532_v25 = vpop.f32.mrf.mxu2 }
  0xe5   :  { %v2388_v11 = vmul.f32 %v1931_v40, %v3816_v33  ;;  %v1936_v14 = vmul.f32 %v4007_v8, %v1935_v5  ;;  %3270 = vrcp.f32 %v4031_v9  ;;  %v4048_v33 = vadd.f32 %v3683_v56, %v1012_v62  ;;  %v941_v23 = vpop.f32.mrf.mxu3 }
  0xe6   :  { %v3267_v16 = vpop.eup %3266  ;;  %v1461_v18 = vsel %vm4036_vm2, %v3998_v31, %v1457_v42  ;;  %v1044_v60 = vmul.f32 %v3672_v51, %v939_v63  ;;  %vm1939_vm3 = vweird.f32 %v4007_v8  ;;  %v1944_v22 = vand.u32 2147483648, %v3963_v12  ;;  %v2986_v31 = vld [vmem:[%s5615_s1 + $0x68] sm:$0xff] }
  0xe7   :  { %v3101_v19 = vpack.c.bf16 %v2388_v11, %v2387_v44  ;;  %v1937_v20 = vadd.f32 %v4007_v8, %v1936_v14  ;;  %vm1463_vm4 = vcmp.eq.f32.partialorder %v1462_v41, 8.507059e+37  ;;  %vm1938_vm5 = vweird.f32 %v3963_v12  ;;  %v863_v54 = vpop.f32.mrf.mxu1 }
  0xe8   :  { %v1477_v24 = vand.u32 2147483647, %v4026_v58  ;;  %v1466_v26 = vsel %vm1463_vm4, %v1465_v36, %v1461_v18  ;;  %vm4059_vm6 = vcmp.eq.f32.partialorder %v1942_v7, 8.507059e+37  ;;  %v4063_v6 = vadd.f32 1.0, %v3267_v16  ;;  %vm4065_vm7 = vmor %vm1938_vm5, %vm1939_vm3  ;;  %v454_v36 = vpop.f32.mrf.mxu0 }
  0xe9   :  { %3189 = vst [vmem:[%s5619_s6 + $0x88] sm:$0xff] %v3101_v19   ;;  %3272 = vpow2.f32 %v2907_v15  ;;  %v1479_v12 = vand.u32 2147483648, %v4026_v58  ;;  %v2876_v29 = vmul.f32 -1.442695, %v4048_v33  ;;  %v4072_v30 = vadd.f32 %v3683_v56, %v1044_v60 }
  0xea   :  { %v1013_v21 = vmul.f32 %v3672_v51, %v862_v10  ;;  %v3269_v34 = vpop.eup %3268  ;;  %v1941_v35 = vsel %vm4065_vm7, %v4007_v8, %v1937_v20  ;;  %v1945_v38 = vor.u32 1.1754944e-38, %v1944_v22  ;;  %vm1473_vm8 = vweird.f32 %v4026_v58 }
  0xeb   :  { %3274 = vrcp.f32 %v4063_v6  ;;  %v3271_v44 = vpop.eup %3270  ;;  %v4090_v46 = vmul.f32 %v1466_v26, %v3852_v1  ;;  %v1469_v47 = vmul.f32 %v3269_v34, %v4026_v58  ;;  %vm4093_vm9 = vcmp.eq.f32.partialorder %v1477_v24, 8.507059e+37 }
  0xec   :  { %vm1953_vm10 = vweird.f32 %v4031_v9  ;;  %v1949_v2 = vmul.f32 %v3271_v44, %v4031_v9  ;;  %v1957_v50 = vand.u32 2147483647, %v4031_v9  ;;  %3276 = vpow2.f32 %v2876_v29  ;;  %v534_v42 = vpop.f32.mrf.mxu2 }
  0xed   :  { %v2908_v1 = vmul.f32 -1.442695, %v4072_v30  ;;  %v1946_v8 = vsel %vm4059_vm6, %v1945_v38, %v1941_v35  ;;  %v1470_v52 = vsub.f32 1.0, %v1469_v47  ;;  %v1480_v41 = vor.u32 1.1754944e-38, %v1479_v12  ;;  %v943_v10 = vpop.f32.mrf.mxu3 }
  0xee   :  { %v4107_v53 = vadd.f32 %v3683_v56, %v1013_v21  ;;  %v1950_v57 = vsub.f32 1.0, %v1949_v2  ;;  %v1959_v59 = vand.u32 2147483648, %v4031_v9  ;;  %v942_v61 = vadd.f32 %v941_v23, %v532_v25 }
  0xef   :  { %v3273_v55 = vpop.eup %3272  ;;  %3278 = vpow2.f32 %v2908_v1  ;;  %v1471_v62 = vmul.f32 %v3269_v34, %v1470_v52  ;;  %vm1474_vm11 = vweird.f32 %v3269_v34  ;;  %v2389_v5 = vmul.f32 %v1946_v8, %v3870_v48  ;;  %v2987_v1 = vld [vmem:[%s5615_s1 + $0x70] sm:$0xff] }
  0xf0   :  { %v4110_v63 = vadd.f32 1.0, %v3273_v55  ;;  %v2877_v0 = vmul.f32 -1.442695, %v4107_v53  ;;  %v1951_v7 = vmul.f32 %v3271_v44, %v1950_v57  ;;  %vm1954_vm12 = vweird.f32 %v3271_v44  ;;  %vm1475_vm14 = vmor %vm1473_vm8, %vm1474_vm11  ;;  %v457_v38 = vpop.f32.mrf.mxu0  ;;  %v3003_v8 = vld [vmem:[%s5615_s1 + $0xf0] sm:$0xff] }
  0xf1   :  { %496 = vmatmul.bf16.gmra.mxu0 %v2986_v31  ;;  %576 = vmatmul.bf16.gmra.mxu2 %v3002_v32  ;;  %v4113_v45 = vpop.eup %3274  ;;  %vm4116_vm13 = vcmp.eq.f32.partialorder %v1957_v50, 8.507059e+37  ;;  %v1472_v11 = vadd.f32 %v3269_v34, %v1471_v62  ;;  %v1492_v14 = vand.u32 2147483647, %v4063_v6  ;;  %v1960_v16 = vor.u32 1.1754944e-38, %v1959_v59  ;;  %vm1955_vm15 = vmor %vm1953_vm10, %vm1954_vm12  ;;  %v2947_v59 = vld [vmem:[%s5616_s0 + $0x70] sm:$0xff] }
  0xf2   :  { %905 = vmatmul.bf16.gmra.mxu1 %v2946_v39  ;;  %985 = vmatmul.bf16.gmra.mxu3 %v2962_v49  ;;  %v1484_v13 = vmul.f32 %v4113_v45, %v4063_v6  ;;  %3280 = vrcp.f32 %v4110_v63  ;;  %v3277_v15 = vpop.eup %3276  ;;  %v1952_v48 = vadd.f32 %v3271_v44, %v1951_v7  ;;  %v1045_v18 = vmul.f32 %v3672_v51, %v942_v61  ;;  %v866_v39 = vpop.f32.mrf.mxu1  ;;  %v2963_v7 = vld [vmem:[%s5616_s0 + $0xf0] sm:$0xff] }
  0xf3   :  { %v864_v60 = vadd.f32 %v863_v54, %v454_v36  ;;  %v1476_v19 = vsel %vm1475_vm14, %v3269_v34, %v1472_v11  ;;  %v4131_v22 = vadd.f32 1.0, %v3277_v15  ;;  %3282 = vpow2.f32 %v2877_v0 }
  0xf4   :  { %v1485_v20 = vsub.f32 1.0, %v1484_v13  ;;  %v1481_v23 = vsel %vm4093_vm9, %v1480_v41, %v1476_v19  ;;  %v1956_v58 = vsel %vm1955_vm15, %v3271_v44, %v1952_v48  ;;  %vm1488_vm0 = vweird.f32 %v4063_v6  ;;  %v537_v55 = vpop.f32.mrf.mxu2 }
  0xf5   :  { %v3279_v25 = vpop.eup %3278  ;;  %v1494_v24 = vand.u32 2147483648, %v4063_v6  ;;  %v2358_v26 = vmul.f32 %v1481_v23, %v3937_v43  ;;  %v1961_v28 = vsel %vm4116_vm13, %v1960_v16, %v1956_v58  ;;  %vm4141_vm1 = vcmp.eq.f32.partialorder %v1492_v14, 8.507059e+37  ;;  %v946_v57 = vpop.f32.mrf.mxu3 }
  0xf6   :  { %v1486_v9 = vmul.f32 %v4113_v45, %v1485_v20  ;;  %3284 = vrcp.f32 %v4131_v22  ;;  %v2390_v12 = vmul.f32 %v1961_v28, %v3951_v4  ;;  %vm1489_vm2 = vweird.f32 %v4113_v45 }
  0xf7   :  { %v1974_v29 = vand.u32 2147483648, %v4110_v63  ;;  %v1014_v21 = vmul.f32 %v3672_v51, %v864_v60  ;;  %v3026_v31 = vpack.c.bf16 %v2358_v26, %v4090_v46  ;;  %v4154_v34 = vadd.f32 1.0, %v3279_v25  ;;  %vm4181_vm3 = vmor %vm1488_vm0, %vm1489_vm2 }
  0xf8   :  { %v4150_v43 = vpop.eup %3280  ;;  %v1487_v32 = vadd.f32 %v4113_v45, %v1486_v9  ;;  %v4157_v35 = vadd.f32 %v3683_v56, %v1045_v18  ;;  %v3106_v4 = vpack.c.bf16 %v2390_v12, %v2389_v5  ;;  %v1495_v44 = vor.u32 1.1754944e-38, %v1494_v24  ;;  %v459_v28 = vpop.f32.mrf.mxu0 }
  0xf9   :  { %v1964_v47 = vmul.f32 %v4150_v43, %v4110_v63  ;;  %v1972_v37 = vand.u32 2147483647, %v4110_v63  ;;  %v3283_v49 = vpop.eup %3282  ;;  %3174 = vst [vmem:[%s5619_s6 + $0x10] sm:$0xff] %v3026_v31   ;;  %v1507_v46 = vand.u32 2147483647, %v4131_v22  ;;  %v1509_v2 = vand.u32 2147483648, %v4131_v22 }
  0xfa   :  { %3286 = vrcp.f32 %v4154_v34  ;;  %v944_v50 = vadd.f32 %v943_v10, %v534_v42  ;;  %3190 = vst [vmem:[%s5619_s6 + $0x90] sm:$0xff] %v3106_v4   ;;  %vm1968_vm4 = vweird.f32 %v4110_v63  ;;  %v4186_v36 = vor.u32 1.1754944e-38, %v1974_v29  ;;  %v868_v9 = vpop.f32.mrf.mxu1 }
  0xfb   :  { %v1965_v41 = vsub.f32 1.0, %v1964_v47  ;;  %v867_v54 = vadd.f32 %v866_v39, %v457_v38  ;;  %v1491_v6 = vsel %vm4181_vm3, %v4113_v45, %v1487_v32  ;;  %v4194_v62 = vadd.f32 1.0, %v3283_v49 }
  0xfc   :  { %v3285_v61 = vpop.eup %3284  ;;  %v2909_v0 = vmul.f32 -1.442695, %v4157_v35  ;;  %v4198_v5 = vadd.f32 %v3683_v56, %v1014_v21  ;;  %vm1969_vm5 = vweird.f32 %v4150_v43  ;;  %vm1503_vm6 = vweird.f32 %v4131_v22 }
  0xfd   :  { %v1966_v40 = vmul.f32 %v4150_v43, %v1965_v41  ;;  %v1499_v42 = vmul.f32 %v3285_v61, %v4131_v22  ;;  %vm4207_vm7 = vcmp.eq.f32.partialorder %v1972_v37, 8.507059e+37  ;;  %vm4211_vm8 = vcmp.eq.f32.partialorder %v1507_v46, 8.507059e+37  ;;  %vm4238_vm12 = vmor %vm1968_vm4, %vm1969_vm5  ;;  %v948_v47 = vpop.f32.mrf.mxu3 }
  0xfe   :  { %v1510_v11 = vor.u32 1.1754944e-38, %v1509_v2  ;;  %v1987_v13 = vand.u32 2147483647, %v4154_v34  ;;  %3288 = vrcp.f32 %v4194_v62  ;;  %v1496_v14 = vsel %vm4141_vm1, %v1495_v44, %v1491_v6  ;;  %v539_v44 = vpop.f32.mrf.mxu2 }
  0xff   :  { %v1500_v15 = vsub.f32 1.0, %v1499_v42  ;;  %v1989_v48 = vand.u32 2147483648, %v4154_v34  ;;  %3290 = vpow2.f32 %v2909_v0  ;;  %v1967_v18 = vadd.f32 %v4150_v43, %v1966_v40  ;;  %v4293_v40 = vld [vmem:[%s5618_s5] ss:$0 sm:$0xff] }
 0x100   :  { %v3287_v16 = vpop.eup %3286  ;;  %v2878_v60 = vmul.f32 -1.442695, %v4198_v5  ;;  %v1046_v19 = vmul.f32 %v3672_v51, %v944_v50  ;;  %v1015_v20 = vmul.f32 %v3672_v51, %v867_v54  ;;  %vm1504_vm9 = vweird.f32 %v3285_v61  ;;  %v462_v45 = vpop.f32.mrf.mxu0 }
 0x101   :  { %501 = vmatmul.bf16.gmra.mxu0 %v2987_v1  ;;  %581 = vmatmul.bf16.gmra.mxu2 %v3003_v8  ;;  %v1501_v25 = vmul.f32 %v3285_v61, %v1500_v15  ;;  %v1979_v23 = vmul.f32 %v3287_v16, %v4154_v34  ;;  %vm1983_vm10 = vweird.f32 %v4154_v34  ;;  %v2359_v58 = vmul.f32 %v1496_v14, %v3993_v3  ;;  %vm1505_vm13 = vmor %vm1503_vm6, %vm1504_vm9  ;;  %v4272_v8 = vld [vmem:[%s5617_s4] ss:$0 sm:$0xff]  ;;  %v2988_v15 = vld [vmem:[%s5615_s1 + $0x78] sm:$0xff] }
 0x102   :  { %910 = vmatmul.bf16.gmra.mxu1 %v2947_v59  ;;  %990 = vmatmul.bf16.gmra.mxu3 %v2963_v7  ;;  %vm4227_vm11 = vcmp.eq.f32.partialorder %v1987_v13, 8.507059e+37  ;;  %3292 = vpow2.f32 %v2878_v60  ;;  %v4232_v26 = vadd.f32 %v3683_v56, %v1046_v19  ;;  %v1990_v12 = vor.u32 1.1754944e-38, %v1989_v48  ;;  %v871_v10 = vpop.f32.mrf.mxu1  ;;  %v3004_v48 = vld [vmem:[%s5615_s1 + $0xf8] sm:$0xff] }
 0x103   :  { %v1502_v17 = vadd.f32 %v3285_v61, %v1501_v25  ;;  %v1980_v3 = vsub.f32 1.0, %v1979_v23  ;;  %v4243_v29 = vadd.f32 %v3683_v56, %v1015_v20  ;;  %v1971_v31 = vsel %vm4238_vm12, %v4150_v43, %v1967_v18  ;;  %v2964_v23 = vld [vmem:[%s5616_s0 + $0xf8] sm:$0xff] }
 0x104   :  { %v4245_v21 = vpop.eup %3288  ;;  %vm1518_vm14 = vweird.f32 %v4194_v62  ;;  %v2910_v63 = vmul.f32 -1.442695, %v4232_v26  ;;  %v947_v32 = vadd.f32 %v946_v57, %v537_v55  ;;  %vm1984_vm15 = vweird.f32 %v3287_v16 }
 0x105   :  { %v3291_v38 = vpop.eup %3290  ;;  %v1506_v39 = vsel %vm1505_vm13, %v3285_v61, %v1502_v17  ;;  %v1981_v4 = vmul.f32 %v3287_v16, %v1980_v3  ;;  %v1514_v56 = vmul.f32 %v4245_v21, %v4194_v62  ;;  %v2879_v22 = vmul.f32 -1.442695, %v4243_v29  ;;  %vm1985_vm0 = vmor %vm1983_vm10, %vm1984_vm15 }
 0x106   :  { %v1511_v43 = vsel %vm4211_vm8, %v1510_v11, %v1506_v39  ;;  %v4259_v37 = vadd.f32 1.0, %v3291_v38  ;;  %3294 = vpow2.f32 %v2910_v63  ;;  %v1976_v49 = vsel %vm4207_vm7, %v4186_v36, %v1971_v31  ;;  %v951_v38 = vpop.f32.mrf.mxu3 }
 0x107   :  { %v2360_v46 = vmul.f32 %v1511_v43, %v4048_v33  ;;  %v1982_v2 = vadd.f32 %v3287_v16, %v1981_v4  ;;  %v1515_v50 = vsub.f32 1.0, %v1514_v56  ;;  %v1047_v52 = vmul.f32 %v4272_v8, %v947_v32  ;;  %v542_v32 = vpop.f32.mrf.mxu2 }
 0x108   :  { %v3293_v1 = vpop.eup %3292  ;;  %3296 = vrcp.f32 %v4259_v37  ;;  %v869_v41 = vadd.f32 %v868_v9, %v459_v28  ;;  %v949_v54 = vadd.f32 %v948_v47, %v539_v44  ;;  %v2391_v34 = vmul.f32 %v1976_v49, %v4017_v27 }
 0x109   :  { %v3031_v36 = vpack.c.bf16 %v2360_v46, %v2359_v58  ;;  %v1986_v55 = vsel %vm1985_vm0, %v3287_v16, %v1982_v2  ;;  %v1516_v33 = vmul.f32 %v4245_v21, %v1515_v50  ;;  %v4276_v57 = vadd.f32 1.0, %v3293_v1  ;;  %v2948_v16 = vld [vmem:[%s5616_s0 + $0x78] sm:$0xff] }
 0x10a   :  { %v1991_v59 = vsel %vm4227_vm11, %v1990_v12, %v1986_v55  ;;  %v1522_v61 = vand.u32 2147483647, %v4194_v62  ;;  %3298 = vpow2.f32 %v2879_v22  ;;  %vm1519_vm1 = vweird.f32 %v4245_v21 }
 0x10b   :  { %3175 = vst [vmem:[%s5619_s6 + $0x18] sm:$0xff] %v3031_v36   ;;  %v2392_v6 = vmul.f32 %v1991_v59, %v4072_v30  ;;  %v1517_v0 = vadd.f32 %v4245_v21, %v1516_v33  ;;  %3300 = vrcp.f32 %v4276_v57  ;;  %v1524_v27 = vand.u32 2147483648, %v4194_v62  ;;  %vm4317_vm2 = vmor %vm1518_vm14, %vm1519_vm1  ;;  %v873_v59 = vpop.f32.mrf.mxu1 }
 0x10c   :  { %v3295_v7 = vpop.eup %3294  ;;  %v4296_v42 = vadd.f32 %v4293_v40, %v1047_v52  ;;  %v1016_v13 = vmul.f32 %v4272_v8, %v869_v41  ;;  %v1048_v14 = vmul.f32 %v4272_v8, %v949_v54  ;;  %vm4321_vm3 = vcmp.eq.f32.partialorder %v1522_v61, 8.507059e+37 }
 0x10d   :  { %v3111_v30 = vpack.c.bf16 %v2392_v6, %v2391_v34  ;;  %v4298_v11 = vadd.f32 1.0, %v3295_v7  ;;  %v2004_v20 = vand.u32 2147483648, %v4259_v37  ;;  %v1521_v62 = vsel %vm4317_vm2, %v4245_v21, %v1517_v0  ;;  %v464_v34 = vpop.f32.mrf.mxu0 }
 0x10e   :  { %v4311_v18 = vpop.eup %3296  ;;  %v2911_v25 = vmul.f32 -1.442695, %v4296_v42  ;;  %v1537_v24 = vand.u32 2147483647, %v4276_v57  ;;  %v1525_v9 = vor.u32 1.1754944e-38, %v1524_v27  ;;  %v1539_v17 = vand.u32 2147483648, %v4276_v57  ;;  %v953_v19 = vpop.f32.mrf.mxu3 }
 0x10f   :  { %3191 = vst [vmem:[%s5619_s6 + $0x98] sm:$0xff] %v3111_v30   ;;  %v1994_v58 = vmul.f32 %v4311_v18, %v4259_v37  ;;  %3302 = vrcp.f32 %v4298_v11  ;;  %v2002_v51 = vand.u32 2147483647, %v4259_v37  ;;  %v4345_v31 = vadd.f32 %v4293_v40, %v1016_v13  ;;  %v544_v60 = vpop.f32.mrf.mxu2 }
 0x110   :  { %v3299_v28 = vpop.eup %3298  ;;  %3304 = vpow2.f32 %v2911_v25  ;;  %v4348_v63 = vadd.f32 %v4293_v40, %v1048_v14  ;;  %v1526_v39 = vsel %vm4321_vm3, %v1525_v9, %v1521_v62  ;;  %vm1998_vm4 = vweird.f32 %v4259_v37 }
 0x111   :  { %506 = vmatmul.bf16.gmra.mxu0 %v2988_v15  ;;  %586 = vmatmul.bf16.gmra.mxu2 %v3004_v48  ;;  %v3301_v3 = vpop.eup %3300  ;;  %v1995_v12 = vsub.f32 1.0, %v1994_v58  ;;  %v4342_v21 = vadd.f32 1.0, %v3299_v28  ;;  %v2005_v4 = vor.u32 1.1754944e-38, %v2004_v20  ;;  %vm1533_vm5 = vweird.f32 %v4276_v57 }
 0x112   :  { %915 = vmatmul.bf16.gmra.mxu1 %v2948_v16  ;;  %995 = vmatmul.bf16.gmra.mxu3 %v2964_v23  ;;  %v1529_v56 = vmul.f32 %v3301_v3, %v4276_v57  ;;  %vm4356_vm6 = vcmp.eq.f32.partialorder %v1537_v24, 8.507059e+37  ;;  %vm4361_vm7 = vcmp.eq.f32.partialorder %v2002_v51, 8.507059e+37  ;;  %v1540_v49 = vor.u32 1.1754944e-38, %v1539_v17 }
 0x113   :  { %v1996_v44 = vmul.f32 %v4311_v18, %v1995_v12  ;;  %3306 = vrcp.f32 %v4342_v21  ;;  %v2880_v46 = vmul.f32 -1.442695, %v4345_v31  ;;  %v2912_v2 = vmul.f32 -1.442695, %v4348_v63  ;;  %v876_v43 = vpop.f32.mrf.mxu1 }
 0x114   :  { %v1530_v22 = vsub.f32 1.0, %v1529_v56  ;;  %v2361_v1 = vmul.f32 %v1526_v39, %v4107_v53  ;;  %vm1999_vm8 = vweird.f32 %v4311_v18  ;;  %v2017_v52 = vand.u32 2147483647, %v4298_v11 }
 0x115   :  { %v3303_v50 = vpop.eup %3302  ;;  %v872_v41 = vadd.f32 %v871_v10, %v462_v45  ;;  %v1997_v36 = vadd.f32 %v4311_v18, %v1996_v44  ;;  %vm1534_vm9 = vweird.f32 %v3301_v3  ;;  %v2019_v61 = vand.u32 2147483648, %v4298_v11  ;;  %vm4378_vm10 = vmor %vm1998_vm4, %vm1999_vm8  ;;  %v467_v47 = vpop.f32.mrf.mxu0 }
 0x116   :  { %v3305_v54 = vpop.eup %3304  ;;  %v1531_v55 = vmul.f32 %v3301_v3, %v1530_v22  ;;  %v2009_v33 = vmul.f32 %v3303_v50, %v4298_v11  ;;  %3308 = vpow2.f32 %v2880_v46  ;;  %vm2013_vm11 = vweird.f32 %v4298_v11  ;;  %vm1535_vm12 = vmor %vm1533_vm5, %vm1534_vm9  ;;  %v956_v0 = vpop.f32.mrf.mxu3 }
 0x117   :  { %v4373_v6 = vadd.f32 1.0, %v3305_v54  ;;  %v1017_v53 = vmul.f32 %v4272_v8, %v872_v41  ;;  %3310 = vpow2.f32 %v2912_v2  ;;  %vm2014_vm13 = vweird.f32 %v3303_v50 }
 0x118   :  { %v1532_v7 = vadd.f32 %v3301_v3, %v1531_v55  ;;  %v2010_v27 = vsub.f32 1.0, %v2009_v33  ;;  %vm4387_vm14 = vcmp.eq.f32.partialorder %v2017_v52, 8.507059e+37  ;;  %v952_v37 = vadd.f32 %v951_v38, %v542_v32  ;;  %vm2015_vm0 = vmor %vm2013_vm11, %vm2014_vm13 }
 0x119   :  { %v4383_v45 = vpop.eup %3306  ;;  %3312 = vrcp.f32 %v4373_v6  ;;  %v2001_v30 = vsel %vm4378_vm10, %v4311_v18, %v1997_v36  ;;  %v2020_v48 = vor.u32 1.1754944e-38, %v2019_v61  ;;  %vm1548_vm15 = vweird.f32 %v4342_v21 }
 0x11a   :  { %v1536_v13 = vsel %vm1535_vm12, %v3301_v3, %v1532_v7  ;;  %v2011_v14 = vmul.f32 %v3303_v50, %v2010_v27  ;;  %v1544_v15 = vmul.f32 %v4383_v45, %v4342_v21  ;;  %v4401_v16 = vadd.f32 %v4293_v40, %v1017_v53  ;;  %v547_v53 = vpop.f32.mrf.mxu2 }
 0x11b   :  { %v1541_v57 = vsel %vm4356_vm6, %v1540_v49, %v1536_v13  ;;  %v1552_v23 = vand.u32 2147483647, %v4342_v21  ;;  %v2006_v58 = vsel %vm4361_vm7, %v2005_v4, %v2001_v30  ;;  %v1554_v24 = vand.u32 2147483648, %v4342_v21 }
 0x11c   :  { %v2362_v20 = vmul.f32 %v1541_v57, %v4198_v5  ;;  %v2012_v25 = vadd.f32 %v3303_v50, %v2011_v14  ;;  %v1545_v18 = vsub.f32 1.0, %v1544_v15  ;;  %v3309_v62 = vpop.eup %3308  ;;  %v2881_v28 = vmul.f32 -1.442695, %v4401_v16 }
 0x11d   :  { %v1049_v9 = vmul.f32 %v4272_v8, %v952_v37  ;;  %v3311_v51 = vpop.eup %3310  ;;  %v4414_v12 = vadd.f32 1.0, %v3309_v62  ;;  %vm1549_vm1 = vweird.f32 %v4383_v45  ;;  %v2393_v39 = vmul.f32 %v2006_v58, %v4157_v35  ;;  %v469_v58 = vpop.f32.mrf.mxu0 }
 0x11e   :  { %v3036_v5 = vpack.c.bf16 %v2362_v20, %v2361_v1  ;;  %v2016_v17 = vsel %vm2015_vm0, %v3303_v50, %v2012_v25  ;;  %v1546_v3 = vmul.f32 %v4383_v45, %v1545_v18  ;;  %v4421_v11 = vadd.f32 1.0, %v3311_v51  ;;  %vm4439_vm2 = vmor %vm1548_vm15, %vm1549_vm1 }
 0x11f   :  { %v4416_v32 = vpop.eup %3312  ;;  %v2021_v38 = vsel %vm4387_vm14, %v2020_v48, %v2016_v17  ;;  %3314 = vpow2.f32 %v2881_v28  ;;  %v4433_v22 = vadd.f32 %v4293_v40, %v1049_v9  ;;  %v874_v49 = vadd.f32 %v873_v59, %v464_v34 }
 0x120   :  { %3176 = vst [vmem:[%s5619_s6 + $0x20] sm:$0xff] %v3036_v5   ;;  %v2394_v4 = vmul.f32 %v2021_v38, %v4232_v26  ;;  %v1547_v56 = vadd.f32 %v4383_v45, %v1546_v3  ;;  %v2024_v44 = vmul.f32 %v4416_v32, %v4373_v6  ;;  %3316 = vrcp.f32 %v4414_v12  ;;  %v958_v26 = vpop.f32.mrf.mxu3 }
 0x121   :  { %v954_v35 = vadd.f32 %v953_v19, %v544_v60  ;;  %v2034_v50 = vand.u32 2147483648, %v4373_v6  ;;  %3318 = vrcp.f32 %v4421_v11  ;;  %vm1553_vm3 = vcmp.eq.f32.partialorder %v1552_v23, 8.507059e+37 }
 0x122   :  { %v3116_v46 = vpack.c.bf16 %v2394_v4, %v2393_v39  ;;  %v2025_v2 = vsub.f32 1.0, %v2024_v44  ;;  %v1551_v1 = vsel %vm4439_vm2, %v4383_v45, %v1547_v56  ;;  %v1555_v52 = vor.u32 1.1754944e-38, %v1554_v24  ;;  %v878_v24 = vpop.f32.mrf.mxu1 }
 0x123   :  { %v2032_v41 = vand.u32 2147483647, %v4373_v6  ;;  %vm2028_vm4 = vweird.f32 %v4373_v6  ;;  %v1567_v54 = vand.u32 2147483647, %v4414_v12  ;;  %v1569_v36 = vand.u32 2147483648, %v4414_v12 }
 0x124   :  { %3192 = vst [vmem:[%s5619_s6 + $0xa0] sm:$0xff] %v3116_v46   ;;  %v2026_v21 = vmul.f32 %v4416_v32, %v2025_v2  ;;  %v2913_v33 = vmul.f32 -1.442695, %v4433_v22  ;;  %v1018_v34 = vmul.f32 %v4272_v8, %v874_v49  ;;  %v1050_v59 = vmul.f32 %v4272_v8, %v954_v35  ;;  %v549_v46 = vpop.f32.mrf.mxu2 }
 0x125   :  { %v3315_v55 = vpop.eup %3314  ;;  %v877_v61 = vadd.f32 %v876_v43, %v467_v47  ;;  %v1556_v7 = vsel %vm1553_vm3, %v1555_v52, %v1551_v1  ;;  %vm2029_vm5 = vweird.f32 %v4416_v32  ;;  %v2035_v27 = vor.u32 1.1754944e-38, %v2034_v50 }
 0x126   :  { %v4460_v45 = vadd.f32 1.0, %v3315_v55  ;;  %v3317_v10 = vpop.eup %3316  ;;  %vm4462_vm6 = vcmp.eq.f32.partialorder %v2032_v41, 8.507059e+37  ;;  %3320 = vpow2.f32 %v2913_v33  ;;  %v4467_v30 = vadd.f32 %v4293_v40, %v1018_v34  ;;  %vm4490_vm10 = vmor %vm2028_vm4, %vm2029_vm5 }
 0x127   :  { %v4470_v13 = vadd.f32 %v4293_v40, %v1050_v59  ;;  %v1019_v14 = vmul.f32 %v4272_v8, %v877_v61  ;;  %v3319_v15 = vpop.eup %3318  ;;  %v2027_v57 = vadd.f32 %v4416_v32, %v2026_v21  ;;  %v1559_v48 = vmul.f32 %v3317_v10, %v4414_v12 }
 0x128   :  { %vm1563_vm7 = vweird.f32 %v4414_v12  ;;  %3322 = vrcp.f32 %v4460_v45  ;;  %vm4477_vm8 = vcmp.eq.f32.partialorder %v1567_v54, 8.507059e+37  ;;  %v1570_v19 = vor.u32 1.1754944e-38, %v1569_v36 }
 0x129   :  { %v2039_v20 = vmul.f32 %v3319_v15, %v4421_v11  ;;  %vm2043_vm9 = vweird.f32 %v4421_v11  ;;  %v2363_v25 = vmul.f32 %v1556_v7, %v4243_v29  ;;  %v1560_v18 = vsub.f32 1.0, %v1559_v48 }
 0x12a   :  { %v2047_v23 = vand.u32 2147483647, %v4421_v11  ;;  %v2049_v62 = vand.u32 2147483648, %v4421_v11  ;;  %v2882_v51 = vmul.f32 -1.442695, %v4467_v30  ;;  %v4497_v5 = vadd.f32 %v4293_v40, %v1019_v14 }
 0x12b   :  { %v2040_v9 = vsub.f32 1.0, %v2039_v20  ;;  %v2914_v29 = vmul.f32 -1.442695, %v4470_v13  ;;  %v2031_v17 = vsel %vm4490_vm10, %v4416_v32, %v2027_v57  ;;  %v1561_v3 = vmul.f32 %v3317_v10, %v1560_v18 }
 0x12c   :  { %vm1564_vm11 = vweird.f32 %v3317_v10  ;;  %v957_v38 = vadd.f32 %v956_v0, %v547_v53  ;;  %v3321_v6 = vpop.eup %3320  ;;  %vm2044_vm12 = vweird.f32 %v3319_v15  ;;  %3324 = vpow2.f32 %v2882_v51 }
 0x12d   :  { %v2041_v39 = vmul.f32 %v3319_v15, %v2040_v9  ;;  %v2883_v4 = vmul.f32 -1.442695, %v4497_v5  ;;  %v1562_v44 = vadd.f32 %v3317_v10, %v1561_v3  ;;  %v4505_v47 = vadd.f32 1.0, %v3321_v6  ;;  %vm1565_vm13 = vmor %vm1563_vm7, %vm1564_vm11  ;;  %v552_v9 = vpop.f32.mrf.mxu2 }
 0x12e   :  { %v4503_v56 = vpop.eup %3322  ;;  %3326 = vpow2.f32 %v2914_v29  ;;  %v1051_v43 = vmul.f32 %v4272_v8, %v957_v38  ;;  %vm2048_vm14 = vcmp.eq.f32.partialorder %v2047_v23, 8.507059e+37  ;;  %v879_v35 = vadd.f32 %v878_v24, %v469_v58  ;;  %vm2045_vm15 = vmor %vm2043_vm9, %vm2044_vm12 }
 0x12f   :  { %v2042_v32 = vadd.f32 %v3319_v15, %v2041_v39  ;;  %v1574_v49 = vmul.f32 %v4503_v56, %v4460_v45  ;;  %v2036_v2 = vsel %vm4462_vm6, %v2035_v27, %v2031_v17  ;;  %v1566_v50 = vsel %vm1565_vm13, %v3317_v10, %v1562_v44  ;;  %v472_v27 = vpop.f32.mrf.mxu0  ;;  %v881_v10 = vpop.f32.mrf.mxu1 }
 0x130   :  { %v2050_v1 = vor.u32 1.1754944e-38, %v2049_v62  ;;  %3328 = vrcp.f32 %v4505_v47  ;;  %v1571_v12 = vsel %vm4477_vm8, %v1570_v19, %v1566_v50  ;;  %vm1578_vm0 = vweird.f32 %v4460_v45 }
 0x131   :  { %v2046_v52 = vsel %vm2045_vm15, %v3319_v15, %v2042_v32  ;;  %v1575_v41 = vsub.f32 1.0, %v1574_v49  ;;  %3330 = vpow2.f32 %v2883_v4  ;;  %v2364_v21 = vmul.f32 %v1571_v12, %v4345_v31 }
 0x132   :  { %v2051_v54 = vsel %vm2048_vm14, %v2050_v1, %v2046_v52  ;;  %v4523_v36 = vadd.f32 %v4293_v40, %v1051_v43  ;;  %v3325_v55 = vpop.eup %3324  ;;  %v2395_v11 = vmul.f32 %v2036_v2, %v4296_v42  ;;  %v1020_v59 = vmul.f32 %v4272_v8, %v879_v35 }
 0x133   :  { %v2396_v33 = vmul.f32 %v2051_v54, %v4348_v63  ;;  %v1576_v34 = vmul.f32 %v4503_v56, %v1575_v41  ;;  %v3041_v53 = vpack.c.bf16 %v2364_v21, %v2363_v25  ;;  %v1582_v0 = vand.u32 2147483647, %v4460_v45 }
 0x134   :  { %v3327_v61 = vpop.eup %3326  ;;  %v1584_v31 = vand.u32 2147483648, %v4460_v45  ;;  %v4531_v7 = vadd.f32 1.0, %v3325_v55  ;;  %vm1579_vm1 = vweird.f32 %v4503_v56  ;;  %v2062_v15 = vand.u32 2147483647, %v4505_v47  ;;  %v961_v45 = vpop.f32.mrf.mxu3 }
 0x135   :  { %v3121_v37 = vpack.c.bf16 %v2396_v33, %v2395_v11  ;;  %v1577_v14 = vadd.f32 %v4503_v56, %v1576_v34  ;;  %v4535_v42 = vadd.f32 1.0, %v3327_v61  ;;  %3177 = vst [vmem:[%s5619_s6 + $0x28] sm:$0xff] %v3041_v53   ;;  %v2915_v57 = vmul.f32 -1.442695, %v4523_v36  ;;  %vm4557_vm2 = vmor %vm1578_vm0, %vm1579_vm1 }
 0x136   :  { %v4537_v63 = vpop.eup %3328  ;;  %3332 = vrcp.f32 %v4531_v7  ;;  %v4546_v48 = vadd.f32 %v4293_v40, %v1020_v59  ;;  %v2064_v20 = vand.u32 2147483648, %v4505_v47  ;;  %v959_v25 = vadd.f32 %v958_v26, %v549_v46 }
 0x137   :  { %v3331_v60 = vpop.eup %3330  ;;  %3193 = vst [vmem:[%s5619_s6 + $0xa8] sm:$0xff] %v3121_v37   ;;  %v2054_v19 = vmul.f32 %v4537_v63, %v4505_v47  ;;  %3334 = vrcp.f32 %v4535_v42  ;;  %vm4561_vm3 = vcmp.eq.f32.partialorder %v1582_v0, 8.507059e+37  ;;  %v1585_v62 = vor.u32 1.1754944e-38, %v1584_v31  ;;  %v474_v50 = vpop.f32.mrf.mxu0 }
 0x138   :  { %v1581_v58 = vsel %vm4557_vm2, %v4503_v56, %v1577_v14  ;;  %vm2058_vm4 = vweird.f32 %v4505_v47  ;;  %v1597_v28 = vand.u32 2147483647, %v4531_v7  ;;  %vm4570_vm5 = vcmp.eq.f32.partialorder %v2062_v15, 8.507059e+37  ;;  %v883_v1 = vpop.f32.mrf.mxu1  ;;  %v554_v15 = vpop.f32.mrf.mxu2 }
 0x139   :  { %v2055_v24 = vsub.f32 1.0, %v2054_v19  ;;  %v1599_v29 = vand.u32 2147483648, %v4531_v7  ;;  %v4575_v17 = vadd.f32 1.0, %v3331_v60  ;;  %3336 = vpow2.f32 %v2915_v57 }
 0x13a   :  { %v2884_v3 = vmul.f32 -1.442695, %v4546_v48  ;;  %v2065_v6 = vor.u32 1.1754944e-38, %v2064_v20  ;;  %vm1593_vm6 = vweird.f32 %v4531_v7  ;;  %v1052_v39 = vmul.f32 %v4272_v8, %v959_v25 }
 0x13b   :  { %v2056_v38 = vmul.f32 %v4537_v63, %v2055_v24  ;;  %v1586_v56 = vsel %vm4561_vm3, %v1585_v62, %v1581_v58  ;;  %vm2059_vm7 = vweird.f32 %v4537_v63  ;;  %3338 = vrcp.f32 %v4575_v17 }
 0x13c   :  { %v3333_v4 = vpop.eup %3332  ;;  %v882_v44 = vadd.f32 %v881_v10, %v472_v27  ;;  %vm4587_vm8 = vcmp.eq.f32.partialorder %v1597_v28, 8.507059e+37  ;;  %3340 = vpow2.f32 %v2884_v3  ;;  %v1600_v46 = vor.u32 1.1754944e-38, %v1599_v29  ;;  %vm4599_vm10 = vmor %vm2058_vm4, %vm2059_vm7  ;;  %v963_v57 = vpop.f32.mrf.mxu3 }
 0x13d   :  { %v3335_v43 = vpop.eup %3334  ;;  %v2057_v32 = vadd.f32 %v4537_v63, %v2056_v38  ;;  %v1589_v49 = vmul.f32 %v3333_v4, %v4531_v7  ;;  %vm2073_vm9 = vweird.f32 %v4535_v42  ;;  %v2079_v2 = vand.u32 2147483648, %v4535_v42 }
 0x13e   :  { %v2069_v26 = vmul.f32 %v3335_v43, %v4535_v42  ;;  %v2365_v12 = vmul.f32 %v1586_v56, %v4401_v16  ;;  %v2077_v21 = vand.u32 2147483647, %v4535_v42  ;;  %v4605_v54 = vadd.f32 %v4293_v40, %v1052_v39 }
 0x13f   :  { %v1590_v41 = vsub.f32 1.0, %v1589_v49  ;;  %v3337_v55 = vpop.eup %3336  ;;  %v2061_v11 = vsel %vm4599_vm10, %v4537_v63, %v2057_v32  ;;  %v1021_v33 = vmul.f32 %v4272_v8, %v882_v44  ;;  %v962_v34 = vadd.f32 %v961_v45, %v552_v9  ;;  %v477_v3 = vpop.f32.mrf.mxu0 }
 0x140   :  { %v2070_v16 = vsub.f32 1.0, %v2069_v26  ;;  %vm1594_vm11 = vweird.f32 %v3333_v4  ;;  %v4611_v59 = vadd.f32 1.0, %v3337_v55  ;;  %v2916_v61 = vmul.f32 -1.442695, %v4605_v54  ;;  %v886_v38 = vpop.f32.mrf.mxu1 }
 0x141   :  { %v1591_v47 = vmul.f32 %v3333_v4, %v1590_v41  ;;  %v4614_v53 = vpop.eup %3338  ;;  %vm2074_vm12 = vweird.f32 %v3335_v43  ;;  %v2080_v31 = vor.u32 1.1754944e-38, %v2079_v2  ;;  %v1612_v27 = vand.u32 2147483647, %v4575_v17  ;;  %vm1595_vm13 = vmor %vm1593_vm6, %vm1594_vm11 }
 0x142   :  { %v2071_v0 = vmul.f32 %v3335_v43, %v2070_v16  ;;  %v3341_v10 = vpop.eup %3340  ;;  %v2066_v37 = vsel %vm4570_vm5, %v2065_v6, %v2061_v11  ;;  %v1604_v63 = vmul.f32 %v4614_v53, %v4575_v17  ;;  %3342 = vrcp.f32 %v4611_v59  ;;  %vm2075_vm14 = vmor %vm2073_vm9, %vm2074_vm12 }
 0x143   :  { %v1592_v14 = vadd.f32 %v3333_v4, %v1591_v47  ;;  %v4626_v19 = vadd.f32 %v4293_v40, %v1021_v33  ;;  %v1053_v20 = vmul.f32 %v4272_v8, %v962_v34  ;;  %v884_v25 = vadd.f32 %v883_v1, %v474_v50 }
 0x144   :  { %v2072_v60 = vadd.f32 %v3335_v43, %v2071_v0  ;;  %v1605_v23 = vsub.f32 1.0, %v1604_v63  ;;  %v4632_v62 = vadd.f32 1.0, %v3341_v10  ;;  %3344 = vpow2.f32 %v2916_v61  ;;  %v966_v55 = vpop.f32.mrf.mxu3 }
 0x145   :  { %v1596_v18 = vsel %vm1595_vm13, %v3333_v4, %v1592_v14  ;;  %vm2078_vm15 = vcmp.eq.f32.partialorder %v2077_v21, 8.507059e+37  ;;  %v1614_v24 = vand.u32 2147483648, %v4575_v17  ;;  %v2397_v42 = vmul.f32 %v2066_v37, %v4433_v22  ;;  %v557_v21 = vpop.f32.mrf.mxu2 }
 0x146   :  { %v1601_v7 = vsel %vm4587_vm8, %v1600_v46, %v1596_v18  ;;  %v2076_v58 = vsel %vm2075_vm14, %v3335_v43, %v2072_v60  ;;  %v1606_v45 = vmul.f32 %v4614_v53, %v1605_v23  ;;  %3346 = vrcp.f32 %v4632_v62 }
 0x147   :  { %v2366_v28 = vmul.f32 %v1601_v7, %v4467_v30  ;;  %v2081_v9 = vsel %vm2078_vm15, %v2080_v31, %v2076_v58  ;;  %vm1608_vm0 = vweird.f32 %v4575_v17  ;;  %v1022_v29 = vmul.f32 %v4272_v8, %v884_v25  ;;  %v479_v60 = vpop.f32.mrf.mxu0 }
 0x148   :  { %v2398_v51 = vmul.f32 %v2081_v9, %v4470_v13  ;;  %v4644_v6 = vpop.eup %3342  ;;  %vm4646_vm1 = vcmp.eq.f32.partialorder %v1612_v27, 8.507059e+37  ;;  %v2885_v4 = vmul.f32 -1.442695, %v4626_v19  ;;  %v4652_v56 = vadd.f32 %v4293_v40, %v1053_v20  ;;  %v888_v20 = vpop.f32.mrf.mxu1 }
 0x149   :  { %v3046_v39 = vpack.c.bf16 %v2366_v28, %v2365_v12  ;;  %v1607_v13 = vadd.f32 %v4614_v53, %v1606_v45  ;;  %vm1609_vm2 = vweird.f32 %v4614_v53  ;;  %v2084_v44 = vmul.f32 %v4644_v6, %v4611_v59 }
 0x14a   :  { %v3126_v22 = vpack.c.bf16 %v2398_v51, %v2397_v42  ;;  %v3345_v43 = vpop.eup %3344  ;;  %v1615_v32 = vor.u32 1.1754944e-38, %v1614_v24  ;;  %vm2088_vm3 = vweird.f32 %v4611_v59  ;;  %3348 = vpow2.f32 %v2885_v4  ;;  %vm4674_vm4 = vmor %vm1608_vm0, %vm1609_vm2 }
 0x14b   :  { %3178 = vst [vmem:[%s5619_s6 + $0x30] sm:$0xff] %v3046_v39   ;;  %v2917_v49 = vmul.f32 -1.442695, %v4652_v56  ;;  %v2085_v35 = vsub.f32 1.0, %v2084_v44  ;;  %v2092_v46 = vand.u32 2147483647, %v4611_v59  ;;  %v4670_v2 = vadd.f32 %v4293_v40, %v1022_v29 }
 0x14c   :  { %3194 = vst [vmem:[%s5619_s6 + $0xb0] sm:$0xff] %v3126_v22   ;;  %v4667_v26 = vadd.f32 1.0, %v3345_v43  ;;  %v3347_v50 = vpop.eup %3346  ;;  %v2094_v12 = vand.u32 2147483648, %v4611_v59  ;;  %v964_v52 = vadd.f32 %v963_v57, %v554_v15  ;;  %v887_v41 = vadd.f32 %v886_v38, %v477_v3  ;;  %v968_v44 = vpop.f32.mrf.mxu3 }
 0x14d   :  { %3350 = vpow2.f32 %v2917_v49  ;;  %v1611_v11 = vsel %vm4674_vm4, %v4614_v53, %v1607_v13  ;;  %v2086_v16 = vmul.f32 %v4644_v6, %v2085_v35  ;;  %v1619_v33 = vmul.f32 %v3347_v50, %v4632_v62  ;;  %v559_v13 = vpop.f32.mrf.mxu2 }
 0x14e   :  { %3352 = vrcp.f32 %v4667_v26  ;;  %vm2089_vm5 = vweird.f32 %v4644_v6  ;;  %v1627_v17 = vand.u32 2147483647, %v4632_v62  ;;  %v1629_v34 = vand.u32 2147483648, %v4632_v62 }
 0x14f   :  { %v2886_v47 = vmul.f32 -1.442695, %v4670_v2  ;;  %v2087_v61 = vadd.f32 %v4644_v6, %v2086_v16  ;;  %v1620_v0 = vsub.f32 1.0, %v1619_v33  ;;  %v1054_v31 = vmul.f32 %v4272_v8, %v964_v52  ;;  %vm4707_vm8 = vmor %vm2088_vm3, %vm2089_vm5 }
 0x150   :  { %v1023_v53 = vmul.f32 %v4272_v8, %v887_v41  ;;  %v3349_v27 = vpop.eup %3348  ;;  %v1616_v10 = vsel %vm4646_vm1, %v1615_v32, %v1611_v11  ;;  %vm4694_vm6 = vcmp.eq.f32.partialorder %v2092_v46, 8.507059e+37  ;;  %v967_v14 = vadd.f32 %v966_v55, %v557_v21  ;;  %v4757_v11 = vpop.f32.mrf.mxu0 }
 0x151   :  { %3354 = vpow2.f32 %v2886_v47  ;;  %v1621_v63 = vmul.f32 %v3347_v50, %v1620_v0  ;;  %vm1624_vm7 = vweird.f32 %v3347_v50  ;;  %v4698_v15 = vadd.f32 1.0, %v3349_v27  ;;  %v4759_v16 = vpop.f32.mrf.mxu1 }
 0x152   :  { %v4701_v57 = vadd.f32 %v4293_v40, %v1054_v31  ;;  %v2095_v23 = vor.u32 1.1754944e-38, %v2094_v12  ;;  %vm1623_vm9 = vweird.f32 %v4632_v62  ;;  %vm4712_vm10 = vcmp.eq.f32.partialorder %v1627_v17, 8.507059e+37 }
 0x153   :  { %v3351_v25 = vpop.eup %3350  ;;  %v4717_v58 = vadd.f32 %v4293_v40, %v1023_v53  ;;  %v2091_v28 = vsel %vm4707_vm8, %v4644_v6, %v2087_v61  ;;  %v1622_v59 = vadd.f32 %v3347_v50, %v1621_v63  ;;  %v1630_v9 = vor.u32 1.1754944e-38, %v1629_v34  ;;  %vm1625_vm11 = vmor %vm1623_vm9, %vm1624_vm7 }
 0x154   :  { %v3353_v24 = vpop.eup %3352  ;;  %3356 = vrcp.f32 %v4698_v15  ;;  %v2367_v45 = vmul.f32 %v1616_v10, %v4497_v5  ;;  %v2107_v42 = vand.u32 2147483647, %v4667_v26  ;;  %v1055_v51 = vmul.f32 %v4272_v8, %v967_v14 }
 0x155   :  { %v2099_v62 = vmul.f32 %v3353_v24, %v4667_v26  ;;  %v1626_v29 = vsel %vm1625_vm11, %v3347_v50, %v1622_v59  ;;  %v4728_v3 = vadd.f32 1.0, %v3351_v25  ;;  %v2918_v38 = vmul.f32 -1.442695, %v4701_v57 }
 0x156   :  { %v2887_v6 = vmul.f32 -1.442695, %v4717_v58  ;;  %v2096_v30 = vsel %vm4694_vm6, %v2095_v23, %v2091_v28  ;;  %v1631_v5 = vsel %vm4712_vm10, %v1630_v9, %v1626_v29  ;;  %v2109_v22 = vand.u32 2147483648, %v4667_v26 }
 0x157   :  { %v3355_v39 = vpop.eup %3354  ;;  %v2100_v4 = vsub.f32 1.0, %v2099_v62  ;;  %v2368_v43 = vmul.f32 %v1631_v5, %v4546_v48  ;;  %vm2104_vm12 = vweird.f32 %v3353_v24  ;;  %3358 = vrcp.f32 %v4728_v3 }
 0x158   :  { %v889_v32 = vadd.f32 %v888_v20, %v479_v60  ;;  %v1642_v35 = vand.u32 2147483647, %v4698_v15  ;;  %v4740_v46 = vadd.f32 1.0, %v3355_v39  ;;  %3360 = vpow2.f32 %v2918_v38 }
 0x159   :  { %v2101_v49 = vmul.f32 %v3353_v24, %v2100_v4  ;;  %v3051_v1 = vpack.c.bf16 %v2368_v43, %v2367_v45  ;;  %v1644_v12 = vand.u32 2147483648, %v4698_v15  ;;  %3362 = vpow2.f32 %v2887_v6  ;;  %v484_v43 = vpop.f32.mrf.mxu0 }
 0x15a   :  { %v4742_v50 = vpop.eup %3356  ;;  %v4746_v52 = vadd.f32 %v4293_v40, %v1055_v51  ;;  %vm2103_vm13 = vweird.f32 %v4667_v26  ;;  %v2399_v21 = vmul.f32 %v2096_v30, %v4523_v36  ;;  %vm2108_vm15 = vcmp.eq.f32.partialorder %v2107_v42, 8.507059e+37 }
 0x15b   :  { %v2102_v48 = vadd.f32 %v3353_v24, %v2101_v49  ;;  %v1634_v41 = vmul.f32 %v4742_v50, %v4698_v15  ;;  %3179 = vst [vmem:[%s5619_s6 + $0x38] sm:$0xff] %v3051_v1   ;;  %vm2105_vm14 = vmor %vm2103_vm13, %vm2104_vm12  ;;  %v2110_v55 = vor.u32 1.1754944e-38, %v2109_v22  ;;  %3364 = vrcp.f32 %v4740_v46 }
 0x15c   :  { %vm1638_vm0 = vweird.f32 %v4698_v15  ;;  %v2919_v36 = vmul.f32 -1.442695, %v4746_v52  ;;  %vm4765_vm1 = vcmp.eq.f32.partialorder %v1642_v35, 8.507059e+37  ;;  %v1645_v61 = vor.u32 1.1754944e-38, %v1644_v12 }
 0x15d   :  { %v2106_v26 = vsel %vm2105_vm14, %v3353_v24, %v2102_v48  ;;  %v1635_v33 = vsub.f32 1.0, %v1634_v41  ;;  %v4763_v17 = vpop.eup %3358  ;;  %v2122_v0 = vand.u32 2147483647, %v4728_v3  ;;  %v1024_v31 = vmul.f32 %v4272_v8, %v889_v32  ;;  %v4784_v24 = vpop.f32.mrf.mxu3 }
 0x15e   :  { %v2111_v34 = vsel %vm2108_vm15, %v2110_v55, %v2106_v26  ;;  %v3361_v53 = vpop.eup %3360  ;;  %v2114_v37 = vmul.f32 %v4763_v17, %v4728_v3  ;;  %v2124_v14 = vand.u32 2147483648, %v4728_v3  ;;  %vm1639_vm2 = vweird.f32 %v4742_v50 }
 0x15f   :  { %v2400_v27 = vmul.f32 %v2111_v34, %v4605_v54  ;;  %v1636_v10 = vmul.f32 %v4742_v50, %v1635_v33  ;;  %v3363_v63 = vpop.eup %3362  ;;  %v4777_v60 = vadd.f32 1.0, %v3361_v53  ;;  %3366 = vpow2.f32 %v2919_v36  ;;  %v4782_v54 = vpop.f32.mrf.mxu2  ;;  %vm4799_vm4 = vmor %vm1638_vm0, %vm1639_vm2 }
 0x160   :  { %v969_v20 = vadd.f32 %v968_v44, %v559_v13  ;;  %v2115_v23 = vsub.f32 1.0, %v2114_v37  ;;  %v4780_v7 = vadd.f32 1.0, %v3363_v63  ;;  %vm2118_vm3 = vweird.f32 %v4728_v3 }
 0x161   :  { %v3131_v25 = vpack.c.bf16 %v2400_v27, %v2399_v21  ;;  %v1637_v18 = vadd.f32 %v4742_v50, %v1636_v10  ;;  %v3365_v28 = vpop.eup %3364  ;;  %v1657_v59 = vand.u32 2147483647, %v4740_v46  ;;  %3368 = vrcp.f32 %v4777_v60  ;;  %v4870_v10 = vld [vmem:[%s5617_s4] ss:$0 sm:$0xff] }
 0x162   :  { %v4790_v9 = vadd.f32 %v4293_v40, %v1024_v31  ;;  %v2116_v62 = vmul.f32 %v4763_v17, %v2115_v23  ;;  %vm4804_vm5 = vcmp.eq.f32.partialorder %v2122_v0, 8.507059e+37  ;;  %v2125_v51 = vor.u32 1.1754944e-38, %v2124_v14 }
 0x163   :  { %3195 = vst [vmem:[%s5619_s6 + $0xb8] sm:$0xff] %v3131_v25   ;;  %v1649_v29 = vmul.f32 %v3365_v28, %v4740_v46  ;;  %v1641_v38 = vsel %vm4799_vm4, %v4742_v50, %v1637_v18  ;;  %v1659_v6 = vand.u32 2147483648, %v4740_v46  ;;  %3370 = vrcp.f32 %v4780_v7 }
 0x164   :  { %v1056_v15 = vmul.f32 %v4272_v8, %v969_v20  ;;  %v2117_v39 = vadd.f32 %v4763_v17, %v2116_v62  ;;  %vm2119_vm6 = vweird.f32 %v4763_v17  ;;  %vm1653_vm7 = vweird.f32 %v4740_v46  ;;  %v893_v8 = vpop.f32.mrf.mxu1 }
 0x165   :  { %v1650_v30 = vsub.f32 1.0, %v1649_v29  ;;  %v3367_v5 = vpop.eup %3366  ;;  %vm4818_vm8 = vcmp.eq.f32.partialorder %v1657_v59, 8.507059e+37  ;;  %v2137_v22 = vand.u32 2147483647, %v4777_v60  ;;  %v2139_v13 = vand.u32 2147483648, %v4777_v60  ;;  %vm4833_vm10 = vmor %vm2118_vm3, %vm2119_vm6 }
 0x166   :  { %v2888_v44 = vmul.f32 -1.442695, %v4790_v9  ;;  %v1646_v32 = vsel %vm4765_vm1, %v1645_v61, %v1641_v38  ;;  %vm1654_vm9 = vweird.f32 %v3365_v28  ;;  %v4827_v35 = vadd.f32 1.0, %v3367_v5 }
 0x167   :  { %v1651_v49 = vmul.f32 %v3365_v28, %v1650_v30  ;;  %v3369_v50 = vpop.eup %3368  ;;  %v1660_v12 = vor.u32 1.1754944e-38, %v1659_v6  ;;  %vm2133_vm11 = vweird.f32 %v4777_v60  ;;  %v4839_v48 = vadd.f32 %v4293_v40, %v1056_v15  ;;  %vm1655_vm12 = vmor %vm1653_vm7, %vm1654_vm9 }
 0x168   :  { %3372 = vpow2.f32 %v2888_v44  ;;  %v2121_v41 = vsel %vm4833_vm10, %v4763_v17, %v2117_v39  ;;  %v2129_v55 = vmul.f32 %v3369_v50, %v4777_v60  ;;  %v892_v3 = vadd.f32 %v4759_v16, %v4757_v11  ;;  %v973_v16 = vpop.f32.mrf.mxu3 }
 0x169   :  { %v1652_v21 = vadd.f32 %v3365_v28, %v1651_v49  ;;  %v4847_v26 = vpop.eup %3370  ;;  %v2369_v33 = vmul.f32 %v1646_v32, %v4626_v19  ;;  %vm4852_vm13 = vcmp.eq.f32.partialorder %v2137_v22, 8.507059e+37  ;;  %v2140_v36 = vor.u32 1.1754944e-38, %v2139_v13  ;;  %v564_v19 = vpop.f32.mrf.mxu2 }
 0x16a   :  { %3374 = vrcp.f32 %v4827_v35  ;;  %v2130_v34 = vsub.f32 1.0, %v2129_v55  ;;  %v1664_v47 = vmul.f32 %v4847_v26, %v4780_v7  ;;  %vm1668_vm14 = vweird.f32 %v4780_v7 }
 0x16b   :  { %v1656_v17 = vsel %vm1655_vm12, %v3365_v28, %v1652_v21  ;;  %v1672_v11 = vand.u32 2147483647, %v4780_v7  ;;  %v2126_v46 = vsel %vm4804_vm5, %v2125_v51, %v2121_v41  ;;  %vm2134_vm15 = vweird.f32 %v3369_v50  ;;  %v487_v51 = vpop.f32.mrf.mxu0 }
 0x16c   :  { %v1661_v61 = vsel %vm4818_vm8, %v1660_v12, %v1656_v17  ;;  %v2920_v0 = vmul.f32 -1.442695, %v4839_v48  ;;  %v2131_v53 = vmul.f32 %v3369_v50, %v2130_v34  ;;  %v1665_v27 = vsub.f32 1.0, %v1664_v47  ;;  %vm2135_vm0 = vmor %vm2133_vm11, %vm2134_vm15  ;;  %v896_v29 = vpop.f32.mrf.mxu1 }
 0x16d   :  { %v2370_v31 = vmul.f32 %v1661_v61, %v4670_v2  ;;  %v1025_v37 = vmul.f32 %v4870_v10, %v892_v3  ;;  %v972_v63 = vadd.f32 %v4784_v24, %v4782_v54  ;;  %v894_v20 = vadd.f32 %v893_v8, %v484_v43  ;;  %v4888_v54 = vld [vmem:[%s5618_s5] ss:$0 sm:$0xff] }
 0x16e   :  { %v3373_v14 = vpop.eup %3372  ;;  %3376 = vpow2.f32 %v2920_v0  ;;  %v974_v25 = vadd.f32 %v973_v16, %v564_v19  ;;  %v2132_v23 = vadd.f32 %v3369_v50, %v2131_v53  ;;  %v1666_v2 = vmul.f32 %v4847_v26, %v1665_v27 }
 0x16f   :  { %v3056_v18 = vpack.c.bf16 %v2370_v31, %v2369_v33  ;;  %v4876_v28 = vadd.f32 1.0, %v3373_v14  ;;  %v2401_v45 = vmul.f32 %v2126_v46, %v4652_v56  ;;  %v1674_v62 = vand.u32 2147483648, %v4780_v7 }
 0x170   :  { %v4878_v59 = vpop.eup %3374  ;;  %v4891_v24 = vadd.f32 %v4888_v54, %v1025_v37  ;;  %v1057_v42 = vmul.f32 %v4870_v10, %v972_v63  ;;  %v2136_v56 = vsel %vm2135_vm0, %v3369_v50, %v2132_v23  ;;  %v2152_v38 = vand.u32 2147483647, %v4827_v35  ;;  %v976_v1 = vpop.f32.mrf.mxu3 }
 0x171   :  { %3180 = vst [vmem:[%s5619_s6 + $0x40] sm:$0xff] %v3056_v18   ;;  %v2144_v60 = vmul.f32 %v4878_v59, %v4827_v35  ;;  %v2154_v6 = vand.u32 2147483648, %v4827_v35  ;;  %v2141_v15 = vsel %vm4852_vm13, %v2140_v36, %v2136_v56  ;;  %vm1669_vm1 = vweird.f32 %v4847_v26 }
 0x172   :  { %3378 = vrcp.f32 %v4876_v28  ;;  %v1026_v39 = vmul.f32 %v4870_v10, %v894_v20  ;;  %v2402_v30 = vmul.f32 %v2141_v15, %v4701_v57  ;;  %v1667_v5 = vadd.f32 %v4847_v26, %v1666_v2  ;;  %v567_v57 = vpop.f32.mrf.mxu2  ;;  %vm4923_vm4 = vmor %vm1668_vm14, %vm1669_vm1 }
 0x173   :  { %v2145_v4 = vsub.f32 1.0, %v2144_v60  ;;  %v1058_v22 = vmul.f32 %v4870_v10, %v974_v25  ;;  %vm4909_vm2 = vcmp.eq.f32.partialorder %v1672_v11, 8.507059e+37  ;;  %v2889_v43 = vmul.f32 -1.442695, %v4891_v24  ;;  %v489_v0 = vpop.f32.mrf.mxu0 }
 0x174   :  { %v3377_v13 = vpop.eup %3376  ;;  %v4915_v8 = vadd.f32 %v4888_v54, %v1057_v42  ;;  %v3136_v32 = vpack.c.bf16 %v2402_v30, %v2401_v45  ;;  %v1675_v49 = vor.u32 1.1754944e-38, %v1674_v62  ;;  %vm2148_vm3 = vweird.f32 %v4827_v35  ;;  %v898_v31 = vpop.f32.mrf.mxu1 }
 0x175   :  { %v2146_v50 = vmul.f32 %v4878_v59, %v2145_v4  ;;  %vm4927_vm5 = vcmp.eq.f32.partialorder %v2152_v38, 8.507059e+37  ;;  %v4931_v21 = vadd.f32 1.0, %v3377_v13  ;;  %3380 = vpow2.f32 %v2889_v43 }
 0x176   :  { %v2921_v55 = vmul.f32 -1.442695, %v4915_v8  ;;  %v4935_v3 = vadd.f32 %v4888_v54, %v1026_v39  ;;  %3196 = vst [vmem:[%s5619_s6 + $0xc0] sm:$0xff] %v3136_v32   ;;  %v1671_v7 = vsel %vm4923_vm4, %v4847_v26, %v1667_v5  ;;  %v2155_v33 = vor.u32 1.1754944e-38, %v2154_v6 }
 0x177   :  { %v4944_v40 = vadd.f32 %v4888_v54, %v1058_v22  ;;  %v897_v36 = vadd.f32 %v896_v29, %v487_v51  ;;  %v2147_v34 = vadd.f32 %v4878_v59, %v2146_v50  ;;  %vm2149_vm6 = vweird.f32 %v4878_v59 }
 0x178   :  { %v3379_v17 = vpop.eup %3378  ;;  %3382 = vrcp.f32 %v4931_v21  ;;  %v977_v47 = vadd.f32 %v976_v1, %v567_v57  ;;  %vm1683_vm7 = vweird.f32 %v4876_v28  ;;  %v1687_v19 = vand.u32 2147483647, %v4876_v28  ;;  %vm4959_vm8 = vmor %vm2148_vm3, %vm2149_vm6  ;;  %v978_v30 = vpop.f32.mrf.mxu3 }
 0x179   :  { %v1679_v11 = vmul.f32 %v3379_v17, %v4876_v28  ;;  %3384 = vpow2.f32 %v2921_v55  ;;  %v1676_v26 = vsel %vm4909_vm2, %v1675_v49, %v1671_v7  ;;  %v1689_v16 = vand.u32 2147483648, %v4876_v28 }
 0x17a   :  { %v2167_v46 = vand.u32 2147483647, %v4931_v21  ;;  %v2890_v61 = vmul.f32 -1.442695, %v4935_v3  ;;  %v2169_v37 = vand.u32 2147483648, %v4931_v21  ;;  %v1027_v63 = vmul.f32 %v4870_v10, %v897_v36  ;;  %v569_v39 = vpop.f32.mrf.mxu2 }
 0x17b   :  { %v1680_v27 = vsub.f32 1.0, %v1679_v11  ;;  %v2922_v14 = vmul.f32 -1.442695, %v4944_v40  ;;  %v3381_v20 = vpop.eup %3380  ;;  %v2151_v25 = vsel %vm4959_vm8, %v4878_v59, %v2147_v34  ;;  %vm1684_vm9 = vweird.f32 %v3379_v17 }
 0x17c   :  { %3386 = vpow2.f32 %v2890_v61  ;;  %v1059_v35 = vmul.f32 %v4870_v10, %v977_v47  ;;  %v4970_v23 = vadd.f32 1.0, %v3381_v20  ;;  %v4973_v2 = vadd.f32 %v4888_v54, %v1027_v63  ;;  %vm1685_vm11 = vmor %vm1683_vm7, %vm1684_vm9  ;;  %v901_v7 = vpop.f32.mrf.mxu1 }
 0x17d   :  { %v1681_v18 = vmul.f32 %v3379_v17, %v1680_v27  ;;  %3388 = vpow2.f32 %v2922_v14  ;;  %v2371_v62 = vmul.f32 %v1676_v26, %v4717_v58  ;;  %vm4976_vm10 = vcmp.eq.f32.partialorder %v1687_v19, 8.507059e+37 }
 0x17e   :  { %v3383_v45 = vpop.eup %3382  ;;  %v1690_v51 = vor.u32 1.1754944e-38, %v1689_v16  ;;  %v4981_v59 = vadd.f32 %v4888_v54, %v1059_v35  ;;  %v2156_v56 = vsel %vm4927_vm5, %v2155_v33, %v2151_v25  ;;  %3390 = vrcp.f32 %v4970_v23 }
 0x17f   :  { %v3385_v29 = vpop.eup %3384  ;;  %v1682_v60 = vadd.f32 %v3379_v17, %v1681_v18  ;;  %v2159_v38 = vmul.f32 %v3383_v45, %v4931_v21  ;;  %vm2163_vm12 = vweird.f32 %v4931_v21  ;;  %vm4991_vm13 = vcmp.eq.f32.partialorder %v2167_v46, 8.507059e+37 }
 0x180   :  { %v2170_v6 = vor.u32 1.1754944e-38, %v2169_v37  ;;  %v4995_v15 = vadd.f32 1.0, %v3385_v29  ;;  %v2891_v22 = vmul.f32 -1.442695, %v4973_v2  ;;  %v2923_v13 = vmul.f32 -1.442695, %v4981_v59  ;;  %v981_v42 = vpop.f32.mrf.mxu3 }
 0x181   :  { %v1686_v5 = vsel %vm1685_vm11, %v3379_v17, %v1682_v60  ;;  %v2160_v4 = vsub.f32 1.0, %v2159_v38  ;;  %v2403_v28 = vmul.f32 %v2156_v56, %v4746_v52  ;;  %v899_v32 = vadd.f32 %v898_v31, %v489_v0  ;;  %v492_v52 = vpop.f32.mrf.mxu0 }
 0x182   :  { %v3387_v44 = vpop.eup %3386  ;;  %v1691_v43 = vsel %vm4976_vm10, %v1690_v51, %v1686_v5  ;;  %3392 = vrcp.f32 %v4995_v15  ;;  %vm2164_vm14 = vweird.f32 %v3383_v45  ;;  %v979_v1 = vadd.f32 %v978_v30, %v569_v39 }
 0x183   :  { %v3389_v49 = vpop.eup %3388  ;;  %v2372_v50 = vmul.f32 %v1691_v43, %v4790_v9  ;;  %v2161_v57 = vmul.f32 %v3383_v45, %v2160_v4  ;;  %v1702_v12 = vand.u32 2147483647, %v4970_v23  ;;  %v5005_v41 = vadd.f32 1.0, %v3387_v44  ;;  %vm2165_vm15 = vmor %vm2163_vm12, %vm2164_vm14 }
 0x184   :  { %v5007_v55 = vadd.f32 1.0, %v3389_v49  ;;  %3394 = vpow2.f32 %v2891_v22  ;;  %v3391_v33 = vpop.eup %3390  ;;  %v1704_v34 = vand.u32 2147483648, %v4970_v23  ;;  %v2184_v47 = vand.u32 2147483648, %v4995_v15 }
 0x185   :  { %v3061_v36 = vpack.c.bf16 %v2372_v50, %v2371_v62  ;;  %v2162_v17 = vadd.f32 %v3383_v45, %v2161_v57  ;;  %3396 = vpow2.f32 %v2923_v13  ;;  %v1694_v9 = vmul.f32 %v3391_v33, %v4970_v23  ;;  %v572_v62 = vpop.f32.mrf.mxu2 }
 0x186   :  { %3398 = vrcp.f32 %v5005_v41  ;;  %v1028_v11 = vmul.f32 %v4870_v10, %v899_v32  ;;  %v2182_v26 = vand.u32 2147483647, %v4995_v15  ;;  %v5021_v16 = vmul.f32 %v4870_v10, %v979_v1  ;;  %v903_v32 = vpop.f32.mrf.mxu1 }
 0x187   :  { %3181 = vst [vmem:[%s5619_s6 + $0x48] sm:$0xff] %v3061_v36   ;;  %v2166_v19 = vsel %vm2165_vm15, %v3383_v45, %v2162_v17  ;;  %v5023_v21 = vadd.f32 %v901_v7, %v492_v52  ;;  %v1695_v0 = vsub.f32 1.0, %v1694_v9  ;;  %vm1698_vm0 = vweird.f32 %v4970_v23 }
 0x188   :  { %v5025_v46 = vpop.eup %3392  ;;  %v2171_v61 = vsel %vm4991_vm13, %v2170_v6, %v2166_v19  ;;  %3400 = vrcp.f32 %v5007_v55  ;;  %vm5032_vm1 = vcmp.eq.f32.partialorder %v1702_v12, 8.507059e+37  ;;  %v1705_v27 = vor.u32 1.1754944e-38, %v1704_v34 }
 0x189   :  { %v2404_v31 = vmul.f32 %v2171_v61, %v4839_v48  ;;  %v2174_v37 = vmul.f32 %v5025_v46, %v4995_v15  ;;  %v1696_v63 = vmul.f32 %v3391_v33, %v1695_v0  ;;  %vm1699_vm2 = vweird.f32 %v3391_v33  ;;  %v494_v43 = vpop.f32.mrf.mxu0 }
 0x18a   :  { %v3395_v14 = vpop.eup %3394  ;;  %vm2178_vm3 = vweird.f32 %v4995_v15  ;;  %v2185_v20 = vor.u32 1.1754944e-38, %v2184_v47  ;;  %vm5039_vm4 = vcmp.eq.f32.partialorder %v2182_v26, 8.507059e+37  ;;  %vm1713_vm5 = vweird.f32 %v5005_v41  ;;  %vm5055_vm7 = vmor %vm1698_vm0, %vm1699_vm2 }
 0x18b   :  { %v3397_v25 = vpop.eup %3396  ;;  %v3141_v35 = vpack.c.bf16 %v2404_v31, %v2403_v28  ;;  %v2175_v18 = vsub.f32 1.0, %v2174_v37  ;;  %v5044_v48 = vadd.f32 1.0, %v3395_v14  ;;  %v1697_v29 = vadd.f32 %v3391_v33, %v1696_v63 }
 0x18c   :  { %v3399_v51 = vpop.eup %3398  ;;  %vm2179_vm6 = vweird.f32 %v5025_v46  ;;  %v1717_v56 = vand.u32 2147483647, %v5005_v41  ;;  %v1719_v60 = vand.u32 2147483648, %v5005_v41  ;;  %v5062_v39 = vadd.f32 1.0, %v3397_v25 }
 0x18d   :  { %3197 = vst [vmem:[%s5619_s6 + $0xc8] sm:$0xff] %v3141_v35   ;;  %v2176_v58 = vmul.f32 %v5025_v46, %v2175_v18  ;;  %v1709_v6 = vmul.f32 %v3399_v51, %v5005_v41  ;;  %3402 = vrcp.f32 %v5044_v48  ;;  %v1701_v5 = vsel %vm5055_vm7, %v3391_v33, %v1697_v29  ;;  %vm5080_vm9 = vmor %vm2178_vm3, %vm2179_vm6 }
 0x18e   :  { %v3401_v30 = vpop.eup %3400  ;;  %vm2193_vm8 = vweird.f32 %v5007_v55  ;;  %v2197_v23 = vand.u32 2147483647, %v5007_v55  ;;  %v2199_v4 = vand.u32 2147483648, %v5007_v55  ;;  %v5072_v28 = vadd.f32 %v4888_v54, %v1028_v11 }
 0x18f   :  { %v2177_v22 = vadd.f32 %v5025_v46, %v2176_v58  ;;  %v1710_v13 = vsub.f32 1.0, %v1709_v6  ;;  %v2189_v44 = vmul.f32 %v3401_v30, %v5007_v55  ;;  %v1706_v49 = vsel %vm5032_vm1, %v1705_v27, %v1701_v5  ;;  %v983_v27 = vpop.f32.mrf.mxu3 }
 0x190   :  { %vm1714_vm10 = vweird.f32 %v3399_v51  ;;  %vm5084_vm11 = vcmp.eq.f32.partialorder %v1717_v56, 8.507059e+37  ;;  %v1720_v1 = vor.u32 1.1754944e-38, %v1719_v60  ;;  %3404 = vrcp.f32 %v5062_v39  ;;  %v906_v56 = vpop.f32.mrf.mxu1 }
 0x191   :  { %v2181_v12 = vsel %vm5080_vm9, %v5025_v46, %v2177_v22  ;;  %v1711_v52 = vmul.f32 %v3399_v51, %v1710_v13  ;;  %v2190_v7 = vsub.f32 1.0, %v2189_v44  ;;  %vm5092_vm12 = vcmp.eq.f32.partialorder %v2197_v23, 8.507059e+37  ;;  %vm1715_vm15 = vmor %vm1713_vm5, %vm1714_vm10 }
 0x192   :  { %v2200_v33 = vor.u32 1.1754944e-38, %v2199_v4  ;;  %v1732_v36 = vand.u32 2147483647, %v5044_v48  ;;  %v1734_v17 = vand.u32 2147483648, %v5044_v48  ;;  %vm2194_vm13 = vweird.f32 %v3401_v30 }
 0x193   :  { %v5098_v34 = vpop.eup %3402  ;;  %v1712_v9 = vadd.f32 %v3399_v51, %v1711_v52  ;;  %v2191_v47 = vmul.f32 %v3401_v30, %v2190_v7  ;;  %vm1728_vm14 = vweird.f32 %v5044_v48  ;;  %v2892_v11 = vmul.f32 -1.442695, %v5072_v28  ;;  %vm2195_vm0 = vmor %vm2193_vm8, %vm2194_vm13 }
 0x194   :  { %v2373_v19 = vmul.f32 %v1706_v49, %v4891_v24  ;;  %v2186_v26 = vsel %vm5039_vm4, %v2185_v20, %v2181_v12  ;;  %v1724_v46 = vmul.f32 %v5098_v34, %v5044_v48  ;;  %v2212_v61 = vand.u32 2147483647, %v5062_v39  ;;  %v574_v24 = vpop.f32.mrf.mxu2 }
 0x195   :  { %v1716_v0 = vsel %vm1715_vm15, %v3399_v51, %v1712_v9  ;;  %v2192_v31 = vadd.f32 %v3401_v30, %v2191_v47  ;;  %3406 = vpow2.f32 %v2892_v11  ;;  %v5113_v53 = vadd.f32 %v4888_v54, %v5021_v16 }
 0x196   :  { %v1721_v37 = vsel %vm5084_vm11, %v1720_v1, %v1716_v0  ;;  %v1725_v41 = vsub.f32 1.0, %v1724_v46  ;;  %v1029_v14 = vmul.f32 %v4870_v10, %v5023_v21  ;;  %v982_v63 = vadd.f32 %v981_v42, %v572_v62  ;;  %v5122_v20 = vpop.eup %3404  ;;  %v497_v42 = vpop.f32.mrf.mxu0 }
 0x197   :  { %v2374_v25 = vmul.f32 %v1721_v37, %v4935_v3  ;;  %v2196_v16 = vsel %vm2195_vm0, %v3401_v30, %v2192_v31  ;;  %v2924_v35 = vmul.f32 -1.442695, %v5113_v53  ;;  %v904_v18 = vadd.f32 %v903_v32, %v494_v43  ;;  %v986_v15 = vpop.f32.mrf.mxu3 }
 0x198   :  { %v2405_v45 = vmul.f32 %v2186_v26, %v4915_v8  ;;  %v2201_v51 = vsel %vm5092_vm12, %v2200_v33, %v2196_v16  ;;  %v1726_v55 = vmul.f32 %v5098_v34, %v1725_v41  ;;  %v2204_v29 = vmul.f32 %v5122_v20, %v5062_v39 }
 0x199   :  { %v3066_v21 = vpack.c.bf16 %v2374_v25, %v2373_v19  ;;  %v2406_v62 = vmul.f32 %v2201_v51, %v4944_v40  ;;  %3408 = vpow2.f32 %v2924_v35  ;;  %v5134_v3 = vadd.f32 %v4888_v54, %v1029_v14  ;;  %v908_v14 = vpop.f32.mrf.mxu1 }
 0x19a   :  { %vm1729_vm1 = vweird.f32 %v5098_v34  ;;  %v2205_v8 = vsub.f32 1.0, %v2204_v29  ;;  %v1061_v60 = vmul.f32 %v4870_v10, %v982_v63  ;;  %v1030_v38 = vmul.f32 %v4870_v10, %v904_v18 }
 0x19b   :  { %v3407_v58 = vpop.eup %3406  ;;  %3182 = vst [vmem:[%s5619_s6 + $0x50] sm:$0xff] %v3066_v21   ;;  %v3146_v6 = vpack.c.bf16 %v2406_v62, %v2405_v45  ;;  %v1727_v40 = vadd.f32 %v5098_v34, %v1726_v55  ;;  %v2893_v30 = vmul.f32 -1.442695, %v5134_v3  ;;  %v984_v5 = vadd.f32 %v983_v27, %v574_v24  ;;  %vm5162_vm3 = vmor %vm1728_vm14, %vm1729_vm1 }
 0x19c   :  { %v2206_v23 = vmul.f32 %v5122_v20, %v2205_v8  ;;  %v5145_v4 = vadd.f32 1.0, %v3407_v58  ;;  %v5148_v22 = vadd.f32 %v4888_v54, %v1061_v60  ;;  %v907_v13 = vadd.f32 %v906_v56, %v497_v42  ;;  %v577_v7 = vpop.f32.mrf.mxu2 }
 0x19d   :  { %3198 = vst [vmem:[%s5619_s6 + $0xd0] sm:$0xff] %v3146_v6   ;;  %vm2209_vm2 = vweird.f32 %v5122_v20  ;;  %3410 = vpow2.f32 %v2893_v30  ;;  %v5155_v44 = vadd.f32 %v4888_v54, %v1030_v38  ;;  %v1062_v43 = vmul.f32 %v4870_v10, %v984_v5 }
 0x19e   :  { %v2207_v49 = vadd.f32 %v5122_v20, %v2206_v23  ;;  %v2214_v50 = vand.u32 2147483648, %v5062_v39  ;;  %3412 = vrcp.f32 %v5145_v4  ;;  %v1731_v1 = vsel %vm5162_vm3, %v5098_v34, %v1727_v40  ;;  %v499_v41 = vpop.f32.mrf.mxu0 }
 0x19f   :  { %v3409_v57 = vpop.eup %3408  ;;  %vm2208_vm4 = vweird.f32 %v5062_v39  ;;  %v2925_v12 = vmul.f32 -1.442695, %v5148_v22  ;;  %v5175_v52 = vadd.f32 %v4888_v54, %v1062_v43  ;;  %v1735_v33 = vor.u32 1.1754944e-38, %v1734_v17  ;;  %v988_v60 = vpop.f32.mrf.mxu3 }
 0x1a0   :  { %vm5181_vm5 = vmor %vm2208_vm4, %vm2209_vm2  ;;  %v5185_v47 = vadd.f32 1.0, %v3409_v57  ;;  %v2894_v34 = vmul.f32 -1.442695, %v5155_v44  ;;  %v1031_v11 = vmul.f32 %v4870_v10, %v907_v13  ;;  %vm1733_vm6 = vcmp.eq.f32.partialorder %v1732_v36, 8.507059e+37 }
 0x1a1   :  { %v2211_v19 = vsel %vm5181_vm5, %v5122_v20, %v2207_v49  ;;  %vm2213_vm7 = vcmp.eq.f32.partialorder %v2212_v61, 8.507059e+37  ;;  %3414 = vpow2.f32 %v2925_v12  ;;  %v1736_v17 = vsel %vm1733_vm6, %v1735_v33, %v1731_v1 }
 0x1a2   :  { %v2215_v26 = vor.u32 1.1754944e-38, %v2214_v50  ;;  %v1747_v46 = vand.u32 2147483647, %v5145_v4  ;;  %3416 = vrcp.f32 %v5185_v47  ;;  %v1749_v31 = vand.u32 2147483648, %v5145_v4 }
 0x1a3   :  { %v3411_v0 = vpop.eup %3410  ;;  %3418 = vpow2.f32 %v2894_v34  ;;  %v2926_v48 = vmul.f32 -1.442695, %v5175_v52  ;;  %v5201_v36 = vadd.f32 %v4888_v54, %v1031_v11  ;;  %v5206_v61 = vmul.f32 %v1736_v17, %v4973_v2  ;;  %v5256_v17 = vpop.f32.mrf.mxu1 }
 0x1a4   :  { %v3413_v24 = vpop.eup %3412  ;;  %v2216_v27 = vsel %vm2213_vm7, %v2215_v26, %v2211_v19  ;;  %v5203_v39 = vadd.f32 1.0, %v3411_v0  ;;  %vm1743_vm8 = vweird.f32 %v5145_v4  ;;  %vm5210_vm9 = vcmp.eq.f32.partialorder %v1747_v46, 8.507059e+37 }
 0x1a5   :  { %v1739_v37 = vmul.f32 %v3413_v24, %v5145_v4  ;;  %3420 = vpow2.f32 %v2926_v48  ;;  %v2227_v20 = vand.u32 2147483647, %v5185_v47  ;;  %v2229_v25 = vand.u32 2147483648, %v5185_v47 }
 0x1a6   :  { %3422 = vrcp.f32 %v5203_v39  ;;  %v5218_v2 = vmul.f32 %v2216_v27, %v4981_v59  ;;  %v1750_v18 = vor.u32 1.1754944e-38, %v1749_v31  ;;  %v2895_v45 = vmul.f32 -1.442695, %v5201_v36  ;;  %v579_v59 = vpop.f32.mrf.mxu2  ;;  %v5254_v19 = vpop.f32.mrf.mxu0 }
 0x1a7   :  { %v3415_v16 = vpop.eup %3414  ;;  %v1740_v35 = vsub.f32 1.0, %v1739_v37  ;;  %v1764_v55 = vand.u32 2147483648, %v5203_v39  ;;  %v987_v21 = vadd.f32 %v986_v15, %v577_v7  ;;  %v909_v62 = vadd.f32 %v908_v14, %v499_v41 }
 0x1a8   :  { %v3417_v51 = vpop.eup %3416  ;;  %v5222_v29 = vadd.f32 1.0, %v3415_v16  ;;  %vm1744_vm10 = vweird.f32 %v3413_v24  ;;  %vm2223_vm11 = vweird.f32 %v5185_v47  ;;  %vm5226_vm12 = vcmp.eq.f32.partialorder %v2227_v20, 8.507059e+37 }
 0x1a9   :  { %v3419_v42 = vpop.eup %3418  ;;  %v1741_v56 = vmul.f32 %v3413_v24, %v1740_v35  ;;  %v2219_v8 = vmul.f32 %v3417_v51, %v5185_v47  ;;  %v2230_v58 = vor.u32 1.1754944e-38, %v2229_v25  ;;  %v1762_v6 = vand.u32 2147483647, %v5203_v39  ;;  %vm1745_vm14 = vmor %vm1743_vm8, %vm1744_vm10  ;;  %v991_v35 = vpop.f32.mrf.mxu3 }
 0x1aa   :  { %3424 = vrcp.f32 %v5222_v29  ;;  %vm1758_vm13 = vweird.f32 %v5203_v39  ;;  %v5233_v23 = vadd.f32 1.0, %v3419_v42  ;;  %v5240_v43 = vor.u32 1.1754944e-38, %v1764_v55 }
 0x1ab   :  { %v3421_v40 = vpop.eup %3420  ;;  %v1742_v30 = vadd.f32 %v3413_v24, %v1741_v56  ;;  %v2220_v5 = vsub.f32 1.0, %v2219_v8  ;;  %3426 = vpow2.f32 %v2895_v45  ;;  %v1063_v49 = vmul.f32 %v4870_v10, %v987_v21 }
 0x1ac   :  { %v5235_v13 = vpop.eup %3422  ;;  %v5242_v32 = vadd.f32 1.0, %v3421_v40  ;;  %v1032_v50 = vmul.f32 %v4870_v10, %v909_v62  ;;  %vm2224_vm15 = vweird.f32 %v3417_v51  ;;  %v2242_v4 = vand.u32 2147483647, %v5222_v29 }
 0x1ad   :  { %v1746_v57 = vsel %vm1745_vm14, %v3413_v24, %v1742_v30  ;;  %v2221_v1 = vmul.f32 %v3417_v51, %v2220_v5  ;;  %v1754_v12 = vmul.f32 %v5235_v13, %v5203_v39  ;;  %v2244_v15 = vand.u32 2147483648, %v5222_v29  ;;  %vm2225_vm0 = vmor %vm2223_vm11, %vm2224_vm15 }
 0x1ae   :  { %v1751_v7 = vsel %vm5210_vm9, %v1750_v18, %v1746_v57  ;;  %3428 = vrcp.f32 %v5233_v23  ;;  %v989_v11 = vadd.f32 %v988_v60, %v579_v59  ;;  %vm2238_vm1 = vweird.f32 %v5222_v29  ;;  %v582_v16 = vpop.f32.mrf.mxu2  ;;  %v504_v57 = vpop.f32.mrf.mxu0 }
 0x1af   :  { %v2376_v33 = vmul.f32 %v1751_v7, %v5072_v28  ;;  %v2222_v9 = vadd.f32 %v3417_v51, %v2221_v1  ;;  %v1755_v34 = vsub.f32 1.0, %v1754_v12  ;;  %v1777_v46 = vand.u32 2147483647, %v5233_v23  ;;  %v913_v1 = vpop.f32.mrf.mxu1 }
 0x1b0   :  { %v3425_v26 = vpop.eup %3424  ;;  %3430 = vrcp.f32 %v5242_v32  ;;  %v5264_v0 = vadd.f32 %v4888_v54, %v1063_v49  ;;  %vm5268_vm2 = vcmp.eq.f32.partialorder %v1762_v6, 8.507059e+37  ;;  %vm5275_vm3 = vcmp.eq.f32.partialorder %v2242_v4, 8.507059e+37 }
 0x1b1   :  { %v3427_v28 = vpop.eup %3426  ;;  %v3071_v31 = vpack.c.bf16 %v2376_v33, %v5206_v61  ;;  %v2226_v48 = vsel %vm2225_vm0, %v3417_v51, %v2222_v9  ;;  %v1756_v24 = vmul.f32 %v5235_v13, %v1755_v34  ;;  %v2234_v47 = vmul.f32 %v3425_v26, %v5222_v29  ;;  %v993_v27 = vpop.f32.mrf.mxu3 }
 0x1b2   :  { %v2231_v37 = vsel %vm5226_vm12, %v2230_v58, %v2226_v48  ;;  %v2245_v14 = vor.u32 1.1754944e-38, %v2244_v15  ;;  %v5280_v63 = vadd.f32 %v4888_v54, %v1032_v50  ;;  %vm1759_vm4 = vweird.f32 %v5235_v13 }
 0x1b3   :  { %3183 = vst [vmem:[%s5619_s6 + $0x58] sm:$0xff] %v3071_v31   ;;  %v2408_v61 = vmul.f32 %v2231_v37, %v5113_v53  ;;  %v1757_v20 = vadd.f32 %v5235_v13, %v1756_v24  ;;  %v2235_v25 = vsub.f32 1.0, %v2234_v47  ;;  %vm2239_vm5 = vweird.f32 %v3425_v26  ;;  %vm5303_vm8 = vmor %vm1758_vm13, %vm1759_vm4 }
 0x1b4   :  { %v3429_v18 = vpop.eup %3428  ;;  %vm1773_vm6 = vweird.f32 %v5233_v23  ;;  %v1779_v45 = vand.u32 2147483648, %v5233_v23  ;;  %v5290_v51 = vadd.f32 1.0, %v3427_v28  ;;  %vm5294_vm7 = vcmp.eq.f32.partialorder %v1777_v46, 8.507059e+37  ;;  %vm5321_vm9 = vmor %vm2238_vm1, %vm2239_vm5 }
 0x1b5   :  { %v3151_v55 = vpack.c.bf16 %v2408_v61, %v5218_v2  ;;  %v2236_v21 = vmul.f32 %v3425_v26, %v2235_v25  ;;  %v1769_v53 = vmul.f32 %v3429_v18, %v5233_v23  ;;  %v2927_v42 = vmul.f32 -1.442695, %v5264_v0 }
 0x1b6   :  { %v3431_v56 = vpop.eup %3430  ;;  %v2257_v2 = vand.u32 2147483647, %v5242_v32  ;;  %3432 = vrcp.f32 %v5290_v51  ;;  %v2896_v59 = vmul.f32 -1.442695, %v5280_v63  ;;  %v1064_v60 = vmul.f32 %v4870_v10, %v989_v11  ;;  %v584_v24 = vpop.f32.mrf.mxu2 }
 0x1b7   :  { %3199 = vst [vmem:[%s5619_s6 + $0xd8] sm:$0xff] %v3151_v55   ;;  %v1761_v39 = vsel %vm5303_vm8, %v5235_v13, %v1757_v20  ;;  %v2237_v38 = vadd.f32 %v3425_v26, %v2236_v21  ;;  %v1770_v58 = vsub.f32 1.0, %v1769_v53  ;;  %v2249_v6 = vmul.f32 %v3431_v56, %v5242_v32  ;;  %v507_v8 = vpop.f32.mrf.mxu0 }
 0x1b8   :  { %vm1774_vm10 = vweird.f32 %v3429_v18  ;;  %v1780_v30 = vor.u32 1.1754944e-38, %v1779_v45  ;;  %vm2253_vm11 = vweird.f32 %v5242_v32  ;;  %v2259_v5 = vand.u32 2147483648, %v5242_v32 }
 0x1b9   :  { %v2241_v13 = vsel %vm5321_vm9, %v3425_v26, %v2237_v38  ;;  %v1771_v49 = vmul.f32 %v3429_v18, %v1770_v58  ;;  %v2250_v50 = vsub.f32 1.0, %v2249_v6  ;;  %3434 = vpow2.f32 %v2927_v42  ;;  %vm1775_vm14 = vmor %vm1773_vm6, %vm1774_vm10  ;;  %v996_v40 = vpop.f32.mrf.mxu3 }
 0x1ba   :  { %v1766_v29 = vsel %vm5268_vm2, %v5240_v43, %v1761_v39  ;;  %vm2254_vm12 = vweird.f32 %v3431_v56  ;;  %vm5332_vm13 = vcmp.eq.f32.partialorder %v2257_v2, 8.507059e+37  ;;  %3436 = vpow2.f32 %v2896_v59  ;;  %v916_v2 = vpop.f32.mrf.mxu1 }
 0x1bb   :  { %v2246_v7 = vsel %vm5275_vm3, %v2245_v14, %v2241_v13  ;;  %v1772_v4 = vadd.f32 %v3429_v18, %v1771_v49  ;;  %v2251_v15 = vmul.f32 %v3431_v56, %v2250_v50  ;;  %v5339_v33 = vadd.f32 %v4888_v54, %v1064_v60  ;;  %vm2255_vm15 = vmor %vm2253_vm11, %vm2254_vm12 }
 0x1bc   :  { %v5341_v9 = vpop.eup %3432  ;;  %v2260_v43 = vor.u32 1.1754944e-38, %v2259_v5  ;;  %v912_v34 = vadd.f32 %v5256_v17, %v5254_v19  ;;  %v992_v11 = vadd.f32 %v991_v35, %v582_v16  ;;  %v914_v26 = vadd.f32 %v913_v1, %v504_v57 }
 0x1bd   :  { %v2377_v46 = vmul.f32 %v1766_v29, %v5134_v3  ;;  %v1776_v28 = vsel %vm1775_vm14, %v3429_v18, %v1772_v4  ;;  %v2252_v31 = vadd.f32 %v3431_v56, %v2251_v15  ;;  %v1784_v48 = vmul.f32 %v5341_v9, %v5290_v51 }
 0x1be   :  { %v2409_v47 = vmul.f32 %v2246_v7, %v5148_v22  ;;  %v1781_v23 = vsel %vm5294_vm7, %v1780_v30, %v1776_v28  ;;  %v2928_v19 = vmul.f32 -1.442695, %v5339_v33  ;;  %v1033_v3 = vmul.f32 %v4870_v10, %v912_v34  ;;  %v587_v6 = vpop.f32.mrf.mxu2 }
 0x1bf   :  { %v3435_v17 = vpop.eup %3434  ;;  %v2378_v37 = vmul.f32 %v1781_v23, %v5155_v44  ;;  %v2256_v41 = vsel %vm2255_vm15, %v3431_v56, %v2252_v31  ;;  %v1785_v14 = vsub.f32 1.0, %v1784_v48  ;;  %v1065_v61 = vmul.f32 %v4870_v10, %v992_v11 }
 0x1c0   :  { %v3437_v20 = vpop.eup %3436  ;;  %v2261_v22 = vsel %vm5332_vm13, %v2260_v43, %v2256_v41  ;;  %v5363_v25 = vadd.f32 1.0, %v3435_v17  ;;  %3438 = vpow2.f32 %v2928_v19  ;;  %v1034_v32 = vmul.f32 %v4870_v10, %v914_v26 }
 0x1c1   :  { %v3076_v16 = vpack.c.bf16 %v2378_v37, %v2377_v46  ;;  %v2410_v35 = vmul.f32 %v2261_v22, %v5175_v52  ;;  %v5367_v18 = vadd.f32 1.0, %v3437_v20  ;;  %v5370_v44 = vadd.f32 %v4888_v54, %v1033_v3 }
 0x1c2   :  { %v1786_v45 = vmul.f32 %v5341_v9, %v1785_v14  ;;  %3440 = vrcp.f32 %v5363_v25  ;;  %v994_v55 = vadd.f32 %v993_v27, %v584_v24  ;;  %v1792_v53 = vand.u32 2147483647, %v5290_v51 }
 0x1c3   :  { %3184 = vst [vmem:[%s5619_s6 + $0x60] sm:$0xff] %v3076_v16   ;;  %v3156_v21 = vpack.c.bf16 %v2410_v35, %v2409_v47  ;;  %3442 = vrcp.f32 %v5367_v18  ;;  %v1794_v52 = vand.u32 2147483648, %v5290_v51  ;;  %v2897_v62 = vmul.f32 -1.442695, %v5370_v44 }
 0x1c4   :  { %v5385_v42 = vadd.f32 %v4888_v54, %v1065_v61  ;;  %v5388_v56 = vadd.f32 %v4888_v54, %v1034_v32  ;;  %v1787_v60 = vadd.f32 %v5341_v9, %v1786_v45  ;;  %vm1788_vm0 = vweird.f32 %v5290_v51 }
 0x1c5   :  { %3200 = vst [vmem:[%s5619_s6 + $0xe0] sm:$0xff] %v3156_v21   ;;  %vm1789_vm1 = vweird.f32 %v5341_v9  ;;  %v1066_v39 = vmul.f32 %v4870_v10, %v994_v55  ;;  %3444 = vpow2.f32 %v2897_v62  ;;  %v917_v49 = vadd.f32 %v916_v2, %v507_v8 }
 0x1c6   :  { %v3439_v59 = vpop.eup %3438  ;;  %v2929_v58 = vmul.f32 -1.442695, %v5385_v42  ;;  %v2898_v5 = vmul.f32 -1.442695, %v5388_v56  ;;  %vm5403_vm2 = vmor %vm1788_vm0, %vm1789_vm1  ;;  %vm5407_vm3 = vcmp.eq.f32.partialorder %v1792_v53, 8.507059e+37  ;;  %v1795_v1 = vor.u32 1.1754944e-38, %v1794_v52  ;;  %v589_v57 = vpop.f32.mrf.mxu2 }
 0x1c7   :  { %v5394_v38 = vadd.f32 1.0, %v3439_v59  ;;  %v5401_v13 = vadd.f32 %v4888_v54, %v1066_v39  ;;  %v1791_v12 = vsel %vm5403_vm2, %v5341_v9, %v1787_v60  ;;  %vm2268_vm4 = vweird.f32 %v5363_v25  ;;  %v918_v59 = vpop.f32.mrf.mxu1 }
 0x1c8   :  { %v5397_v30 = vpop.eup %3440  ;;  %v2272_v7 = vand.u32 2147483647, %v5363_v25  ;;  %v997_v15 = vadd.f32 %v996_v40, %v587_v6  ;;  %v1035_v11 = vmul.f32 %v4870_v10, %v917_v49  ;;  %v2274_v26 = vand.u32 2147483648, %v5363_v25 }
 0x1c9   :  { %v3443_v51 = vpop.eup %3442  ;;  %v2264_v29 = vmul.f32 %v5397_v30, %v5363_v25  ;;  %3446 = vrcp.f32 %v5394_v38  ;;  %v2930_v34 = vmul.f32 -1.442695, %v5401_v13  ;;  %v1807_v28 = vand.u32 2147483647, %v5367_v18  ;;  %v509_v25 = vpop.f32.mrf.mxu0 }
 0x1ca   :  { %v1799_v4 = vmul.f32 %v3443_v51, %v5367_v18  ;;  %3448 = vpow2.f32 %v2929_v58  ;;  %v1796_v31 = vsel %vm5407_vm3, %v1795_v1, %v1791_v12  ;;  %v1809_v24 = vand.u32 2147483648, %v5367_v18  ;;  %v998_v1 = vpop.f32.mrf.mxu3 }
 0x1cb   :  { %v2265_v43 = vsub.f32 1.0, %v2264_v29  ;;  %3450 = vpow2.f32 %v2898_v5  ;;  %v3445_v9 = vpop.eup %3444  ;;  %vm1804_vm5 = vweird.f32 %v3443_v51  ;;  %v5431_v23 = vadd.f32 %v4888_v54, %v1035_v11 }
 0x1cc   :  { %v1800_v46 = vsub.f32 1.0, %v1799_v4  ;;  %3452 = vpow2.f32 %v2930_v34  ;;  %v5428_v47 = vadd.f32 1.0, %v3445_v9  ;;  %vm2269_vm6 = vweird.f32 %v5397_v30 }
 0x1cd   :  { %v2266_v48 = vmul.f32 %v5397_v30, %v2265_v43  ;;  %vm5434_vm7 = vcmp.eq.f32.partialorder %v2272_v7, 8.507059e+37  ;;  %vm1803_vm8 = vweird.f32 %v5367_v18  ;;  %v1067_v17 = vmul.f32 %v4870_v10, %v997_v15  ;;  %vm5452_vm11 = vmor %vm2268_vm4, %vm2269_vm6 }
 0x1ce   :  { %v1801_v27 = vmul.f32 %v3443_v51, %v1800_v46  ;;  %3454 = vrcp.f32 %v5428_v47  ;;  %v2379_v20 = vmul.f32 %v1796_v31, %v5201_v36  ;;  %vm1805_vm9 = vmor %vm1803_vm8, %vm1804_vm5  ;;  %vm1808_vm10 = vcmp.eq.f32.partialorder %v1807_v28, 8.507059e+37 }
 0x1cf   :  { %v3447_v19 = vpop.eup %3446  ;;  %v2267_v37 = vadd.f32 %v5397_v30, %v2266_v48  ;;  %v1810_v22 = vor.u32 1.1754944e-38, %v1809_v24  ;;  %v2287_v32 = vand.u32 2147483647, %v5394_v38  ;;  %v2899_v10 = vmul.f32 -1.442695, %v5431_v23 }
 0x1d0   :  { %v1802_v41 = vadd.f32 %v3443_v51, %v1801_v27  ;;  %v2279_v14 = vmul.f32 %v3447_v19, %v5394_v38  ;;  %v3449_v61 = vpop.eup %3448  ;;  %vm2284_vm12 = vweird.f32 %v3447_v19  ;;  %v2289_v53 = vand.u32 2147483648, %v5394_v38 }
 0x1d1   :  { %v3451_v16 = vpop.eup %3450  ;;  %v5445_v45 = vadd.f32 1.0, %v3449_v61  ;;  %v5458_v52 = vadd.f32 %v4888_v54, %v1067_v17  ;;  %v2271_v62 = vsel %vm5452_vm11, %v5397_v30, %v2267_v37  ;;  %v2275_v60 = vor.u32 1.1754944e-38, %v2274_v26  ;;  %v3482_v17 = vld [vmem:[%s5617_s4] ss:$0 sm:$0xff] }
 0x1d2   :  { %v1806_v35 = vsel %vm1805_vm9, %v3443_v51, %v1802_v41  ;;  %v2280_v18 = vsub.f32 1.0, %v2279_v14  ;;  %v3453_v55 = vpop.eup %3452  ;;  %vm2283_vm13 = vweird.f32 %v5394_v38  ;;  %v5466_v39 = vadd.f32 1.0, %v3451_v16 }
 0x1d3   :  { %v1811_v36 = vsel %vm1808_vm10, %v1810_v22, %v1806_v35  ;;  %3456 = vrcp.f32 %v5445_v45  ;;  %v5468_v58 = vadd.f32 1.0, %v3453_v55  ;;  %vm2288_vm14 = vcmp.eq.f32.partialorder %v2287_v32, 8.507059e+37  ;;  %vm2285_vm15 = vmor %vm2283_vm13, %vm2284_vm12 }
 0x1d4   :  { %v2380_v8 = vmul.f32 %v1811_v36, %v5280_v63  ;;  %v2281_v2 = vmul.f32 %v3447_v19, %v2280_v18  ;;  %v5470_v54 = vpop.eup %3454  ;;  %3458 = vpow2.f32 %v2899_v10  ;;  %v2276_v63 = vsel %vm5434_vm7, %v2275_v60, %v2271_v62 }
 0x1d5   :  { %v2290_v30 = vor.u32 1.1754944e-38, %v2289_v53  ;;  %v1814_v5 = vmul.f32 %v5470_v54, %v5428_v47  ;;  %v919_v38 = vadd.f32 %v918_v59, %v509_v25  ;;  %v1822_v51 = vand.u32 2147483647, %v5428_v47 }
 0x1d6   :  { %v3081_v6 = vpack.c.bf16 %v2380_v8, %v2379_v20  ;;  %v2282_v40 = vadd.f32 %v3447_v19, %v2281_v2  ;;  %3460 = vrcp.f32 %v5466_v39  ;;  %v2931_v50 = vmul.f32 -1.442695, %v5458_v52 }
 0x1d7   :  { %v1815_v12 = vsub.f32 1.0, %v1814_v5  ;;  %v1824_v7 = vand.u32 2147483648, %v5428_v47  ;;  %3462 = vrcp.f32 %v5468_v58  ;;  %v2411_v15 = vmul.f32 %v2276_v63, %v5264_v0 }
 0x1d8   :  { %3185 = vst [vmem:[%s5619_s6 + $0x68] sm:$0xff] %v3081_v6   ;;  %v2286_v49 = vsel %vm2285_vm15, %v3447_v19, %v2282_v40  ;;  %v2302_v34 = vand.u32 2147483647, %v5445_v45  ;;  %v2304_v11 = vand.u32 2147483648, %v5445_v45  ;;  %v999_v28 = vadd.f32 %v998_v1, %v589_v57 }
 0x1d9   :  { %v2291_v29 = vsel %vm2288_vm14, %v2290_v30, %v2286_v49  ;;  %v5485_v4 = vpop.eup %3456  ;;  %v1816_v26 = vmul.f32 %v5470_v54, %v1815_v12  ;;  %vm1818_vm0 = vweird.f32 %v5428_v47  ;;  %3464 = vpow2.f32 %v2931_v50  ;;  %v3483_v47 = vld [vmem:[%s5618_s5] ss:$0 sm:$0xff] }
 0x1da   :  { %v2412_v43 = vmul.f32 %v2291_v29, %v5339_v33  ;;  %v2294_v46 = vmul.f32 %v5485_v4, %v5445_v45  ;;  %v3459_v9 = vpop.eup %3458  ;;  %vm1819_vm1 = vweird.f32 %v5470_v54  ;;  %vm5496_vm2 = vcmp.eq.f32.partialorder %v1822_v51, 8.507059e+37 }
 0x1db   :  { %v1825_v33 = vor.u32 1.1754944e-38, %v1824_v7  ;;  %vm2298_vm3 = vweird.f32 %v5445_v45  ;;  %v1817_v27 = vadd.f32 %v5470_v54, %v1816_v26  ;;  %vm5505_vm4 = vcmp.eq.f32.partialorder %v2302_v34, 8.507059e+37  ;;  %vm5524_vm7 = vmor %vm1818_vm0, %vm1819_vm1 }
 0x1dc   :  { %v3161_v31 = vpack.c.bf16 %v2412_v43, %v2411_v15  ;;  %v2295_v48 = vsub.f32 1.0, %v2294_v46  ;;  %v3461_v24 = vpop.eup %3460  ;;  %v2305_v3 = vor.u32 1.1754944e-38, %v2304_v11  ;;  %v1036_v37 = vmul.f32 %v3482_v17, %v919_v38 }
 0x1dd   :  { %v3463_v41 = vpop.eup %3462  ;;  %v1829_v61 = vmul.f32 %v3461_v24, %v5466_v39  ;;  %v5514_v20 = vadd.f32 1.0, %v3459_v9  ;;  %v1068_v22 = vmul.f32 %v3482_v17, %v999_v28  ;;  %vm2299_vm5 = vweird.f32 %v5485_v4 }
 0x1de   :  { %3201 = vst [vmem:[%s5619_s6 + $0xe8] sm:$0xff] %v3161_v31   ;;  %v2296_v14 = vmul.f32 %v5485_v4, %v2295_v48  ;;  %vm1833_vm6 = vweird.f32 %v5466_v39  ;;  %v1837_v32 = vand.u32 2147483647, %v5466_v39  ;;  %v2309_v16 = vmul.f32 %v3463_v41, %v5468_v58  ;;  %vm5543_vm9 = vmor %vm2298_vm3, %vm2299_vm5 }
 0x1df   :  { %v1830_v10 = vsub.f32 1.0, %v1829_v61  ;;  %v1839_v55 = vand.u32 2147483648, %v5466_v39  ;;  %v2319_v21 = vand.u32 2147483648, %v5468_v58  ;;  %v3465_v36 = vpop.eup %3464  ;;  %v1821_v53 = vsel %vm5524_vm7, %v5470_v54, %v1817_v27 }
 0x1e0   :  { %v2297_v18 = vadd.f32 %v5485_v4, %v2296_v14  ;;  %vm1834_vm8 = vweird.f32 %v3461_v24  ;;  %v2310_v62 = vsub.f32 1.0, %v2309_v16  ;;  %v5537_v8 = vadd.f32 %v3483_v47, %v1036_v37 }
 0x1e1   :  { %v1831_v25 = vmul.f32 %v3461_v24, %v1830_v10  ;;  %3466 = vrcp.f32 %v5514_v20  ;;  %v5548_v59 = vadd.f32 1.0, %v3465_v36  ;;  %v5550_v60 = vadd.f32 %v3483_v47, %v1068_v22  ;;  %vm1835_vm13 = vmor %vm1833_vm6, %vm1834_vm8 }
 0x1e2   :  { %v2301_v54 = vsel %vm5543_vm9, %v5485_v4, %v2297_v18  ;;  %v2311_v6 = vmul.f32 %v3463_v41, %v2310_v62  ;;  %vm2314_vm10 = vweird.f32 %v3463_v41  ;;  %v2317_v40 = vand.u32 2147483647, %v5468_v58 }
 0x1e3   :  { %v1832_v45 = vadd.f32 %v3461_v24, %v1831_v25  ;;  %vm1838_vm11 = vcmp.eq.f32.partialorder %v1837_v32, 8.507059e+37  ;;  %vm2313_vm12 = vweird.f32 %v5468_v58  ;;  %3468 = vrcp.f32 %v5548_v59 }
 0x1e4   :  { %v1826_v63 = vsel %vm5496_vm2, %v1825_v33, %v1821_v53  ;;  %v1840_v30 = vor.u32 1.1754944e-38, %v1839_v55  ;;  %v2312_v5 = vadd.f32 %v3463_v41, %v2311_v6  ;;  %v2900_v38 = vmul.f32 -1.442695, %v5537_v8  ;;  %vm2315_vm14 = vmor %vm2313_vm12, %vm2314_vm10 }
 0x1e5   :  { %v2306_v49 = vsel %vm5505_vm4, %v2305_v3, %v2301_v54  ;;  %v1836_v51 = vsel %vm1835_vm13, %v3461_v24, %v1832_v45  ;;  %v2320_v50 = vor.u32 1.1754944e-38, %v2319_v21  ;;  %v2932_v58 = vmul.f32 -1.442695, %v5550_v60 }
 0x1e6   :  { %v1841_v57 = vsel %vm1838_vm11, %v1840_v30, %v1836_v51  ;;  %v2316_v1 = vsel %vm2315_vm14, %v3463_v41, %v2312_v5  ;;  %vm2318_vm15 = vcmp.eq.f32.partialorder %v2317_v40, 8.507059e+37  ;;  %v2381_v12 = vmul.f32 %v1826_v63, %v5370_v44 }
 0x1e7   :  { %v3467_v29 = vpop.eup %3466  ;;  %v2382_v39 = vmul.f32 %v1841_v57, %v5388_v56  ;;  %v2321_v7 = vsel %vm2318_vm15, %v2320_v50, %v2316_v1  ;;  %3470 = vpow2.f32 %v2900_v38  ;;  %v2413_v4 = vmul.f32 %v2306_v49, %v5385_v42 }
 0x1e8   :  { %v2414_v15 = vmul.f32 %v2321_v7, %v5401_v13  ;;  %3472 = vpow2.f32 %v2932_v58  ;;  %v1844_v26 = vmul.f32 %v3467_v29, %v5514_v20  ;;  %v1852_v0 = vand.u32 2147483647, %v5514_v20 }
 0x1e9   :  { %v3469_v43 = vpop.eup %3468  ;;  %v3086_v34 = vpack.c.bf16 %v2382_v39, %v2381_v12  ;;  %v1854_v48 = vand.u32 2147483648, %v5514_v20  ;;  %vm1848_vm0 = vweird.f32 %v5514_v20  ;;  %vm1849_vm1 = vweird.f32 %v3467_v29 }
 0x1ea   :  { %v3166_v11 = vpack.c.bf16 %v2414_v15, %v2413_v4  ;;  %v2324_v44 = vmul.f32 %v3469_v43, %v5548_v59  ;;  %v1845_v46 = vsub.f32 1.0, %v1844_v26  ;;  %vm5582_vm2 = vcmp.eq.f32.partialorder %v1852_v0, 8.507059e+37  ;;  %vm5586_vm4 = vmor %vm1848_vm0, %vm1849_vm1 }
 0x1eb   :  { %3186 = vst [vmem:[%s5619_s6 + $0x70] sm:$0xff] %v3086_v34   ;;  %vm2329_vm3 = vweird.f32 %v3469_v43  ;;  %v1855_v61 = vor.u32 1.1754944e-38, %v1854_v48  ;;  %v2332_v22 = vand.u32 2147483647, %v5548_v59  ;;  %v2334_v32 = vand.u32 2147483648, %v5548_v59 }
 0x1ec   :  { %3202 = vst [vmem:[%s5619_s6 + $0xf0] sm:$0xff] %v3166_v11   ;;  %v2325_v9 = vsub.f32 1.0, %v2324_v44  ;;  %v1846_v31 = vmul.f32 %v3467_v29, %v1845_v46  ;;  %vm2328_vm5 = vweird.f32 %v5548_v59 }
 0x1ed   :  { %v3471_v56 = vpop.eup %3470  ;;  %vm5595_vm6 = vmor %vm2328_vm5, %vm2329_vm3  ;;  %vm2333_vm9 = vcmp.eq.f32.partialorder %v2332_v22, 8.507059e+37  ;;  %v2335_v2 = vor.u32 1.1754944e-38, %v2334_v32 }
 0x1ee   :  { %v3473_v42 = vpop.eup %3472  ;;  %v1360_v13 = vadd.f32 1.0, %v3471_v56  ;;  %v2326_v33 = vmul.f32 %v3469_v43, %v2325_v9  ;;  %v1847_v27 = vadd.f32 %v3467_v29, %v1846_v31 }
 0x1ef   :  { %v1392_v28 = vadd.f32 1.0, %v3473_v42 }
 0x1f0   :  { %3474 = vrcp.f32 %v1360_v13  ;;  %v2327_v37 = vadd.f32 %v3469_v43, %v2326_v33  ;;  %v1851_v16 = vsel %vm5586_vm4, %v3467_v29, %v1847_v27  ;;  %v1869_v35 = vand.u32 2147483648, %v1360_v13 }
 0x1f1   :  { %3476 = vrcp.f32 %v1392_v28  ;;  %v1867_v21 = vand.u32 2147483647, %v1360_v13  ;;  %v2349_v36 = vand.u32 2147483648, %v1392_v28  ;;  %v2347_v47 = vand.u32 2147483647, %v1392_v28 }
 0x1f2   :  { %v2331_v53 = vsel %vm5595_vm6, %v3469_v43, %v2327_v37  ;;  %vm1863_vm10 = vweird.f32 %v1360_v13  ;;  %v1856_v59 = vsel %vm5582_vm2, %v1855_v61, %v1851_v16  ;;  %v1870_v54 = vor.u32 1.1754944e-38, %v1869_v35 }
 0x1f3   :  { %vm2343_vm12 = vweird.f32 %v1392_v28  ;;  %v2336_v40 = vsel %vm2333_vm9, %v2335_v2, %v2331_v53  ;;  %vm1868_vm13 = vcmp.eq.f32.partialorder %v1867_v21, 8.507059e+37  ;;  %v2350_v63 = vor.u32 1.1754944e-38, %v2349_v36 }
 0x1f4   :  { %vm2348_vm15 = vcmp.eq.f32.partialorder %v2347_v47, 8.507059e+37  ;;  %v2383_v38 = vmul.f32 %v1856_v59, %v5431_v23  ;;  %v2415_v50 = vmul.f32 %v2336_v40, %v5458_v52 }
 0x1f6   :  { %v3475_v24 = vpop.eup %3474 }
 0x1f7   :  { %v3477_v19 = vpop.eup %3476  ;;  %v1859_v3 = vmul.f32 %v3475_v24, %v1360_v13  ;;  %vm1864_vm7 = vweird.f32 %v3475_v24 }
 0x1f8   :  { %v2339_v41 = vmul.f32 %v3477_v19, %v1392_v28  ;;  %vm2344_vm8 = vweird.f32 %v3477_v19  ;;  %vm1865_vm11 = vmor %vm1863_vm10, %vm1864_vm7 }
 0x1f9   :  { %v1860_v20 = vsub.f32 1.0, %v1859_v3  ;;  %vm2345_vm14 = vmor %vm2343_vm12, %vm2344_vm8 }
 0x1fa   :  { %v2340_v18 = vsub.f32 1.0, %v2339_v41 }
 0x1fb   :  { %v1861_v55 = vmul.f32 %v3475_v24, %v1860_v20 }
 0x1fc   :  { %v2341_v62 = vmul.f32 %v3477_v19, %v2340_v18 }
 0x1fd   :  { %v1862_v25 = vadd.f32 %v3475_v24, %v1861_v55 }
 0x1fe   :  { %v2342_v6 = vadd.f32 %v3477_v19, %v2341_v62 }
 0x1ff   :  { %v1866_v45 = vsel %vm1865_vm11, %v3475_v24, %v1862_v25 }
 0x200   :  { %v1871_v30 = vsel %vm1868_vm13, %v1870_v54, %v1866_v45  ;;  %v2346_v5 = vsel %vm2345_vm14, %v3477_v19, %v2342_v6 }
 0x201   :  { %v2384_v49 = vmul.f32 %v1871_v30, %v5537_v8  ;;  %v2351_v51 = vsel %vm2348_vm15, %v2350_v63, %v2346_v5 }
 0x202   :  { %v2416_v58 = vmul.f32 %v2351_v51, %v5550_v60 }
 0x203   :  { %v3091_v57 = vpack.c.bf16 %v2384_v49, %v2383_v38 }
 0x204   :  { %v3171_v1 = vpack.c.bf16 %v2416_v58, %v2415_v50 }
 0x205   :  { %3187 = vst [vmem:[%s5619_s6 + $0x78] sm:$0xff] %v3091_v57  }
 0x206   :  { %3203 = vst [vmem:[%s5619_s6 + $0xf8] sm:$0xff] %v3171_v1  }

// kernel: c3_forward.8
= control target key start
LH: loop header
LB: loop body
LE: loop exit
PB: predicated region body
PF: predicated region fallthrough
CT: control target
= control target key end

     0   :  { %s6530_s18 = smov 0   ;;  %s6532_s19 = smov 0   ;;  %s8822_s0 = inlined_call_operand.vmem [shape: bf16[2,18,18,128], index: 0, kind: input, shape index: {}]   ;;  %s8823_s1 = inlined_call_operand.vmem [shape: bf16[1152,128], index: 1, kind: input, shape index: {}]   ;;  %s8824_s2 = inlined_call_operand.vmem [shape: f32[1,128], index: 2, kind: input, shape index: {}]   ;;  %s8825_s3 = inlined_call_operand.vmem [shape: f32[1,128], index: 3, kind: input, shape index: {}]   ;;  %s8826_s4 = inlined_call_operand.vmem [shape: bf16[2,16,16,128], index: 4, kind: input, shape index: {}]   ;;  %s8827_s5 = inlined_call_operand.vmem [shape: bf16[2,16,16,128], index: 5, kind: output, shape index: {}]  }
   0x1   :  { %s6534_s20 = smov 0  }
   0x2 LB: > { %s27_s21 = sadd.s32 1, %s6494_s19  ;;  %p5254_p0 = scmp.ge.s32.totalorder %s6498_s20, 1  ;;  %s6498_s20 = sphi %s6534_s20, %s15_s20   ;;  %s6494_s19 = sphi %s6532_s19, %s8903_s19   ;;  %s6490_s18 = sphi %s6530_s18, %s8902_s18  }
   0x3   : > { %p29_p1 = scmp.ge.s32.totalorder %s27_s21, 2  ;;  %p219_p2 = scmp.lt.s32.totalorder %s6498_s20, 3 }
   0x5   : > { %s8905_s21 = smov (%p29_p1, %s27_s21), 0  ;;  %p220_p3 = pnand %p5254_p0, %p219_p2 }
   0x7   : > { %223 = sbr.rel (%p220_p3) target bundleno = 821 (0x335), region = 40 }
   0xc   : > { %v5951_v0 = vld [vmem:[%s8823_s1 + $0x78] sm:$0xff]  ;;  %p262_p4 = scmp.lt.s32.totalorder %s6490_s18, 1  ;;  %v5950_v1 = vld [vmem:[%s8823_s1 + $0x70] sm:$0xff]  ;;  %v5949_v2 = vld [vmem:[%s8823_s1 + $0x68] sm:$0xff]  ;;  %vm389_vm0 = vsmask.f32 3328 }
   0xd   : > { %6214 = vmatpush.bf16.msra.mxu1 %v5951_v0  ;;  %6215 = vmatpush.bf16.msra.mxu2 %v5951_v0  ;;  %vm390_vm1 = vsmask.f32 7440  ;;  %v5948_v6 = vld [vmem:[%s8823_s1 + $0x60] sm:$0xff]  ;;  %v5947_v35 = vld [vmem:[%s8823_s1 + $0x58] sm:$0xff]  ;;  %v5946_v54 = vld [vmem:[%s8823_s1 + $0x50] sm:$0xff]  ;;  %vm1242_vm3 = vcmask 1042432  }
   0xe   : > { %s8907_s18 = smov (!%p262_p4, %s6490_s18), 1  ;;  %6216 = vmatpush.bf16.msra.mxu3 %v5951_v0  ;;  %904 = vmatpush.bf16.msra.mxu0 %v5951_v0  ;;  %vm6578_vm2 = vmor %vm389_vm0, %vm390_vm1  ;;  %vm1243_vm4 = vcmask 1046532  }
   0xf   : > { %s6238_s26 = smul.u32 216, %s8907_s18  ;;  %vm6900_vm5 = vmor %vm1242_vm3, %vm1243_vm4  ;;  %s5918_s9 = sshll.u32 %s8907_s18, 7 }
  0x10   : > { %s7855_s12 = scalar_lea.vmem %s8826_s4, %s5918_s9  ;;  %s8038_s15 = scalar_lea.vmem %s8827_s5, %s5918_s9 }
  0x11   : > { %6217 = vmatpush.bf16.msra.mxu1 %v5950_v1  ;;  %6218 = vmatpush.bf16.msra.mxu2 %v5950_v1  ;;  %s6563_s6 = scalar_lea.vmem %s8822_s0, %s6238_s26 }
  0x12   : > { %6219 = vmatpush.bf16.msra.mxu3 %v5950_v1  ;;  %905 = vmatpush.bf16.msra.mxu0 %v5950_v1  ;;  %v337_v3 = vld [vmem:[%s6563_s6 + $0x30] sm:$0xf]  ;;  %v338_v4 = vld [vmem:[%s6563_s6 + $0x34] sm:$0xf]  ;;  %v339_v5 = vld [vmem:[%s6563_s6 + $0x38] sm:$0x1] }
  0x13   : > { %v489_v7 = vshrl.u32 %v337_v3, 16  ;;  %v492_v8 = vshll.u32 %v337_v3, 16  ;;  %v498_v9 = vshll.u32 %v338_v4, 16  ;;  %v502_v10 = vshrl.u32 %v338_v4, 16  ;;  %v349_v11 = vld [vmem:[%s6563_s6 + $0x60] sm:$0xf] }
  0x14   : > { %v508_v12 = vshll.u32 %v339_v5, 16  ;;  %v350_v13 = vld [vmem:[%s6563_s6 + $0x64] sm:$0xf]  ;;  %v351_v14 = vld [vmem:[%s6563_s6 + $0x68] sm:$0x1]  ;;  %v585_v15 = vshrl.u32 %v349_v11, 16 }
  0x15   : > { %6220 = vmatpush.bf16.msra.mxu1 %v5949_v2  ;;  %6221 = vmatpush.bf16.msra.mxu2 %v5949_v2  ;;  %v491_v16 = vrot.slane %v489_v7, 4  ;;  %v494_v17 = vrot.slane %v492_v8, 5  ;;  %v500_v18 = vrot.slane %v498_v9, 5  ;;  %v504_v19 = vrot.slane %v502_v10, 4  ;;  %v361_v20 = vld [vmem:[%s6563_s6 + $0x90] sm:$0xf] }
  0x16   : > { %6222 = vmatpush.bf16.msra.mxu3 %v5949_v2  ;;  %906 = vmatpush.bf16.msra.mxu0 %v5949_v2  ;;  %v510_v21 = vrot.slane %v508_v12, 5  ;;  %v587_v22 = vrot.slane %v585_v15, 4  ;;  %v588_v23 = vshll.u32 %v349_v11, 16  ;;  %v594_v24 = vshll.u32 %v350_v13, 16  ;;  %v362_v29 = vld [vmem:[%s6563_s6 + $0x94] sm:$0xf] }
  0x17   : > { %v495_v25 = vor.u32 %v494_v17, %v491_v16  ;;  %v505_v26 = vor.u32 %v504_v19, %v500_v18  ;;  %v598_v27 = vshrl.u32 %v350_v13, 16  ;;  %v604_v28 = vshll.u32 %v351_v14, 16  ;;  %v363_v41 = vld [vmem:[%s6563_s6 + $0x98] sm:$0x1]  ;;  %v6591_v49 = vld [vmem:[%s6563_s6] sm:$0xf] }
  0x18   : > { %v590_v31 = vrot.slane %v588_v23, 5  ;;  %v596_v32 = vrot.slane %v594_v24, 5  ;;  %v681_v33 = vshrl.u32 %v361_v20, 16  ;;  %v684_v34 = vshll.u32 %v361_v20, 16  ;;  %v6605_v62 = vld [vmem:[%s6563_s6 + $0x4] sm:$0xf] }
  0x19   : > { %6223 = vmatpush.bf16.msra.mxu1 %v5948_v6  ;;  %6224 = vmatpush.bf16.msra.mxu2 %v5948_v6  ;;  %v496_v36 = vrot.slane %v495_v25, 4  ;;  %v506_v37 = vrot.slane %v505_v26, 4  ;;  %v600_v38 = vrot.slane %v598_v27, 4  ;;  %v606_v39 = vrot.slane %v604_v28, 5  ;;  %v6613_v4 = vld [vmem:[%s6563_s6 + $0x8] sm:$0x1] }
  0x1a   : > { %6225 = vmatpush.bf16.msra.mxu3 %v5948_v6  ;;  %907 = vmatpush.bf16.msra.mxu0 %v5948_v6  ;;  %v591_v40 = vor.u32 %v590_v31, %v587_v22  ;;  %v683_v42 = vrot.slane %v681_v33, 4  ;;  %v686_v43 = vrot.slane %v684_v34, 5  ;;  %v690_v44 = vshll.u32 %v362_v29, 16  ;;  %v340_v5 = vld [vmem:[%s6563_s6 + $0x3c] sm:$0xf]  ;;  %v5945_v10 = vld [vmem:[%s8823_s1 + $0x48] sm:$0xff] }
  0x1b   : > { %v501_v45 = vsel %vm6578_vm2, %v496_v36, %v500_v18  ;;  %v511_v46 = vsel %vm6578_vm2, %v506_v37, %v510_v21  ;;  %v601_v47 = vor.u32 %v600_v38, %v596_v32  ;;  %v694_v48 = vshrl.u32 %v362_v29, 16  ;;  %v341_v15 = vld [vmem:[%s6563_s6 + $0x40] sm:$0xf]  ;;  %v342_v19 = vld [vmem:[%s6563_s6 + $0x44] sm:$0x1]  ;;  %v5959_v37 = vld [vmem:[%s8823_s1 + $0xb8] sm:$0xff] }
  0x1c   : > { %v6593_v50 = vunpack.c.l.b16 %v501_v45  ;;  %v6595_v51 = vunpack.c.l.b16 %v511_v46  ;;  %v592_v52 = vrot.slane %v591_v40, 4  ;;  %v687_v53 = vor.u32 %v686_v43, %v683_v42  ;;  %v352_v25 = vld [vmem:[%s6563_s6 + $0x6c] sm:$0xf]  ;;  %v5944_v31 = vld [vmem:[%s8823_s1 + $0x40] sm:$0xff]  ;;  %v353_v40 = vld [vmem:[%s6563_s6 + $0x70] sm:$0xf] }
  0x1d   : > { %6226 = vmatpush.bf16.msra.mxu1 %v5947_v35  ;;  %6227 = vmatpush.bf16.msra.mxu2 %v5947_v35  ;;  %v602_v55 = vrot.slane %v601_v47, 4  ;;  %v692_v56 = vrot.slane %v690_v44, 5  ;;  %v696_v57 = vrot.slane %v694_v48, 4  ;;  %v700_v58 = vshll.u32 %v363_v41, 16  ;;  %v5983_v43 = vld [vmem:[%s8823_s1 + $0xf8] sm:$0xff] }
  0x1e   : > { %6228 = vmatpush.bf16.msra.mxu3 %v5947_v35  ;;  %908 = vmatpush.bf16.msra.mxu0 %v5947_v35  ;;  %v828_v59 = vpack.c.b16 %v6595_v51, %v6593_v50  ;;  %v597_v60 = vsel %vm6578_vm2, %v592_v52, %v596_v32  ;;  %v688_v61 = vrot.slane %v687_v53, 4  ;;  %v393_v63 = vshrl.u32 %v6591_v49, 16  ;;  %v354_v47 = vld [vmem:[%s6563_s6 + $0x74] sm:$0x1] }
  0x1f   : > { %v607_v0 = vsel %vm6578_vm2, %v602_v55, %v606_v39  ;;  %v6610_v1 = vunpack.c.l.b16 %v597_v60  ;;  %v697_v2 = vor.u32 %v696_v57, %v692_v56  ;;  %v702_v3 = vrot.slane %v700_v58, 5  ;;  %v364_v55 = vld [vmem:[%s6563_s6 + $0x9c] sm:$0xf]  ;;  %v5942_v50 = vld [vmem:[%s8823_s1 + $0x30] sm:$0xff] }
  0x20   : > { %v6616_v6 = vunpack.c.l.b16 %v607_v0  ;;  %v693_v7 = vsel %vm6578_vm2, %v688_v61, %v692_v56  ;;  %v395_v8 = vrot.slane %v393_v63, 4  ;;  %v396_v9 = vshll.u32 %v6591_v49, 16  ;;  %v5943_v58 = vld [vmem:[%s8823_s1 + $0x38] sm:$0xff]  ;;  %v5958_v0 = vld [vmem:[%s8823_s1 + $0xb0] sm:$0xff] }
  0x21   : > { %6229 = vmatpush.bf16.msra.mxu1 %v5946_v54  ;;  %6230 = vmatpush.bf16.msra.mxu2 %v5946_v54  ;;  %v698_v11 = vrot.slane %v697_v2, 4  ;;  %v6624_v12 = vunpack.c.l.b16 %v693_v7  ;;  %v402_v13 = vshll.u32 %v6605_v62, 16  ;;  %v406_v14 = vshrl.u32 %v6605_v62, 16 }
  0x22   : > { %6231 = vmatpush.bf16.msra.mxu3 %v5946_v54  ;;  %909 = vmatpush.bf16.msra.mxu0 %v5946_v54  ;;  %v832_v16 = vpack.c.b16 %v6616_v6, %v6610_v1  ;;  %v398_v17 = vrot.slane %v396_v9, 5  ;;  %v412_v18 = vshll.u32 %v6613_v4, 16  ;;  %v513_v20 = vshrl.u32 %v340_v5, 16  ;;  %v365_v9 = vld [vmem:[%s6563_s6 + $0xa0] sm:$0xf] }
  0x23   : > { %v703_v21 = vsel %vm6578_vm2, %v698_v11, %v702_v3  ;;  %v404_v22 = vrot.slane %v402_v13, 5  ;;  %v408_v23 = vrot.slane %v406_v14, 4  ;;  %v516_v24 = vshll.u32 %v340_v5, 16  ;;  %v5982_v5 = vld [vmem:[%s8823_s1 + $0xf0] sm:$0xff] }
  0x24   : > { %v817_v26 = vunpack.c.l.b16 %v703_v21  ;;  %v399_v27 = vor.u32 %v398_v17, %v395_v8  ;;  %v414_v28 = vrot.slane %v412_v18, 5  ;;  %v515_v29 = vrot.slane %v513_v20, 4  ;;  %v366_v17 = vld [vmem:[%s6563_s6 + $0xa4] sm:$0x1]  ;;  %v6675_v18 = vld [vmem:[%s6563_s6 + $0xc] sm:$0xf] }
  0x25   : > { %6232 = vmatpush.bf16.msra.mxu1 %v5945_v10  ;;  %6233 = vmatpush.bf16.msra.mxu2 %v5945_v10  ;;  %v409_v32 = vor.u32 %v408_v23, %v404_v22  ;;  %v518_v33 = vrot.slane %v516_v24, 5  ;;  %v522_v34 = vshll.u32 %v341_v15, 16  ;;  %v526_v35 = vshrl.u32 %v341_v15, 16  ;;  %v5957_v24 = vld [vmem:[%s8823_s1 + $0xa8] sm:$0xff] }
  0x26   : > { %6234 = vmatpush.bf16.msra.mxu3 %v5945_v10  ;;  %910 = vmatpush.bf16.msra.mxu0 %v5945_v10  ;;  %v836_v36 = vpack.c.b16 %v817_v26, %v6624_v12  ;;  %v400_v38 = vrot.slane %v399_v27, 4  ;;  %v532_v39 = vshll.u32 %v342_v19, 16  ;;  %v609_v41 = vshrl.u32 %v352_v25, 16  ;;  %v5991_v12 = vld [vmem:[%s8823_s1 + $0x138] sm:$0xff] }
  0x27   : > { %v410_v42 = vrot.slane %v409_v32, 4  ;;  %v519_v44 = vor.u32 %v518_v33, %v515_v29  ;;  %v524_v45 = vrot.slane %v522_v34, 5  ;;  %v528_v46 = vrot.slane %v526_v35, 4 }
  0x28   : > { %v405_v48 = vsel %vm6578_vm2, %v400_v38, %v404_v22  ;;  %v534_v52 = vrot.slane %v532_v39, 5  ;;  %v611_v53 = vrot.slane %v609_v41, 4  ;;  %v612_v54 = vshll.u32 %v352_v25, 16 }
  0x29   : > { %6235 = vmatpush.bf16.msra.mxu1 %v5944_v31  ;;  %6236 = vmatpush.bf16.msra.mxu2 %v5944_v31  ;;  %v415_v56 = vsel %vm6578_vm2, %v410_v42, %v414_v28  ;;  %v792_v57 = vunpack.c.l.b16 %v405_v48  ;;  %v520_v60 = vrot.slane %v519_v44, 4  ;;  %v529_v61 = vor.u32 %v528_v46, %v524_v45  ;;  %v6688_v28 = vld [vmem:[%s6563_s6 + $0x10] sm:$0xf]  ;;  %v5941_v42 = vld [vmem:[%s8823_s1 + $0x28] sm:$0xff] }
  0x2a   : > { %6237 = vmatpush.bf16.msra.mxu3 %v5944_v31  ;;  %911 = vmatpush.bf16.msra.mxu0 %v5944_v31  ;;  %v793_v63 = vunpack.c.l.b16 %v415_v56  ;;  %v614_v1 = vrot.slane %v612_v54, 5  ;;  %v618_v2 = vshll.u32 %v353_v40, 16  ;;  %v622_v3 = vshrl.u32 %v353_v40, 16  ;;  %v5981_v31 = vld [vmem:[%s8823_s1 + $0xe8] sm:$0xff]  ;;  %v5980_v56 = vld [vmem:[%s8823_s1 + $0xe0] sm:$0xff] }
  0x2b   : > { %v525_v6 = vsel %vm6578_vm2, %v520_v60, %v524_v45  ;;  %v530_v7 = vrot.slane %v529_v61, 4  ;;  %v628_v8 = vshll.u32 %v354_v47, 16  ;;  %v705_v10 = vshrl.u32 %v364_v55, 16  ;;  %v343_v47 = vld [vmem:[%s6563_s6 + $0x48] sm:$0xf] }
  0x2c   : > { %932 = vmatmul.bf16.vlgmr.msra.gmra.mxu1 %v828_v59  ;;  %952 = vmatmul.bf16.vlgmr.msra.gmra.mxu2 %v832_v16  ;;  %v824_v11 = vpack.c.b16 %v793_v63, %v792_v57  ;;  %v6671_v13 = vunpack.c.l.b16 %v525_v6  ;;  %v615_v14 = vor.u32 %v614_v1, %v611_v53  ;;  %v620_v15 = vrot.slane %v618_v2, 5  ;;  %v5989_v63 = vld [vmem:[%s8823_s1 + $0x128] sm:$0xff] }
  0x2d   : > { %1485 = vmatpush.bf16.msrb.mxu2 %v5959_v37  ;;  %972 = vmatmul.bf16.vlgmr.msra.gmra.mxu3 %v836_v36  ;;  %v535_v51 = vsel %vm6578_vm2, %v530_v7, %v534_v52  ;;  %v624_v59 = vrot.slane %v622_v3, 4  ;;  %v630_v16 = vrot.slane %v628_v8, 5  ;;  %v707_v19 = vrot.slane %v705_v10, 4  ;;  %v6699_v36 = vld [vmem:[%s6563_s6 + $0x14] sm:$0x1] }
  0x2e   : > { %1818 = vmatpush.bf16.msrb.mxu3 %v5983_v43  ;;  %1137 = vmatpush.bf16.msrb.mxu1 %v5943_v58  ;;  %v6682_v20 = vunpack.c.l.b16 %v535_v51  ;;  %v616_v21 = vrot.slane %v615_v14, 4  ;;  %v708_v22 = vshll.u32 %v364_v55, 16  ;;  %v714_v23 = vshll.u32 %v365_v9, 16  ;;  %v5990_v37 = vld [vmem:[%s8823_s1 + $0x130] sm:$0xff]  ;;  %v5956_v55 = vld [vmem:[%s8823_s1 + $0xa0] sm:$0xff]  ;;  %v5955_v51 = vld [vmem:[%s8823_s1 + $0x98] sm:$0xff] }
  0x2f   : > { %912 = vmatmul.bf16.vlgmr.msra.gmra.mxu0 %v824_v11  ;;  %v625_v25 = vor.u32 %v624_v59, %v620_v15  ;;  %v718_v26 = vshrl.u32 %v365_v9, 16  ;;  %v724_v27 = vshll.u32 %v366_v17, 16  ;;  %v417_v29 = vshrl.u32 %v6675_v18, 16  ;;  %v6735_v10 = vld [vmem:[%s6563_s6 + $0x50] sm:$0x1]  ;;  %v5979_v59 = vld [vmem:[%s8823_s1 + $0xd8] sm:$0xff] }
  0x30   : > { %2451 = vmatpush.bf16.msrb.mxu0 %v5991_v12  ;;  %v829_v32 = vpack.c.b16 %v6682_v20, %v6671_v13  ;;  %v621_v33 = vsel %vm6578_vm2, %v616_v21, %v620_v15  ;;  %v710_v34 = vrot.slane %v708_v22, 5  ;;  %v716_v35 = vrot.slane %v714_v23, 5  ;;  %v355_v12 = vld [vmem:[%s6563_s6 + $0x78] sm:$0xf] }
  0x31   : > { %1486 = vmatpush.bf16.msrb.mxu2 %v5958_v0  ;;  %v626_v38 = vrot.slane %v625_v25, 4  ;;  %v6704_v39 = vunpack.c.l.b16 %v621_v33  ;;  %v720_v40 = vrot.slane %v718_v26, 4  ;;  %v726_v41 = vrot.slane %v724_v27, 5  ;;  %v5940_v0 = vld [vmem:[%s8823_s1 + $0x20] sm:$0xff] }
  0x32   : > { %1819 = vmatpush.bf16.msrb.mxu3 %v5982_v5  ;;  %1138 = vmatpush.bf16.msrb.mxu1 %v5942_v50  ;;  %v711_v43 = vor.u32 %v710_v34, %v707_v19  ;;  %v419_v44 = vrot.slane %v417_v29, 4  ;;  %v420_v45 = vshll.u32 %v6675_v18, 16  ;;  %v426_v46 = vshll.u32 %v6688_v28, 16  ;;  %v6729_v5 = vld [vmem:[%s6563_s6 + $0x4c] sm:$0xf]  ;;  %v5988_v27 = vld [vmem:[%s8823_s1 + $0x120] sm:$0xff] }
  0x33   : > { %v631_v48 = vsel %vm6578_vm2, %v626_v38, %v630_v16  ;;  %v721_v52 = vor.u32 %v720_v40, %v716_v35  ;;  %v430_v53 = vshrl.u32 %v6688_v28, 16  ;;  %v436_v54 = vshll.u32 %v6699_v36, 16  ;;  %v5939_v38 = vld [vmem:[%s8823_s1 + $0x18] sm:$0xff] }
  0x34   : > { %v811_v57 = vunpack.c.l.b16 %v631_v48  ;;  %v712_v58 = vrot.slane %v711_v43, 4  ;;  %v422_v60 = vrot.slane %v420_v45, 5  ;;  %v428_v61 = vrot.slane %v426_v46, 5  ;;  %2452 = vmatpush.bf16.msrb.mxu0 %v5990_v37  ;;  %v357_v37 = vld [vmem:[%s6563_s6 + $0x80] sm:$0x1]  ;;  %v5978_v45 = vld [vmem:[%s8823_s1 + $0xd0] sm:$0xff] }
  0x35   : > { %1487 = vmatpush.bf16.msrb.mxu2 %v5957_v24  ;;  %v722_v1 = vrot.slane %v721_v52, 4  ;;  %v432_v2 = vrot.slane %v430_v53, 4  ;;  %v438_v3 = vrot.slane %v436_v54, 5  ;;  %v537_v6 = vshrl.u32 %v343_v47, 16  ;;  %v367_v43 = vld [vmem:[%s6563_s6 + $0xa8] sm:$0xf] }
  0x36   : > { %1820 = vmatpush.bf16.msrb.mxu3 %v5981_v31  ;;  %1139 = vmatpush.bf16.msrb.mxu1 %v5941_v42  ;;  %v833_v7 = vpack.c.b16 %v811_v57, %v6704_v39  ;;  %v717_v8 = vsel %vm6578_vm2, %v712_v58, %v716_v35  ;;  %v423_v9 = vor.u32 %v422_v60, %v419_v44  ;;  %v540_v11 = vshll.u32 %v343_v47, 16  ;;  %v356_v35 = vld [vmem:[%s6563_s6 + $0x7c] sm:$0xf]  ;;  %v5954_v44 = vld [vmem:[%s8823_s1 + $0x90] sm:$0xff] }
  0x37   : > { %v727_v14 = vsel %vm6578_vm2, %v722_v1, %v726_v41  ;;  %v818_v15 = vunpack.c.l.b16 %v717_v8  ;;  %v433_v17 = vor.u32 %v432_v2, %v428_v61  ;;  %v539_v50 = vrot.slane %v537_v6, 4  ;;  %v5987_v57 = vld [vmem:[%s8823_s1 + $0x118] sm:$0xff] }
  0x38   : > { %v819_v16 = vunpack.c.l.b16 %v727_v14  ;;  %v424_v19 = vrot.slane %v423_v9, 4  ;;  %2453 = vmatpush.bf16.msrb.mxu0 %v5989_v63  ;;  %v542_v21 = vrot.slane %v540_v11, 5  ;;  %v546_v22 = vshll.u32 %v6729_v5, 16  ;;  %v6784_v11 = vld [vmem:[%s6563_s6 + $0x18] sm:$0xf] }
  0x39   : > { %1488 = vmatpush.bf16.msrb.mxu2 %v5956_v55  ;;  %v434_v23 = vrot.slane %v433_v17, 4  ;;  %v550_v24 = vshrl.u32 %v6729_v5, 16  ;;  %v556_v25 = vshll.u32 %v6735_v10, 16  ;;  %v633_v26 = vshrl.u32 %v355_v12, 16 }
  0x3a   : > { %1821 = vmatpush.bf16.msrb.mxu3 %v5980_v56  ;;  %1140 = vmatpush.bf16.msrb.mxu1 %v5940_v0  ;;  %v837_v29 = vpack.c.b16 %v819_v16, %v818_v15  ;;  %v429_v31 = vsel %vm6578_vm2, %v424_v19, %v428_v61  ;;  %v543_v33 = vor.u32 %v542_v21, %v539_v50  ;;  %v548_v34 = vrot.slane %v546_v22, 5  ;;  %v5938_v61 = vld [vmem:[%s8823_s1 + $0x10] sm:$0xff]  ;;  %v5953_v19 = vld [vmem:[%s8823_s1 + $0x88] sm:$0xff] }
  0x3b   : > { %v439_v39 = vsel %vm6578_vm2, %v434_v23, %v438_v3  ;;  %v794_v40 = vunpack.c.l.b16 %v429_v31  ;;  %v552_v41 = vrot.slane %v550_v24, 4  ;;  %v558_v42 = vrot.slane %v556_v25, 5  ;;  %v369_v3 = vld [vmem:[%s6563_s6 + $0xb0] sm:$0x1]  ;;  %v6792_v24 = vld [vmem:[%s6563_s6 + $0x1c] sm:$0xf] }
  0x3c   : > { %937 = vmatmul.bf16.gmra.mxu1 %v829_v32  ;;  %957 = vmatmul.bf16.gmra.mxu2 %v833_v7  ;;  %v795_v46 = vunpack.c.l.b16 %v439_v39  ;;  %v544_v47 = vrot.slane %v543_v33, 4  ;;  %v635_v48 = vrot.slane %v633_v26, 4  ;;  %v636_v52 = vshll.u32 %v355_v12, 16  ;;  %v368_v32 = vld [vmem:[%s6563_s6 + $0xac] sm:$0xf] }
  0x3d   : > { %1489 = vmatpush.bf16.msrb.mxu2 %v5955_v51  ;;  %977 = vmatmul.bf16.gmra.mxu3 %v837_v29  ;;  %v553_v53 = vor.u32 %v552_v41, %v548_v34  ;;  %v642_v54 = vshll.u32 %v356_v35, 16  ;;  %v646_v55 = vshrl.u32 %v356_v35, 16  ;;  %v652_v56 = vshll.u32 %v357_v37, 16  ;;  %v6799_v33 = vld [vmem:[%s6563_s6 + $0x20] sm:$0x1] }
  0x3e   : > { %1822 = vmatpush.bf16.msrb.mxu3 %v5979_v59  ;;  %2454 = vmatpush.bf16.msrb.mxu0 %v5988_v27  ;;  %v825_v58 = vpack.c.b16 %v795_v46, %v794_v40  ;;  %v549_v13 = vsel %vm6578_vm2, %v544_v47, %v548_v34  ;;  %v638_v20 = vrot.slane %v636_v52, 5  ;;  %v729_v60 = vshrl.u32 %v367_v43, 16  ;;  %v6802_v34 = vld [vmem:[%s6563_s6 + $0x54] sm:$0xf]  ;;  %v5937_v46 = vld [vmem:[%s8823_s1 + $0x8] sm:$0xff] }
  0x3f   : > { %1141 = vmatpush.bf16.msrb.mxu1 %v5939_v38  ;;  %v554_v63 = vrot.slane %v553_v53, 4  ;;  %v6780_v0 = vunpack.c.l.b16 %v549_v13  ;;  %v644_v1 = vrot.slane %v642_v54, 5  ;;  %v648_v2 = vrot.slane %v646_v55, 4  ;;  %v5952_v54 = vld [vmem:[%s8823_s1 + $0x80] sm:$0xff]  ;;  %v6826_v13 = vld [vmem:[%s6563_s6 + $0x58] sm:$0xf] }
  0x40   : > { %917 = vmatmul.bf16.gmra.mxu0 %v825_v58  ;;  %v639_v6 = vor.u32 %v638_v20, %v635_v48  ;;  %v654_v7 = vrot.slane %v652_v56, 5  ;;  %v731_v8 = vrot.slane %v729_v60, 4  ;;  %v732_v9 = vshll.u32 %v367_v43, 16  ;;  %v6829_v20 = vld [vmem:[%s6563_s6 + $0x5c] sm:$0x1] }
  0x41   : > { %1490 = vmatpush.bf16.msrb.mxu2 %v5954_v44  ;;  %v559_v12 = vsel %vm6578_vm2, %v554_v63, %v558_v42  ;;  %v649_v14 = vor.u32 %v648_v2, %v644_v1  ;;  %v738_v15 = vshll.u32 %v368_v32, 16  ;;  %v742_v17 = vshrl.u32 %v368_v32, 16  ;;  %v5977_v44 = vld [vmem:[%s8823_s1 + $0xc8] sm:$0xff] }
  0x42   : > { %1823 = vmatpush.bf16.msrb.mxu3 %v5978_v45  ;;  %2455 = vmatpush.bf16.msrb.mxu0 %v5987_v57  ;;  %v805_v50 = vunpack.c.l.b16 %v559_v12  ;;  %v640_v51 = vrot.slane %v639_v6, 4  ;;  %v734_v59 = vrot.slane %v732_v9, 5  ;;  %v748_v16 = vshll.u32 %v369_v3, 16  ;;  %v5986_v45 = vld [vmem:[%s8823_s1 + $0x110] sm:$0xff]  ;;  %v5985_v2 = vld [vmem:[%s8823_s1 + $0x108] sm:$0xff]  ;;  %v5936_v9 = vld [vmem:[%s8823_s1] sm:$0xff] }
  0x43   : > { %1142 = vmatpush.bf16.msrb.mxu1 %v5938_v61  ;;  %v650_v21 = vrot.slane %v649_v14, 4  ;;  %v740_v22 = vrot.slane %v738_v15, 5  ;;  %v744_v23 = vrot.slane %v742_v17, 4  ;;  %v441_v25 = vshrl.u32 %v6784_v11, 16 }
  0x44   : > { %v830_v26 = vpack.c.b16 %v805_v50, %v6780_v0  ;;  %v645_v27 = vsel %vm6578_vm2, %v640_v51, %v644_v1  ;;  %v735_v29 = vor.u32 %v734_v59, %v731_v8  ;;  %v750_v31 = vrot.slane %v748_v16, 5  ;;  %v358_v0 = vld [vmem:[%s6563_s6 + $0x84] sm:$0xf]  ;;  %v359_v16 = vld [vmem:[%s6563_s6 + $0x88] sm:$0xf] }
  0x45   : > { %1491 = vmatpush.bf16.msrb.mxu2 %v5953_v19  ;;  %v655_v35 = vsel %vm6578_vm2, %v650_v21, %v654_v7  ;;  %v812_v37 = vunpack.c.l.b16 %v645_v27  ;;  %v745_v38 = vor.u32 %v744_v23, %v740_v22  ;;  %v443_v39 = vrot.slane %v441_v25, 4  ;;  %v5976_v1 = vld [vmem:[%s8823_s1 + $0xc0] sm:$0xff] }
  0x46   : > { %v813_v40 = vunpack.c.l.b16 %v655_v35  ;;  %v736_v41 = vrot.slane %v735_v29, 4  ;;  %v444_v42 = vshll.u32 %v6784_v11, 16  ;;  %v450_v43 = vshll.u32 %v6792_v24, 16  ;;  %1824 = vmatpush.bf16.msrb.mxu3 %v5977_v44  ;;  %2456 = vmatpush.bf16.msrb.mxu0 %v5986_v45  ;;  %v5984_v27 = vld [vmem:[%s8823_s1 + $0x100] sm:$0xff] }
  0x47   : > { %v746_v47 = vrot.slane %v745_v38, 4  ;;  %v454_v48 = vshrl.u32 %v6792_v24, 16  ;;  %v460_v52 = vshll.u32 %v6799_v33, 16  ;;  %v561_v53 = vshrl.u32 %v6802_v34, 16  ;;  %1143 = vmatpush.bf16.msrb.mxu1 %v5937_v46  ;;  %v370_v38 = vld [vmem:[%s6563_s6 + $0xb4] sm:$0xf] }
  0x48   : > { %v834_v55 = vpack.c.b16 %v813_v40, %v812_v37  ;;  %v741_v56 = vsel %vm6578_vm2, %v736_v41, %v740_v22  ;;  %v446_v57 = vrot.slane %v444_v42, 5  ;;  %v452_v58 = vrot.slane %v450_v43, 5 }
  0x49   : > { %v751_v32 = vsel %vm6578_vm2, %v746_v47, %v750_v31  ;;  %v820_v60 = vunpack.c.l.b16 %v741_v56  ;;  %v456_v61 = vrot.slane %v454_v48, 4  ;;  %v462_v63 = vrot.slane %v460_v52, 5  ;;  %1492 = vmatpush.bf16.msrb.mxu2 %v5952_v54  ;;  %v360_v31 = vld [vmem:[%s6563_s6 + $0x8c] sm:$0x1] }
  0x4a   : > { %v821_v3 = vunpack.c.l.b16 %v751_v32  ;;  %v447_v6 = vor.u32 %v446_v57, %v443_v39  ;;  %v563_v7 = vrot.slane %v561_v53, 4  ;;  %v564_v8 = vshll.u32 %v6802_v34, 16  ;;  %1825 = vmatpush.bf16.msrb.mxu3 %v5976_v1  ;;  %2457 = vmatpush.bf16.msrb.mxu0 %v5985_v2  ;;  %v371_v53 = vld [vmem:[%s6563_s6 + $0xb8] sm:$0xf]  ;;  %v372_v32 = vld [vmem:[%s6563_s6 + $0xbc] sm:$0x1] }
  0x4b   : > { %v457_v12 = vor.u32 %v456_v61, %v452_v58  ;;  %v570_v14 = vshll.u32 %v6826_v13, 16  ;;  %v574_v15 = vshrl.u32 %v6826_v13, 16  ;;  %v580_v17 = vshll.u32 %v6829_v20, 16  ;;  %1144 = vmatpush.bf16.msrb.mxu1 %v5936_v9  ;;  %v6023_v61 = vld [vmem:[%s8823_s1 + $0x1b8] sm:$0xff] }
  0x4c   : > { %942 = vmatmul.bf16.gmra.mxu1 %v830_v26  ;;  %962 = vmatmul.bf16.gmra.mxu2 %v834_v55  ;;  %v838_v50 = vpack.c.b16 %v821_v3, %v820_v60  ;;  %v448_v51 = vrot.slane %v447_v6, 4  ;;  %v566_v59 = vrot.slane %v564_v8, 5  ;;  %v657_v19 = vshrl.u32 %v358_v0, 16  ;;  %v6862_v60 = vld [vmem:[%s6563_s6 + $0x24] sm:$0xf] }
  0x4d   : > { %v458_v21 = vrot.slane %v457_v12, 4  ;;  %v572_v22 = vrot.slane %v570_v14, 5  ;;  %v576_v23 = vrot.slane %v574_v15, 4  ;;  %v582_v25 = vrot.slane %v580_v17, 5  ;;  %3161 = vmatpush.bf16.msra.mxu2 %v6023_v61  ;;  %v6870_v15 = vld [vmem:[%s6563_s6 + $0x28] sm:$0xf] }
  0x4e   : > { %982 = vmatmul.bf16.gmra.mxu3 %v838_v50  ;;  %v453_v26 = vsel %vm6578_vm2, %v448_v51, %v452_v58  ;;  %v567_v29 = vor.u32 %v566_v59, %v563_v7  ;;  %v659_v35 = vrot.slane %v657_v19, 4  ;;  %v660_v37 = vshll.u32 %v358_v0, 16  ;;  %2458 = vmatpush.bf16.msrb.mxu0 %v5984_v27  ;;  %v6031_v19 = vld [vmem:[%s8823_s1 + $0x1f8] sm:$0xff] }
  0x4f   : > { %v463_v39 = vsel %vm6578_vm2, %v458_v21, %v462_v63  ;;  %v796_v40 = vunpack.c.l.b16 %v453_v26  ;;  %v577_v41 = vor.u32 %v576_v23, %v572_v22  ;;  %v666_v42 = vshll.u32 %v359_v16, 16  ;;  %v5999_v21 = vld [vmem:[%s8823_s1 + $0x178] sm:$0xff]  ;;  %3794 = vmatpush.bf16.msra.mxu3 %v6031_v19 }
  0x50   : > { %v797_v43 = vunpack.c.l.b16 %v463_v39  ;;  %v568_v44 = vrot.slane %v567_v29, 4  ;;  %v662_v45 = vrot.slane %v660_v37, 5  ;;  %v670_v46 = vshrl.u32 %v359_v16, 16  ;;  %v6885_v29 = vld [vmem:[%s6563_s6 + $0x2c] sm:$0x1]  ;;  %2828 = vmatpush.bf16.msra.mxu1 %v5999_v21 }
  0x51   : > { %v578_v47 = vrot.slane %v577_v41, 4  ;;  %v668_v48 = vrot.slane %v666_v42, 5  ;;  %v676_v52 = vshll.u32 %v360_v31, 16  ;;  %v753_v54 = vshrl.u32 %v370_v38, 16 }
  0x52   : > { %v826_v55 = vpack.c.b16 %v797_v43, %v796_v40  ;;  %v573_v56 = vsel %vm6578_vm2, %v568_v44, %v572_v22  ;;  %v663_v57 = vor.u32 %v662_v45, %v659_v35  ;;  %v672_v58 = vrot.slane %v670_v46, 4  ;;  %v6039_v22 = vld [vmem:[%s8823_s1 + $0x238] sm:$0xff] }
  0x53   : > { %v583_v63 = vsel %vm6578_vm2, %v578_v47, %v582_v25  ;;  %v806_v0 = vunpack.c.l.b16 %v573_v56  ;;  %v678_v1 = vrot.slane %v676_v52, 5  ;;  %v755_v2 = vrot.slane %v753_v54, 4  ;;  %4171 = vmatpush.bf16.msra.mxu0 %v6039_v22  ;;  %v5436_v56 = vld [vmem:[%s6563_s6 + $0xc] sm:$0xf] }
  0x54   : > { %922 = vmatmul.bf16.gmra.mxu0 %v826_v55  ;;  %v807_v3 = vunpack.c.l.b16 %v583_v63  ;;  %v664_v6 = vrot.slane %v663_v57, 4  ;;  %v673_v7 = vor.u32 %v672_v58, %v668_v48  ;;  %v756_v8 = vshll.u32 %v370_v38, 16  ;;  %v5437_v57 = vld [vmem:[%s6563_s6 + $0x10] sm:$0xf] }
  0x55   : > { %v762_v9 = vshll.u32 %v371_v53, 16  ;;  %v766_v12 = vshrl.u32 %v371_v53, 16  ;;  %v772_v14 = vshll.u32 %v372_v32, 16  ;;  %v465_v17 = vshrl.u32 %v6862_v60, 16 }
  0x56   : > { %v831_v50 = vpack.c.b16 %v807_v3, %v806_v0  ;;  %v669_v51 = vsel %vm6578_vm2, %v664_v6, %v668_v48  ;;  %v674_v59 = vrot.slane %v673_v7, 4  ;;  %v758_v16 = vrot.slane %v756_v8, 5 }
  0x57   : > { %v814_v23 = vunpack.c.l.b16 %v669_v51  ;;  %v764_v25 = vrot.slane %v762_v9, 5  ;;  %v768_v27 = vrot.slane %v766_v12, 4  ;;  %v774_v26 = vrot.slane %v772_v14, 5 }
  0x58   : > { %v679_v31 = vsel %vm6578_vm2, %v674_v59, %v678_v1  ;;  %v759_v35 = vor.u32 %v758_v16, %v755_v2  ;;  %v467_v37 = vrot.slane %v465_v17, 4  ;;  %v468_v38 = vshll.u32 %v6862_v60, 16  ;;  %v5438_v59 = vld [vmem:[%s6563_s6 + $0x14] sm:$0x1] }
  0x59   : > { %v815_v39 = vunpack.c.l.b16 %v679_v31  ;;  %v769_v40 = vor.u32 %v768_v27, %v764_v25  ;;  %v474_v41 = vshll.u32 %v6870_v15, 16  ;;  %v478_v42 = vshrl.u32 %v6870_v15, 16 }
  0x5a   : > { %v760_v43 = vrot.slane %v759_v35, 4  ;;  %v470_v44 = vrot.slane %v468_v38, 5  ;;  %v484_v45 = vshll.u32 %v6885_v29, 16  ;;  %v5388_v0 = vrot.slane %v6591_v49, 9 }
  0x5b   : > { %v835_v46 = vpack.c.b16 %v815_v39, %v814_v23  ;;  %v770_v47 = vrot.slane %v769_v40, 4  ;;  %v476_v48 = vrot.slane %v474_v41, 5  ;;  %v480_v52 = vrot.slane %v478_v42, 4 }
  0x5c   : > { %947 = vmatmul.bf16.gmra.mxu1 %v831_v50  ;;  %v765_v53 = vsel %vm6578_vm2, %v760_v43, %v764_v25  ;;  %v471_v54 = vor.u32 %v470_v44, %v467_v37  ;;  %v486_v55 = vrot.slane %v484_v45, 5  ;;  %v1247_v3 = vrot.slane %v6605_v62, 5  ;;  %v5439_v45 = vld [vmem:[%s6563_s6 + $0x18] sm:$0xf] }
  0x5d   : > { %967 = vmatmul.bf16.gmra.mxu2 %v835_v46  ;;  %v775_v58 = vsel %vm6578_vm2, %v770_v47, %v774_v26  ;;  %v822_v32 = vunpack.c.l.b16 %v765_v53  ;;  %v481_v61 = vor.u32 %v480_v52, %v476_v48  ;;  %v1250_v6 = vrot.slane %v6613_v4, 5  ;;  %v5440_v46 = vld [vmem:[%s6563_s6 + $0x1c] sm:$0xf]  ;;  %v5920_v47 = vld [vmem:[%s6563_s6] sm:$0xff] }
  0x5e   : > { %v823_v1 = vunpack.c.l.b16 %v775_v58  ;;  %v472_v2 = vrot.slane %v471_v54, 4  ;;  %v1940_v8 = vshrl.u32 %v5436_v56, 16  ;;  %v1943_v9 = vshll.u32 %v5436_v56, 16 }
  0x5f   : > { %v482_v7 = vrot.slane %v481_v61, 4  ;;  %v1949_v12 = vshll.u32 %v5437_v57, 16  ;;  %v1248_v50 = vsel %vm6900_vm5, %v5388_v0, %v1247_v3  ;;  %v1249_v51 = vrot.slane %v1247_v3, 4  ;;  %v5960_v0 = vld [vmem:[%s6563_s6 + $0xc] sm:$0xff] }
  0x60   : > { %v839_v14 = vpack.c.b16 %v823_v1, %v822_v32  ;;  %v477_v17 = vsel %vm6578_vm2, %v472_v2, %v476_v48  ;;  %v1373_v62 = vunpack.c.l.b16 %v1248_v50  ;;  %v1942_v19 = vrot.slane %v1940_v8, 4 }
  0x61   : > { %v487_v49 = vsel %vm6578_vm2, %v482_v7, %v486_v55  ;;  %v798_v16 = vunpack.c.l.b16 %v477_v17  ;;  %v1251_v21 = vsel %vm6900_vm5, %v1249_v51, %v1250_v6  ;;  %v1945_v22 = vrot.slane %v1943_v9, 5  ;;  %v5441_v9 = vld [vmem:[%s6563_s6 + $0x20] sm:$0x1] }
  0x62   : > { %987 = vmatmul.bf16.gmra.mxu3 %v839_v14  ;;  %v799_v4 = vunpack.c.l.b16 %v487_v49  ;;  %v1374_v23 = vunpack.c.l.b16 %v1251_v21  ;;  %v1951_v25 = vrot.slane %v1949_v12, 5  ;;  %v1953_v27 = vshrl.u32 %v5437_v57, 16  ;;  %v6022_v14 = vld [vmem:[%s8823_s1 + $0x1b0] sm:$0xff] }
  0x63   : > { %v1959_v26 = vshll.u32 %v5438_v59, 16  ;;  %v1946_v35 = vor.u32 %v1945_v22, %v1942_v19  ;;  %v5389_v39 = vrot.slane %v6675_v18, 9  ;;  %v1254_v40 = vrot.slane %v6688_v28, 5  ;;  %3162 = vmatpush.bf16.msra.mxu2 %v6022_v14  ;;  %v5442_v59 = vld [vmem:[%s6563_s6 + $0x24] sm:$0xf]  ;;  %v6030_v49 = vld [vmem:[%s8823_s1 + $0x1f0] sm:$0xff] }
  0x64   : > { %v827_v31 = vpack.c.b16 %v799_v4, %v798_v16  ;;  %v1405_v37 = vpack.c.b16 %v1374_v23, %v1373_v62  ;;  %v1955_v38 = vrot.slane %v1953_v27, 4  ;;  %v1257_v41 = vrot.slane %v6699_v36, 5  ;;  %v5998_v16 = vld [vmem:[%s8823_s1 + $0x170] sm:$0xff]  ;;  %v5443_v22 = vld [vmem:[%s6563_s6 + $0x28] sm:$0xf]  ;;  %3795 = vmatpush.bf16.msra.mxu3 %v6030_v49 }
  0x65   : > { %v1947_v42 = vrot.slane %v1946_v35, 4  ;;  %v1961_v44 = vrot.slane %v1959_v26, 5  ;;  %v1255_v48 = vsel %vm6900_vm5, %v5389_v39, %v1254_v40  ;;  %v1256_v52 = vrot.slane %v1254_v40, 4  ;;  %v6038_v62 = vld [vmem:[%s8823_s1 + $0x230] sm:$0xff]  ;;  %2829 = vmatpush.bf16.msra.mxu1 %v5998_v16 }
  0x66   : > { %927 = vmatmul.bf16.gmra.mxu0 %v827_v31  ;;  %v1956_v43 = vor.u32 %v1955_v38, %v1951_v25  ;;  %v1375_v54 = vunpack.c.l.b16 %v1255_v48  ;;  %v1964_v55 = vshrl.u32 %v5439_v45, 16  ;;  %v1967_v28 = vshll.u32 %v5439_v45, 16  ;;  %v5921_v23 = vld [vmem:[%s6563_s6 + $0xc] sm:$0xff] }
  0x67   : > { %v1258_v18 = vsel %vm6900_vm5, %v1256_v52, %v1257_v41  ;;  %v1973_v36 = vshll.u32 %v5440_v46, 16  ;;  %v1952_v56 = vsel %vm6578_vm2, %v1947_v42, %v1951_v25  ;;  %v1977_v32 = vshrl.u32 %v5440_v46, 16  ;;  %4172 = vmatpush.bf16.msra.mxu0 %v6038_v62  ;;  %v5444_v48 = vld [vmem:[%s6563_s6 + $0x2c] sm:$0x1] }
  0x68   : > { %v1957_v53 = vrot.slane %v1956_v43, 4  ;;  %v1376_v58 = vunpack.c.l.b16 %v1258_v18  ;;  %v2339_v1 = vunpack.c.l.b16 %v1952_v56  ;;  %v1966_v3 = vrot.slane %v1964_v55, 4  ;;  %v5961_v43 = vld [vmem:[%s6563_s6 + $0x18] sm:$0xff] }
  0x69   : > { %v1969_v6 = vrot.slane %v1967_v28, 5  ;;  %v1975_v7 = vrot.slane %v1973_v36, 5  ;;  %v1979_v8 = vrot.slane %v1977_v32, 4  ;;  %v1983_v51 = vshll.u32 %v5441_v9, 16  ;;  %v5446_v32 = vld [vmem:[%s6563_s6 + $0x34] sm:$0xf] }
  0x6a   : > { %v1962_v57 = vsel %vm6578_vm2, %v1957_v53, %v1961_v44  ;;  %v1406_v61 = vpack.c.b16 %v1376_v58, %v1375_v54  ;;  %v1261_v25 = vrot.slane %v6792_v24, 5  ;;  %v1988_v27 = vshrl.u32 %v5442_v59, 16  ;;  %v5445_v58 = vld [vmem:[%s6563_s6 + $0x30] sm:$0xf] }
  0x6b   : > { %v2340_v2 = vunpack.c.l.b16 %v1962_v57  ;;  %v1970_v17 = vor.u32 %v1969_v6, %v1966_v3  ;;  %v1980_v50 = vor.u32 %v1979_v8, %v1975_v7  ;;  %v1985_v21 = vrot.slane %v1983_v51, 5 }
  0x6c   : > { %1145 = vmatmul.bf16.vlgmr.msrb.gmra.mxu1 %v5920_v47  ;;  %v1991_v26 = vshll.u32 %v5442_v59, 16  ;;  %v1997_v31 = vshll.u32 %v5443_v22, 16  ;;  %v2001_v35 = vshrl.u32 %v5443_v22, 16  ;;  %v5390_v39 = vrot.slane %v6784_v11, 9  ;;  %v5962_v59 = vld [vmem:[%s6563_s6 + $0x24] sm:$0xff] }
  0x6d   : > { %1493 = vmatmul.bf16.vlgmr.msrb.gmra.mxu2 %v1405_v37  ;;  %v2371_v12 = vpack.c.b16 %v2340_v2, %v2339_v1  ;;  %v1971_v19 = vrot.slane %v1970_v17, 4  ;;  %v1981_v4 = vrot.slane %v1980_v50, 4  ;;  %v1263_v40 = vrot.slane %v1261_v25, 4 }
  0x6e   : > { %v1264_v41 = vrot.slane %v6799_v33, 5  ;;  %v1990_v24 = vrot.slane %v1988_v27, 4  ;;  %v1993_v42 = vrot.slane %v1991_v26, 5  ;;  %v1999_v46 = vrot.slane %v1997_v31, 5  ;;  %v5448_v31 = vld [vmem:[%s6563_s6 + $0x3c] sm:$0xf] }
  0x6f   : > { %v1976_v37 = vsel %vm6578_vm2, %v1971_v19, %v1975_v7  ;;  %v1986_v38 = vsel %vm6578_vm2, %v1981_v4, %v1985_v21  ;;  %v2003_v47 = vrot.slane %v2001_v35, 4  ;;  %v1262_v52 = vsel %vm6900_vm5, %v5390_v39, %v1261_v25  ;;  %v5447_v4 = vld [vmem:[%s6563_s6 + $0x38] sm:$0x1]  ;;  %v5449_v35 = vld [vmem:[%s6563_s6 + $0x40] sm:$0xf] }
  0x70   : > { %v2341_v44 = vunpack.c.l.b16 %v1976_v37  ;;  %v2342_v45 = vunpack.c.l.b16 %v1986_v38  ;;  %v1994_v53 = vor.u32 %v1993_v42, %v1990_v24  ;;  %v1265_v33 = vsel %vm6900_vm5, %v1263_v40, %v1264_v41  ;;  %v6029_v40 = vld [vmem:[%s8823_s1 + $0x1e8] sm:$0xff] }
  0x71   : > { %v2004_v54 = vor.u32 %v2003_v47, %v1999_v46  ;;  %v2007_v18 = vshll.u32 %v5444_v48, 16  ;;  %v1377_v55 = vunpack.c.l.b16 %v1262_v52  ;;  %v1378_v28 = vunpack.c.l.b16 %v1265_v33  ;;  %v5997_v41 = vld [vmem:[%s8823_s1 + $0x168] sm:$0xff]  ;;  %3796 = vmatpush.bf16.msra.mxu3 %v6029_v40  ;;  %v6393_v52 = vld [vmem:[%s6563_s6 + $0x34] sm:$0xf]  ;;  %v6397_v40 = vld [vmem:[%s6563_s6 + $0x3c] sm:$0xf] }
  0x72   : > { %1826 = vmatmul.bf16.vlgmr.msrb.gmra.mxu3 %v5960_v0  ;;  %v2372_v11 = vpack.c.b16 %v2342_v45, %v2341_v44  ;;  %v1995_v36 = vrot.slane %v1994_v53, 4  ;;  %v2012_v2 = vshrl.u32 %v5445_v58, 16  ;;  %v2015_v3 = vshll.u32 %v5445_v58, 16  ;;  %v6037_v24 = vld [vmem:[%s8823_s1 + $0x228] sm:$0xff]  ;;  %2830 = vmatpush.bf16.msra.mxu1 %v5997_v41 }
  0x73   : > { %v2005_v56 = vrot.slane %v2004_v54, 4  ;;  %v2009_v57 = vrot.slane %v2007_v18, 5  ;;  %v1407_v0 = vpack.c.b16 %v1378_v28, %v1377_v55  ;;  %v1268_v7 = vrot.slane %v6870_v15, 5  ;;  %v5923_v42 = vld [vmem:[%s6563_s6 + $0x24] sm:$0xff]  ;;  %4173 = vmatpush.bf16.msra.mxu0 %v6037_v24 }
  0x74   : > { %v2000_v1 = vsel %vm6578_vm2, %v1995_v36, %v1999_v46  ;;  %v2021_v8 = vshll.u32 %v5446_v32, 16  ;;  %v2025_v9 = vshrl.u32 %v5446_v32, 16  ;;  %v5391_v17 = vrot.slane %v6862_v60, 9  ;;  %v5963_v36 = vld [vmem:[%s6563_s6 + $0x30] sm:$0xff]  ;;  %v6395_v32 = vld [vmem:[%s6563_s6 + $0x38] sm:$0x1] }
  0x75   : > { %v2010_v6 = vsel %vm6578_vm2, %v2005_v56, %v2009_v57  ;;  %v2014_v50 = vrot.slane %v2012_v2, 4  ;;  %v2017_v51 = vrot.slane %v2015_v3, 5  ;;  %v1270_v49 = vrot.slane %v1268_v7, 4  ;;  %v6394_v56 = vld [vmem:[%s6563_s6 + $0x30] sm:$0xf] }
  0x76   : > { %2459 = vmatmul.bf16.vlgmr.msrb.gmra.mxu0 %v2371_v12  ;;  %v2343_v12 = vunpack.c.l.b16 %v2000_v1  ;;  %v2344_v14 = vunpack.c.l.b16 %v2010_v6  ;;  %v1271_v16 = vrot.slane %v6885_v29, 5  ;;  %v2023_v62 = vrot.slane %v2021_v8, 5  ;;  %v6021_v29 = vld [vmem:[%s8823_s1 + $0x1a8] sm:$0xff]  ;;  %v5450_v1 = vld [vmem:[%s6563_s6 + $0x44] sm:$0x1] }
  0x77   : > { %v2027_v19 = vrot.slane %v2025_v9, 4  ;;  %v2018_v21 = vor.u32 %v2017_v51, %v2014_v50  ;;  %v1269_v22 = vsel %vm6900_vm5, %v5391_v17, %v1268_v7  ;;  %v2031_v25 = vshll.u32 %v5447_v4, 16  ;;  %3163 = vmatpush.bf16.msra.mxu2 %v6021_v29 }
  0x78   : > { %v2373_v15 = vpack.c.b16 %v2344_v14, %v2343_v12  ;;  %v1272_v60 = vsel %vm6900_vm5, %v1270_v49, %v1271_v16  ;;  %v1379_v27 = vunpack.c.l.b16 %v1269_v22  ;;  %v2039_v44 = vshll.u32 %v5448_v31, 16  ;;  %v5452_v49 = vld [vmem:[%s6563_s6 + $0x4c] sm:$0xf]  ;;  %v5924_v16 = vld [vmem:[%s6563_s6 + $0x30] sm:$0xff] }
  0x79   : > { %v1380_v26 = vunpack.c.l.b16 %v1272_v60  ;;  %v2019_v37 = vrot.slane %v2018_v21, 4  ;;  %v2033_v39 = vrot.slane %v2031_v25, 5  ;;  %v2045_v46 = vshll.u32 %v5449_v35, 16 }
  0x7a   : > { %v1275_v53 = vrot.slane %v6393_v52, 5  ;;  %v2041_v54 = vrot.slane %v2039_v44, 5  ;;  %v5392_v57 = vrot.slane %v6394_v56, 9  ;;  %v2055_v9 = vshll.u32 %v5450_v1, 16  ;;  %v6028_v1 = vld [vmem:[%s8823_s1 + $0x1e0] sm:$0xff] }
  0x7b   : > { %v1408_v45 = vpack.c.b16 %v1380_v26, %v1379_v27  ;;  %v2024_v47 = vsel %vm6578_vm2, %v2019_v37, %v2023_v62  ;;  %v2047_v28 = vrot.slane %v2045_v46, 5  ;;  %v2069_v22 = vshll.u32 %v5452_v49, 16  ;;  %v5453_v46 = vld [vmem:[%s6563_s6 + $0x50] sm:$0x1]  ;;  %3797 = vmatpush.bf16.msra.mxu3 %v6028_v1 }
  0x7c   : > { %1150 = vmatmul.bf16.gmra.mxu1 %v5921_v23  ;;  %v2028_v23 = vor.u32 %v2027_v19, %v2023_v62  ;;  %v2345_v18 = vunpack.c.l.b16 %v2024_v47  ;;  %v1277_v58 = vrot.slane %v1275_v53, 4  ;;  %v1276_v6 = vsel %vm6900_vm5, %v5392_v57, %v1275_v53 }
  0x7d   : > { %1498 = vmatmul.bf16.gmra.mxu2 %v1406_v61  ;;  %v5922_v61 = vld [vmem:[%s6563_s6 + $0x18] sm:$0xff]  ;;  %v1381_v14 = vunpack.c.l.b16 %v1276_v6  ;;  %v2057_v51 = vrot.slane %v2055_v9, 5  ;;  %v2073_v29 = vshrl.u32 %v5452_v49, 16  ;;  %v5393_v41 = vrot.slane %v6397_v40, 9 }
  0x7e   : > { %v2029_v38 = vrot.slane %v2028_v23, 4  ;;  %v6396_v23 = vld [vmem:[%s6563_s6 + $0x40] sm:$0xf]  ;;  %v1289_v49 = vrot.slane %v6729_v5, 5 }
  0x7f   : > { %v1282_v25 = vrot.slane %v6396_v23, 5  ;;  %v2075_v44 = vrot.slane %v2073_v29, 4  ;;  %v5965_v23 = vld [vmem:[%s6563_s6 + $0x48] sm:$0xff] }
  0x80   : > { %v2034_v48 = vsel %vm6578_vm2, %v2029_v38, %v2033_v39  ;;  %v2071_v38 = vrot.slane %v2069_v22, 5  ;;  %v5964_v39 = vld [vmem:[%s6563_s6 + $0x3c] sm:$0xff] }
  0x81   : > { %v2346_v55 = vunpack.c.l.b16 %v2034_v48  ;;  %v1284_v24 = vrot.slane %v1282_v25, 4 }
  0x82   : > { %1831 = vmatmul.bf16.gmra.mxu3 %v5961_v43  ;;  %v2036_v43 = vshrl.u32 %v5448_v31, 16 }
  0x83   : > { %v2374_v3 = vpack.c.b16 %v2346_v55, %v2345_v18  ;;  %v2079_v18 = vshll.u32 %v5453_v46, 16  ;;  %v6020_v55 = vld [vmem:[%s8823_s1 + $0x1a0] sm:$0xff] }
  0x84   : > { %v2038_v33 = vrot.slane %v2036_v43, 4  ;;  %3164 = vmatpush.bf16.msra.mxu2 %v6020_v55 }
  0x86   : > { %2464 = vmatmul.bf16.gmra.mxu0 %v2372_v11  ;;  %v2049_v11 = vshrl.u32 %v5449_v35, 16  ;;  %v2042_v2 = vor.u32 %v2041_v54, %v2038_v33  ;;  %v2076_v54 = vor.u32 %v2075_v44, %v2071_v38 }
  0x88   : > { %v2043_v12 = vrot.slane %v2042_v2, 4  ;;  %v5996_v2 = vld [vmem:[%s8823_s1 + $0x160] sm:$0xff] }
  0x89   : > { %2831 = vmatpush.bf16.msra.mxu1 %v5996_v2 }
  0x8a   : > { %v2048_v62 = vsel %vm6578_vm2, %v2043_v12, %v2047_v28 }
  0x8b   : > { %v2347_v26 = vunpack.c.l.b16 %v2048_v62 }
  0x8c   : > { %1155 = vmatmul.bf16.gmra.mxu1 %v5922_v61  ;;  %v1278_v61 = vrot.slane %v6395_v32, 5  ;;  %v2077_v32 = vrot.slane %v2076_v54, 4  ;;  %v5458_v54 = vld [vmem:[%s6563_s6 + $0x64] sm:$0xf] }
  0x8d   : > { %1503 = vmatmul.bf16.gmra.mxu2 %v1407_v0  ;;  %v2051_v0 = vrot.slane %v2049_v11, 4  ;;  %v1283_v11 = vsel %vm6900_vm5, %v5393_v41, %v1282_v25  ;;  %v6399_v25 = vld [vmem:[%s6563_s6 + $0x48] sm:$0xf]  ;;  %v2117_v1 = vshll.u32 %v5458_v54, 16 }
  0x8e   : > { %v1279_v7 = vsel %vm6900_vm5, %v1277_v58, %v1278_v61  ;;  %v5454_v58 = vld [vmem:[%s6563_s6 + $0x54] sm:$0xf]  ;;  %v2081_v61 = vrot.slane %v2079_v18, 5  ;;  %v5394_v29 = vrot.slane %v6399_v25, 9 }
  0x8f   : > { %v2052_v8 = vor.u32 %v2051_v0, %v2047_v28  ;;  %v1382_v17 = vunpack.c.l.b16 %v1279_v7  ;;  %v5455_v0 = vld [vmem:[%s6563_s6 + $0x58] sm:$0xf]  ;;  %v5925_v7 = vld [vmem:[%s6563_s6 + $0x3c] sm:$0xff]  ;;  %v2087_v9 = vshll.u32 %v5454_v58, 16 }
  0x91   : > { %v2053_v50 = vrot.slane %v2052_v8, 4  ;;  %v1409_v4 = vpack.c.b16 %v1382_v17, %v1381_v14  ;;  %v2084_v8 = vshrl.u32 %v5454_v58, 16  ;;  %v2093_v17 = vshll.u32 %v5455_v0, 16 }
  0x92   : > { %1836 = vmatmul.bf16.gmra.mxu3 %v5962_v59  ;;  %v5451_v59 = vld [vmem:[%s6563_s6 + $0x48] sm:$0xf] }
  0x93   : > { %v2063_v21 = vshll.u32 %v5451_v59, 16  ;;  %v2058_v60 = vsel %vm6578_vm2, %v2053_v50, %v2057_v51  ;;  %v6036_v50 = vld [vmem:[%s8823_s1 + $0x220] sm:$0xff]  ;;  %v2086_v62 = vrot.slane %v2084_v8, 4  ;;  %v2121_v8 = vshrl.u32 %v5458_v54, 16 }
  0x94   : > { %v2348_v31 = vunpack.c.l.b16 %v2058_v60  ;;  %4174 = vmatpush.bf16.msra.mxu0 %v6036_v50  ;;  %v2095_v60 = vrot.slane %v2093_v17, 5 }
  0x95   : > { %v2065_v37 = vrot.slane %v2063_v21, 5 }
  0x96   : > { %2469 = vmatmul.bf16.gmra.mxu0 %v2373_v15  ;;  %v2060_v15 = vshrl.u32 %v5451_v59, 16  ;;  %v2375_v48 = vpack.c.b16 %v2348_v31, %v2347_v26  ;;  %v2082_v59 = vsel %vm6578_vm2, %v2077_v32, %v2081_v61  ;;  %v1291_v26 = vrot.slane %v1289_v49, 4 }
  0x97   : > { %v2350_v22 = vunpack.c.l.b16 %v2082_v59  ;;  %v1292_v31 = vrot.slane %v6735_v10, 5  ;;  %v5966_v59 = vld [vmem:[%s6563_s6 + $0x54] sm:$0xff] }
  0x98   : > { %v2062_v35 = vrot.slane %v2060_v15, 4 }
  0x99   : > { %v1293_v10 = vsel %vm6900_vm5, %v1291_v26, %v1292_v31 }
  0x9a   : > { %v2066_v53 = vor.u32 %v2065_v37, %v2062_v35  ;;  %v5456_v37 = vld [vmem:[%s6563_s6 + $0x5c] sm:$0x1] }
  0x9c   : > { %1160 = vmatmul.bf16.gmra.mxu1 %v5923_v42  ;;  %v6398_v42 = vld [vmem:[%s6563_s6 + $0x44] sm:$0x1]  ;;  %v2067_v57 = vrot.slane %v2066_v53, 4 }
  0x9d   : > { %1508 = vmatmul.bf16.gmra.mxu2 %v1408_v45  ;;  %v1285_v43 = vrot.slane %v6398_v42, 5 }
  0x9e   : > { %v2072_v51 = vsel %vm6578_vm2, %v2067_v57, %v2071_v38 }
  0x9f   : > { %v1286_v33 = vsel %vm6900_vm5, %v1284_v24, %v1285_v43  ;;  %v2349_v21 = vunpack.c.l.b16 %v2072_v51  ;;  %v1290_v24 = vsel %vm6900_vm5, %v5394_v29, %v1289_v49  ;;  %v2103_v43 = vshll.u32 %v5456_v37, 16 }
  0xa0   : > { %v1384_v56 = vunpack.c.l.b16 %v1286_v33  ;;  %v1385_v46 = vunpack.c.l.b16 %v1290_v24  ;;  %v5457_v33 = vld [vmem:[%s6563_s6 + $0x60] sm:$0xf]  ;;  %v2119_v51 = vrot.slane %v2117_v1, 5  ;;  %v5395_v49 = vrot.slane %v6802_v34, 9 }
  0xa1   : > { %v2376_v40 = vpack.c.b16 %v2350_v22, %v2349_v21  ;;  %v2108_v61 = vshrl.u32 %v5457_v33, 16  ;;  %v5459_v22 = vld [vmem:[%s6563_s6 + $0x68] sm:$0x1] }
  0xa2   : > { %1841 = vmatmul.bf16.gmra.mxu3 %v5963_v36  ;;  %v1383_v36 = vunpack.c.l.b16 %v1283_v11  ;;  %v2105_v11 = vrot.slane %v2103_v43, 5  ;;  %v2127_v31 = vshll.u32 %v5459_v22, 16  ;;  %v6027_v43 = vld [vmem:[%s8823_s1 + $0x1d8] sm:$0xff] }
  0xa3   : > { %v2110_v17 = vrot.slane %v2108_v61, 4  ;;  %3798 = vmatpush.bf16.msra.mxu3 %v6027_v43  ;;  %v6400_v61 = vld [vmem:[%s6563_s6 + $0x64] sm:$0xf] }
  0xa4   : > { %v1410_v14 = vpack.c.b16 %v1384_v56, %v1383_v36  ;;  %v5926_v56 = vld [vmem:[%s6563_s6 + $0x48] sm:$0xff] }
  0xa6   : > { %2474 = vmatmul.bf16.gmra.mxu0 %v2374_v3 }
  0xa9   : > { %v7009_v19 = vpop.f32.mrf.mxu1 }
  0xac   : > { %v7014_v27 = vpop.f32.mrf.mxu0  ;;  %1165 = vmatmul.bf16.gmra.mxu1 %v5924_v16  ;;  %v2097_v16 = vshrl.u32 %v5455_v0, 16  ;;  %v2111_v0 = vshll.u32 %v5457_v33, 16 }
  0xad   : > { %1513 = vmatmul.bf16.gmra.mxu2 %v1409_v4  ;;  %v2089_v4 = vrot.slane %v2087_v9, 5 }
  0xae   : > { %v2099_v35 = vrot.slane %v2097_v16, 4  ;;  %v2113_v50 = vrot.slane %v2111_v0, 5  ;;  %v1303_v0 = vrot.slane %v6400_v61, 5 }
  0xaf   : > { %v7019_v45 = vpop.f32.mrf.mxu2 }
  0xb0   : > { %v7022_v47 = vpop.f32.mrf.mxu3  ;;  %v2100_v42 = vor.u32 %v2099_v35, %v2095_v60  ;;  %v2114_v25 = vor.u32 %v2113_v50, %v2110_v17  ;;  %v6019_v35 = vld [vmem:[%s8823_s1 + $0x198] sm:$0xff] }
  0xb1   : > { %v7024_v52 = vpop.f32.mrf.mxu1  ;;  %3165 = vmatpush.bf16.msra.mxu2 %v6019_v35 }
  0xb2   : > { %1846 = vmatmul.bf16.gmra.mxu3 %v5964_v39  ;;  %v2090_v39 = vor.u32 %v2089_v4, %v2086_v62  ;;  %v2101_v53 = vrot.slane %v2100_v42, 4  ;;  %v1299_v62 = vrot.slane %v6829_v20, 5  ;;  %v2123_v4 = vrot.slane %v2121_v8, 4  ;;  %v5460_v42 = vld [vmem:[%s6563_s6 + $0x6c] sm:$0xf] }
  0xb3   : > { %v2132_v54 = vshrl.u32 %v5460_v42, 16  ;;  %v2135_v1 = vshll.u32 %v5460_v42, 16  ;;  %v5463_v42 = vld [vmem:[%s6563_s6 + $0x78] sm:$0xf] }
  0xb4   : > { %v7033_v28 = vpop.f32.mrf.mxu0  ;;  %v2091_v44 = vrot.slane %v2090_v39, 4  ;;  %v2106_v2 = vsel %vm6578_vm2, %v2101_v53, %v2105_v11  ;;  %v2124_v26 = vor.u32 %v2123_v4, %v2119_v51  ;;  %v5461_v53 = vld [vmem:[%s6563_s6 + $0x70] sm:$0xf]  ;;  %v2159_v61 = vshll.u32 %v5463_v42, 16 }
  0xb5   : > { %v2145_v8 = vshrl.u32 %v5461_v53, 16  ;;  %v2134_v50 = vrot.slane %v2132_v54, 4  ;;  %v2137_v22 = vrot.slane %v2135_v1, 5  ;;  %v5928_v1 = vld [vmem:[%s6563_s6 + $0x60] sm:$0xff] }
  0xb6   : > { %2479 = vmatmul.bf16.gmra.mxu0 %v2375_v48  ;;  %v1386_v48 = vunpack.c.l.b16 %v1293_v10  ;;  %v2096_v57 = vsel %vm6578_vm2, %v2091_v44, %v2095_v60  ;;  %v2125_v24 = vrot.slane %v2124_v26, 4  ;;  %v2129_v10 = vrot.slane %v2127_v31, 5  ;;  %v5995_v44 = vld [vmem:[%s8823_s1 + $0x158] sm:$0xff] }
  0xb7   : > { %v7043_v3 = vpop.f32.mrf.mxu2  ;;  %v2351_v9 = vunpack.c.l.b16 %v2096_v57  ;;  %2832 = vmatpush.bf16.msra.mxu1 %v5995_v44 }
  0xb8   : > { %v7045_v6 = vpop.f32.mrf.mxu3  ;;  %v1411_v32 = vpack.c.b16 %v1386_v48, %v1385_v46  ;;  %v5927_v48 = vld [vmem:[%s6563_s6 + $0x54] sm:$0xff] }
  0xb9   : > { %v7048_v12 = vpop.f32.mrf.mxu1 }
  0xbc   : > { %1170 = vmatmul.bf16.gmra.mxu1 %v5925_v7  ;;  %v1296_v7 = vrot.slane %v6826_v13, 5 }
  0xbd   : > { %v7058_v15 = vpop.f32.mrf.mxu0  ;;  %1518 = vmatmul.bf16.gmra.mxu2 %v1410_v14  ;;  %v2352_v14 = vunpack.c.l.b16 %v2106_v2 }
  0xbe   : > { %v1298_v16 = vrot.slane %v1296_v7, 4  ;;  %v1297_v34 = vsel %vm6900_vm5, %v5395_v49, %v1296_v7  ;;  %v2141_v7 = vshll.u32 %v5461_v53, 16  ;;  %v5464_v53 = vld [vmem:[%s6563_s6 + $0x7c] sm:$0xf] }
  0xbf   : > { %v7063_v5 = vpop.f32.mrf.mxu2  ;;  %v2377_v13 = vpack.c.b16 %v2352_v14, %v2351_v9  ;;  %v1387_v37 = vunpack.c.l.b16 %v1297_v34  ;;  %v6035_v9 = vld [vmem:[%s8823_s1 + $0x218] sm:$0xff] }
  0xc0   : > { %v7066_v38 = vpop.f32.mrf.mxu3  ;;  %v1300_v20 = vsel %vm6900_vm5, %v1298_v16, %v1299_v62  ;;  %4175 = vmatpush.bf16.msra.mxu0 %v6035_v9  ;;  %v1305_v16 = vrot.slane %v1303_v0, 4  ;;  %v6402_v62 = vld [vmem:[%s6563_s6 + $0x68] sm:$0x1] }
  0xc1   : > { %v7068_v41 = vpop.f32.mrf.mxu1  ;;  %v1388_v39 = vunpack.c.l.b16 %v1300_v20  ;;  %v1306_v4 = vrot.slane %v6402_v62, 5  ;;  %v5462_v20 = vld [vmem:[%s6563_s6 + $0x74] sm:$0x1] }
  0xc2   : > { %1851 = vmatmul.bf16.gmra.mxu3 %v5965_v23 }
  0xc3   : > { %v1412_v33 = vpack.c.b16 %v1388_v39, %v1387_v37  ;;  %v1307_v37 = vsel %vm6900_vm5, %v1305_v16, %v1306_v4  ;;  %v2138_v39 = vor.u32 %v2137_v22, %v2134_v50  ;;  %v2161_v4 = vrot.slane %v2159_v61, 5 }
  0xc5   : > { %v7076_v18 = vpop.f32.mrf.mxu0 }
  0xc6   : > { %2484 = vmatmul.bf16.gmra.mxu0 %v2376_v40  ;;  %v2115_v40 = vrot.slane %v2114_v25, 4  ;;  %v2147_v25 = vrot.slane %v2145_v8, 4  ;;  %v2169_v8 = vshrl.u32 %v5464_v53, 16 }
  0xc7   : > { %v7078_v55 = vpop.f32.mrf.mxu2 }
  0xc8   : > { %v7080_v36 = vpop.f32.mrf.mxu3  ;;  %v2120_v57 = vsel %vm6578_vm2, %v2115_v40, %v2119_v51  ;;  %v5967_v51 = vld [vmem:[%s6563_s6 + $0x60] sm:$0xff] }
  0xc9   : > { %v7085_v58 = vpop.f32.mrf.mxu1  ;;  %v2353_v14 = vunpack.c.l.b16 %v2120_v57 }
  0xcc   : > { %1175 = vmatmul.bf16.gmra.mxu1 %v5926_v56 }
  0xcd   : > { %1523 = vmatmul.bf16.gmra.mxu2 %v1411_v32  ;;  %v2130_v32 = vsel %vm6578_vm2, %v2125_v24, %v2129_v10  ;;  %v2151_v10 = vshll.u32 %v5462_v20, 16 }
  0xce   : > { %v2354_v17 = vunpack.c.l.b16 %v2130_v32  ;;  %v2156_v32 = vshrl.u32 %v5463_v42, 16 }
  0xcf   : > { %v7093_v21 = vpop.f32.mrf.mxu2  ;;  %v2153_v57 = vrot.slane %v2151_v10, 5  ;;  %v5968_v10 = vld [vmem:[%s6563_s6 + $0x6c] sm:$0xff] }
  0xd0   : > { %v2378_v26 = vpack.c.b16 %v2354_v17, %v2353_v14  ;;  %v6403_v14 = vld [vmem:[%s6563_s6 + $0x70] sm:$0xf]  ;;  %v2158_v62 = vrot.slane %v2156_v32, 4 }
  0xd1   : > { %v7096_v60 = vpop.f32.mrf.mxu0  ;;  %v7098_v23 = vpop.f32.mrf.mxu3  ;;  %v1310_v17 = vrot.slane %v6403_v14, 5  ;;  %v6018_v14 = vld [vmem:[%s8823_s1 + $0x190] sm:$0xff] }
  0xd2   : > { %1856 = vmatmul.bf16.gmra.mxu3 %v5966_v59  ;;  %v7100_v29 = vpop.f32.mrf.mxu1  ;;  %v6401_v59 = vld [vmem:[%s6563_s6 + $0x60] sm:$0xf]  ;;  %3166 = vmatpush.bf16.msra.mxu2 %v6018_v14 }
  0xd3   : > { %v5396_v49 = vrot.slane %v6401_v59, 9 }
  0xd5   : > { %v1304_v35 = vsel %vm6900_vm5, %v5396_v49, %v1303_v0 }
  0xd6   : > { %2489 = vmatmul.bf16.gmra.mxu0 %v2377_v13  ;;  %v2143_v13 = vrot.slane %v2141_v7, 5  ;;  %v1389_v44 = vunpack.c.l.b16 %v1304_v35  ;;  %v2165_v7 = vshll.u32 %v5464_v53, 16 }
  0xd7   : > { %v7116_v46 = vpop.f32.mrf.mxu2 }
  0xd8   : > { %v2148_v24 = vor.u32 %v2147_v25, %v2143_v13  ;;  %v2167_v22 = vrot.slane %v2165_v7, 5  ;;  %v2171_v25 = vrot.slane %v2169_v8, 4 }
  0xd9   : > { %v7120_v11 = vpop.f32.mrf.mxu0  ;;  %v7129_v2 = vpop.f32.mrf.mxu3 }
  0xda   : > { %v7122_v56 = vpop.f32.mrf.mxu1  ;;  %v2149_v54 = vrot.slane %v2148_v24, 4  ;;  %v5465_v24 = vld [vmem:[%s6563_s6 + $0x80] sm:$0x1]  ;;  %v2172_v53 = vor.u32 %v2171_v25, %v2167_v22  ;;  %v5467_v25 = vld [vmem:[%s6563_s6 + $0x88] sm:$0xf] }
  0xdc   : > { %1180 = vmatmul.bf16.gmra.mxu1 %v5927_v48  ;;  %v1390_v48 = vunpack.c.l.b16 %v1307_v37  ;;  %v2154_v16 = vsel %vm6578_vm2, %v2149_v54, %v2153_v57  ;;  %v6405_v37 = vld [vmem:[%s6563_s6 + $0x74] sm:$0x1] }
  0xdd   : > { %1528 = vmatmul.bf16.gmra.mxu2 %v1412_v33  ;;  %v2139_v33 = vrot.slane %v2138_v39, 4  ;;  %v1313_v39 = vrot.slane %v6405_v37, 5  ;;  %v5929_v37 = vld [vmem:[%s6563_s6 + $0x6c] sm:$0xff] }
  0xde   : > { %v1413_v9 = vpack.c.b16 %v1390_v48, %v1389_v44  ;;  %v2162_v44 = vor.u32 %v2161_v4, %v2158_v62  ;;  %v5466_v62 = vld [vmem:[%s6563_s6 + $0x84] sm:$0xf] }
  0xe0   : > { %v7137_v34 = vpop.f32.mrf.mxu2 }
  0xe2   : > { %1861 = vmatmul.bf16.gmra.mxu3 %v5967_v51  ;;  %v7140_v31 = vpop.f32.mrf.mxu1  ;;  %v2144_v51 = vsel %vm6578_vm2, %v2139_v33, %v2143_v13  ;;  %v1312_v13 = vrot.slane %v1310_v17, 4  ;;  %v2175_v33 = vshll.u32 %v5465_v24, 16 }
  0xe3   : > { %v7146_v40 = vpop.f32.mrf.mxu0  ;;  %v2355_v42 = vunpack.c.l.b16 %v2144_v51 }
  0xe4   : > { %v1314_v32 = vsel %vm6900_vm5, %v1312_v13, %v1313_v39 }
  0xe5   : > { %v7149_v43 = vpop.f32.mrf.mxu3  ;;  %v1392_v51 = vunpack.c.l.b16 %v1314_v32 }
  0xe6   : > { %2494 = vmatmul.bf16.gmra.mxu0 %v2378_v26  ;;  %v6404_v26 = vld [vmem:[%s6563_s6 + $0x6c] sm:$0xf] }
  0xe7   : > { %v5397_v35 = vrot.slane %v6404_v26, 9  ;;  %v5994_v26 = vld [vmem:[%s8823_s1 + $0x150] sm:$0xff] }
  0xe8   : > { %v7152_v0 = vpop.f32.mrf.mxu2  ;;  %2833 = vmatpush.bf16.msra.mxu1 %v5994_v26 }
  0xe9   : > { %v1311_v57 = vsel %vm6900_vm5, %v5397_v35, %v1310_v17  ;;  %v2177_v17 = vrot.slane %v2175_v33, 5 }
  0xea   : > { %v1146_v50 = vpop.f32.mrf.mxu1 }
  0xeb   : > { %v7158_v59 = vpop.f32.mrf.mxu0  ;;  %v1147_v49 = vadd.f32 %v1146_v50, %v7014_v27  ;;  %v2356_v27 = vunpack.c.l.b16 %v2154_v16  ;;  %v1391_v50 = vunpack.c.l.b16 %v1311_v57 }
  0xec   : > { %1185 = vmatmul.bf16.gmra.mxu1 %v5928_v1 }
  0xed   : > { %v7163_v20 = vpop.f32.mrf.mxu3  ;;  %1533 = vmatmul.bf16.gmra.mxu2 %v1413_v9  ;;  %v2379_v61 = vpack.c.b16 %v2356_v27, %v2355_v42  ;;  %v2163_v9 = vrot.slane %v2162_v44, 4  ;;  %v1414_v39 = vpack.c.b16 %v1392_v51, %v1391_v50  ;;  %v2183_v44 = vshll.u32 %v5466_v62, 16 }
  0xef   : > { %v2168_v35 = vsel %vm6578_vm2, %v2163_v9, %v2167_v22  ;;  %v2185_v14 = vrot.slane %v2183_v44, 5 }
  0xf0   : > { %v1494_v48 = vpop.f32.mrf.mxu2 }
  0xf1   : > { %v1574_v54 = vadd.f32 %v1494_v48, %v1147_v49  ;;  %v2173_v49 = vrot.slane %v2172_v53, 4  ;;  %v2189_v48 = vshll.u32 %v5467_v25, 16  ;;  %v2193_v53 = vshrl.u32 %v5467_v25, 16 }
  0xf2   : > { %1866 = vmatmul.bf16.gmra.mxu3 %v5968_v10  ;;  %v1148_v1 = vpop.f32.mrf.mxu1  ;;  %v2180_v10 = vshrl.u32 %v5466_v62, 16 }
  0xf3   : > { %v2460_v7 = vpop.f32.mrf.mxu0  ;;  %v1149_v8 = vadd.f32 %v1148_v1, %v7033_v28  ;;  %v6026_v28 = vld [vmem:[%s8823_s1 + $0x1d0] sm:$0xff]  ;;  %v2178_v24 = vsel %vm6578_vm2, %v2173_v49, %v2177_v17  ;;  %v2357_v1 = vunpack.c.l.b16 %v2168_v35  ;;  %v2191_v50 = vrot.slane %v2189_v48, 5  ;;  %v5969_v17 = vld [vmem:[%s6563_s6 + $0x78] sm:$0xff] }
  0xf4   : > { %3799 = vmatpush.bf16.msra.mxu3 %v6026_v28  ;;  %v2182_v9 = vrot.slane %v2180_v10, 4  ;;  %v2195_v51 = vrot.slane %v2193_v53, 4  ;;  %v5468_v28 = vld [vmem:[%s6563_s6 + $0x8c] sm:$0x1] }
  0xf5   : > { %v1827_v16 = vpop.f32.mrf.mxu3  ;;  %v2199_v48 = vshll.u32 %v5468_v28, 16  ;;  %v6409_v28 = vld [vmem:[%s6563_s6 + $0x88] sm:$0xf] }
  0xf6   : > { %2499 = vmatmul.bf16.gmra.mxu0 %v2379_v61  ;;  %v1907_v4 = vadd.f32 %v1827_v16, %v1574_v54  ;;  %v6406_v54 = vld [vmem:[%s6563_s6 + $0x7c] sm:$0xf]  ;;  %v6034_v61 = vld [vmem:[%s8823_s1 + $0x210] sm:$0xff]  ;;  %v6407_v16 = vld [vmem:[%s6563_s6 + $0x78] sm:$0xf]  ;;  %v2196_v44 = vor.u32 %v2195_v51, %v2191_v50 }
  0xf7   : > { %v1317_v57 = vrot.slane %v6406_v54, 5  ;;  %4176 = vmatpush.bf16.msra.mxu0 %v6034_v61 }
  0xf8   : > { %v1496_v13 = vpop.f32.mrf.mxu2  ;;  %v7190_v42 = vadd.f32 %v2460_v7, %v1907_v4  ;;  %v2358_v7 = vunpack.c.l.b16 %v2178_v24  ;;  %v6408_v4 = vld [vmem:[%s6563_s6 + $0x80] sm:$0x1] }
  0xf9   : > { %v1575_v27 = vadd.f32 %v1496_v13, %v1149_v8  ;;  %v1319_v62 = vrot.slane %v1317_v57, 4  ;;  %v1320_v25 = vrot.slane %v6408_v4, 5 }
  0xfa   : > { %v1151_v33 = vpop.f32.mrf.mxu1  ;;  %v2380_v13 = vpack.c.b16 %v2358_v7, %v2357_v1  ;;  %v2197_v7 = vrot.slane %v2196_v44, 4 }
  0xfb   : > { %v2462_v22 = vpop.f32.mrf.mxu0  ;;  %v1152_v32 = vadd.f32 %v1151_v33, %v7058_v15  ;;  %v5398_v15 = vrot.slane %v6407_v16, 9 }
  0xfc   : > { %1190 = vmatmul.bf16.gmra.mxu1 %v5929_v37  ;;  %v2186_v37 = vor.u32 %v2185_v14, %v2182_v9  ;;  %v5930_v14 = vld [vmem:[%s6563_s6 + $0x78] sm:$0xff] }
  0xfd   : > { %v1829_v8 = vpop.f32.mrf.mxu3  ;;  %1538 = vmatmul.bf16.gmra.mxu2 %v1414_v39  ;;  %v1318_v10 = vsel %vm6900_vm5, %v5398_v15, %v1317_v57  ;;  %v5469_v57 = vld [vmem:[%s6563_s6 + $0x90] sm:$0xf] }
  0xfe   : > { %v1908_v49 = vadd.f32 %v1829_v8, %v1575_v27  ;;  %v1321_v27 = vsel %vm6900_vm5, %v1319_v62, %v1320_v25  ;;  %v2187_v1 = vrot.slane %v2186_v37, 4  ;;  %v2201_v8 = vrot.slane %v2199_v48, 5 }
  0xff   : > { %v2204_v15 = vshrl.u32 %v5469_v57, 16  ;;  %v2207_v62 = vshll.u32 %v5469_v57, 16  ;;  %v5471_v57 = vld [vmem:[%s6563_s6 + $0x98] sm:$0x1] }
 0x100   : > { %v1499_v26 = vpop.f32.mrf.mxu2  ;;  %v7201_v24 = vadd.f32 %v2462_v22, %v1908_v49  ;;  %v1394_v22 = vunpack.c.l.b16 %v1321_v27  ;;  %v5470_v49 = vld [vmem:[%s6563_s6 + $0x94] sm:$0xf]  ;;  %v2192_v4 = vsel %vm6578_vm2, %v2187_v1, %v2191_v50  ;;  %v2202_v25 = vsel %vm6578_vm2, %v2197_v7, %v2201_v8 }
 0x101   : > { %v1576_v35 = vadd.f32 %v1499_v26, %v1152_v32  ;;  %v1393_v32 = vunpack.c.l.b16 %v1318_v10  ;;  %v1324_v26 = vrot.slane %v6409_v28, 5  ;;  %v2213_v37 = vshll.u32 %v5470_v49, 16 }
 0x102   : > { %1871 = vmatmul.bf16.gmra.mxu3 %v5969_v17  ;;  %v1153_v39 = vpop.f32.mrf.mxu1  ;;  %v2359_v27 = vunpack.c.l.b16 %v2192_v4  ;;  %v2360_v44 = vunpack.c.l.b16 %v2202_v25  ;;  %v2206_v50 = vrot.slane %v2204_v15, 4  ;;  %v2209_v48 = vrot.slane %v2207_v62, 5 }
 0x103   : > { %v2465_v53 = vpop.f32.mrf.mxu0  ;;  %v1154_v33 = vadd.f32 %v1153_v39, %v7076_v18  ;;  %v1415_v16 = vpack.c.b16 %v1394_v22, %v1393_v32  ;;  %v2217_v39 = vshrl.u32 %v5470_v49, 16  ;;  %v1326_v22 = vrot.slane %v1324_v26, 4 }
 0x104   : > { %v7222_v7 = vrot.slane %v2213_v37, 5  ;;  %v2381_v49 = vpack.c.b16 %v2360_v44, %v2359_v27  ;;  %v2210_v62 = vor.u32 %v2209_v48, %v2206_v50  ;;  %v2223_v28 = vshll.u32 %v5471_v57, 16  ;;  %v5993_v50 = vld [vmem:[%s8823_s1 + $0x148] sm:$0xff] }
 0x105   : > { %v1832_v54 = vpop.f32.mrf.mxu3  ;;  %2834 = vmatpush.bf16.msra.mxu1 %v5993_v50 }
 0x106   : > { %2504 = vmatmul.bf16.gmra.mxu0 %v2380_v13  ;;  %v1909_v61 = vadd.f32 %v1832_v54, %v1576_v35  ;;  %v6410_v54 = vld [vmem:[%s6563_s6 + $0x84] sm:$0xf]  ;;  %v2211_v44 = vrot.slane %v2210_v62, 4 }
 0x107   : > { %v5399_v32 = vrot.slane %v6410_v54, 9 }
 0x108   : > { %v1501_v9 = vpop.f32.mrf.mxu2  ;;  %v7211_v17 = vadd.f32 %v2465_v53, %v1909_v61  ;;  %v6411_v61 = vld [vmem:[%s6563_s6 + $0x8c] sm:$0x1] }
 0x109   : > { %v1577_v51 = vadd.f32 %v1501_v9, %v1154_v33  ;;  %v5970_v33 = vld [vmem:[%s6563_s6 + $0x84] sm:$0xff]  ;;  %v1327_v1 = vrot.slane %v6411_v61, 5 }
 0x10a   : > { %v1156_v18 = vpop.f32.mrf.mxu1 }
 0x10b   : > { %v2467_v13 = vpop.f32.mrf.mxu0  ;;  %v1157_v35 = vadd.f32 %v1156_v18, %v7096_v60  ;;  %v2219_v60 = vrot.slane %v2217_v39, 4  ;;  %v1328_v15 = vsel %vm6900_vm5, %v1326_v22, %v1327_v1  ;;  %v5931_v22 = vld [vmem:[%s6563_s6 + $0x84] sm:$0xff] }
 0x10c   : > { %1195 = vmatmul.bf16.gmra.mxu1 %v5930_v14 }
 0x10d   : > { %v1834_v10 = vpop.f32.mrf.mxu3  ;;  %1543 = vmatmul.bf16.gmra.mxu2 %v1415_v16  ;;  %v2220_v25 = vor.u32 %v2219_v60, %v7222_v7 }
 0x10e   : > { %v1910_v53 = vadd.f32 %v1834_v10, %v1577_v51  ;;  %v1325_v51 = vsel %vm6900_vm5, %v5399_v32, %v1324_v26  ;;  %v1396_v10 = vunpack.c.l.b16 %v1328_v15  ;;  %v5473_v26 = vld [vmem:[%s6563_s6 + $0xa0] sm:$0xf] }
 0x10f   : > { %v1395_v39 = vunpack.c.l.b16 %v1325_v51  ;;  %v2221_v48 = vrot.slane %v2220_v25, 4  ;;  %v2237_v61 = vshll.u32 %v5473_v26, 16  ;;  %v2241_v1 = vshrl.u32 %v5473_v26, 16  ;;  %v6414_v26 = vld [vmem:[%s6563_s6 + $0x98] sm:$0x1] }
 0x110   : > { %v1504_v8 = vpop.f32.mrf.mxu2  ;;  %v7225_v14 = vadd.f32 %v2467_v13, %v1910_v53  ;;  %v6017_v13 = vld [vmem:[%s8823_s1 + $0x188] sm:$0xff]  ;;  %v2225_v53 = vrot.slane %v2223_v28, 5  ;;  %v2216_v51 = vsel %vm6578_vm2, %v2211_v44, %v7222_v7  ;;  %v6413_v7 = vld [vmem:[%s6563_s6 + $0x90] sm:$0xf] }
 0x111   : > { %v1578_v9 = vadd.f32 %v1504_v8, %v1157_v35  ;;  %v5472_v35 = vld [vmem:[%s6563_s6 + $0x9c] sm:$0xf]  ;;  %3167 = vmatpush.bf16.msra.mxu2 %v6017_v13  ;;  %v1416_v57 = vpack.c.b16 %v1396_v10, %v1395_v39  ;;  %v6033_v28 = vld [vmem:[%s8823_s1 + $0x208] sm:$0xff]  ;;  %v2239_v13 = vrot.slane %v2237_v61, 5  ;;  %v5400_v39 = vrot.slane %v6413_v7, 9 }
 0x112   : > { %1876 = vmatmul.bf16.gmra.mxu3 %v5970_v33  ;;  %v1158_v16 = vpop.f32.mrf.mxu1  ;;  %v2228_v33 = vshrl.u32 %v5472_v35, 16  ;;  %v2231_v54 = vshll.u32 %v5472_v35, 16  ;;  %v2226_v25 = vsel %vm6578_vm2, %v2221_v48, %v2225_v53  ;;  %v2243_v35 = vrot.slane %v2241_v1, 4  ;;  %4177 = vmatpush.bf16.msra.mxu0 %v6033_v28  ;;  %v5476_v7 = vld [vmem:[%s6563_s6 + $0xac] sm:$0xf] }
 0x113   : > { %v2470_v18 = vpop.f32.mrf.mxu0  ;;  %v1159_v4 = vadd.f32 %v1158_v16, %v7120_v11  ;;  %v6025_v11 = vld [vmem:[%s8823_s1 + $0x1c8] sm:$0xff]  ;;  %v2361_v50 = vunpack.c.l.b16 %v2216_v51  ;;  %v2362_v48 = vunpack.c.l.b16 %v2226_v25 }
 0x114   : > { %3800 = vmatpush.bf16.msra.mxu3 %v6025_v11  ;;  %v5971_v11 = vld [vmem:[%s6563_s6 + $0x90] sm:$0xff] }
 0x115   : > { %v1837_v37 = vpop.f32.mrf.mxu3 }
 0x116   : > { %2509 = vmatmul.bf16.gmra.mxu0 %v2381_v49  ;;  %v1911_v27 = vadd.f32 %v1837_v37, %v1578_v9  ;;  %v6412_v9 = vld [vmem:[%s6563_s6 + $0x94] sm:$0xf] }
 0x117   : > { %v1331_v49 = vrot.slane %v6412_v9, 5 }
 0x118   : > { %v1506_v32 = vpop.f32.mrf.mxu2  ;;  %v7245_v60 = vadd.f32 %v2470_v18, %v1911_v27  ;;  %v2230_v18 = vrot.slane %v2228_v33, 4  ;;  %v5474_v27 = vld [vmem:[%s6563_s6 + $0xa4] sm:$0x1] }
 0x119   : > { %v1579_v8 = vadd.f32 %v1506_v32, %v1159_v4  ;;  %v2233_v4 = vrot.slane %v2231_v54, 5  ;;  %v1333_v10 = vrot.slane %v1331_v49, 4  ;;  %v2244_v54 = vor.u32 %v2243_v35, %v2239_v13 }
 0x11a   : > { %v1161_v16 = vpop.f32.mrf.mxu1  ;;  %v2247_v32 = vshll.u32 %v5474_v27, 16  ;;  %v1332_v61 = vsel %vm6900_vm5, %v5400_v39, %v1331_v49  ;;  %v5475_v49 = vld [vmem:[%s6563_s6 + $0xa8] sm:$0xf] }
 0x11b   : > { %v2472_v15 = vpop.f32.mrf.mxu0  ;;  %v1162_v62 = vadd.f32 %v1161_v16, %v7146_v40  ;;  %v1334_v40 = vrot.slane %v6414_v26, 5  ;;  %v2234_v53 = vor.u32 %v2233_v4, %v2230_v18  ;;  %v1397_v18 = vunpack.c.l.b16 %v1332_v61 }
 0x11c   : > { %1200 = vmatmul.bf16.gmra.mxu1 %v5931_v22  ;;  %v2249_v28 = vrot.slane %v2247_v32, 5 }
 0x11d   : > { %v1839_v37 = vpop.f32.mrf.mxu3  ;;  %1548 = vmatmul.bf16.gmra.mxu2 %v1416_v57  ;;  %v1335_v1 = vsel %vm6900_vm5, %v1333_v10, %v1334_v40  ;;  %v2235_v25 = vrot.slane %v2234_v53, 4  ;;  %v5932_v10 = vld [vmem:[%s6563_s6 + $0x90] sm:$0xff]  ;;  %v2252_v40 = vshrl.u32 %v5475_v49, 16 }
 0x11e   : > { %v1912_v44 = vadd.f32 %v1839_v37, %v1579_v8  ;;  %v2382_v8 = vpack.c.b16 %v2362_v48, %v2361_v50  ;;  %v1398_v4 = vunpack.c.l.b16 %v1335_v1  ;;  %v2261_v50 = vshll.u32 %v5476_v7, 16 }
 0x11f   : > { %v2265_v48 = vshrl.u32 %v5476_v7, 16  ;;  %v2254_v1 = vrot.slane %v2252_v40, 4 }
 0x120   : > { %v1509_v33 = vpop.f32.mrf.mxu2  ;;  %v7265_v57 = vadd.f32 %v2472_v15, %v1912_v44  ;;  %v2240_v15 = vsel %vm6578_vm2, %v2235_v25, %v2239_v13  ;;  %v1417_v26 = vpack.c.b16 %v1398_v4, %v1397_v18  ;;  %v5972_v25 = vld [vmem:[%s6563_s6 + $0x9c] sm:$0xff] }
 0x121   : > { %v1580_v22 = vadd.f32 %v1509_v33, %v1162_v62  ;;  %v2245_v62 = vrot.slane %v2244_v54, 4  ;;  %v6415_v33 = vld [vmem:[%s6563_s6 + $0xa0] sm:$0xf]  ;;  %v2363_v32 = vunpack.c.l.b16 %v2240_v15  ;;  %v6416_v18 = vld [vmem:[%s6563_s6 + $0x9c] sm:$0xf] }
 0x122   : > { %1881 = vmatmul.bf16.gmra.mxu3 %v5971_v11  ;;  %v1163_v9 = vpop.f32.mrf.mxu1  ;;  %v2255_v11 = vshll.u32 %v5475_v49, 16  ;;  %v1338_v54 = vrot.slane %v6415_v33, 5  ;;  %v5401_v4 = vrot.slane %v6416_v18, 9  ;;  %v5933_v18 = vld [vmem:[%s6563_s6 + $0x9c] sm:$0xff] }
 0x123   : > { %v2475_v16 = vpop.f32.mrf.mxu0  ;;  %v1164_v51 = vadd.f32 %v1163_v9, %v7158_v59  ;;  %v2250_v59 = vsel %vm6578_vm2, %v2245_v62, %v2249_v28  ;;  %v2263_v9 = vrot.slane %v2261_v50, 5  ;;  %v6417_v28 = vld [vmem:[%s6563_s6 + $0xa4] sm:$0x1] }
 0x124   : > { %v1340_v62 = vrot.slane %v1338_v54, 4  ;;  %v1339_v40 = vsel %vm6900_vm5, %v5401_v4, %v1338_v54  ;;  %v5479_v4 = vld [vmem:[%s6563_s6 + $0xb8] sm:$0xf] }
 0x125   : > { %v1842_v35 = vpop.f32.mrf.mxu3  ;;  %v1399_v33 = vunpack.c.l.b16 %v1339_v40  ;;  %v2285_v40 = vshll.u32 %v5479_v4, 16 }
 0x126   : > { %2514 = vmatmul.bf16.gmra.mxu0 %v2382_v8  ;;  %v1913_v37 = vadd.f32 %v1842_v35, %v1580_v22  ;;  %v2364_v22 = vunpack.c.l.b16 %v2250_v59  ;;  %v2257_v8 = vrot.slane %v2255_v11, 5  ;;  %v1341_v35 = vrot.slane %v6417_v28, 5 }
 0x128   : > { %v1511_v39 = vpop.f32.mrf.mxu2  ;;  %v7275_v27 = vadd.f32 %v2475_v16, %v1913_v37  ;;  %v2267_v16 = vrot.slane %v2265_v48, 4  ;;  %v5477_v37 = vld [vmem:[%s6563_s6 + $0xb0] sm:$0x1]  ;;  %v2383_v15 = vpack.c.b16 %v2364_v22, %v2363_v32 }
 0x129   : > { %v1581_v44 = vadd.f32 %v1511_v39, %v1164_v51  ;;  %v2271_v50 = vshll.u32 %v5477_v37, 16 }
 0x12a   : > { %v1166_v53 = vpop.f32.mrf.mxu1  ;;  %v2268_v11 = vor.u32 %v2267_v16, %v2263_v9  ;;  %v5992_v16 = vld [vmem:[%s8823_s1 + $0x140] sm:$0xff] }
 0x12b   : > { %v2477_v13 = vpop.f32.mrf.mxu0  ;;  %v1167_v49 = vadd.f32 %v1166_v53, %v7009_v19  ;;  %v6016_v19 = vld [vmem:[%s8823_s1 + $0x180] sm:$0xff]  ;;  %2835 = vmatpush.bf16.msra.mxu1 %v5992_v16  ;;  %v2287_v16 = vrot.slane %v2285_v40, 5 }
 0x12c   : > { %1205 = vmatmul.bf16.gmra.mxu1 %v5932_v10  ;;  %v2258_v10 = vor.u32 %v2257_v8, %v2254_v1  ;;  %3168 = vmatpush.bf16.msra.mxu2 %v6016_v19  ;;  %v2269_v54 = vrot.slane %v2268_v11, 4  ;;  %v5478_v1 = vld [vmem:[%s6563_s6 + $0xb4] sm:$0xf]  ;;  %v6024_v8 = vld [vmem:[%s8823_s1 + $0x1c0] sm:$0xff] }
 0x12d   : > { %v1844_v61 = vpop.f32.mrf.mxu3  ;;  %1553 = vmatmul.bf16.gmra.mxu2 %v1417_v26  ;;  %3801 = vmatpush.bf16.msra.mxu3 %v6024_v8  ;;  %v2279_v37 = vshll.u32 %v5478_v1, 16  ;;  %v6032_v11 = vld [vmem:[%s8823_s1 + $0x200] sm:$0xff] }
 0x12e   : > { %v1914_v51 = vadd.f32 %v1844_v61, %v1581_v44  ;;  %v1342_v44 = vsel %vm6900_vm5, %v1340_v62, %v1341_v35  ;;  %v2259_v32 = vrot.slane %v2258_v10, 4  ;;  %v2273_v61 = vrot.slane %v2271_v50, 5  ;;  %4178 = vmatpush.bf16.msra.mxu0 %v6032_v11  ;;  %v5481_v11 = vld [vmem:[%s6563_s6 + $0xc0] sm:$0xf] }
 0x130   : > { %v1514_v7 = vpop.f32.mrf.mxu2  ;;  %v7283_v59 = vadd.f32 %v2477_v13, %v1914_v51  ;;  %v1400_v13 = vunpack.c.l.b16 %v1342_v44  ;;  %v2289_v44 = vshrl.u32 %v5479_v4, 16 }
 0x131   : > { %v1582_v39 = vadd.f32 %v1514_v7, %v1167_v49  ;;  %v2276_v49 = vshrl.u32 %v5478_v1, 16 }
 0x132   : > { %1886 = vmatmul.bf16.gmra.mxu3 %v5972_v25  ;;  %v1168_v26 = vpop.f32.mrf.mxu1  ;;  %v1418_v35 = vpack.c.b16 %v1400_v13, %v1399_v33  ;;  %v5973_v13 = vld [vmem:[%s6563_s6 + $0xa8] sm:$0xff] }
 0x133   : > { %v2480_v48 = vpop.f32.mrf.mxu0  ;;  %v1169_v51 = vadd.f32 %v1168_v26, %v7024_v52  ;;  %v6418_v52 = vld [vmem:[%s6563_s6 + $0xac] sm:$0xf]  ;;  %v2278_v19 = vrot.slane %v2276_v49, 4 }
 0x134   : > { %v1345_v10 = vrot.slane %v6418_v52, 5 }
 0x135   : > { %v1847_v53 = vpop.f32.mrf.mxu3 }
 0x136   : > { %2519 = vmatmul.bf16.gmra.mxu0 %v2383_v15  ;;  %v1915_v22 = vadd.f32 %v1847_v53, %v1582_v39  ;;  %v2264_v15 = vsel %vm6578_vm2, %v2259_v32, %v2263_v9  ;;  %v2274_v39 = vsel %vm6578_vm2, %v2269_v54, %v2273_v61  ;;  %v2281_v53 = vrot.slane %v2279_v37, 5  ;;  %v6419_v32 = vld [vmem:[%s6563_s6 + $0xa8] sm:$0xf]  ;;  %v6420_v61 = vld [vmem:[%s6563_s6 + $0xb0] sm:$0x1] }
 0x137   : > { %v2366_v9 = vunpack.c.l.b16 %v2274_v39  ;;  %v1347_v54 = vrot.slane %v1345_v10, 4  ;;  %v1348_v1 = vrot.slane %v6420_v61, 5  ;;  %v2303_v61 = vshll.u32 %v5481_v11, 16 }
 0x138   : > { %v1516_v25 = vpop.f32.mrf.mxu2  ;;  %v7302_v62 = vadd.f32 %v2480_v48, %v1915_v22  ;;  %v2365_v48 = vunpack.c.l.b16 %v2264_v15  ;;  %v5402_v22 = vrot.slane %v6419_v32, 9 }
 0x139   : > { %v1583_v28 = vadd.f32 %v1516_v25, %v1169_v51  ;;  %v2291_v51 = vrot.slane %v2289_v44, 4  ;;  %v1349_v15 = vsel %vm6900_vm5, %v1347_v54, %v1348_v1  ;;  %v2300_v54 = vshrl.u32 %v5481_v11, 16 }
 0x13a   : > { %v1171_v7 = vpop.f32.mrf.mxu1  ;;  %v2384_v49 = vpack.c.b16 %v2366_v9, %v2365_v48  ;;  %v1346_v37 = vsel %vm6900_vm5, %v5402_v22, %v1345_v10  ;;  %v5482_v9 = vld [vmem:[%s6563_s6 + $0xc4] sm:$0xf]  ;;  %v5934_v22 = vld [vmem:[%s6563_s6 + $0xa8] sm:$0xff] }
 0x13b   : > { %v2482_v26 = vpop.f32.mrf.mxu0  ;;  %v1172_v8 = vadd.f32 %v1171_v7, %v7048_v12  ;;  %v2282_v12 = vor.u32 %v2281_v53, %v2278_v19  ;;  %v2292_v39 = vor.u32 %v2291_v51, %v2287_v16  ;;  %v1401_v44 = vunpack.c.l.b16 %v1346_v37  ;;  %v6423_v37 = vld [vmem:[%s6563_s6 + $0xc] sm:$0xf] }
 0x13c   : > { %1210 = vmatmul.bf16.gmra.mxu1 %v5933_v18  ;;  %v5480_v18 = vld [vmem:[%s6563_s6 + $0xbc] sm:$0x1] }
 0x13d   : > { %v1849_v50 = vpop.f32.mrf.mxu3  ;;  %1558 = vmatmul.bf16.gmra.mxu2 %v1418_v35  ;;  %v2295_v52 = vshll.u32 %v5480_v18, 16  ;;  %v2283_v48 = vrot.slane %v2282_v12, 4  ;;  %v2293_v32 = vrot.slane %v2292_v39, 4  ;;  %v2313_v18 = vshrl.u32 %v5482_v9, 16  ;;  %v6424_v39 = vld [vmem:[%s6563_s6 + $0x14] sm:$0x1] }
 0x13e   : > { %v1916_v33 = vadd.f32 %v1849_v50, %v1583_v28 }
 0x13f   : > { %v2297_v19 = vrot.slane %v2295_v52, 5  ;;  %v2593_v52 = vrot.slane %v6424_v39, 5  ;;  %v6426_v39 = vld [vmem:[%s6563_s6 + $0xbc] sm:$0x1] }
 0x140   : > { %v1519_v25 = vpop.f32.mrf.mxu2  ;;  %v7317_v35 = vadd.f32 %v2482_v26, %v1916_v33  ;;  %v1402_v26 = vunpack.c.l.b16 %v1349_v15  ;;  %v6421_v33 = vld [vmem:[%s6563_s6 + $0x10] sm:$0xf]  ;;  %v5612_v15 = vrot.slane %v6423_v37, 9 }
 0x141   : > { %v1584_v4 = vadd.f32 %v1519_v25, %v1172_v8  ;;  %v2309_v25 = vshll.u32 %v5482_v9, 16 }
 0x142   : > { %8832 = vst [vmem:[#allocation2_spill] sm:$0xff] %v7317_v35  ;;  %1891 = vmatmul.bf16.gmra.mxu3 %v5973_v13  ;;  %v1173_v28 = vpop.f32.mrf.mxu1  ;;  %v2590_v13 = vrot.slane %v6421_v33, 5  ;;  %v1419_v51 = vpack.c.b16 %v1402_v26, %v1401_v44  ;;  %v2302_v44 = vrot.slane %v2300_v54, 4  ;;  %v2305_v26 = vrot.slane %v2303_v61, 5  ;;  %v5483_v35 = vld [vmem:[%s6563_s6 + $0xc8] sm:$0x1] }
 0x143   : > { %v2485_v7 = vpop.f32.mrf.mxu0  ;;  %v1174_v10 = vadd.f32 %v1173_v28, %v7068_v41  ;;  %v6422_v41 = vld [vmem:[%s6563_s6 + $0xb8] sm:$0xf]  ;;  %v2311_v9 = vrot.slane %v2309_v25, 5  ;;  %v2315_v33 = vrot.slane %v2313_v18, 4 }
 0x144   : > { %v1352_v28 = vrot.slane %v6422_v41, 5  ;;  %v2592_v12 = vrot.slane %v2590_v13, 4  ;;  %v2306_v61 = vor.u32 %v2305_v26, %v2302_v44  ;;  %v7358_v26 = vld [vmem:[%s6563_s6 + $0x1c] sm:$0xf] }
 0x145   : > { %v1852_v40 = vpop.f32.mrf.mxu3 }
 0x146   : > { %2524 = vmatmul.bf16.gmra.mxu0 %v2384_v49  ;;  %v1917_v50 = vadd.f32 %v1852_v40, %v1584_v4  ;;  %v2288_v49 = vsel %vm6578_vm2, %v2283_v48, %v2287_v16  ;;  %v1354_v37 = vrot.slane %v1352_v28, 4 }
 0x147   : > { %v2367_v16 = vunpack.c.l.b16 %v2288_v49  ;;  %v2316_v49 = vor.u32 %v2315_v33, %v2311_v9 }
 0x148   : > { %v1521_v53 = vpop.f32.mrf.mxu2  ;;  %v7328_v1 = vadd.f32 %v2485_v7, %v1917_v50  ;;  %v2298_v7 = vsel %vm6578_vm2, %v2293_v32, %v2297_v19  ;;  %v6425_v50 = vld [vmem:[%s6563_s6 + $0xb4] sm:$0xf]  ;;  %v2591_v19 = vsel %vm6900_vm5, %v5612_v15, %v2590_v13 }
 0x149   : > { %v1585_v8 = vadd.f32 %v1521_v53, %v1174_v10  ;;  %v5403_v48 = vrot.slane %v6425_v50, 9  ;;  %v5974_v53 = vld [vmem:[%s6563_s6 + $0xb4] sm:$0xff]  ;;  %v2368_v41 = vunpack.c.l.b16 %v2298_v7  ;;  %v2319_v7 = vshll.u32 %v5483_v35, 16 }
 0x14a   : > { %8833 = vst [vmem:[#allocation3_spill] sm:$0xff] %v7328_v1  ;;  %v1176_v4 = vpop.f32.mrf.mxu1  ;;  %v1355_v1 = vrot.slane %v6426_v39, 5  ;;  %v5935_v39 = vld [vmem:[%s6563_s6 + $0xb4] sm:$0xff] }
 0x14b   : > { %v2487_v40 = vpop.f32.mrf.mxu0  ;;  %v1177_v32 = vadd.f32 %v1176_v4, %v7085_v58  ;;  %v1353_v18 = vsel %vm6900_vm5, %v5403_v48, %v1352_v28  ;;  %v2385_v58 = vpack.c.b16 %v2368_v41, %v2367_v16  ;;  %v2307_v28 = vrot.slane %v2306_v61, 4 }
 0x14c   : > { %1215 = vmatmul.bf16.gmra.mxu1 %v5934_v22  ;;  %v2594_v22 = vsel %vm6900_vm5, %v2592_v12, %v2593_v52  ;;  %v1356_v13 = vsel %vm6900_vm5, %v1354_v37, %v1355_v1  ;;  %v7353_v12 = vld [vmem:[%s6563_s6 + $0x18] sm:$0xf]  ;;  %v2317_v48 = vrot.slane %v2316_v49, 4  ;;  %v2321_v16 = vrot.slane %v2319_v7, 5  ;;  %v5662_v7 = vld [vmem:[%s6563_s6 + $0x20] sm:$0x1] }
 0x14d   : > { %v1854_v11 = vpop.f32.mrf.mxu3  ;;  %1563 = vmatmul.bf16.gmra.mxu2 %v1419_v51  ;;  %v2716_v51 = vunpack.c.l.b16 %v2591_v19  ;;  %v1404_v35 = vunpack.c.l.b16 %v1356_v13  ;;  %v3283_v33 = vshrl.u32 %v7353_v12, 16  ;;  %v3292_v41 = vshll.u32 %v7358_v26, 16 }
 0x14e   : > { %v1918_v10 = vadd.f32 %v1854_v11, %v1585_v8  ;;  %v2717_v8 = vunpack.c.l.b16 %v2594_v22  ;;  %v1403_v11 = vunpack.c.l.b16 %v1353_v18  ;;  %v2322_v61 = vsel %vm6578_vm2, %v2317_v48, %v2321_v16  ;;  %v7376_v16 = vld [vmem:[%s6563_s6 + $0x24] sm:$0xf] }
 0x14f   : > { %v3294_v18 = vrot.slane %v3292_v41, 5  ;;  %v2370_v13 = vunpack.c.l.b16 %v2322_v61 }
 0x150   : > { %v1524_v54 = vpop.f32.mrf.mxu2  ;;  %v7350_v15 = vpack.c.b16 %v2717_v8, %v2716_v51  ;;  %v7355_v52 = vadd.f32 %v2487_v40, %v1918_v10  ;;  %v3296_v40 = vshrl.u32 %v7358_v26, 16  ;;  %v1420_v22 = vpack.c.b16 %v1404_v35, %v1403_v11  ;;  %v5975_v11 = vld [vmem:[%s6563_s6 + $0xc0] sm:$0xff] }
 0x151   : > { %v1586_v25 = vadd.f32 %v1524_v54, %v1177_v32  ;;  %v2312_v54 = vsel %vm6578_vm2, %v2307_v28, %v2311_v9  ;;  %v3285_v8 = vrot.slane %v3283_v33, 4 }
 0x152   : > { %1896 = vmatmul.bf16.gmra.mxu3 %v5974_v53  ;;  %v1178_v4 = vpop.f32.mrf.mxu1  ;;  %v3286_v53 = vshll.u32 %v7353_v12, 16  ;;  %v3298_v49 = vrot.slane %v3296_v40, 4 }
 0x153   : > { %v2490_v44 = vpop.f32.mrf.mxu0  ;;  %v1179_v10 = vadd.f32 %v1178_v4, %v7100_v29  ;;  %v2369_v4 = vunpack.c.l.b16 %v2312_v54  ;;  %v3307_v54 = vshrl.u32 %v7376_v16, 16 }
 0x154   : > { %v3299_v28 = vor.u32 %v3298_v49, %v3294_v18 }
 0x155   : > { %v1857_v50 = vpop.f32.mrf.mxu3  ;;  %v2386_v33 = vpack.c.b16 %v2370_v13, %v2369_v4  ;;  %v3936_v13 = vrot.slane %v5662_v7, 5 }
 0x156   : > { %2529 = vmatmul.bf16.gmra.mxu0 %v2385_v58  ;;  %v1919_v1 = vadd.f32 %v1857_v50, %v1586_v25  ;;  %v3288_v25 = vrot.slane %v3286_v53, 5  ;;  %v3302_v50 = vshll.u32 %v5662_v7, 16  ;;  %v7379_v53 = vld [vmem:[%s6563_s6 + $0x28] sm:$0xf] }
 0x157   : > { %v3316_v61 = vshll.u32 %v7379_v53, 16 }
 0x158   : > { %v1526_v37 = vpop.f32.mrf.mxu2  ;;  %v7366_v32 = vadd.f32 %v2490_v44, %v1919_v1  ;;  %v3289_v9 = vor.u32 %v3288_v25, %v3285_v8 }
 0x159   : > { %v1587_v19 = vadd.f32 %v1526_v37, %v1179_v10  ;;  %v3300_v10 = vrot.slane %v3299_v28, 4  ;;  %v3304_v37 = vrot.slane %v3302_v50, 5  ;;  %v3318_v28 = vrot.slane %v3316_v61, 5 }
 0x15a   : > { %v1181_v51 = vpop.f32.mrf.mxu1  ;;  %v3290_v40 = vrot.slane %v3289_v9, 4 }
 0x15b   : > { %v2492_v29 = vpop.f32.mrf.mxu0  ;;  %v1182_v35 = vadd.f32 %v1181_v51, %v7122_v56  ;;  %v3310_v56 = vshll.u32 %v7376_v16, 16  ;;  %v3320_v51 = vshrl.u32 %v7379_v53, 16 }
 0x15c   : > { %1220 = vmatmul.bf16.gmra.mxu1 %v5935_v39  ;;  %v3295_v49 = vsel %vm6578_vm2, %v3290_v40, %v3294_v18  ;;  %v6427_v18 = vld [vmem:[%s6563_s6 + $0x1c] sm:$0xf]  ;;  %v7399_v40 = vld [vmem:[%s6563_s6 + $0x2c] sm:$0x1] }
 0x15d   : > { %v1859_v58 = vpop.f32.mrf.mxu3  ;;  %1568 = vmatmul.bf16.gmra.mxu2 %v1420_v22  ;;  %v3933_v22 = vrot.slane %v7358_v26, 5  ;;  %v3305_v26 = vsel %vm6578_vm2, %v3300_v10, %v3304_v37  ;;  %v3312_v9 = vrot.slane %v3310_v56, 5  ;;  %v3322_v50 = vrot.slane %v3320_v51, 4  ;;  %v6428_v51 = vld [vmem:[%s6563_s6 + $0x18] sm:$0xf] }
 0x15e   : > { %v1920_v44 = vadd.f32 %v1859_v58, %v1587_v19  ;;  %v3682_v10 = vunpack.c.l.b16 %v3295_v49  ;;  %v3326_v56 = vshll.u32 %v7399_v40, 16  ;;  %v6429_v49 = vld [vmem:[%s6563_s6 + $0x20] sm:$0x1] }
 0x15f   : > { %v3935_v4 = vrot.slane %v3933_v22, 4 }
 0x160   : > { %v1529_v48 = vpop.f32.mrf.mxu2  ;;  %v7381_v39 = vadd.f32 %v2492_v29, %v1920_v44  ;;  %v5836_v29 = vrot.slane %v7353_v12, 9  ;;  %v3309_v44 = vrot.slane %v3307_v54, 4  ;;  %v3323_v54 = vor.u32 %v3322_v50, %v3318_v28 }
 0x161   : > { %v1588_v1 = vadd.f32 %v1529_v48, %v1182_v35  ;;  %v3937_v37 = vsel %vm6900_vm5, %v3935_v4, %v3936_v13 }
 0x162   : > { %1901 = vmatmul.bf16.gmra.mxu3 %v5975_v11  ;;  %v1183_v41 = vpop.f32.mrf.mxu1  ;;  %v3934_v7 = vsel %vm6900_vm5, %v5836_v29, %v3933_v22  ;;  %v4060_v29 = vunpack.c.l.b16 %v3937_v37 }
 0x163   : > { %v2495_v19 = vpop.f32.mrf.mxu0  ;;  %v1184_v58 = vadd.f32 %v1183_v41, %v7140_v31  ;;  %v3683_v31 = vunpack.c.l.b16 %v3305_v26  ;;  %v2600_v26 = vrot.slane %v6429_v49, 5  ;;  %v4059_v22 = vunpack.c.l.b16 %v3934_v7  ;;  %v7416_v7 = vld [vmem:[%s6563_s6 + $0x30] sm:$0xf] }
 0x164   : > { %v3943_v49 = vrot.slane %v7399_v40, 5 }
 0x165   : > { %v1862_v8 = vpop.f32.mrf.mxu3 }
 0x166   : > { %2534 = vmatmul.bf16.gmra.mxu0 %v2386_v33  ;;  %v1921_v25 = vadd.f32 %v1862_v8, %v1588_v1  ;;  %v6000_v33 = vld [vmem:[%s6563_s6 + $0x18] sm:$0xff]  ;;  %v2597_v1 = vrot.slane %v6427_v18, 5  ;;  %v5613_v8 = vrot.slane %v6428_v51, 9 }
 0x168   : > { %v1531_v11 = vpop.f32.mrf.mxu2  ;;  %v7394_v35 = vadd.f32 %v2495_v19, %v1921_v25  ;;  %v3313_v19 = vor.u32 %v3312_v9, %v3309_v44  ;;  %v2599_v25 = vrot.slane %v2597_v1, 4  ;;  %v3324_v44 = vrot.slane %v3323_v54, 4 }
 0x169   : > { %v1589_v48 = vadd.f32 %v1531_v11, %v1184_v58  ;;  %v3714_v11 = vpack.c.b16 %v3683_v31, %v3682_v10  ;;  %v3328_v9 = vrot.slane %v3326_v56, 5  ;;  %v4091_v10 = vpack.c.b16 %v4060_v29, %v4059_v22  ;;  %v6430_v29 = vld [vmem:[%s6563_s6 + $0x28] sm:$0xf] }
 0x16a   : > { %v1186_v12 = vpop.f32.mrf.mxu1  ;;  %v3314_v13 = vrot.slane %v3313_v19, 4  ;;  %v2601_v18 = vsel %vm6900_vm5, %v2599_v25, %v2600_v26  ;;  %v5837_v56 = vrot.slane %v7376_v16, 9 }
 0x16b   : > { %v2497_v41 = vpop.f32.mrf.mxu0  ;;  %v1187_v4 = vadd.f32 %v1186_v12, %v7019_v45  ;;  %v7421_v12 = vld [vmem:[%s6563_s6 + $0x34] sm:$0xf]  ;;  %v2719_v54 = vunpack.c.l.b16 %v2601_v18 }
 0x16c   : > { %2836 = vmatmul.bf16.vlgmr.msra.gmra.mxu1 %v7350_v15  ;;  %v3340_v26 = vshll.u32 %v7421_v12, 16 }
 0x16d   : > { %v1864_v61 = vpop.f32.mrf.mxu3  ;;  %3169 = vmatmul.bf16.vlgmr.msra.gmra.mxu2 %v6000_v33  ;;  %v2598_v33 = vsel %vm6900_vm5, %v5613_v8, %v2597_v1  ;;  %v3319_v1 = vsel %vm6578_vm2, %v3314_v13, %v3318_v28  ;;  %v3334_v8 = vshll.u32 %v7416_v7, 16  ;;  %v3344_v28 = vshrl.u32 %v7421_v12, 16 }
 0x16e   : > { %v1922_v58 = vadd.f32 %v1864_v61, %v1589_v48  ;;  %v3940_v48 = vrot.slane %v7379_v53, 5  ;;  %v2718_v19 = vunpack.c.l.b16 %v2598_v33  ;;  %v3329_v53 = vsel %vm6578_vm2, %v3324_v44, %v3328_v9  ;;  %v6001_v44 = vld [vmem:[%s6563_s6 + $0x24] sm:$0xff] }
 0x16f   : > { %v3684_v22 = vunpack.c.l.b16 %v3319_v1  ;;  %v3685_v9 = vunpack.c.l.b16 %v3329_v53  ;;  %v6432_v53 = vld [vmem:[%s6563_s6 + $0x2c] sm:$0x1] }
 0x170   : > { %v1534_v15 = vpop.f32.mrf.mxu2  ;;  %v7418_v37 = vadd.f32 %v2497_v41, %v1922_v58  ;;  %v3942_v51 = vrot.slane %v3940_v48, 4  ;;  %v3331_v41 = vshrl.u32 %v7416_v7, 16  ;;  %v3941_v18 = vsel %vm6900_vm5, %v5837_v56, %v3940_v48 }
 0x171   : > { %v1590_v50 = vadd.f32 %v1534_v15, %v1187_v4  ;;  %v2604_v4 = vrot.slane %v6430_v29, 5 }
 0x172   : > { %3802 = vmatmul.bf16.vlgmr.msra.gmra.mxu3 %v3714_v11  ;;  %v1188_v31 = vpop.f32.mrf.mxu1  ;;  %v2749_v11 = vpack.c.b16 %v2719_v54, %v2718_v19  ;;  %v3333_v40 = vrot.slane %v3331_v41, 4  ;;  %v7443_v54 = vld [vmem:[%s6563_s6 + $0x38] sm:$0x1]  ;;  %v2607_v41 = vrot.slane %v6432_v53, 5 }
 0x173   : > { %v2500_v45 = vpop.f32.mrf.mxu0  ;;  %v1189_v16 = vadd.f32 %v1188_v31, %v7043_v3  ;;  %v3944_v3 = vsel %vm6900_vm5, %v3942_v51, %v3943_v49  ;;  %v3346_v31 = vrot.slane %v3344_v28, 4  ;;  %v3715_v51 = vpack.c.b16 %v3685_v9, %v3684_v22 }
 0x174   : > { %v4062_v48 = vunpack.c.l.b16 %v3944_v3 }
 0x175   : > { %v1867_v61 = vpop.f32.mrf.mxu3 }
 0x176   : > { %4179 = vmatmul.bf16.vlgmr.msra.gmra.mxu0 %v4091_v10  ;;  %v1923_v25 = vadd.f32 %v1867_v61, %v1590_v50  ;;  %v3336_v50 = vrot.slane %v3334_v8, 5  ;;  %v3342_v10 = vrot.slane %v3340_v26, 5  ;;  %v2606_v61 = vrot.slane %v2604_v4, 4 }
 0x177   : > { %v3350_v26 = vshll.u32 %v7443_v54, 16 }
 0x178   : > { %v1536_v58 = vpop.f32.mrf.mxu2  ;;  %v7435_v15 = vadd.f32 %v2500_v45, %v1923_v25  ;;  %v6431_v45 = vld [vmem:[%s6563_s6 + $0x24] sm:$0xf]  ;;  %v4061_v25 = vunpack.c.l.b16 %v3941_v18  ;;  %v3337_v56 = vor.u32 %v3336_v50, %v3333_v40  ;;  %v3347_v49 = vor.u32 %v3346_v31, %v3342_v10  ;;  %v7457_v40 = vld [vmem:[%s6563_s6 + $0x40] sm:$0xf] }
 0x179   : > { %v1591_v13 = vadd.f32 %v1536_v58, %v1189_v16  ;;  %v5614_v1 = vrot.slane %v6431_v45, 9  ;;  %v2608_v29 = vsel %vm6900_vm5, %v2606_v61, %v2607_v41  ;;  %v7454_v45 = vld [vmem:[%s6563_s6 + $0x3c] sm:$0xf]  ;;  %v3352_v9 = vrot.slane %v3350_v26, 5 }
 0x17a   : > { %v1191_v33 = vpop.f32.mrf.mxu1  ;;  %v3338_v3 = vrot.slane %v3337_v56, 4  ;;  %v2721_v31 = vunpack.c.l.b16 %v2608_v29  ;;  %v3358_v61 = vshll.u32 %v7454_v45, 16  ;;  %v3364_v53 = vshll.u32 %v7457_v40, 16 }
 0x17b   : > { %v2502_v19 = vpop.f32.mrf.mxu0  ;;  %v1192_v28 = vadd.f32 %v1191_v33, %v7063_v5  ;;  %v3947_v5 = vrot.slane %v7421_v12, 5  ;;  %v3368_v41 = vshrl.u32 %v7457_v40, 16 }
 0x17c   : > { %2841 = vmatmul.bf16.gmra.mxu1 %v2749_v11  ;;  %v2605_v11 = vsel %vm6900_vm5, %v5614_v1, %v2604_v4  ;;  %v3355_v1 = vshrl.u32 %v7454_v45, 16 }
 0x17d   : > { %v1869_v8 = vpop.f32.mrf.mxu3  ;;  %3174 = vmatmul.bf16.gmra.mxu2 %v6001_v44  ;;  %v4092_v44 = vpack.c.b16 %v4062_v48, %v4061_v25  ;;  %v2720_v4 = vunpack.c.l.b16 %v2605_v11  ;;  %v3343_v25 = vsel %vm6578_vm2, %v3338_v3, %v3342_v10  ;;  %v5838_v48 = vrot.slane %v7416_v7, 9  ;;  %v6433_v3 = vld [vmem:[%s6563_s6 + $0x34] sm:$0xf] }
 0x17e   : > { %v1924_v16 = vadd.f32 %v1869_v8, %v1591_v13  ;;  %v3348_v13 = vrot.slane %v3347_v49, 4  ;;  %v3949_v56 = vrot.slane %v3947_v5, 4  ;;  %v3950_v49 = vrot.slane %v7443_v54, 5 }
 0x17f   : > { %v3357_v26 = vrot.slane %v3355_v1, 4  ;;  %v7473_v10 = vrot.slane %v3364_v53, 5  ;;  %v3370_v11 = vrot.slane %v3368_v41, 4  ;;  %v2611_v7 = vrot.slane %v6433_v3, 5  ;;  %v6434_v53 = vld [vmem:[%s6563_s6 + $0x30] sm:$0xf] }
 0x180   : > { %v1539_v58 = vpop.f32.mrf.mxu2  ;;  %v7460_v50 = vadd.f32 %v2502_v19, %v1924_v16  ;;  %v3353_v19 = vsel %vm6578_vm2, %v3348_v13, %v3352_v9  ;;  %v7480_v9 = vld [vmem:[%s6563_s6 + $0x44] sm:$0x1]  ;;  %v5615_v41 = vrot.slane %v6434_v53, 9 }
 0x181   : > { %v1592_v18 = vadd.f32 %v1539_v58, %v1192_v28  ;;  %v3360_v58 = vrot.slane %v3358_v61, 5  ;;  %v3371_v1 = vor.u32 %v3370_v11, %v7473_v10 }
 0x182   : > { %3807 = vmatmul.bf16.gmra.mxu3 %v3715_v51  ;;  %v1193_v22 = vpop.f32.mrf.mxu1  ;;  %v2750_v51 = vpack.c.b16 %v2721_v31, %v2720_v4  ;;  %v3948_v4 = vsel %vm6900_vm5, %v5838_v48, %v3947_v5  ;;  %v3951_v31 = vsel %vm6900_vm5, %v3949_v56, %v3950_v49 }
 0x183   : > { %v2505_v33 = vpop.f32.mrf.mxu0  ;;  %v1194_v16 = vadd.f32 %v1193_v22, %v7078_v55  ;;  %v3686_v55 = vunpack.c.l.b16 %v3343_v25  ;;  %v3687_v22 = vunpack.c.l.b16 %v3353_v19  ;;  %v6435_v25 = vld [vmem:[%s6563_s6 + $0x38] sm:$0x1]  ;;  %v3374_v19 = vshll.u32 %v7480_v9, 16 }
 0x184   : > { %v4063_v3 = vunpack.c.l.b16 %v3948_v4  ;;  %v4064_v5 = vunpack.c.l.b16 %v3951_v31  ;;  %v3372_v49 = vrot.slane %v3371_v1, 4  ;;  %v7502_v1 = vld [vmem:[%s6563_s6 + $0x4c] sm:$0xf] }
 0x185   : > { %v1872_v8 = vpop.f32.mrf.mxu3 }
 0x186   : > { %4184 = vmatmul.bf16.gmra.mxu0 %v4092_v44  ;;  %v1925_v12 = vadd.f32 %v1872_v8, %v1592_v18  ;;  %v6002_v18 = vld [vmem:[%s6563_s6 + $0x30] sm:$0xff]  ;;  %v2613_v8 = vrot.slane %v2611_v7, 4 }
 0x188   : > { %v1541_v28 = vpop.f32.mrf.mxu2  ;;  %v7475_v29 = vadd.f32 %v2505_v33, %v1925_v12  ;;  %v3361_v33 = vor.u32 %v3360_v58, %v3357_v26  ;;  %v2614_v12 = vrot.slane %v6435_v25, 5  ;;  %v2612_v58 = vsel %vm6900_vm5, %v5615_v41, %v2611_v7 }
 0x189   : > { %v1593_v44 = vadd.f32 %v1541_v28, %v1194_v16  ;;  %v3716_v28 = vpack.c.b16 %v3687_v22, %v3686_v55  ;;  %v3954_v22 = vrot.slane %v7457_v40, 5  ;;  %v2722_v31 = vunpack.c.l.b16 %v2612_v58 }
 0x18a   : > { %v1196_v13 = vpop.f32.mrf.mxu1  ;;  %v2615_v11 = vsel %vm6900_vm5, %v2613_v8, %v2614_v12  ;;  %v5839_v40 = vrot.slane %v7454_v45, 9  ;;  %v3957_v8 = vrot.slane %v7480_v9, 5 }
 0x18b   : > { %v2507_v54 = vpop.f32.mrf.mxu0  ;;  %v1197_v48 = vadd.f32 %v1196_v13, %v7093_v21  ;;  %v7499_v13 = vld [vmem:[%s6563_s6 + $0x48] sm:$0xf]  ;;  %v3956_v41 = vrot.slane %v3954_v22, 4 }
 0x18c   : > { %2846 = vmatmul.bf16.gmra.mxu1 %v2750_v51  ;;  %v3362_v51 = vrot.slane %v3361_v33, 4  ;;  %v2723_v33 = vunpack.c.l.b16 %v2615_v11  ;;  %v3379_v25 = vshrl.u32 %v7499_v13, 16 }
 0x18d   : > { %v1874_v61 = vpop.f32.mrf.mxu3  ;;  %3179 = vmatmul.bf16.gmra.mxu2 %v6002_v18  ;;  %v3376_v18 = vrot.slane %v3374_v19, 5  ;;  %v3382_v19 = vshll.u32 %v7499_v13, 16  ;;  %v3958_v58 = vsel %vm6900_vm5, %v3956_v41, %v3957_v8 }
 0x18e   : > { %v1926_v16 = vadd.f32 %v1874_v61, %v1593_v44  ;;  %v4093_v44 = vpack.c.b16 %v4064_v5, %v4063_v3  ;;  %v3367_v7 = vsel %vm6578_vm2, %v3362_v51, %v7473_v10  ;;  %v3388_v10 = vshll.u32 %v7502_v1, 16 }
 0x18f   : > { %v3377_v53 = vsel %vm6578_vm2, %v3372_v49, %v3376_v18  ;;  %v2751_v3 = vpack.c.b16 %v2723_v33, %v2722_v31  ;;  %v3688_v49 = vunpack.c.l.b16 %v3367_v7  ;;  %v3381_v18 = vrot.slane %v3379_v25, 4  ;;  %v5674_v31 = vld [vmem:[%s6563_s6 + $0x50] sm:$0x1] }
 0x190   : > { %v1544_v56 = vpop.f32.mrf.mxu2  ;;  %v7496_v4 = vadd.f32 %v2507_v54, %v1926_v16  ;;  %v3392_v16 = vshrl.u32 %v7502_v1, 16 }
 0x191   : > { %v1594_v26 = vadd.f32 %v1544_v56, %v1197_v48  ;;  %v6003_v48 = vld [vmem:[%s6563_s6 + $0x3c] sm:$0xff] }
 0x192   : > { %3812 = vmatmul.bf16.gmra.mxu3 %v3716_v28  ;;  %v1198_v55 = vpop.f32.mrf.mxu1  ;;  %v6436_v56 = vld [vmem:[%s6563_s6 + $0x40] sm:$0xf] }
 0x193   : > { %v2510_v21 = vpop.f32.mrf.mxu0  ;;  %v1199_v12 = vadd.f32 %v1198_v55, %v7116_v46  ;;  %v2618_v9 = vrot.slane %v6436_v56, 5  ;;  %v3689_v46 = vunpack.c.l.b16 %v3377_v53  ;;  %v3390_v55 = vrot.slane %v3388_v10, 5 }
 0x194   : > { %v4066_v56 = vunpack.c.l.b16 %v3958_v58 }
 0x195   : > { %v1877_v61 = vpop.f32.mrf.mxu3  ;;  %v2620_v7 = vrot.slane %v2618_v9, 4 }
 0x196   : > { %4189 = vmatmul.bf16.gmra.mxu0 %v4093_v44  ;;  %v1927_v54 = vadd.f32 %v1877_v61, %v1594_v26  ;;  %v3955_v26 = vsel %vm6900_vm5, %v5839_v40, %v3954_v22  ;;  %v3384_v44 = vrot.slane %v3382_v19, 5  ;;  %v6437_v61 = vld [vmem:[%s6563_s6 + $0x3c] sm:$0xf]  ;;  %v3717_v22 = vpack.c.b16 %v3689_v46, %v3688_v49 }
 0x197   : > { %v4065_v40 = vunpack.c.l.b16 %v3955_v26  ;;  %v3398_v19 = vshll.u32 %v5674_v31, 16  ;;  %v7534_v26 = vld [vmem:[%s6563_s6 + $0x54] sm:$0xf] }
 0x198   : > { %v1546_v28 = vpop.f32.mrf.mxu2  ;;  %v7516_v5 = vadd.f32 %v2510_v21, %v1927_v54  ;;  %v3394_v21 = vrot.slane %v3392_v16, 4  ;;  %v5616_v54 = vrot.slane %v6437_v61, 9  ;;  %v3385_v8 = vor.u32 %v3384_v44, %v3381_v18 }
 0x199   : > { %v1595_v45 = vadd.f32 %v1546_v28, %v1199_v12  ;;  %v6438_v12 = vld [vmem:[%s6563_s6 + $0x44] sm:$0x1]  ;;  %v3961_v16 = vrot.slane %v7502_v1, 5  ;;  %v4094_v49 = vpack.c.b16 %v4066_v56, %v4065_v40  ;;  %v3400_v44 = vrot.slane %v3398_v19, 5 }
 0x19a   : > { %v1201_v51 = vpop.f32.mrf.mxu1  ;;  %v2621_v53 = vrot.slane %v6438_v12, 5  ;;  %v3395_v25 = vor.u32 %v3394_v21, %v3390_v55  ;;  %v3386_v58 = vrot.slane %v3385_v8, 4  ;;  %v5840_v1 = vrot.slane %v7499_v13, 9  ;;  %v7540_v21 = vld [vmem:[%s6563_s6 + $0x58] sm:$0xf] }
 0x19b   : > { %v2512_v11 = vpop.f32.mrf.mxu0  ;;  %v1202_v41 = vadd.f32 %v1201_v51, %v7137_v34  ;;  %v3963_v61 = vrot.slane %v3961_v16, 4  ;;  %v3403_v12 = vshrl.u32 %v7534_v26, 16 }
 0x19c   : > { %2851 = vmatmul.bf16.gmra.mxu1 %v2751_v3  ;;  %v3396_v18 = vrot.slane %v3395_v25, 4  ;;  %v3391_v40 = vsel %vm6578_vm2, %v3386_v58, %v3390_v55  ;;  %v3962_v8 = vsel %vm6900_vm5, %v5840_v1, %v3961_v16  ;;  %v7560_v16 = vld [vmem:[%s6563_s6 + $0x5c] sm:$0x1] }
 0x19d   : > { %v1879_v33 = vpop.f32.mrf.mxu3  ;;  %3184 = vmatmul.bf16.gmra.mxu2 %v6003_v48  ;;  %v2619_v48 = vsel %vm6900_vm5, %v5616_v54, %v2618_v9  ;;  %v3964_v54 = vrot.slane %v5674_v31, 5  ;;  %v3405_v55 = vrot.slane %v3403_v12, 4  ;;  %v4067_v1 = vunpack.c.l.b16 %v3962_v8  ;;  %v6441_v12 = vld [vmem:[%s6563_s6 + $0x50] sm:$0x1] }
 0x19e   : > { %v1928_v28 = vadd.f32 %v1879_v33, %v1595_v45  ;;  %v2622_v45 = vsel %vm6900_vm5, %v2620_v7, %v2621_v53  ;;  %v2724_v33 = vunpack.c.l.b16 %v2619_v48  ;;  %v3401_v31 = vsel %vm6578_vm2, %v3396_v18, %v3400_v44 }
 0x19f   : > { %v2725_v9 = vunpack.c.l.b16 %v2622_v45  ;;  %v3965_v25 = vsel %vm6900_vm5, %v3963_v61, %v3964_v54  ;;  %v3691_v58 = vunpack.c.l.b16 %v3401_v31  ;;  %v6440_v61 = vld [vmem:[%s6563_s6 + $0x48] sm:$0xf] }
 0x1a0   : > { %v1549_v10 = vpop.f32.mrf.mxu2  ;;  %v7536_v34 = vadd.f32 %v2512_v11, %v1928_v28  ;;  %v3406_v11 = vshll.u32 %v7534_v26, 16  ;;  %v3412_v28 = vshll.u32 %v7540_v21, 16  ;;  %v5617_v54 = vrot.slane %v6440_v61, 9  ;;  %v7571_v61 = vld [vmem:[%s6563_s6 + $0x60] sm:$0xf] }
 0x1a1   : > { %v1596_v3 = vadd.f32 %v1549_v10, %v1202_v41  ;;  %v2752_v41 = vpack.c.b16 %v2725_v9, %v2724_v33 }
 0x1a2   : > { %3817 = vmatmul.bf16.gmra.mxu3 %v3717_v22  ;;  %v1203_v46 = vpop.f32.mrf.mxu1  ;;  %v3416_v22 = vshrl.u32 %v7540_v21, 16  ;;  %v3408_v45 = vrot.slane %v3406_v11, 5  ;;  %v3414_v18 = vrot.slane %v3412_v28, 5  ;;  %v2628_v11 = vrot.slane %v6441_v12, 5 }
 0x1a3   : > { %v2515_v51 = vpop.f32.mrf.mxu0  ;;  %v1204_v13 = vadd.f32 %v1203_v46, %v7152_v0  ;;  %v6439_v0 = vld [vmem:[%s6563_s6 + $0x4c] sm:$0xf]  ;;  %v3690_v46 = vunpack.c.l.b16 %v3391_v40  ;;  %v3422_v28 = vshll.u32 %v7560_v16, 16 }
 0x1a4   : > { %v2625_v48 = vrot.slane %v6439_v0, 5  ;;  %v3418_v44 = vrot.slane %v3416_v22, 4 }
 0x1a5   : > { %v1882_v7 = vpop.f32.mrf.mxu3  ;;  %v3718_v40 = vpack.c.b16 %v3691_v58, %v3690_v46  ;;  %v3968_v46 = vrot.slane %v7540_v21, 5 }
 0x1a6   : > { %4194 = vmatmul.bf16.gmra.mxu0 %v4094_v49  ;;  %v1929_v53 = vadd.f32 %v1882_v7, %v1596_v3  ;;  %v6004_v3 = vld [vmem:[%s6563_s6 + $0x48] sm:$0xff]  ;;  %v2627_v7 = vrot.slane %v2625_v48, 4  ;;  %v3419_v31 = vor.u32 %v3418_v44, %v3414_v18 }
 0x1a7   : > { %v3970_v12 = vrot.slane %v3968_v46, 4 }
 0x1a8   : > { %v1551_v56 = vpop.f32.mrf.mxu2  ;;  %v7555_v19 = vadd.f32 %v2515_v51, %v1929_v53  ;;  %v4068_v51 = vunpack.c.l.b16 %v3965_v25  ;;  %v3409_v53 = vor.u32 %v3408_v45, %v3405_v55  ;;  %v2626_v25 = vsel %vm6900_vm5, %v5617_v54, %v2625_v48 }
 0x1a9   : > { %v1597_v10 = vadd.f32 %v1551_v56, %v1204_v13  ;;  %v3420_v55 = vrot.slane %v3419_v31, 4  ;;  %v3424_v45 = vrot.slane %v3422_v28, 5  ;;  %v2726_v58 = vunpack.c.l.b16 %v2626_v25 }
 0x1aa   : > { %v1206_v49 = vpop.f32.mrf.mxu1  ;;  %v4095_v56 = vpack.c.b16 %v4068_v51, %v4067_v1  ;;  %v3410_v0 = vrot.slane %v3409_v53, 4  ;;  %v7577_v1 = vld [vmem:[%s6563_s6 + $0x64] sm:$0xf]  ;;  %v3427_v48 = vshrl.u32 %v7571_v61, 16  ;;  %v3430_v51 = vshll.u32 %v7571_v61, 16 }
 0x1ab   : > { %v2517_v33 = vpop.f32.mrf.mxu0  ;;  %v1207_v22 = vadd.f32 %v1206_v49, %v7022_v47  ;;  %v3425_v21 = vsel %vm6578_vm2, %v3420_v55, %v3424_v45  ;;  %v3971_v53 = vrot.slane %v7560_v16, 5 }
 0x1ac   : > { %2856 = vmatmul.bf16.gmra.mxu1 %v2752_v41  ;;  %v3415_v54 = vsel %vm6578_vm2, %v3410_v0, %v3414_v18  ;;  %v3429_v28 = vrot.slane %v3427_v48, 4  ;;  %v3693_v16 = vunpack.c.l.b16 %v3425_v21 }
 0x1ad   : > { %v1884_v9 = vpop.f32.mrf.mxu3  ;;  %3189 = vmatmul.bf16.gmra.mxu2 %v6004_v3  ;;  %v2629_v3 = vsel %vm6900_vm5, %v2627_v7, %v2628_v11  ;;  %v3972_v55 = vsel %vm6900_vm5, %v3970_v12, %v3971_v53 }
 0x1ae   : > { %v1930_v13 = vadd.f32 %v1884_v9, %v1597_v10  ;;  %v2727_v44 = vunpack.c.l.b16 %v2629_v3  ;;  %v4070_v12 = vunpack.c.l.b16 %v3972_v55 }
 0x1b0   : > { %v1554_v41 = vpop.f32.mrf.mxu2  ;;  %v7574_v47 = vadd.f32 %v2517_v33, %v1930_v13  ;;  %v5841_v33 = vrot.slane %v7534_v26, 9  ;;  %v3436_v13 = vshll.u32 %v7577_v1, 16  ;;  %v2753_v18 = vpack.c.b16 %v2727_v44, %v2726_v58  ;;  %v6442_v26 = vld [vmem:[%s6563_s6 + $0x58] sm:$0xf]  ;;  %v7601_v58 = vld [vmem:[%s6563_s6 + $0x68] sm:$0x1] }
 0x1b1   : > { %v1598_v8 = vadd.f32 %v1554_v41, %v1207_v22  ;;  %v3432_v22 = vrot.slane %v3430_v51, 5  ;;  %v2632_v25 = vrot.slane %v6442_v26, 5  ;;  %v6443_v51 = vld [vmem:[%s6563_s6 + $0x54] sm:$0xf] }
 0x1b2   : > { %3822 = vmatmul.bf16.gmra.mxu3 %v3718_v40  ;;  %v1208_v10 = vpop.f32.mrf.mxu1  ;;  %8834 = vst [vmem:[#allocation4_spill] sm:$0xff] %v7574_v47  ;;  %v3440_v40 = vshrl.u32 %v7577_v1, 16  ;;  %v7598_v45 = vrot.slane %v3436_v13, 5 }
 0x1b3   : > { %v2520_v49 = vpop.f32.mrf.mxu0  ;;  %v1209_v11 = vadd.f32 %v1208_v10, %v7045_v6  ;;  %v3692_v6 = vunpack.c.l.b16 %v3415_v54  ;;  %v3969_v10 = vsel %vm6900_vm5, %v5841_v33, %v3968_v46  ;;  %v3433_v44 = vor.u32 %v3432_v22, %v3429_v28  ;;  %v7612_v22 = vld [vmem:[%s6563_s6 + $0x70] sm:$0xf] }
 0x1b4   : > { %v2634_v54 = vrot.slane %v2632_v25, 4 }
 0x1b5   : > { %v1887_v9 = vpop.f32.mrf.mxu3  ;;  %v3719_v33 = vpack.c.b16 %v3693_v16, %v3692_v6  ;;  %v3434_v28 = vrot.slane %v3433_v44, 4  ;;  %v3975_v6 = vrot.slane %v7577_v1, 5 }
 0x1b6   : > { %4199 = vmatmul.bf16.gmra.mxu0 %v4095_v56  ;;  %v1931_v7 = vadd.f32 %v1887_v9, %v1598_v8  ;;  %v6005_v8 = vld [vmem:[%s6563_s6 + $0x54] sm:$0xff]  ;;  %v5618_v9 = vrot.slane %v6443_v51, 9  ;;  %v3460_v51 = vshll.u32 %v7612_v22, 16 }
 0x1b8   : > { %v1556_v31 = vpop.f32.mrf.mxu2  ;;  %v7590_v56 = vadd.f32 %v2520_v49, %v1931_v7  ;;  %v3442_v49 = vrot.slane %v3440_v40, 4  ;;  %v6444_v7 = vld [vmem:[%s6563_s6 + $0x5c] sm:$0x1]  ;;  %v3446_v40 = vshll.u32 %v7601_v58, 16  ;;  %v2633_v26 = vsel %vm6900_vm5, %v5618_v9, %v2632_v25 }
 0x1b9   : > { %v1599_v41 = vadd.f32 %v1556_v31, %v1209_v11  ;;  %v2635_v21 = vrot.slane %v6444_v7, 5  ;;  %v4069_v11 = vunpack.c.l.b16 %v3969_v10  ;;  %v7609_v31 = vld [vmem:[%s6563_s6 + $0x6c] sm:$0xf]  ;;  %v3464_v25 = vshrl.u32 %v7612_v22, 16 }
 0x1ba   : > { %8835 = vst [vmem:[#allocation5_spill] sm:$0xff] %v7590_v56  ;;  %v1211_v3 = vpop.f32.mrf.mxu1  ;;  %v3443_v13 = vor.u32 %v3442_v49, %v7598_v45  ;;  %v3451_v16 = vshrl.u32 %v7609_v31, 16  ;;  %v3454_v10 = vshll.u32 %v7609_v31, 16  ;;  %v2728_v9 = vunpack.c.l.b16 %v2633_v26 }
 0x1bb   : > { %v2522_v0 = vpop.f32.mrf.mxu0  ;;  %v1212_v53 = vadd.f32 %v1211_v3, %v7066_v38  ;;  %v4096_v38 = vpack.c.b16 %v4070_v12, %v4069_v11  ;;  %v3439_v7 = vsel %vm6578_vm2, %v3434_v28, %v7598_v45  ;;  %v7634_v28 = vld [vmem:[%s6563_s6 + $0x74] sm:$0x1] }
 0x1bc   : > { %2861 = vmatmul.bf16.gmra.mxu1 %v2753_v18  ;;  %v3444_v44 = vrot.slane %v3443_v13, 4  ;;  %v3453_v11 = vrot.slane %v3451_v16, 4  ;;  %v3456_v12 = vrot.slane %v3454_v10, 5 }
 0x1bd   : > { %v1889_v48 = vpop.f32.mrf.mxu3  ;;  %3194 = vmatmul.bf16.gmra.mxu2 %v6005_v8 }
 0x1be   : > { %v1932_v46 = vadd.f32 %v1889_v48, %v1599_v41  ;;  %v2636_v41 = vsel %vm6900_vm5, %v2634_v54, %v2635_v21  ;;  %v3448_v48 = vrot.slane %v3446_v40, 5  ;;  %v5842_v21 = vrot.slane %v7571_v61, 9 }
 0x1bf   : > { %v2729_v54 = vunpack.c.l.b16 %v2636_v41  ;;  %v3462_v40 = vrot.slane %v3460_v51, 5 }
 0x1c0   : > { %v1559_v18 = vpop.f32.mrf.mxu2  ;;  %v7621_v55 = vadd.f32 %v2522_v0, %v1932_v46  ;;  %v3977_v0 = vrot.slane %v3975_v6, 4  ;;  %v3449_v13 = vsel %vm6578_vm2, %v3444_v44, %v3448_v48  ;;  %v3457_v48 = vor.u32 %v3456_v12, %v3453_v11 }
 0x1c1   : > { %v1600_v8 = vadd.f32 %v1559_v18, %v1212_v53  ;;  %v3466_v18 = vrot.slane %v3464_v25, 4  ;;  %v2754_v45 = vpack.c.b16 %v2729_v54, %v2728_v9  ;;  %v3695_v10 = vunpack.c.l.b16 %v3449_v13 }
 0x1c2   : > { %3827 = vmatmul.bf16.gmra.mxu3 %v3719_v33  ;;  %v1213_v3 = vpop.f32.mrf.mxu1  ;;  %8836 = vst [vmem:[#allocation6_spill] sm:$0xff] %v7621_v55  ;;  %v3978_v33 = vrot.slane %v7601_v58, 5  ;;  %v3976_v58 = vsel %vm6900_vm5, %v5842_v21, %v3975_v6 }
 0x1c3   : > { %v2525_v49 = vpop.f32.mrf.mxu0  ;;  %v1214_v53 = vadd.f32 %v1213_v3, %v7080_v36  ;;  %v3694_v3 = vunpack.c.l.b16 %v3439_v7  ;;  %v3467_v25 = vor.u32 %v3466_v18, %v3462_v40  ;;  %v4071_v9 = vunpack.c.l.b16 %v3976_v58  ;;  %v6447_v7 = vld [vmem:[%s6563_s6 + $0x68] sm:$0x1] }
 0x1c4   : > { %v3979_v44 = vsel %vm6900_vm5, %v3977_v0, %v3978_v33  ;;  %v3458_v0 = vrot.slane %v3457_v48, 4 }
 0x1c5   : > { %v1892_v1 = vpop.f32.mrf.mxu3  ;;  %v4072_v6 = vunpack.c.l.b16 %v3979_v44  ;;  %v3468_v11 = vrot.slane %v3467_v25, 4 }
 0x1c6   : > { %4204 = vmatmul.bf16.gmra.mxu0 %v4096_v38  ;;  %v1933_v46 = vadd.f32 %v1892_v1, %v1600_v8  ;;  %v6006_v38 = vld [vmem:[%s6563_s6 + $0x60] sm:$0xff] }
 0x1c7   : > { %v6445_v8 = vld [vmem:[%s6563_s6 + $0x64] sm:$0xf]  ;;  %v6446_v1 = vld [vmem:[%s6563_s6 + $0x60] sm:$0xf]  ;;  %v4097_v58 = vpack.c.b16 %v4072_v6, %v4071_v9 }
 0x1c8   : > { %v1561_v26 = vpop.f32.mrf.mxu2  ;;  %v7636_v61 = vadd.f32 %v2525_v49, %v1933_v46  ;;  %v2639_v16 = vrot.slane %v6445_v8, 5  ;;  %v3470_v49 = vshll.u32 %v7634_v28, 16  ;;  %v5619_v21 = vrot.slane %v6446_v1, 9  ;;  %v7656_v1 = vld [vmem:[%s6563_s6 + $0x7c] sm:$0xf] }
 0x1c9   : > { %v1601_v41 = vadd.f32 %v1561_v26, %v1214_v53  ;;  %v2642_v53 = vrot.slane %v6447_v7, 5  ;;  %v3720_v26 = vpack.c.b16 %v3695_v10, %v3694_v3  ;;  %v3982_v3 = vrot.slane %v7612_v22, 5 }
 0x1ca   : > { %8837 = vst [vmem:[#allocation7_spill] sm:$0xff] %v7636_v61  ;;  %v1216_v36 = vpop.f32.mrf.mxu1  ;;  %v2641_v46 = vrot.slane %v2639_v16, 4  ;;  %v3472_v12 = vrot.slane %v3470_v49, 5  ;;  %v3484_v6 = vshll.u32 %v7656_v1, 16 }
 0x1cb   : > { %v2527_v51 = vpop.f32.mrf.mxu0  ;;  %v1217_v33 = vadd.f32 %v1216_v36, %v7098_v23  ;;  %v3463_v23 = vsel %vm6578_vm2, %v3458_v0, %v3462_v40  ;;  %v5843_v36 = vrot.slane %v7609_v31, 9  ;;  %v3488_v40 = vshrl.u32 %v7656_v1, 16 }
 0x1cc   : > { %2866 = vmatmul.bf16.gmra.mxu1 %v2754_v45  ;;  %v7649_v45 = vld [vmem:[%s6563_s6 + $0x78] sm:$0xf]  ;;  %v2643_v44 = vsel %vm6900_vm5, %v2641_v46, %v2642_v53  ;;  %v3696_v31 = vunpack.c.l.b16 %v3463_v23  ;;  %v3984_v7 = vrot.slane %v3982_v3, 4 }
 0x1cd   : > { %v1894_v54 = vpop.f32.mrf.mxu3  ;;  %3199 = vmatmul.bf16.gmra.mxu2 %v6006_v38  ;;  %v2640_v38 = vsel %vm6900_vm5, %v5619_v21, %v2639_v16  ;;  %v3473_v16 = vsel %vm6578_vm2, %v3468_v11, %v3472_v12  ;;  %v3475_v25 = vshrl.u32 %v7649_v45, 16  ;;  %v3478_v49 = vshll.u32 %v7649_v45, 16 }
 0x1ce   : > { %v1934_v13 = vadd.f32 %v1894_v54, %v1601_v41  ;;  %v2730_v9 = vunpack.c.l.b16 %v2640_v38  ;;  %v2731_v54 = vunpack.c.l.b16 %v2643_v44  ;;  %v3983_v46 = vsel %vm6900_vm5, %v5843_v36, %v3982_v3  ;;  %v6007_v38 = vld [vmem:[%s6563_s6 + $0x6c] sm:$0xff]  ;;  %v7681_v36 = vld [vmem:[%s6563_s6 + $0x80] sm:$0x1] }
 0x1cf   : > { %v3480_v0 = vrot.slane %v3478_v49, 5  ;;  %v7674_v12 = vrot.slane %v3484_v6, 5  ;;  %v6448_v44 = vld [vmem:[%s6563_s6 + $0x70] sm:$0xf]  ;;  %v7689_v49 = vld [vmem:[%s6563_s6 + $0x88] sm:$0xf] }
 0x1d0   : > { %v1564_v18 = vpop.f32.mrf.mxu2  ;;  %v7662_v10 = vadd.f32 %v2527_v51, %v1934_v13  ;;  %v3697_v51 = vunpack.c.l.b16 %v3473_v16  ;;  %v3985_v13 = vrot.slane %v7634_v28, 5  ;;  %v2755_v11 = vpack.c.b16 %v2731_v54, %v2730_v9  ;;  %v7684_v28 = vld [vmem:[%s6563_s6 + $0x84] sm:$0xf]  ;;  %v6449_v9 = vld [vmem:[%s6563_s6 + $0x6c] sm:$0xf] }
 0x1d1   : > { %v1602_v8 = vadd.f32 %v1564_v18, %v1217_v33  ;;  %v3490_v18 = vrot.slane %v3488_v40, 4  ;;  %v2646_v23 = vrot.slane %v6448_v44, 5  ;;  %v4073_v16 = vunpack.c.l.b16 %v3983_v46 }
 0x1d2   : > { %3832 = vmatmul.bf16.gmra.mxu3 %v3720_v26  ;;  %v1218_v41 = vpop.f32.mrf.mxu1  ;;  %8838 = vst [vmem:[#allocation8_spill] sm:$0xff] %v7662_v10  ;;  %v3477_v26 = vrot.slane %v3475_v25, 4  ;;  %v3986_v3 = vsel %vm6900_vm5, %v3984_v7, %v3985_v13  ;;  %v5620_v54 = vrot.slane %v6449_v9, 9  ;;  %v3494_v40 = vshll.u32 %v7681_v36, 16 }
 0x1d3   : > { %v2530_v48 = vpop.f32.mrf.mxu0  ;;  %v1219_v53 = vadd.f32 %v1218_v41, %v7129_v2  ;;  %v3491_v6 = vor.u32 %v3490_v18, %v7674_v12  ;;  %v3499_v44 = vshrl.u32 %v7684_v28, 16  ;;  %v3502_v46 = vshll.u32 %v7684_v28, 16 }
 0x1d4   : > { %v3481_v25 = vor.u32 %v3480_v0, %v3477_v26  ;;  %v4074_v13 = vunpack.c.l.b16 %v3986_v3  ;;  %v3508_v26 = vshll.u32 %v7689_v49, 16  ;;  %v2647_v18 = vsel %vm6900_vm5, %v5620_v54, %v2646_v23 }
 0x1d5   : > { %v1897_v21 = vpop.f32.mrf.mxu3  ;;  %v3496_v9 = vrot.slane %v3494_v40, 5  ;;  %v3501_v3 = vrot.slane %v3499_v44, 4  ;;  %v2732_v54 = vunpack.c.l.b16 %v2647_v18  ;;  %v7714_v40 = vld [vmem:[%s6563_s6 + $0x8c] sm:$0x1]  ;;  %v6451_v44 = vld [vmem:[%s6563_s6 + $0x7c] sm:$0xf] }
 0x1d6   : > { %4209 = vmatmul.bf16.gmra.mxu0 %v4097_v58  ;;  %v1935_v22 = vadd.f32 %v1897_v21, %v1602_v8  ;;  %v3482_v0 = vrot.slane %v3481_v25, 4  ;;  %v4098_v10 = vpack.c.b16 %v4074_v13, %v4073_v16  ;;  %v3518_v13 = vshll.u32 %v7714_v40, 16 }
 0x1d8   : > { %v1566_v33 = vpop.f32.mrf.mxu2  ;;  %v7676_v58 = vadd.f32 %v2530_v48, %v1935_v22  ;;  %v3721_v48 = vpack.c.b16 %v3697_v51, %v3696_v31  ;;  %v2648_v22 = vrot.slane %v2646_v23, 4  ;;  %v3512_v31 = vshrl.u32 %v7689_v49, 16 }
 0x1d9   : > { %v1603_v8 = vadd.f32 %v1566_v33, %v1219_v53  ;;  %v6450_v53 = vld [vmem:[%s6563_s6 + $0x74] sm:$0x1] }
 0x1da   : > { %8839 = vst [vmem:[#allocation9_spill] sm:$0xff] %v7676_v58  ;;  %v1221_v2 = vpop.f32.mrf.mxu1  ;;  %v2649_v33 = vrot.slane %v6450_v53, 5  ;;  %v3989_v53 = vrot.slane %v7656_v1, 5  ;;  %v3514_v25 = vrot.slane %v3512_v31, 4  ;;  %v3487_v1 = vsel %vm6578_vm2, %v3482_v0, %v7674_v12  ;;  %v7726_v0 = vld [vmem:[%s6563_s6 + $0x90] sm:$0xf] }
 0x1db   : > { %v2532_v41 = vpop.f32.mrf.mxu0  ;;  %v1222_v51 = vadd.f32 %v1221_v2, %v7149_v43  ;;  %v7705_v2 = vrot.slane %v3508_v26, 5  ;;  %v3698_v31 = vunpack.c.l.b16 %v3487_v1 }
 0x1dc   : > { %2871 = vmatmul.bf16.gmra.mxu1 %v2755_v11 }
 0x1dd   : > { %v1899_v21 = vpop.f32.mrf.mxu3  ;;  %3204 = vmatmul.bf16.gmra.mxu2 %v6007_v38  ;;  %v3492_v38 = vrot.slane %v3491_v6, 4  ;;  %v5844_v6 = vrot.slane %v7649_v45, 9  ;;  %v3515_v45 = vor.u32 %v3514_v25, %v7705_v2 }
 0x1de   : > { %v1936_v7 = vadd.f32 %v1899_v21, %v1603_v8  ;;  %v2650_v8 = vsel %vm6900_vm5, %v2648_v22, %v2649_v33  ;;  %v3504_v21 = vrot.slane %v3502_v46, 5  ;;  %v3992_v33 = vrot.slane %v7681_v36, 5 }
 0x1df   : > { %v2733_v22 = vunpack.c.l.b16 %v2650_v8  ;;  %v3497_v16 = vsel %vm6578_vm2, %v3492_v38, %v3496_v9  ;;  %v2653_v46 = vrot.slane %v6451_v44, 5  ;;  %v3990_v36 = vsel %vm6900_vm5, %v5844_v6, %v3989_v53  ;;  %v7732_v9 = vld [vmem:[%s6563_s6 + $0x94] sm:$0xf] }
 0x1e0   : > { %v1569_v11 = vpop.f32.mrf.mxu2  ;;  %v7707_v61 = vadd.f32 %v2532_v41, %v1936_v7  ;;  %v3505_v7 = vor.u32 %v3504_v21, %v3501_v3  ;;  %v3516_v6 = vrot.slane %v3515_v45, 4 }
 0x1e1   : > { %v1604_v58 = vadd.f32 %v1569_v11, %v1222_v51  ;;  %v3699_v51 = vunpack.c.l.b16 %v3497_v16  ;;  %v2756_v18 = vpack.c.b16 %v2733_v22, %v2732_v54  ;;  %v2655_v21 = vrot.slane %v2653_v46, 4 }
 0x1e2   : > { %3837 = vmatmul.bf16.gmra.mxu3 %v3721_v48  ;;  %v1223_v43 = vpop.f32.mrf.mxu1  ;;  %8840 = vst [vmem:[#allocation10_spill] sm:$0xff] %v7707_v61  ;;  %v3991_v48 = vrot.slane %v3989_v53, 4  ;;  %v3506_v1 = vrot.slane %v3505_v7, 4  ;;  %v3520_v16 = vrot.slane %v3518_v13, 5  ;;  %v3523_v54 = vshrl.u32 %v7726_v0, 16 }
 0x1e3   : > { %v2535_v23 = vpop.f32.mrf.mxu0  ;;  %v1224_v26 = vadd.f32 %v1223_v43, %v7163_v20  ;;  %v6008_v20 = vld [vmem:[%s6563_s6 + $0x78] sm:$0xff]  ;;  %v6453_v43 = vld [vmem:[%s6563_s6 + $0x80] sm:$0x1]  ;;  %v3526_v22 = vshll.u32 %v7726_v0, 16  ;;  %v3722_v44 = vpack.c.b16 %v3699_v51, %v3698_v31  ;;  %v5845_v13 = vrot.slane %v7684_v28, 9 }
 0x1e4   : > { %v2656_v25 = vrot.slane %v6453_v43, 5  ;;  %v3521_v31 = vsel %vm6578_vm2, %v3516_v6, %v3520_v16  ;;  %v3525_v51 = vrot.slane %v3523_v54, 4 }
 0x1e5   : > { %v1902_v41 = vpop.f32.mrf.mxu3 }
 0x1e6   : > { %4214 = vmatmul.bf16.gmra.mxu0 %v4098_v10  ;;  %v1937_v12 = vadd.f32 %v1902_v41, %v1604_v58  ;;  %v3993_v10 = vsel %vm6900_vm5, %v3991_v48, %v3992_v33  ;;  %v6452_v58 = vld [vmem:[%s6563_s6 + $0x78] sm:$0xf]  ;;  %v3996_v33 = vrot.slane %v7689_v49, 5  ;;  %v3532_v41 = vshll.u32 %v7732_v9, 16 }
 0x1e7   : > { %v5621_v38 = vrot.slane %v6452_v58, 9  ;;  %v2657_v45 = vsel %vm6900_vm5, %v2655_v21, %v2656_v25  ;;  %v3511_v49 = vsel %vm6578_vm2, %v3506_v1, %v7705_v2  ;;  %v6454_v1 = vld [vmem:[%s6563_s6 + $0x88] sm:$0xf] }
 0x1e8   : > { %v1571_v11 = vpop.f32.mrf.mxu2  ;;  %v7734_v8 = vadd.f32 %v2535_v23, %v1937_v12  ;;  %v3536_v23 = vshrl.u32 %v7732_v9, 16  ;;  %v4075_v12 = vunpack.c.l.b16 %v3990_v36  ;;  %v3528_v36 = vrot.slane %v3526_v22, 5  ;;  %v7765_v22 = vld [vmem:[%s6563_s6 + $0x98] sm:$0x1] }
 0x1e9   : > { %v1605_v3 = vadd.f32 %v1571_v11, %v1224_v26  ;;  %v4076_v26 = vunpack.c.l.b16 %v3993_v10  ;;  %v2654_v7 = vsel %vm6900_vm5, %v5621_v38, %v2653_v46  ;;  %v3999_v10 = vrot.slane %v7714_v40, 5 }
 0x1ea   : > { %8841 = vst [vmem:[#allocation11_spill] sm:$0xff] %v7734_v8  ;;  %v2837_v53 = vpop.f32.mrf.mxu1  ;;  %v7754_v46 = vrot.slane %v3532_v41, 5  ;;  %v3538_v38 = vrot.slane %v3536_v23, 4  ;;  %v2734_v2 = vunpack.c.l.b16 %v2654_v7  ;;  %v2735_v43 = vunpack.c.l.b16 %v2657_v45 }
 0x1eb   : > { %v2537_v48 = vpop.f32.mrf.mxu0  ;;  %v7757_v28 = vunpack.c.l.b16 %v3511_v49  ;;  %v3997_v25 = vsel %vm6900_vm5, %v5845_v13, %v3996_v33  ;;  %v2660_v6 = vrot.slane %v6454_v1, 5  ;;  %v4099_v40 = vpack.c.b16 %v4076_v26, %v4075_v12  ;;  %v7775_v12 = vld [vmem:[%s8824_s2] ss:$0 sm:$0xff]  ;;  %v6455_v26 = vld [vmem:[%s6563_s6 + $0x84] sm:$0xf] }
 0x1ec   : > { %2876 = vmatmul.bf16.gmra.mxu1 %v2756_v18  ;;  %v3998_v18 = vrot.slane %v3996_v33, 4  ;;  %v2757_v33 = vpack.c.b16 %v2735_v43, %v2734_v2  ;;  %v4077_v7 = vunpack.c.l.b16 %v3997_v25  ;;  %v5622_v45 = vrot.slane %v6455_v26, 9  ;;  %v7798_v1 = vld [vmem:[%s8825_s3] ss:$0 sm:$0xff] }
 0x1ed   : > { %v1904_v11 = vpop.f32.mrf.mxu3  ;;  %3209 = vmatmul.bf16.gmra.mxu2 %v6008_v20  ;;  %v2917_v20 = vadd.f32 %v2837_v53, %v7190_v42  ;;  %v3529_v42 = vor.u32 %v3528_v36, %v3525_v51  ;;  %v2662_v49 = vrot.slane %v2660_v6, 4  ;;  %v3542_v13 = vshll.u32 %v7765_v22, 16  ;;  %v6456_v51 = vld [vmem:[%s6563_s6 + $0x8c] sm:$0x1] }
 0x1ee   : > { %v1938_v58 = vadd.f32 %v1904_v11, %v1605_v3  ;;  %v7759_v3 = vunpack.c.l.b16 %v3521_v31  ;;  %v4000_v23 = vsel %vm6900_vm5, %v3998_v18, %v3999_v10  ;;  %v3539_v11 = vor.u32 %v3538_v38, %v7754_v46  ;;  %v7785_v10 = vld [vmem:[%s6563_s6 + $0x9c] sm:$0xf]  ;;  %v7788_v38 = vld [vmem:[%s6563_s6 + $0xa0] sm:$0xf] }
 0x1ef   : > { %v4078_v31 = vunpack.c.l.b16 %v4000_v23  ;;  %v2663_v36 = vrot.slane %v6456_v51, 5  ;;  %v7782_v18 = vrot.slane %v3529_v42, 4  ;;  %v3550_v2 = vshll.u32 %v7785_v10, 16 }
 0x1f0   : > { %v3170_v21 = vpop.f32.mrf.mxu2  ;;  %v7767_v53 = vadd.f32 %v2537_v48, %v1938_v58  ;;  %v3556_v43 = vshll.u32 %v7788_v38, 16  ;;  %v4003_v42 = vrot.slane %v7732_v9, 5  ;;  %v3560_v23 = vshrl.u32 %v7788_v38, 16 }
 0x1f1   : > { %v3250_v16 = vadd.f32 %v3170_v21, %v2917_v20  ;;  %v7790_v20 = vrot.slane %v3539_v11, 4  ;;  %v3547_v21 = vshrl.u32 %v7785_v10, 16  ;;  %v6009_v11 = vld [vmem:[%s6563_s6 + $0x84] sm:$0xff]  ;;  %v4100_v61 = vpack.c.b16 %v4078_v31, %v4077_v7 }
 0x1f2   : > { %3842 = vmatmul.bf16.gmra.mxu3 %v3722_v44  ;;  %v2839_v54 = vpop.f32.mrf.mxu1  ;;  %8842 = vst [vmem:[#allocation12_spill] sm:$0xff] %v7767_v53  ;;  %v3562_v9 = vrot.slane %v3560_v23, 4  ;;  %v2664_v55 = vsel %vm6900_vm5, %v2662_v49, %v2663_v36  ;;  %v4005_v49 = vrot.slane %v4003_v42, 4 }
 0x1f3   : > { %v4180_v41 = vpop.f32.mrf.mxu0  ;;  %v3549_v26 = vrot.slane %v3547_v21, 4 }
 0x1f5   : > { %v3803_v44 = vpop.f32.mrf.mxu3 }
 0x1f6   : > { %4219 = vmatmul.bf16.gmra.mxu0 %v4099_v40  ;;  %v3883_v58 = vadd.f32 %v3803_v44, %v3250_v16  ;;  %v2918_v40 = vadd.f32 %v2839_v54, %v7201_v24  ;;  %v7806_v44 = vsel %vm6900_vm5, %v5622_v45, %v2660_v6  ;;  %v3544_v24 = vrot.slane %v3542_v13, 5  ;;  %v7812_v54 = vld [vmem:[%s6563_s6 + $0xa4] sm:$0x1]  ;;  %v6457_v45 = vld [vmem:[%s6563_s6 + $0x94] sm:$0xf] }
 0x1f7   : > { %v5846_v6 = vrot.slane %v7726_v0, 9  ;;  %v2667_v21 = vrot.slane %v6457_v45, 5  ;;  %v3535_v13 = vsel %vm6578_vm2, %v7782_v18, %v7754_v46  ;;  %v4006_v0 = vrot.slane %v7765_v22, 5  ;;  %v6458_v22 = vld [vmem:[%s6563_s6 + $0x90] sm:$0xf] }
 0x1f8   : > { %v4260_v25 = vadd.f32 %v4180_v41, %v3883_v58  ;;  %v3172_v16 = vpop.f32.mrf.mxu2  ;;  %v3552_v41 = vrot.slane %v3550_v2, 5  ;;  %v7808_v58 = vrot.slane %v3556_v43, 5  ;;  %v2736_v43 = vunpack.c.l.b16 %v7806_v44 }
 0x1f9   : > { %v3251_v48 = vadd.f32 %v3172_v16, %v2918_v40  ;;  %v2737_v16 = vunpack.c.l.b16 %v2664_v55  ;;  %v3545_v46 = vsel %vm6578_vm2, %v7790_v20, %v3544_v24  ;;  %v7836_v23 = vsel %vm6900_vm5, %v5846_v6, %v4003_v42 }
 0x1fa   : > { %v4296_v51 = vmul.f32 %v7775_v12, %v4260_v25  ;;  %v2842_v53 = vpop.f32.mrf.mxu1  ;;  %v3553_v7 = vor.u32 %v3552_v41, %v3549_v26  ;;  %v3563_v36 = vor.u32 %v3562_v9, %v7808_v58  ;;  %v2669_v44 = vrot.slane %v2667_v21, 4 }
 0x1fb   : > { %v4182_v8 = vpop.f32.mrf.mxu0  ;;  %v2919_v18 = vadd.f32 %v2842_v53, %v7211_v17  ;;  %v4007_v20 = vsel %vm6900_vm5, %v4005_v49, %v4006_v0  ;;  %v4010_v53 = vrot.slane %v7788_v38, 5  ;;  %v8843_v9 = vpack.c.b16 %v7759_v3, %v7757_v28 }
 0x1fc   : > { %v7819_v2 = vadd.f32 %v7798_v1, %v4296_v51  ;;  %2881 = vmatmul.bf16.gmra.mxu1 %v2757_v33  ;;  %v3566_v33 = vshll.u32 %v7812_v54, 16  ;;  %v3554_v51 = vrot.slane %v3553_v7, 4  ;;  %v3564_v24 = vrot.slane %v3563_v36, 4 }
 0x1fd   : > { %v3805_v31 = vpop.f32.mrf.mxu3  ;;  %3214 = vmatmul.bf16.gmra.mxu2 %v6009_v11  ;;  %v5623_v11 = vrot.slane %v6458_v22, 9  ;;  %v7857_v7 = vunpack.c.l.b16 %v3535_v13  ;;  %v7859_v49 = vunpack.c.l.b16 %v3545_v46  ;;  %v4012_v28 = vrot.slane %v4010_v53, 4 }
 0x1fe   : > { %v5884_v25 = vmul.f32 -1.442695, %v7819_v2  ;;  %v3884_v40 = vadd.f32 %v3805_v31, %v3251_v48  ;;  %v6459_v48 = vld [vmem:[%s6563_s6 + $0x98] sm:$0x1]  ;;  %v3568_v17 = vrot.slane %v3566_v33, 5  ;;  %v4013_v31 = vrot.slane %v7812_v54, 5 }
 0x1ff   : > { %v2670_v55 = vrot.slane %v6459_v48, 5  ;;  %v3559_v0 = vsel %vm6578_vm2, %v3554_v51, %v7808_v58  ;;  %v2758_v13 = vpack.c.b16 %v2737_v16, %v2736_v43  ;;  %v4079_v33 = vunpack.c.l.b16 %v7836_v23  ;;  %v7893_v51 = vld [vmem:[%s6563_s6 + $0xac] sm:$0xf] }
 0x200   : > { %6265 = vpow2.f32 %v5884_v25  ;;  %v4261_v26 = vadd.f32 %v4182_v8, %v3884_v40  ;;  %v3175_v41 = vpop.f32.mrf.mxu2  ;;  %v5847_v8 = vrot.slane %v7785_v10, 9  ;;  %v2668_v10 = vsel %vm6900_vm5, %v5623_v11, %v2667_v21 }
 0x201   : > { %v3252_v6 = vadd.f32 %v3175_v41, %v2919_v18  ;;  %v2671_v54 = vsel %vm6900_vm5, %v2669_v44, %v2670_v55  ;;  %v4080_v25 = vunpack.c.l.b16 %v4007_v20  ;;  %v3569_v40 = vsel %vm6578_vm2, %v3564_v24, %v3568_v17  ;;  %v7875_v18 = vld [vmem:[%s7855_s12] sm:$0xff]   ;;  %v6010_v24 = vld [vmem:[%s6563_s6 + $0x90] sm:$0xff] }
 0x202   : > { %v4297_v42 = vmul.f32 %v7775_v12, %v4261_v26  ;;  %3847 = vmatmul.bf16.gmra.mxu3 %v8843_v9  ;;  %v2844_v45 = vpop.f32.mrf.mxu1  ;;  %v4011_v58 = vsel %vm6900_vm5, %v5847_v8, %v4010_v53  ;;  %v4014_v43 = vsel %vm6900_vm5, %v4012_v28, %v4013_v31  ;;  %v2738_v23 = vunpack.c.l.b16 %v2668_v10  ;;  %v7887_v26 = vld [vmem:[%s6563_s6 + $0xa8] sm:$0xf]  ;;  %v7931_v20 = vld [vmem:[%s6563_s6 + $0xb0] sm:$0x1] }
 0x203   : > { %v4185_v38 = vpop.f32.mrf.mxu0  ;;  %v2739_v11 = vunpack.c.l.b16 %v2671_v54  ;;  %v7884_v44 = vunpack.c.l.b16 %v3559_v0  ;;  %v7890_v55 = vunpack.c.l.b16 %v3569_v40  ;;  %v4081_v17 = vunpack.c.l.b16 %v4011_v58 }
 0x204   : > { %v7862_v3 = vadd.f32 %v7798_v1, %v4297_v42  ;;  %v4082_v53 = vunpack.c.l.b16 %v4014_v43  ;;  %v3571_v8 = vshrl.u32 %v7887_v26, 16  ;;  %v3724_v31 = vpack.c.b16 %v7859_v49, %v7857_v7  ;;  %v7916_v49 = vld [vmem:[%s7855_s12 + $0x8] sm:$0xff]  }
 0x205   : > { %v3808_v36 = vpop.f32.mrf.mxu3  ;;  %v3580_v28 = vshll.u32 %v7893_v51, 16  ;;  %v3584_v10 = vshrl.u32 %v7893_v51, 16 }
 0x206   : > { %v6266_v46 = vpop.eup %6265  ;;  %v5885_v21 = vmul.f32 -1.442695, %v7862_v3  ;;  %4224 = vmatmul.bf16.gmra.mxu0 %v4100_v61  ;;  %v3885_v22 = vadd.f32 %v3808_v36, %v3252_v6  ;;  %v2920_v61 = vadd.f32 %v2844_v45, %v7225_v14  ;;  %v3574_v14 = vshll.u32 %v7887_v26, 16 }
 0x207   : > { %v7882_v16 = vadd.f32 1.0, %v6266_v46  ;;  %v7909_v36 = vpack.c.b16 %v2739_v11, %v2738_v23  ;;  %v3573_v23 = vrot.slane %v3571_v8, 4 }
 0x208   : > { %6267 = vpow2.f32 %v5885_v21  ;;  %v4262_v41 = vadd.f32 %v4185_v38, %v3885_v22  ;;  %v3177_v48 = vpop.f32.mrf.mxu2  ;;  %v4101_v38 = vpack.c.b16 %v4080_v25, %v4079_v33  ;;  %v7918_v25 = vpack.c.b16 %v4082_v53, %v4081_v17  ;;  %v6460_v21 = vld [vmem:[%s6563_s6 + $0xa0] sm:$0xf] }
 0x209   : > { %6269 = vrcp.f32 %v7882_v16  ;;  %v3253_v9 = vadd.f32 %v3177_v48, %v2920_v61  ;;  %v4501_v46 = vand.u32 2147483647, %v7882_v16  ;;  %v4503_v7 = vand.u32 2147483648, %v7882_v16  ;;  %v6461_v48 = vld [vmem:[%s6563_s6 + $0x9c] sm:$0xf] }
 0x20a   : > { %v4298_v42 = vmul.f32 %v7775_v12, %v4262_v41  ;;  %v2847_v6 = vpop.f32.mrf.mxu1  ;;  %v2674_v22 = vrot.slane %v6460_v21, 5  ;;  %vm4497_vm6 = vweird.f32 %v7882_v16  ;;  %v3576_v11 = vrot.slane %v3574_v14, 5  ;;  %v6462_v14 = vld [vmem:[%s6563_s6 + $0xa4] sm:$0x1] }
 0x20b   : > { %v4187_v45 = vpop.f32.mrf.mxu0  ;;  %v3586_v17 = vrot.slane %v3584_v10, 4  ;;  %vm7936_vm7 = vcmp.eq.f32.partialorder %v4501_v46, 8.507059e+37  ;;  %v4504_v46 = vor.u32 1.1754944e-38, %v4503_v7 }
 0x20c   : > { %v7907_v0 = vadd.f32 %v7798_v1, %v4298_v42  ;;  %2886 = vmatmul.bf16.gmra.mxu1 %v2758_v13  ;;  %v5624_v42 = vrot.slane %v6461_v48, 9  ;;  %v2676_v8 = vrot.slane %v2674_v22, 4 }
 0x20d   : > { %v3810_v33 = vpop.f32.mrf.mxu3  ;;  %3219 = vmatmul.bf16.gmra.mxu2 %v6010_v24  ;;  %v7926_v24 = vrot.slane %v3580_v28, 5 }
 0x20e   : > { %v6268_v58 = vpop.eup %6267  ;;  %v5886_v13 = vmul.f32 -1.442695, %v7907_v0  ;;  %v3886_v43 = vadd.f32 %v3810_v33, %v3253_v9  ;;  %v2921_v9 = vadd.f32 %v2847_v6, %v7245_v60  ;;  %v2677_v33 = vrot.slane %v6462_v14, 5 }
 0x20f   : > { %v6270_v41 = vpop.eup %6269  ;;  %v7923_v61 = vadd.f32 1.0, %v6268_v58  ;;  %v2675_v21 = vsel %vm6900_vm5, %v5624_v42, %v2674_v22  ;;  %v3587_v60 = vor.u32 %v3586_v17, %v7926_v24  ;;  %v3590_v6 = vshll.u32 %v7931_v20, 16 }
 0x210   : > { %v4493_v53 = vmul.f32 %v6270_v41, %v7882_v16  ;;  %6271 = vpow2.f32 %v5886_v13  ;;  %v4263_v54 = vadd.f32 %v4187_v45, %v3886_v43  ;;  %v3180_v40 = vpop.f32.mrf.mxu2  ;;  %v3577_v45 = vor.u32 %v3576_v11, %v3573_v23  ;;  %v6011_v16 = vld [vmem:[%s6563_s6 + $0x9c] sm:$0xff] }
 0x211   : > { %6273 = vrcp.f32 %v7923_v61  ;;  %v3254_v48 = vadd.f32 %v3180_v40, %v2921_v9  ;;  %vm4498_vm8 = vweird.f32 %v6270_v41  ;;  %v2678_v22 = vsel %vm6900_vm5, %v2676_v8, %v2677_v33 }
 0x212   : > { %v4494_v58 = vsub.f32 1.0, %v4493_v53  ;;  %v4299_v10 = vmul.f32 %v7775_v12, %v4263_v54  ;;  %3852 = vmatmul.bf16.gmra.mxu3 %v3724_v31  ;;  %v2849_v13 = vpop.f32.mrf.mxu1  ;;  %v4516_v54 = vand.u32 2147483647, %v7923_v61  ;;  %v4518_v31 = vand.u32 2147483648, %v7923_v61  ;;  %vm4499_vm10 = vmor %vm4497_vm6, %vm4498_vm8 }
 0x213   : > { %v4190_v43 = vpop.f32.mrf.mxu0  ;;  %vm4512_vm9 = vweird.f32 %v7923_v61  ;;  %v2740_v7 = vunpack.c.l.b16 %v2675_v21  ;;  %v3578_v9 = vrot.slane %v3577_v45, 4  ;;  %v3588_v56 = vrot.slane %v3587_v60, 4 }
 0x214   : > { %v4495_v14 = vmul.f32 %v6270_v41, %v4494_v58  ;;  %v7946_v53 = vadd.f32 %v7798_v1, %v4299_v10  ;;  %v3592_v8 = vrot.slane %v3590_v6, 5  ;;  %v2741_v45 = vunpack.c.l.b16 %v2678_v22 }
 0x215   : > { %v3813_v40 = vpop.f32.mrf.mxu3  ;;  %vm7967_vm11 = vcmp.eq.f32.partialorder %v4516_v54, 8.507059e+37  ;;  %v8851_v60 = vpack.c.b16 %v7890_v55, %v7884_v44 }
 0x216   : > { %v6272_v11 = vpop.eup %6271  ;;  %v4496_v42 = vadd.f32 %v6270_v41, %v4495_v14  ;;  %v5887_v17 = vmul.f32 -1.442695, %v7946_v53  ;;  %4229 = vmatmul.bf16.gmra.mxu0 %v4101_v38  ;;  %v3887_v23 = vadd.f32 %v3813_v40, %v3254_v48  ;;  %v2922_v38 = vadd.f32 %v2849_v13, %v7265_v57  ;;  %v7975_v13 = vld [vmem:[%s7855_s12 + $0x10] sm:$0xff]  }
 0x217   : > { %v6274_v58 = vpop.eup %6273  ;;  %v7958_v10 = vadd.f32 1.0, %v6272_v11  ;;  %v5848_v11 = vrot.slane %v7887_v26, 9  ;;  %v3583_v57 = vsel %vm6578_vm2, %v3578_v9, %v7926_v24  ;;  %v3593_v22 = vsel %vm6578_vm2, %v3588_v56, %v3592_v8 }
 0x218   : > { %v4500_v33 = vsel %vm4499_vm10, %v6270_v41, %v4496_v42  ;;  %v4508_v14 = vmul.f32 %v6274_v58, %v7923_v61  ;;  %6275 = vpow2.f32 %v5887_v17  ;;  %v3182_v47 = vpop.f32.mrf.mxu2  ;;  %v4519_v41 = vor.u32 1.1754944e-38, %v4518_v31 }
 0x219   : > { %v4505_v21 = vsel %vm7936_vm7, %v4504_v46, %v4500_v33  ;;  %6277 = vrcp.f32 %v7958_v10  ;;  %v4264_v28 = vadd.f32 %v4190_v43, %v3887_v23  ;;  %v3255_v40 = vadd.f32 %v3182_v47, %v2922_v38 }
 0x21a   : > { %v4509_v48 = vsub.f32 1.0, %v4508_v14  ;;  %v2852_v6 = vpop.f32.mrf.mxu1  ;;  %v4017_v26 = vrot.slane %v7893_v51, 5  ;;  %v4972_v54 = vmul.f32 %v4505_v21, %v7819_v2  ;;  %vm4513_vm12 = vweird.f32 %v6274_v58 }
 0x21b   : > { %v4192_v46 = vpop.f32.mrf.mxu0  ;;  %v4533_v31 = vand.u32 2147483648, %v7958_v10  ;;  %v4300_v24 = vmul.f32 %v7775_v12, %v4264_v28  ;;  %v7984_v43 = vpack.c.b16 %v2741_v45, %v2740_v7  ;;  %v7986_v47 = vunpack.c.l.b16 %v3583_v57  ;;  %vm4514_vm14 = vmor %vm4512_vm9, %vm4513_vm12 }
 0x21c   : > { %v4510_v42 = vmul.f32 %v6274_v58, %v4509_v48  ;;  %2891 = vmatmul.bf16.gmra.mxu1 %v7909_v36  ;;  %v7990_v56 = vsel %vm6900_vm5, %v5848_v11, %v4017_v26  ;;  %vm4527_vm13 = vweird.f32 %v7958_v10  ;;  %v4531_v23 = vand.u32 2147483647, %v7958_v10 }
 0x21d   : > { %v3815_v17 = vpop.f32.mrf.mxu3  ;;  %3224 = vmatmul.bf16.gmra.mxu2 %v6011_v16  ;;  %v6050_v36 = vunpack.c.l.bf16 %v7975_v13  ;;  %v2923_v9 = vadd.f32 %v2852_v6, %v7275_v27  ;;  %v8004_v33 = vadd.f32 %v7798_v1, %v4300_v24  ;;  %v8006_v38 = vunpack.c.l.b16 %v3593_v22 }
 0x21e   : > { %v6276_v51 = vpop.eup %6275  ;;  %v4511_v2 = vadd.f32 %v6274_v58, %v4510_v42  ;;  %v3888_v14 = vadd.f32 %v3815_v17, %v3255_v40  ;;  %v8848_v21 = vunpack.c.l.bf16 %v7875_v18  ;;  %v4534_v11 = vor.u32 1.1754944e-38, %v4533_v31  ;;  %v6463_v31 = vld [vmem:[%s6563_s6 + $0xac] sm:$0xf] }
 0x21f   : > { %v7996_v8 = vpop.eup %6277  ;;  %v8001_v7 = vadd.f32 1.0, %v6276_v51  ;;  %v4019_v6 = vrot.slane %v4017_v26, 4  ;;  %v4020_v57 = vrot.slane %v7931_v20, 5  ;;  %vm8017_vm15 = vcmp.eq.f32.partialorder %v4531_v23, 8.507059e+37 }
 0x220   : > { %v5036_v16 = vadd.f32 %v8848_v21, %v4972_v54  ;;  %v4515_v45 = vsel %vm4514_vm14, %v6274_v58, %v4511_v2  ;;  %v4523_v27 = vmul.f32 %v7996_v8, %v7958_v10  ;;  %v3185_v48 = vpop.f32.mrf.mxu2  ;;  %v5888_v22 = vmul.f32 -1.442695, %v8004_v33 }
 0x221   : > { %v4520_v61 = vsel %vm7967_vm11, %v4519_v41, %v4515_v45  ;;  %6279 = vrcp.f32 %v8001_v7  ;;  %v4083_v54 = vunpack.c.l.b16 %v7990_v56  ;;  %v4265_v26 = vadd.f32 %v4192_v46, %v3888_v14  ;;  %v6464_v56 = vld [vmem:[%s6563_s6 + $0xa8] sm:$0xf] }
 0x222   : > { %v4973_v28 = vmul.f32 %v4520_v61, %v7862_v3  ;;  %v4524_v40 = vsub.f32 1.0, %v4523_v27  ;;  %3857 = vmatmul.bf16.gmra.mxu3 %v8851_v60  ;;  %v2854_v41 = vpop.f32.mrf.mxu1  ;;  %v3256_v42 = vadd.f32 %v3185_v48, %v2923_v9  ;;  %v3726_v3 = vpack.c.b16 %v8006_v38, %v7986_v47  ;;  %v8068_v60 = vld [vmem:[%s6563_s6 + $0xb4] sm:$0xf] }
 0x223   : > { %v4195_v20 = vpop.f32.mrf.mxu0  ;;  %v2681_v24 = vrot.slane %v6463_v31, 5  ;;  %v8852_v17 = vunpack.c.h.bf16 %v7875_v18  ;;  %vm4528_vm0 = vweird.f32 %v7996_v8  ;;  %6281 = vpow2.f32 %v5888_v22 }
 0x224   : > { %v4525_v2 = vmul.f32 %v7996_v8, %v4524_v40  ;;  %v4546_v44 = vand.u32 2147483647, %v8001_v7  ;;  %v4301_v55 = vmul.f32 %v7775_v12, %v4265_v26  ;;  %v4021_v18 = vsel %vm6900_vm5, %v4019_v6, %v4020_v57  ;;  %vm8052_vm1 = vmor %vm4527_vm13, %vm4528_vm0  ;;  %v6465_v40 = vld [vmem:[%s6563_s6 + $0xb0] sm:$0x1] }
 0x225   : > { %v5037_v51 = vadd.f32 %v8852_v17, %v4973_v28  ;;  %v3818_v46 = vpop.f32.mrf.mxu3  ;;  %v5625_v23 = vrot.slane %v6464_v56, 9  ;;  %v6051_v21 = vunpack.c.h.bf16 %v7975_v13  ;;  %vm4542_vm3 = vweird.f32 %v8001_v7 }
 0x226   : > { %v4526_v14 = vadd.f32 %v7996_v8, %v4525_v2  ;;  %4234 = vmatmul.bf16.gmra.mxu0 %v7918_v25  ;;  %v3889_v45 = vadd.f32 %v3818_v46, %v3256_v42  ;;  %v2924_v61 = vadd.f32 %v2854_v41, %v7283_v59  ;;  %v2683_v6 = vrot.slane %v2681_v24, 4  ;;  %v6012_v42 = vld [vmem:[%s6563_s6 + $0xa8] sm:$0xff] }
 0x227   : > { %v6107_v9 = vpack.c.bf16 %v5037_v51, %v5036_v16  ;;  %v6280_v27 = vpop.eup %6279  ;;  %v8058_v16 = vadd.f32 %v7798_v1, %v4301_v55  ;;  %v2684_v22 = vrot.slane %v6465_v40, 5  ;;  %vm8070_vm4 = vcmp.eq.f32.partialorder %v4546_v44, 8.507059e+37 }
 0x228   : > { %v4530_v25 = vsel %vm8052_vm1, %v7996_v8, %v4526_v14  ;;  %v4538_v10 = vmul.f32 %v6280_v27, %v8001_v7  ;;  %v4266_v57 = vadd.f32 %v4195_v20, %v3889_v45  ;;  %v3187_v28 = vpop.f32.mrf.mxu2  ;;  %v4548_v59 = vand.u32 2147483648, %v8001_v7 }
 0x229   : > { %6108 = vst [vmem:[%s8038_s15] sm:$0xff] %v6107_v9   ;;  %v5889_v41 = vmul.f32 -1.442695, %v8058_v16  ;;  %v4084_v31 = vunpack.c.l.b16 %v4021_v18  ;;  %v6282_v17 = vpop.eup %6281  ;;  %v3257_v20 = vadd.f32 %v3187_v28, %v2924_v61  ;;  %v8080_v55 = vsel %vm6900_vm5, %v5625_v23, %v2681_v24 }
 0x22a   : > { %v4539_v8 = vsub.f32 1.0, %v4538_v10  ;;  %v4302_v51 = vmul.f32 %v7775_v12, %v4266_v57  ;;  %v2857_v2 = vpop.f32.mrf.mxu1  ;;  %v4535_v44 = vsel %vm8017_vm15, %v4534_v11, %v4530_v25  ;;  %v8084_v46 = vadd.f32 1.0, %v6282_v17  ;;  %v8098_v57 = vld [vmem:[%s6563_s6 + $0xb8] sm:$0xf] }
 0x22b   : > { %6283 = vpow2.f32 %v5889_v41  ;;  %v4197_v56 = vpop.f32.mrf.mxu0  ;;  %v3595_v9 = vshrl.u32 %v8068_v60, 16  ;;  %vm4543_vm6 = vweird.f32 %v6280_v27  ;;  %v2685_v24 = vsel %vm6900_vm5, %v2683_v6, %v2684_v22 }
 0x22c   : > { %v4540_v18 = vmul.f32 %v6280_v27, %v4539_v8  ;;  %v8088_v14 = vadd.f32 %v7798_v1, %v4302_v51  ;;  %2896 = vmatmul.bf16.gmra.mxu1 %v7984_v43  ;;  %v4549_v23 = vor.u32 1.1754944e-38, %v4548_v59  ;;  %6285 = vrcp.f32 %v8084_v46  ;;  %vm4544_vm7 = vmor %vm4542_vm3, %vm4543_vm6 }
 0x22d   : > { %v3820_v11 = vpop.f32.mrf.mxu3  ;;  %3229 = vmatmul.bf16.gmra.mxu2 %v6012_v42  ;;  %v4103_v58 = vpack.c.b16 %v4084_v31, %v4083_v54  ;;  %v2742_v45 = vunpack.c.l.b16 %v8080_v55  ;;  %v4974_v48 = vmul.f32 %v4535_v44, %v7907_v0  ;;  %v2925_v43 = vadd.f32 %v2857_v2, %v7302_v62  ;;  %v8107_v0 = vld [vmem:[%s7855_s12 + $0x18] sm:$0xff]  }
 0x22e   : > { %v4541_v61 = vadd.f32 %v6280_v27, %v4540_v18  ;;  %v5890_v25 = vmul.f32 -1.442695, %v8088_v14  ;;  %v3890_v10 = vadd.f32 %v3820_v11, %v3257_v20  ;;  %v2743_v6 = vunpack.c.l.b16 %v2685_v24 }
 0x22f   : > { %v3597_v28 = vrot.slane %v3595_v9, 4  ;;  %v3598_v54 = vshll.u32 %v8068_v60, 16  ;;  %v4561_v22 = vand.u32 2147483647, %v8084_v46  ;;  %v3604_v17 = vshll.u32 %v8098_v57, 16 }
 0x230   : > { %v4545_v40 = vsel %vm4544_vm7, %v6280_v27, %v4541_v61  ;;  %6287 = vpow2.f32 %v5890_v25  ;;  %v4267_v59 = vadd.f32 %v4197_v56, %v3890_v10  ;;  %v3190_v41 = vpop.f32.mrf.mxu2  ;;  %v3608_v62 = vshrl.u32 %v8098_v57, 16 }
 0x231   : > { %v6284_v42 = vpop.eup %6283  ;;  %v4550_v31 = vsel %vm8070_vm4, %v4549_v23, %v4545_v40  ;;  %v3600_v7 = vrot.slane %v3598_v54, 5  ;;  %v3258_v20 = vadd.f32 %v3190_v41, %v2925_v43  ;;  %v8857_v26 = vunpack.c.l.bf16 %v7916_v49 }
 0x232   : > { %v4975_v8 = vmul.f32 %v4550_v31, %v7946_v53  ;;  %v8114_v51 = vadd.f32 1.0, %v6284_v42  ;;  %v4303_v27 = vmul.f32 %v7775_v12, %v4267_v59  ;;  %3862 = vmatmul.bf16.gmra.mxu3 %v3726_v3  ;;  %v2859_v2 = vpop.f32.mrf.mxu1  ;;  %v8120_v55 = vpop.eup %6285  ;;  %vm4557_vm8 = vweird.f32 %v8084_v46  ;;  %v8141_v59 = vld [vmem:[%s6563_s6 + $0xbc] sm:$0x1]  ;;  %v8861_v31 = vld [vmem:[#allocation2_spill] sm:$0xff] }
 0x233   : > { %v5038_v44 = vadd.f32 %v8857_v26, %v4974_v48  ;;  %v4563_v56 = vand.u32 2147483648, %v8084_v46  ;;  %v6054_v53 = vunpack.c.l.bf16 %v8107_v0  ;;  %v4200_v9 = vpop.f32.mrf.mxu0  ;;  %v8858_v18 = vunpack.c.h.bf16 %v7916_v49 }
 0x234   : > { %v4553_v47 = vmul.f32 %v8120_v55, %v8084_v46  ;;  %6289 = vrcp.f32 %v8114_v51  ;;  %v6055_v38 = vunpack.c.h.bf16 %v8107_v0  ;;  %v8134_v3 = vadd.f32 %v7798_v1, %v4303_v27 }
 0x235   : > { %v5039_v24 = vadd.f32 %v8858_v18, %v4975_v8  ;;  %v3823_v23 = vpop.f32.mrf.mxu3  ;;  %v3601_v11 = vor.u32 %v3600_v7, %v3597_v28  ;;  %v3606_v48 = vrot.slane %v3604_v17, 5  ;;  %v3610_v61 = vrot.slane %v3608_v62, 4 }
 0x236   : > { %v6288_v25 = vpop.eup %6287  ;;  %v4554_v49 = vsub.f32 1.0, %v4553_v47  ;;  %vm8136_vm9 = vcmp.eq.f32.partialorder %v4561_v22, 8.507059e+37  ;;  %4239 = vmatmul.bf16.gmra.mxu0 %v4103_v58  ;;  %v3891_v54 = vadd.f32 %v3823_v23, %v3258_v20  ;;  %v2761_v40 = vpack.c.b16 %v2743_v6, %v2742_v45  ;;  %v6013_v45 = vld [vmem:[%s6563_s6 + $0xb4] sm:$0xff] }
 0x237   : > { %v6112_v10 = vpack.c.bf16 %v5039_v24, %v5038_v44  ;;  %v4576_v41 = vand.u32 2147483647, %v8114_v51  ;;  %v8144_v42 = vadd.f32 1.0, %v6288_v25  ;;  %v5891_v28 = vmul.f32 -1.442695, %v8134_v3 }
 0x238   : > { %v2926_v7 = vadd.f32 %v2859_v2, %v8861_v31  ;;  %v4555_v22 = vmul.f32 %v8120_v55, %v4554_v49  ;;  %vm4558_vm10 = vweird.f32 %v8120_v55  ;;  %v4578_v17 = vand.u32 2147483648, %v8114_v51  ;;  %v3192_v62 = vpop.f32.mrf.mxu2 }
 0x239   : > { %6199 = vst [vmem:[%s8038_s15 + $0x8] sm:$0xff] %v6112_v10   ;;  %v4268_v58 = vadd.f32 %v4200_v9, %v3891_v54  ;;  %6291 = vrcp.f32 %v8144_v42  ;;  %v3602_v6 = vrot.slane %v3601_v11, 4  ;;  %v3611_v8 = vor.u32 %v3610_v61, %v3606_v48  ;;  %vm8161_vm11 = vmor %vm4557_vm8, %vm4558_vm10 }
 0x23a   : > { %v3614_v27 = vshll.u32 %v8141_v59, 16  ;;  %v6290_v20 = vpop.eup %6289  ;;  %v4556_v26 = vadd.f32 %v8120_v55, %v4555_v22  ;;  %6293 = vpow2.f32 %v5891_v28  ;;  %v3259_v44 = vadd.f32 %v3192_v62, %v2926_v7  ;;  %v2862_v18 = vpop.f32.mrf.mxu1 }
 0x23b   : > { %v4304_v2 = vmul.f32 %v7775_v12, %v4268_v58  ;;  %v4564_v24 = vor.u32 1.1754944e-38, %v4563_v56  ;;  %v4568_v47 = vmul.f32 %v6290_v20, %v8114_v51  ;;  %vm4572_vm12 = vweird.f32 %v8114_v51  ;;  %v4202_v11 = vpop.f32.mrf.mxu0 }
 0x23c   : > { %vm8167_vm13 = vcmp.eq.f32.partialorder %v4576_v41, 8.507059e+37  ;;  %v4560_v61 = vsel %vm8161_vm11, %v8120_v55, %v4556_v26  ;;  %v4579_v25 = vor.u32 1.1754944e-38, %v4578_v17  ;;  %v4591_v46 = vand.u32 2147483647, %v8144_v42  ;;  %2901 = vmatmul.bf16.gmra.mxu1 %v2761_v40 }
 0x23d   : > { %v8176_v10 = vadd.f32 %v7798_v1, %v4304_v2  ;;  %v4569_v56 = vsub.f32 1.0, %v4568_v47  ;;  %v4593_v49 = vand.u32 2147483648, %v8144_v42  ;;  %v3825_v54 = vpop.f32.mrf.mxu3  ;;  %3234 = vmatmul.bf16.gmra.mxu2 %v6013_v45  ;;  %v3607_v41 = vsel %vm6578_vm2, %v3602_v6, %v3606_v48 }
 0x23e   : > { %v3612_v28 = vrot.slane %v3611_v8, 4  ;;  %vm4573_vm14 = vweird.f32 %v6290_v20  ;;  %vm4587_vm15 = vweird.f32 %v8144_v42  ;;  %v3892_v31 = vadd.f32 %v3825_v54, %v3259_v44 }
 0x23f   : > { %v5892_v55 = vmul.f32 -1.442695, %v8176_v10  ;;  %v3616_v7 = vrot.slane %v3614_v27, 5  ;;  %v6292_v22 = vpop.eup %6291  ;;  %v4565_v40 = vsel %vm8136_vm9, %v4564_v24, %v4560_v61  ;;  %v4570_v17 = vmul.f32 %v6290_v20, %v4569_v56  ;;  %vm4574_vm1 = vmor %vm4572_vm12, %vm4573_vm14 }
 0x240   : > { %v5849_v58 = vrot.slane %v8068_v60, 9  ;;  %v4024_v62 = vrot.slane %v8098_v57, 5  ;;  %v6294_v45 = vpop.eup %6293  ;;  %v4583_v48 = vmul.f32 %v6292_v22, %v8144_v42  ;;  %vm8188_vm0 = vcmp.eq.f32.partialorder %v4591_v46, 8.507059e+37  ;;  %v3195_v26 = vpop.f32.mrf.mxu2 }
 0x241   : > { %6295 = vpow2.f32 %v5892_v55  ;;  %v3708_v8 = vunpack.c.l.b16 %v3607_v41  ;;  %v4571_v27 = vadd.f32 %v6290_v20, %v4570_v17  ;;  %v8192_v2 = vadd.f32 1.0, %v6294_v45  ;;  %v8868_v41 = vld [vmem:[#allocation3_spill] sm:$0xff] }
 0x242   : > { %v4269_v43 = vadd.f32 %v4202_v11, %v3892_v31  ;;  %v3617_v44 = vsel %vm6578_vm2, %v3612_v28, %v3616_v7  ;;  %v4976_v60 = vmul.f32 %v4565_v40, %v8004_v33  ;;  %v4584_v57 = vsub.f32 1.0, %v4583_v48  ;;  %v2864_v47 = vpop.f32.mrf.mxu1 }
 0x243   : > { %v4594_v9 = vor.u32 1.1754944e-38, %v4593_v49  ;;  %v3709_v24 = vunpack.c.l.b16 %v3617_v44  ;;  %v4575_v61 = vsel %vm4574_vm1, %v6290_v20, %v4571_v27  ;;  %6297 = vrcp.f32 %v8192_v2  ;;  %v4205_v46 = vpop.f32.mrf.mxu0  ;;  %v6014_v44 = vld [vmem:[%s6563_s6 + $0xc0] sm:$0xff] }
 0x244   : > { %v4025_v11 = vsel %vm6900_vm5, %v5849_v58, %v4024_v62  ;;  %v4026_v56 = vrot.slane %v4024_v62, 4  ;;  %v4580_v54 = vsel %vm8167_vm13, %v4579_v25, %v4575_v61  ;;  %v4585_v33 = vmul.f32 %v6292_v22, %v4584_v57 }
 0x245   : > { %vm4588_vm3 = vweird.f32 %v6292_v22  ;;  %v4305_v51 = vmul.f32 %v7775_v12, %v4269_v43  ;;  %v4977_v49 = vmul.f32 %v4580_v54, %v8058_v16  ;;  %v2927_v28 = vadd.f32 %v2862_v18, %v8868_v41  ;;  %v3828_v31 = vpop.f32.mrf.mxu3  ;;  %v8219_v16 = vld [vmem:[%s7855_s12 + $0x20] sm:$0xff]  }
 0x246   : > { %v3727_v20 = vpack.c.b16 %v3709_v24, %v3708_v8  ;;  %v4027_v55 = vrot.slane %v8141_v59, 5  ;;  %v5040_v40 = vadd.f32 %v6050_v36, %v4976_v60  ;;  %v4586_v17 = vadd.f32 %v6292_v22, %v4585_v33  ;;  %vm4589_vm4 = vmor %vm4587_vm15, %vm4588_vm3 }
 0x247   : > { %v6296_v7 = vpop.eup %6295  ;;  %v8212_v23 = vadd.f32 %v7798_v1, %v4305_v51  ;;  %v4085_v25 = vunpack.c.l.b16 %v4025_v11  ;;  %v5041_v58 = vadd.f32 %v6051_v21, %v4977_v49  ;;  %v3260_v18 = vadd.f32 %v3195_v26, %v2927_v28  ;;  %v8247_v49 = vld [vmem:[%s6563_s6 + $0xc0] sm:$0xf] }
 0x248   : > { %v8221_v59 = vadd.f32 1.0, %v6296_v7  ;;  %3867 = vmatmul.bf16.gmra.mxu3 %v3727_v20  ;;  %v4028_v36 = vsel %vm6900_vm5, %v4026_v56, %v4027_v55  ;;  %v4590_v62 = vsel %vm4589_vm4, %v6292_v22, %v4586_v17  ;;  %v4606_v45 = vand.u32 2147483647, %v8192_v2  ;;  %v3197_v48 = vpop.f32.mrf.mxu2  ;;  %v6466_v20 = vld [vmem:[%s6563_s6 + $0xb4] sm:$0xf] }
 0x249   : > { %v5893_v13 = vmul.f32 -1.442695, %v8212_v23  ;;  %v4086_v21 = vunpack.c.l.b16 %v4028_v36  ;;  %v6298_v42 = vpop.eup %6297  ;;  %v6117_v8 = vpack.c.bf16 %v5041_v58, %v5040_v40  ;;  %v4595_v27 = vsel %vm8188_vm0, %v4594_v9, %v4590_v62  ;;  %v6468_v58 = vld [vmem:[%s6563_s6 + $0xbc] sm:$0x1] }
 0x24a   : > { %v4608_v43 = vand.u32 2147483648, %v8192_v2  ;;  %6299 = vrcp.f32 %v8221_v59  ;;  %v4598_v26 = vmul.f32 %v6298_v42, %v8192_v2  ;;  %v6058_v22 = vunpack.c.l.bf16 %v8219_v16  ;;  %v8236_v24 = vpop.f32.mrf.mxu1 }
 0x24b   : > { %v6059_v60 = vunpack.c.h.bf16 %v8219_v16  ;;  %v2928_v57 = vadd.f32 %v2864_v47, %v7355_v52  ;;  %6200 = vst [vmem:[%s8038_s15 + $0x10] sm:$0xff] %v6117_v8   ;;  %v4978_v61 = vmul.f32 %v4595_v27, %v8088_v14  ;;  %6301 = vpow2.f32 %v5893_v13  ;;  %v4207_v11 = vpop.f32.mrf.mxu0 }
 0x24c   : > { %v4104_v6 = vpack.c.b16 %v4086_v21, %v4085_v25  ;;  %v3893_v9 = vadd.f32 %v3828_v31, %v3260_v18  ;;  %v4599_v56 = vsub.f32 1.0, %v4598_v26  ;;  %vm4602_vm6 = vweird.f32 %v8192_v2  ;;  %v6467_v31 = vld [vmem:[%s6563_s6 + $0xb8] sm:$0xf] }
 0x24d   : > { %vm8241_vm7 = vcmp.eq.f32.partialorder %v4606_v45, 8.507059e+37  ;;  %v4621_v52 = vand.u32 2147483647, %v8221_v59  ;;  %vm4603_vm8 = vweird.f32 %v6298_v42  ;;  %v4609_v47 = vor.u32 1.1754944e-38, %v4608_v43  ;;  %v3830_v51 = vpop.f32.mrf.mxu3  ;;  %3239 = vmatmul.bf16.gmra.mxu2 %v6014_v44 }
 0x24e   : > { %4244 = vmatmul.bf16.gmra.mxu0 %v4104_v6  ;;  %v4270_v14 = vadd.f32 %v4205_v46, %v3893_v9  ;;  %v3261_v33 = vadd.f32 %v3197_v48, %v2928_v57  ;;  %v4600_v41 = vmul.f32 %v6298_v42, %v4599_v56  ;;  %vm4617_vm9 = vweird.f32 %v8221_v59  ;;  %vm4604_vm11 = vmor %vm4602_vm6, %vm4603_vm8  ;;  %v8277_v6 = vld [vmem:[%s7855_s12 + $0x28] sm:$0xff]  }
 0x24f   : > { %v4623_v28 = vand.u32 2147483648, %v8221_v59  ;;  %v5626_v55 = vrot.slane %v6466_v20, 9  ;;  %v2688_v7 = vrot.slane %v6467_v31, 5  ;;  %v5042_v17 = vadd.f32 %v6054_v53, %v4978_v61 }
 0x250   : > { %v6300_v40 = vpop.eup %6299  ;;  %v4306_v46 = vmul.f32 %v7775_v12, %v4270_v14  ;;  %v3894_v25 = vadd.f32 %v3830_v51, %v3261_v33  ;;  %v2691_v36 = vrot.slane %v6468_v58, 5  ;;  %v4601_v18 = vadd.f32 %v6298_v42, %v4600_v41  ;;  %v8264_v48 = vpop.f32.mrf.mxu2 }
 0x251   : > { %v4613_v62 = vmul.f32 %v6300_v40, %v8221_v59  ;;  %vm8258_vm10 = vcmp.eq.f32.partialorder %v4621_v52, 8.507059e+37  ;;  %v3619_v13 = vshrl.u32 %v8247_v49, 16  ;;  %v3622_v21 = vshll.u32 %v8247_v49, 16  ;;  %v6302_v53 = vpop.eup %6301 }
 0x252   : > { %v8270_v8 = vadd.f32 %v7798_v1, %v4306_v46  ;;  %v4271_v27 = vadd.f32 %v4207_v11, %v3894_v25  ;;  %v2689_v43 = vsel %vm6900_vm5, %v5626_v55, %v2688_v7  ;;  %v2690_v44 = vrot.slane %v2688_v7, 4  ;;  %v8279_v9 = vpop.f32.mrf.mxu1 }
 0x253   : > { %v4605_v26 = vsel %vm4604_vm11, %v6298_v42, %v4601_v18  ;;  %v4614_v57 = vsub.f32 1.0, %v4613_v62  ;;  %vm4618_vm12 = vweird.f32 %v6300_v40  ;;  %v8274_v61 = vadd.f32 1.0, %v6302_v53  ;;  %v8285_v52 = vpop.f32.mrf.mxu0 }
 0x254   : > { %v4610_v2 = vsel %vm8241_vm7, %v4609_v47, %v4605_v26  ;;  %v5894_v56 = vmul.f32 -1.442695, %v8270_v8  ;;  %v4307_v11 = vmul.f32 %v7775_v12, %v4271_v27  ;;  %v2692_v42 = vsel %vm6900_vm5, %v2690_v44, %v2691_v36  ;;  %v5703_v12 = vld [vmem:[%s6563_s6 + $0xc4] sm:$0xf]  ;;  %vm4619_vm13 = vmor %vm4617_vm9, %vm4618_vm12  ;;  %v6015_v27 = vld [vmem:[%s6563_s6 + $0xcc] sm:$0xff] }
 0x255   : > { %v4979_v14 = vmul.f32 %v4610_v2, %v8134_v3  ;;  %v4615_v33 = vmul.f32 %v6300_v40, %v4614_v57  ;;  %6303 = vrcp.f32 %v8274_v61  ;;  %v2744_v51 = vunpack.c.l.b16 %v2689_v43  ;;  %v8296_v20 = vpop.f32.mrf.mxu3  ;;  %v8301_v3 = vld [vmem:[%s6563_s6 + $0xc8] sm:$0x1] }
 0x256   : > { %v4624_v41 = vor.u32 1.1754944e-38, %v4623_v28  ;;  %v6062_v54 = vunpack.c.l.bf16 %v8277_v6  ;;  %6305 = vpow2.f32 %v5894_v56  ;;  %v8293_v47 = vadd.f32 %v7798_v1, %v4307_v11 }
 0x257   : > { %v5043_v55 = vadd.f32 %v6055_v38, %v4979_v14  ;;  %v4616_v31 = vadd.f32 %v6300_v40, %v4615_v33  ;;  %v2745_v7 = vunpack.c.l.b16 %v2692_v42  ;;  %v3621_v46 = vrot.slane %v3619_v13, 4 }
 0x258   : > { %v4636_v1 = vand.u32 2147483647, %v8274_v61  ;;  %v5895_v28 = vmul.f32 -1.442695, %v8293_v47  ;;  %v2929_v25 = vadd.f32 %v8236_v24, %v7366_v32  ;;  %v3624_v0 = vrot.slane %v3622_v21, 5  ;;  %v8310_v62 = vpop.f32.mrf.mxu2 }
 0x259   : > { %v6122_v38 = vpack.c.bf16 %v5043_v55, %v5042_v17  ;;  %v4620_v58 = vsel %vm4619_vm13, %v6300_v40, %v4616_v31  ;;  %v2762_v36 = vpack.c.b16 %v2745_v7, %v2744_v51  ;;  %v3628_v18 = vshll.u32 %v5703_v12, 16  ;;  %v8379_v51 = vld [vmem:[%s6563_s6 + $0xcc] sm:$0xf] }
 0x25a   : > { %v4625_v13 = vsel %vm8258_vm10, %v4624_v41, %v4620_v58  ;;  %6307 = vpow2.f32 %v5895_v28  ;;  %v3625_v59 = vor.u32 %v3624_v0, %v3621_v46  ;;  %v3632_v53 = vshrl.u32 %v5703_v12, 16  ;;  %v8319_v17 = vpop.f32.mrf.mxu1 }
 0x25b   : > { %v6304_v43 = vpop.eup %6303  ;;  %6201 = vst [vmem:[%s8038_s15 + $0x18] sm:$0xff] %v6122_v38   ;;  %v4638_v44 = vand.u32 2147483648, %v8274_v61  ;;  %v6063_v32 = vunpack.c.h.bf16 %v8277_v6  ;;  %2906 = vmatmul.bf16.gmra.mxu1 %v2762_v36  ;;  %v3630_v24 = vrot.slane %v3628_v18, 5  ;;  %v3638_v40 = vshll.u32 %v8301_v3, 16  ;;  %v8323_v56 = vpop.f32.mrf.mxu0 }
 0x25c   : > { %v6306_v21 = vpop.eup %6305  ;;  %v4628_v45 = vmul.f32 %v6304_v43, %v8274_v61  ;;  %v3626_v26 = vrot.slane %v3625_v59, 4  ;;  %v3634_v57 = vrot.slane %v3632_v53, 4  ;;  %v5850_v2 = vrot.slane %v8247_v49, 9 }
 0x25d   : > { %v4980_v11 = vmul.f32 %v4625_v13, %v8176_v10  ;;  %vm4632_vm14 = vweird.f32 %v8274_v61  ;;  %v8327_v42 = vadd.f32 1.0, %v6306_v21  ;;  %v4031_v14 = vrot.slane %v5703_v12, 5  ;;  %v8333_v31 = vpop.f32.mrf.mxu3  ;;  %3244 = vmatmul.bf16.gmra.mxu2 %v6015_v27 }
 0x25e   : > { %v4629_v33 = vsub.f32 1.0, %v4628_v45  ;;  %vm8329_vm15 = vcmp.eq.f32.partialorder %v4636_v1, 8.507059e+37  ;;  %v3635_v41 = vor.u32 %v3634_v57, %v3630_v24  ;;  %v3640_v55 = vrot.slane %v3638_v40, 5 }
 0x25f   : > { %vm4633_vm0 = vweird.f32 %v6304_v43  ;;  %v4639_v49 = vor.u32 1.1754944e-38, %v4638_v44  ;;  %6309 = vrcp.f32 %v8327_v42  ;;  %v3631_v10 = vsel %vm6578_vm2, %v3626_v26, %v3630_v24 }
 0x260   : > { %v6308_v7 = vpop.eup %6307  ;;  %v4630_v46 = vmul.f32 %v6304_v43, %v4629_v33  ;;  %v3636_v12 = vrot.slane %v3635_v41, 4  ;;  %v4032_v1 = vsel %vm6900_vm5, %v5850_v2, %v4031_v14  ;;  %v4034_v28 = vrot.slane %v8301_v3, 5  ;;  %v8349_v27 = vpop.f32.mrf.mxu2  ;;  %vm4634_vm1 = vmor %vm4632_vm14, %vm4633_vm0 }
 0x261   : > { %v5044_v0 = vadd.f32 %v6058_v22, %v4980_v11  ;;  %v4653_v38 = vand.u32 2147483648, %v8327_v42  ;;  %v8344_v58 = vadd.f32 1.0, %v6308_v7  ;;  %v4033_v36 = vrot.slane %v4031_v14, 4 }
 0x262   : > { %v4631_v18 = vadd.f32 %v6304_v43, %v4630_v46  ;;  %v4651_v13 = vand.u32 2147483647, %v8327_v42  ;;  %v3641_v59 = vsel %vm6578_vm2, %v3636_v12, %v3640_v55  ;;  %v3710_v53 = vunpack.c.l.b16 %v3631_v10  ;;  %v8362_v26 = vpop.f32.mrf.mxu1  ;;  %v6469_v12 = vld [vmem:[%s6563_s6 + $0xc0] sm:$0xf] }
 0x263   : > { %6311 = vrcp.f32 %v8344_v58  ;;  %v4668_v22 = vand.u32 2147483648, %v8344_v58  ;;  %v4087_v3 = vunpack.c.l.b16 %v4032_v1  ;;  %v3262_v44 = vadd.f32 %v8264_v48, %v2929_v25  ;;  %v8360_v45 = vpop.f32.mrf.mxu0 }
 0x264   : > { %v4635_v24 = vsel %vm4634_vm1, %v6304_v43, %v4631_v18  ;;  %vm4647_vm3 = vweird.f32 %v8327_v42  ;;  %v3711_v40 = vunpack.c.l.b16 %v3641_v59  ;;  %v4035_v21 = vsel %vm6900_vm5, %v4033_v36, %v4034_v28  ;;  %v6470_v28 = vld [vmem:[%s6563_s6 + $0xc4] sm:$0xf] }
 0x265   : > { %v8364_v61 = vpop.eup %6309  ;;  %v4640_v57 = vsel %vm8329_vm15, %v4639_v49, %v4635_v24  ;;  %v4654_v2 = vor.u32 1.1754944e-38, %v4653_v38  ;;  %v4666_v48 = vand.u32 2147483647, %v8344_v58  ;;  %v4088_v25 = vunpack.c.l.b16 %v4035_v21  ;;  %v8381_v55 = vpop.f32.mrf.mxu3 }
 0x266   : > { %v4981_v43 = vmul.f32 %v4640_v57, %v8212_v23  ;;  %v4643_v11 = vmul.f32 %v8364_v61, %v8327_v42  ;;  %vm8372_vm4 = vcmp.eq.f32.partialorder %v4651_v13, 8.507059e+37  ;;  %v8376_v33 = vor.u32 1.1754944e-38, %v4668_v22  ;;  %v6471_v13 = vld [vmem:[%s6563_s6 + $0xc8] sm:$0x1] }
 0x267   : > { %v3728_v41 = vpack.c.b16 %v3711_v40, %v3710_v53  ;;  %vm4648_vm6 = vweird.f32 %v8364_v61  ;;  %v4105_v49 = vpack.c.b16 %v4088_v25, %v4087_v3  ;;  %v3895_v23 = vadd.f32 %v8296_v20, %v3262_v44 }
 0x268   : > { %v2930_v10 = vadd.f32 %v8279_v9, %v7381_v39  ;;  %v5045_v7 = vadd.f32 %v6059_v60, %v4981_v43  ;;  %v4644_v46 = vsub.f32 1.0, %v4643_v11  ;;  %vm4662_vm7 = vweird.f32 %v8344_v58  ;;  %v8404_v22 = vpop.f32.mrf.mxu2  ;;  %vm4649_vm10 = vmor %vm4647_vm3, %vm4648_vm6 }
 0x269   : > { %3872 = vmatmul.bf16.gmra.mxu3 %v3728_v41  ;;  %v5627_v1 = vrot.slane %v6469_v12, 9  ;;  %v2695_v38 = vrot.slane %v6470_v28, 5  ;;  %v6312_v36 = vpop.eup %6311  ;;  %4249 = vmatmul.bf16.gmra.mxu0 %v4105_v49  ;;  %v4272_v18 = vadd.f32 %v8285_v52, %v3895_v23  ;;  %v2698_v39 = vrot.slane %v6471_v13, 5 }
 0x26a   : > { %v3263_v20 = vadd.f32 %v8310_v62, %v2930_v10  ;;  %v3643_v16 = vshrl.u32 %v8379_v51, 16  ;;  %v6127_v60 = vpack.c.bf16 %v5045_v7, %v5044_v0  ;;  %v4645_v9 = vmul.f32 %v8364_v61, %v4644_v46  ;;  %v8409_v62 = vld [vmem:[%s8824_s2] ss:$0 sm:$0xff] }
 0x26b   : > { %v4658_v59 = vmul.f32 %v6312_v36, %v8344_v58  ;;  %vm8398_vm8 = vcmp.eq.f32.partialorder %v4666_v48, 8.507059e+37  ;;  %v2931_v52 = vadd.f32 %v8319_v17, %v7394_v35  ;;  %v4308_v0 = vmul.f32 %v8409_v62, %v4272_v18  ;;  %v5706_v17 = vld [vmem:[%s6563_s6 + $0xd0] sm:$0xf]  ;;  %v8418_v57 = vpop.f32.mrf.mxu0  ;;  %v8420_v48 = vpop.f32.mrf.mxu1 }
 0x26c   : > { %v3896_v3 = vadd.f32 %v8333_v31, %v3263_v20  ;;  %v2696_v44 = vsel %vm6900_vm5, %v5627_v1, %v2695_v38  ;;  %v2697_v24 = vrot.slane %v2695_v38, 4  ;;  %6202 = vst [vmem:[%s8038_s15 + $0x20] sm:$0xff] %v6127_v60   ;;  %v4646_v40 = vadd.f32 %v8364_v61, %v4645_v9  ;;  %v8429_v31 = vld [vmem:[%s8825_s3] ss:$0 sm:$0xff] }
 0x26d   : > { %v4659_v21 = vsub.f32 1.0, %v4658_v59  ;;  %vm4663_vm9 = vweird.f32 %v6312_v36  ;;  %v2746_v35 = vunpack.c.l.b16 %v2696_v44  ;;  %v8432_v25 = vadd.f32 %v8429_v31, %v4308_v0  ;;  %v8439_v7 = vpop.f32.mrf.mxu3 }
 0x26e   : > { %v4273_v43 = vadd.f32 %v8323_v56, %v3896_v3  ;;  %v2699_v11 = vsel %vm6900_vm5, %v2697_v24, %v2698_v39  ;;  %v3645_v41 = vrot.slane %v3643_v16, 4  ;;  %v4650_v49 = vsel %vm4649_vm10, %v8364_v61, %v4646_v40  ;;  %v5707_v56 = vld [vmem:[%s6563_s6 + $0xd4] sm:$0x1]  ;;  %vm4664_vm11 = vmor %vm4662_vm7, %vm4663_vm9 }
 0x26f   : > { %v4660_v23 = vmul.f32 %v6312_v36, %v4659_v21  ;;  %v2747_v10 = vunpack.c.l.b16 %v2699_v11  ;;  %v3646_v42 = vshll.u32 %v8379_v51, 16  ;;  %v4655_v46 = vsel %vm8372_vm4, %v4654_v2, %v4650_v49 }
 0x270   : > { %v5896_v12 = vmul.f32 -1.442695, %v8432_v25  ;;  %v4309_v1 = vmul.f32 %v8409_v62, %v4273_v43  ;;  %v3652_v28 = vshll.u32 %v5706_v17, 16  ;;  %v4982_v38 = vmul.f32 %v4655_v46, %v8270_v8  ;;  %v3210_v9 = vpop.f32.mrf.mxu2 }
 0x271   : > { %v4661_v18 = vadd.f32 %v6312_v36, %v4660_v23  ;;  %v2763_v20 = vpack.c.b16 %v2747_v10, %v2746_v35  ;;  %v3648_v61 = vrot.slane %v3646_v42, 5  ;;  %v3656_v14 = vshrl.u32 %v5706_v17, 16 }
 0x272   : > { %6313 = vpow2.f32 %v5896_v12  ;;  %v8451_v13 = vadd.f32 %v8429_v31, %v4309_v1  ;;  %v3654_v2 = vrot.slane %v3652_v28, 5  ;;  %v5046_v39 = vadd.f32 %v6062_v54, %v4982_v38 }
 0x273   : > { %v4665_v16 = vsel %vm4664_vm11, %v6312_v36, %v4661_v18  ;;  %2911 = vmatmul.bf16.gmra.mxu1 %v2763_v20  ;;  %v3649_v60 = vor.u32 %v3648_v61, %v3645_v41  ;;  %v3662_v8 = vshll.u32 %v5707_v56, 16  ;;  %v3658_v0 = vrot.slane %v3656_v14, 4  ;;  %v4220_v54 = vpop.f32.mrf.mxu0  ;;  %v2879_v36 = vpop.f32.mrf.mxu1 }
 0x274   : > { %v4670_v59 = vsel %vm8398_vm8, %v8376_v33, %v4665_v16  ;;  %v5897_v58 = vmul.f32 -1.442695, %v8451_v13  ;;  %v5851_v3 = vrot.slane %v8379_v51, 9  ;;  %v4038_v21 = vrot.slane %v5706_v17, 5 }
 0x275   : > { %v4983_v44 = vmul.f32 %v4670_v59, %v8293_v47  ;;  %v3650_v24 = vrot.slane %v3649_v60, 4  ;;  %v3664_v40 = vrot.slane %v3662_v8, 5  ;;  %v3659_v35 = vor.u32 %v3658_v0, %v3654_v2  ;;  %v3843_v41 = vpop.f32.mrf.mxu3 }
 0x276   : > { %6315 = vpow2.f32 %v5897_v58  ;;  %v4041_v43 = vrot.slane %v5707_v56, 5  ;;  %v3264_v11 = vadd.f32 %v8349_v27, %v2931_v52  ;;  %v4039_v47 = vsel %vm6900_vm5, %v5851_v3, %v4038_v21 }
 0x277   : > { %v5047_v33 = vadd.f32 %v6063_v32, %v4983_v44  ;;  %v3655_v53 = vsel %vm6578_vm2, %v3650_v24, %v3654_v2  ;;  %v4040_v51 = vrot.slane %v4038_v21, 4  ;;  %v3660_v49 = vrot.slane %v3659_v35, 4 }
 0x278   : > { %v6314_v17 = vpop.eup %6313  ;;  %v4089_v23 = vunpack.c.l.b16 %v4039_v47  ;;  %v3897_v6 = vadd.f32 %v8381_v55, %v3264_v11  ;;  %v3712_v52 = vunpack.c.l.b16 %v3655_v53  ;;  %v2932_v12 = vadd.f32 %v8362_v26, %v7418_v37  ;;  %v3212_v56 = vpop.f32.mrf.mxu2  ;;  %v8486_v37 = vld [vmem:[%s7855_s12 + $0x30] sm:$0xff]  }
 0x279   : > { %v6132_v10 = vpack.c.bf16 %v5047_v33, %v5046_v39  ;;  %v8468_v42 = vadd.f32 1.0, %v6314_v17  ;;  %v4042_v27 = vsel %vm6900_vm5, %v4040_v51, %v4041_v43  ;;  %v3665_v32 = vsel %vm6578_vm2, %v3660_v49, %v3664_v40 }
 0x27a   : > { %v4090_v46 = vunpack.c.l.b16 %v4042_v27  ;;  %v2933_v1 = vadd.f32 %v8420_v48, %v7435_v15  ;;  %v3713_v28 = vunpack.c.l.b16 %v3665_v32  ;;  %v4274_v55 = vadd.f32 %v8360_v45, %v3897_v6 }
 0x27b   : > { %6203 = vst [vmem:[%s8038_s15 + $0x28] sm:$0xff] %v6132_v10   ;;  %6317 = vrcp.f32 %v8468_v42  ;;  %v3265_v30 = vadd.f32 %v8404_v22, %v2932_v12  ;;  %v4222_v61 = vpop.f32.mrf.mxu0  ;;  %v2882_v2 = vpop.f32.mrf.mxu1  ;;  %v2934_v48 = vadd.f32 %v2879_v36, %v7460_v50  ;;  %v6066_v8 = vunpack.c.l.bf16 %v8486_v37 }
 0x27c   : > { %v6316_v63 = vpop.eup %6315  ;;  %v4106_v38 = vpack.c.b16 %v4090_v46, %v4089_v23  ;;  %v3266_v20 = vadd.f32 %v3210_v9, %v2933_v1  ;;  %v3729_v26 = vpack.c.b16 %v3713_v28, %v3712_v52  ;;  %v4310_v14 = vmul.f32 %v8409_v62, %v4274_v55 }
 0x27d   : > { %v8483_v18 = vadd.f32 1.0, %v6316_v63  ;;  %v3898_v15 = vadd.f32 %v8439_v7, %v3265_v30  ;;  %v3845_v45 = vpop.f32.mrf.mxu3  ;;  %v3267_v9 = vadd.f32 %v3212_v56, %v2934_v48  ;;  %v2935_v50 = vadd.f32 %v2882_v2, %v7475_v29 }
 0x27e   : > { %4254 = vmatmul.bf16.gmra.mxu0 %v4106_v38  ;;  %3877 = vmatmul.bf16.gmra.mxu3 %v3729_v26  ;;  %v8493_v22 = vadd.f32 %v8429_v31, %v4310_v14  ;;  %v3899_v16 = vadd.f32 %v3843_v41, %v3266_v20  ;;  %v4681_v0 = vand.u32 2147483647, %v8468_v42  ;;  %v4683_v3 = vand.u32 2147483648, %v8468_v42 }
 0x27f   : > { %6319 = vrcp.f32 %v8483_v18  ;;  %v4275_v39 = vadd.f32 %v8418_v57, %v3898_v15  ;;  %v3900_v24 = vadd.f32 %v3845_v45, %v3267_v9  ;;  %vm4677_vm2 = vweird.f32 %v8468_v42 }
 0x280   : > { %v5898_v7 = vmul.f32 -1.442695, %v8493_v22  ;;  %v4276_v44 = vadd.f32 %v4220_v54, %v3899_v16  ;;  %v3215_v57 = vpop.f32.mrf.mxu2  ;;  %v6067_v43 = vunpack.c.h.bf16 %v8486_v37  ;;  %vm8511_vm12 = vcmp.eq.f32.partialorder %v4681_v0, 8.507059e+37 }
 0x281   : > { %v6318_v60 = vpop.eup %6317  ;;  %v4311_v58 = vmul.f32 %v8409_v62, %v4275_v39  ;;  %v3268_v36 = vadd.f32 %v3215_v57, %v2935_v50  ;;  %v4277_v11 = vadd.f32 %v4222_v61, %v3900_v24  ;;  %v4684_v17 = vor.u32 1.1754944e-38, %v4683_v3 }
 0x282   : > { %v4673_v59 = vmul.f32 %v6318_v60, %v8468_v42  ;;  %6321 = vpow2.f32 %v5898_v7  ;;  %v4312_v29 = vmul.f32 %v8409_v62, %v4276_v44  ;;  %vm4678_vm5 = vweird.f32 %v6318_v60  ;;  %v8544_v7 = vld [vmem:[%s7855_s12 + $0x38] sm:$0xff]  }
 0x283   : > { %v8504_v21 = vadd.f32 %v8429_v31, %v4311_v58  ;;  %v4225_v33 = vpop.f32.mrf.mxu0  ;;  %v2884_v53 = vpop.f32.mrf.mxu1  ;;  %v4313_v23 = vmul.f32 %v8409_v62, %v4277_v11  ;;  %vm4679_vm13 = vmor %vm4677_vm2, %vm4678_vm5  ;;  %v4696_v52 = vand.u32 2147483647, %v8483_v18  ;;  %v4698_v46 = vand.u32 2147483648, %v8483_v18  ;;  %v8547_v58 = vld [vmem:[%s7855_s12 + $0x40] sm:$0xff]  }
 0x284   : > { %v4674_v40 = vsub.f32 1.0, %v4673_v59  ;;  %v8516_v49 = vadd.f32 %v8429_v31, %v4312_v29  ;;  %vm4692_vm15 = vweird.f32 %v8483_v18  ;;  %v2936_v26 = vadd.f32 %v2884_v53, %v7496_v4 }
 0x285   : > { %v6320_v35 = vpop.eup %6319  ;;  %v5899_v51 = vmul.f32 -1.442695, %v8504_v21  ;;  %v3848_v10 = vpop.f32.mrf.mxu3  ;;  %v8525_v1 = vadd.f32 %v8429_v31, %v4313_v23  ;;  %vm4697_vm1 = vcmp.eq.f32.partialorder %v4696_v52, 8.507059e+37  ;;  %v4699_v15 = vor.u32 1.1754944e-38, %v4698_v46 }
 0x286   : > { %v4675_v47 = vmul.f32 %v6318_v60, %v4674_v40  ;;  %v4688_v54 = vmul.f32 %v6320_v35, %v8483_v18  ;;  %v3901_v32 = vadd.f32 %v3848_v10, %v3268_v36  ;;  %v5900_v12 = vmul.f32 -1.442695, %v8516_v49 }
 0x287   : > { %6323 = vpow2.f32 %v5899_v51  ;;  %vm4693_vm14 = vweird.f32 %v6320_v35  ;;  %v5901_v42 = vmul.f32 -1.442695, %v8525_v1  ;;  %v6070_v36 = vunpack.c.l.bf16 %v8544_v7 }
 0x288   : > { %v4676_v27 = vadd.f32 %v6318_v60, %v4675_v47  ;;  %v4689_v6 = vsub.f32 1.0, %v4688_v54  ;;  %v6322_v56 = vpop.eup %6321  ;;  %v4278_v38 = vadd.f32 %v4225_v33, %v3901_v32  ;;  %6325 = vpow2.f32 %v5900_v12  ;;  %v3217_v20 = vpop.f32.mrf.mxu2  ;;  %vm4694_vm0 = vmor %vm4692_vm15, %vm4693_vm14 }
 0x289   : > { %v8529_v30 = vadd.f32 1.0, %v6322_v56  ;;  %v6071_v29 = vunpack.c.h.bf16 %v8544_v7  ;;  %v6074_v37 = vunpack.c.l.bf16 %v8547_v58 }
 0x28a   : > { %v4680_v63 = vsel %vm4679_vm13, %v6318_v60, %v4676_v27  ;;  %v4690_v28 = vmul.f32 %v6320_v35, %v4689_v6  ;;  %v4314_v2 = vmul.f32 %v8409_v62, %v4278_v38  ;;  %v3269_v60 = vadd.f32 %v3217_v20, %v2936_v26 }
 0x28b   : > { %v4685_v55 = vsel %vm8511_vm12, %v4684_v17, %v4680_v63  ;;  %6327 = vrcp.f32 %v8529_v30  ;;  %v4227_v48 = vpop.f32.mrf.mxu0  ;;  %v2887_v45 = vpop.f32.mrf.mxu1  ;;  %v4711_v44 = vand.u32 2147483647, %v8529_v30  ;;  %vm4707_vm3 = vweird.f32 %v8529_v30 }
 0x28c   : > { %v4691_v61 = vadd.f32 %v6320_v35, %v4690_v28  ;;  %v4984_v14 = vmul.f32 %v4685_v55, %v8432_v25  ;;  %6329 = vpow2.f32 %v5901_v42  ;;  %v8538_v18 = vadd.f32 %v8429_v31, %v4314_v2 }
 0x28d   : > { %v6324_v39 = vpop.eup %6323  ;;  %v3850_v25 = vpop.f32.mrf.mxu3  ;;  %vm8564_vm4 = vcmp.eq.f32.partialorder %v4711_v44, 8.507059e+37  ;;  %v2937_v6 = vadd.f32 %v2887_v45, %v7516_v5 }
 0x28e   : > { %v4695_v16 = vsel %vm4694_vm0, %v6320_v35, %v4691_v61  ;;  %v8540_v4 = vadd.f32 1.0, %v6324_v39  ;;  %v5902_v50 = vmul.f32 -1.442695, %v8538_v18  ;;  %v6326_v0 = vpop.eup %6325  ;;  %v5048_v3 = vadd.f32 %v6066_v8, %v4984_v14 }
 0x28f   : > { %v4700_v9 = vsel %vm4697_vm1, %v4699_v15, %v4695_v16  ;;  %v8554_v57 = vadd.f32 1.0, %v6326_v0  ;;  %v3902_v40 = vadd.f32 %v3850_v25, %v3269_v60  ;;  %v4713_v35 = vand.u32 2147483648, %v8529_v30 }
 0x290   : > { %v4985_v59 = vmul.f32 %v4700_v9, %v8451_v13  ;;  %6331 = vrcp.f32 %v8540_v4  ;;  %v3220_v8 = vpop.f32.mrf.mxu2  ;;  %v4726_v54 = vand.u32 2147483647, %v8540_v4  ;;  %v4728_v10 = vand.u32 2147483648, %v8540_v4 }
 0x291   : > { %6333 = vpow2.f32 %v5902_v50  ;;  %v6328_v13 = vpop.eup %6327  ;;  %v4279_v27 = vadd.f32 %v4227_v48, %v3902_v40  ;;  %v4714_v52 = vor.u32 1.1754944e-38, %v4713_v35  ;;  %vm4722_vm6 = vweird.f32 %v8540_v4 }
 0x292   : > { %v5049_v24 = vadd.f32 %v6067_v43, %v4985_v59  ;;  %v6330_v11 = vpop.eup %6329  ;;  %v4703_v53 = vmul.f32 %v6328_v13, %v8529_v30  ;;  %6335 = vrcp.f32 %v8554_v57  ;;  %v6075_v43 = vunpack.c.h.bf16 %v8547_v58 }
 0x293   : > { %v8569_v51 = vadd.f32 1.0, %v6330_v11  ;;  %v4230_v41 = vpop.f32.mrf.mxu0  ;;  %v2889_v17 = vpop.f32.mrf.mxu1  ;;  %v4741_v46 = vand.u32 2147483647, %v8554_v57  ;;  %vm4708_vm7 = vweird.f32 %v6328_v13  ;;  %v3270_v38 = vadd.f32 %v3220_v8, %v2937_v6 }
 0x294   : > { %v6137_v33 = vpack.c.bf16 %v5049_v24, %v5048_v3  ;;  %v4704_v23 = vsub.f32 1.0, %v4703_v53  ;;  %vm8578_vm8 = vcmp.eq.f32.partialorder %v4726_v54, 8.507059e+37  ;;  %v4743_v5 = vand.u32 2147483648, %v8554_v57  ;;  %vm4709_vm10 = vmor %vm4707_vm3, %vm4708_vm7 }
 0x295   : > { %6337 = vrcp.f32 %v8569_v51  ;;  %v3853_v12 = vpop.f32.mrf.mxu3  ;;  %v4315_v20 = vmul.f32 %v8409_v62, %v4279_v27  ;;  %v4729_v14 = vor.u32 1.1754944e-38, %v4728_v10  ;;  %vm4737_vm9 = vweird.f32 %v8554_v57 }
 0x296   : > { %6204 = vst [vmem:[%s8038_s15 + $0x30] sm:$0xff] %v6137_v33   ;;  %v6332_v32 = vpop.eup %6331  ;;  %v4705_v63 = vmul.f32 %v6328_v13, %v4704_v23  ;;  %vm8590_vm11 = vcmp.eq.f32.partialorder %v4741_v46, 8.507059e+37  ;;  %v2938_v45 = vadd.f32 %v2889_v17, %v7536_v34  ;;  %v3903_v9 = vadd.f32 %v3853_v12, %v3270_v38 }
 0x297   : > { %v6334_v56 = vpop.eup %6333  ;;  %v4718_v28 = vmul.f32 %v6332_v32, %v8540_v4  ;;  %vm4723_vm2 = vweird.f32 %v6332_v32  ;;  %v4744_v50 = vor.u32 1.1754944e-38, %v4743_v5  ;;  %v8599_v0 = vadd.f32 %v8429_v31, %v4315_v20 }
 0x298   : > { %v8583_v42 = vadd.f32 1.0, %v6334_v56  ;;  %v6336_v61 = vpop.eup %6335  ;;  %v4706_v2 = vadd.f32 %v6328_v13, %v4705_v63  ;;  %v3222_v39 = vpop.f32.mrf.mxu2  ;;  %vm4752_vm5 = vweird.f32 %v8569_v51  ;;  %v4756_v34 = vand.u32 2147483647, %v8569_v51  ;;  %vm4724_vm12 = vmor %vm4722_vm6, %vm4723_vm2 }
 0x299   : > { %v4719_v26 = vsub.f32 1.0, %v4718_v28  ;;  %v4733_v15 = vmul.f32 %v6336_v61, %v8554_v57  ;;  %vm4738_vm13 = vweird.f32 %v6336_v61  ;;  %v5903_v8 = vmul.f32 -1.442695, %v8599_v0 }
 0x29a   : > { %6339 = vrcp.f32 %v8583_v42  ;;  %v4710_v16 = vsel %vm4709_vm10, %v6328_v13, %v4706_v2  ;;  %v4758_v47 = vand.u32 2147483648, %v8569_v51  ;;  %v4280_v54 = vadd.f32 %v4230_v41, %v3903_v9  ;;  %vm4739_vm14 = vmor %vm4737_vm9, %vm4738_vm13  ;;  %v8887_v9 = vld [vmem:[#allocation4_spill] sm:$0xff] }
 0x29b   : > { %v4720_v60 = vmul.f32 %v6332_v32, %v4719_v26  ;;  %v6338_v25 = vpop.eup %6337  ;;  %v4715_v30 = vsel %vm8564_vm4, %v4714_v52, %v4710_v16  ;;  %v4734_v59 = vsub.f32 1.0, %v4733_v15  ;;  %v4232_v3 = vpop.f32.mrf.mxu0  ;;  %6341 = vpow2.f32 %v5903_v8 }
 0x29c   : > { %v2892_v44 = vpop.f32.mrf.mxu1  ;;  %v4748_v40 = vmul.f32 %v6338_v25, %v8569_v51  ;;  %v4986_v13 = vmul.f32 %v4715_v30, %v8493_v22  ;;  %v3271_v22 = vadd.f32 %v3222_v39, %v2938_v45  ;;  %vm4753_vm15 = vweird.f32 %v6338_v25 }
 0x29d   : > { %v4721_v24 = vadd.f32 %v6332_v32, %v4720_v60  ;;  %v4735_v35 = vmul.f32 %v6336_v61, %v4734_v59  ;;  %v3855_v11 = vpop.f32.mrf.mxu3  ;;  %v4316_v52 = vmul.f32 %v8409_v62, %v4280_v54  ;;  %vm4754_vm0 = vmor %vm4752_vm5, %vm4753_vm15  ;;  %vm4757_vm1 = vcmp.eq.f32.partialorder %v4756_v34, 8.507059e+37 }
 0x29e   : > { %v4749_v53 = vsub.f32 1.0, %v4748_v40  ;;  %v5050_v41 = vadd.f32 %v6070_v36, %v4986_v13  ;;  %v3904_v46 = vadd.f32 %v3855_v11, %v3271_v22  ;;  %v4759_v28 = vor.u32 1.1754944e-38, %v4758_v47  ;;  %v6192_v22 = vld [vmem:[%s7855_s12 + $0x48] sm:$0xff]  }
 0x29f   : > { %v4725_v33 = vsel %vm4724_vm12, %v6332_v32, %v4721_v24  ;;  %v4736_v10 = vadd.f32 %v6336_v61, %v4735_v35  ;;  %v8628_v36 = vadd.f32 %v8429_v31, %v4316_v52  ;;  %v4773_v24 = vand.u32 2147483648, %v8583_v42 }
 0x2a0   : > { %v8609_v17 = vpop.eup %6339  ;;  %v4730_v23 = vsel %vm8578_vm8, %v4729_v14, %v4725_v33  ;;  %v4750_v27 = vmul.f32 %v6338_v25, %v4749_v53  ;;  %v3225_v12 = vpop.f32.mrf.mxu2  ;;  %v4281_v38 = vadd.f32 %v4232_v3, %v3904_v46  ;;  %vm4767_vm4 = vweird.f32 %v8583_v42 }
 0x2a1   : > { %v4987_v4 = vmul.f32 %v4730_v23, %v8504_v21  ;;  %v4763_v6 = vmul.f32 %v8609_v17, %v8583_v42  ;;  %v4740_v32 = vsel %vm4739_vm14, %v6336_v61, %v4736_v10  ;;  %v2939_v61 = vadd.f32 %v2892_v44, %v7555_v19  ;;  %v6342_v2 = vpop.eup %6341 }
 0x2a2   : > { %v4745_v21 = vsel %vm8590_vm11, %v4744_v50, %v4740_v32  ;;  %v4751_v57 = vadd.f32 %v6338_v25, %v4750_v27  ;;  %v5904_v51 = vmul.f32 -1.442695, %v8628_v36  ;;  %v4317_v14 = vmul.f32 %v8409_v62, %v4281_v38 }
 0x2a3   : > { %v5051_v56 = vadd.f32 %v6071_v29, %v4987_v4  ;;  %v4764_v63 = vsub.f32 1.0, %v4763_v6  ;;  %v4235_v55 = vpop.f32.mrf.mxu0  ;;  %v4988_v7 = vmul.f32 %v4745_v21, %v8516_v49  ;;  %v8637_v39 = vadd.f32 1.0, %v6342_v2 }
 0x2a4   : > { %v2894_v5 = vpop.f32.mrf.mxu1  ;;  %v4755_v29 = vsel %vm4754_vm0, %v6338_v25, %v4751_v57  ;;  %v3272_v16 = vadd.f32 %v3225_v12, %v2939_v61  ;;  %6343 = vpow2.f32 %v5904_v51  ;;  %v8640_v49 = vadd.f32 %v8429_v31, %v4317_v14 }
 0x2a5   : > { %v6142_v20 = vpack.c.bf16 %v5051_v56, %v5050_v41  ;;  %v4760_v26 = vsel %vm4757_vm1, %v4759_v28, %v4755_v29  ;;  %v3858_v15 = vpop.f32.mrf.mxu3  ;;  %v4765_v45 = vmul.f32 %v8609_v17, %v4764_v63  ;;  %v5052_v19 = vadd.f32 %v6074_v37, %v4988_v7 }
 0x2a6   : > { %v4989_v48 = vmul.f32 %v4760_v26, %v8525_v1  ;;  %6345 = vrcp.f32 %v8637_v39  ;;  %v2940_v1 = vadd.f32 %v2894_v5, %v8887_v9  ;;  %vm4768_vm3 = vweird.f32 %v8609_v17 }
 0x2a7   : > { %6205 = vst [vmem:[%s8038_s15 + $0x38] sm:$0xff] %v6142_v20   ;;  %v5905_v25 = vmul.f32 -1.442695, %v8640_v49  ;;  %v4766_v50 = vadd.f32 %v8609_v17, %v4765_v45  ;;  %v3905_v3 = vadd.f32 %v3858_v15, %v3272_v16  ;;  %v4771_v58 = vand.u32 2147483647, %v8583_v42  ;;  %vm4769_vm6 = vmor %vm4767_vm4, %vm4768_vm3  ;;  %v8888_v42 = vld [vmem:[#allocation5_spill] sm:$0xff] }
 0x2a8   : > { %v5053_v60 = vadd.f32 %v6075_v43, %v4989_v48  ;;  %v3227_v30 = vpop.f32.mrf.mxu2  ;;  %v4774_v47 = vor.u32 1.1754944e-38, %v4773_v24  ;;  %v4786_v32 = vand.u32 2147483647, %v8637_v39  ;;  %v4788_v52 = vand.u32 2147483648, %v8637_v39 }
 0x2a9   : > { %v3273_v44 = vadd.f32 %v3227_v30, %v2940_v1  ;;  %6347 = vpow2.f32 %v5905_v25  ;;  %v4282_v43 = vadd.f32 %v4235_v55, %v3905_v3  ;;  %v4770_v8 = vsel %vm4769_vm6, %v8609_v17, %v4766_v50 }
 0x2aa   : > { %v6147_v59 = vpack.c.bf16 %v5053_v60, %v5052_v19  ;;  %v6344_v34 = vpop.eup %6343  ;;  %vm4772_vm7 = vcmp.eq.f32.partialorder %v4771_v58, 8.507059e+37  ;;  %v6078_v63 = vunpack.c.l.bf16 %v6192_v22  ;;  %vm4782_vm9 = vweird.f32 %v8637_v39  ;;  %v8889_v60 = vld [vmem:[#allocation6_spill] sm:$0xff] }
 0x2ab   : > { %v4237_v40 = vpop.f32.mrf.mxu0  ;;  %v8658_v11 = vadd.f32 1.0, %v6344_v34  ;;  %v4318_v33 = vmul.f32 %v8409_v62, %v4282_v43  ;;  %v4775_v4 = vsel %vm4772_vm7, %v4774_v47, %v4770_v8  ;;  %v6079_v29 = vunpack.c.h.bf16 %v6192_v22  ;;  %v6193_v47 = vld [vmem:[%s7855_s12 + $0x50] sm:$0xff]  }
 0x2ac   : > { %v2897_v37 = vpop.f32.mrf.mxu1  ;;  %6206 = vst [vmem:[%s8038_s15 + $0x40] sm:$0xff] %v6147_v59   ;;  %v6346_v35 = vpop.eup %6345  ;;  %v4990_v7 = vmul.f32 %v4775_v4, %v8538_v18  ;;  %v4789_v61 = vor.u32 1.1754944e-38, %v4788_v52  ;;  %vm4787_vm11 = vcmp.eq.f32.partialorder %v4786_v32, 8.507059e+37  ;;  %v6082_v52 = vunpack.c.l.bf16 %v6193_v47 }
 0x2ad   : > { %v3860_v13 = vpop.f32.mrf.mxu3  ;;  %v4778_v54 = vmul.f32 %v6346_v35, %v8637_v39  ;;  %6349 = vrcp.f32 %v8658_v11  ;;  %v2941_v23 = vadd.f32 %v2897_v37, %v8888_v42  ;;  %v8666_v6 = vadd.f32 %v8429_v31, %v4318_v33 }
 0x2ae   : > { %v3906_v53 = vadd.f32 %v3860_v13, %v3273_v44  ;;  %vm4783_vm8 = vweird.f32 %v6346_v35  ;;  %v4801_v45 = vand.u32 2147483647, %v8658_v11  ;;  %v4803_v39 = vand.u32 2147483648, %v8658_v11 }
 0x2af   : > { %v6348_v10 = vpop.eup %6347  ;;  %v4779_v27 = vsub.f32 1.0, %v4778_v54  ;;  %v5906_v21 = vmul.f32 -1.442695, %v8666_v6  ;;  %vm4784_vm10 = vmor %vm4782_vm9, %vm4783_vm8  ;;  %v5054_v30 = vadd.f32 %v6078_v63, %v4990_v7  ;;  %vm4797_vm5 = vweird.f32 %v8658_v11 }
 0x2b0   : > { %v4283_v17 = vadd.f32 %v4237_v40, %v3906_v53  ;;  %v3230_v41 = vpop.f32.mrf.mxu2  ;;  %v8670_v46 = vadd.f32 1.0, %v6348_v10  ;;  %vm8689_vm12 = vcmp.eq.f32.partialorder %v4801_v45, 8.507059e+37  ;;  %v4804_v13 = vor.u32 1.1754944e-38, %v4803_v39 }
 0x2b1   : > { %v3274_v12 = vadd.f32 %v3230_v41, %v2941_v23  ;;  %v4780_v56 = vmul.f32 %v6346_v35, %v4779_v27 }
 0x2b2   : > { %v4319_v57 = vmul.f32 %v8409_v62, %v4283_v17  ;;  %6351 = vrcp.f32 %v8670_v46  ;;  %v4816_v8 = vand.u32 2147483647, %v8670_v46  ;;  %vm4812_vm15 = vweird.f32 %v8670_v46 }
 0x2b3   : > { %v4781_v28 = vadd.f32 %v6346_v35, %v4780_v56  ;;  %6353 = vpow2.f32 %v5906_v21  ;;  %v6350_v20 = vpop.eup %6349  ;;  %v4240_v2 = vpop.f32.mrf.mxu0 }
 0x2b4   : > { %v8677_v38 = vadd.f32 %v8429_v31, %v4319_v57  ;;  %v2899_v5 = vpop.f32.mrf.mxu1  ;;  %v4793_v14 = vmul.f32 %v6350_v20, %v8658_v11  ;;  %vm4798_vm2 = vweird.f32 %v6350_v20  ;;  %v4818_v11 = vand.u32 2147483648, %v8670_v46 }
 0x2b5   : > { %v3863_v55 = vpop.f32.mrf.mxu3  ;;  %v4785_v51 = vsel %vm4784_vm10, %v6346_v35, %v4781_v28  ;;  %v2942_v9 = vadd.f32 %v2899_v5, %v8889_v60  ;;  %vm4799_vm13 = vmor %vm4797_vm5, %vm4798_vm2  ;;  %v6083_v57 = vunpack.c.h.bf16 %v6193_v47  ;;  %vm4817_vm1 = vcmp.eq.f32.partialorder %v4816_v8, 8.507059e+37 }
 0x2b6   : > { %v3907_v26 = vadd.f32 %v3863_v55, %v3274_v12  ;;  %v5907_v15 = vmul.f32 -1.442695, %v8677_v38  ;;  %v4790_v48 = vsel %vm4787_vm11, %v4789_v61, %v4785_v51  ;;  %v4794_v18 = vsub.f32 1.0, %v4793_v14 }
 0x2b7   : > { %v4991_v19 = vmul.f32 %v4790_v48, %v8599_v0  ;;  %v4819_v56 = vor.u32 1.1754944e-38, %v4818_v11 }
 0x2b8   : > { %v4284_v16 = vadd.f32 %v4240_v2, %v3907_v26  ;;  %6355 = vpow2.f32 %v5907_v15  ;;  %v3232_v1 = vpop.f32.mrf.mxu2  ;;  %v6352_v25 = vpop.eup %6351  ;;  %v4795_v44 = vmul.f32 %v6350_v20, %v4794_v18 }
 0x2b9   : > { %v6354_v50 = vpop.eup %6353  ;;  %v5055_v3 = vadd.f32 %v6079_v29, %v4991_v19  ;;  %v4808_v24 = vmul.f32 %v6352_v25, %v8670_v46  ;;  %v3275_v37 = vadd.f32 %v3232_v1, %v2942_v9  ;;  %vm4813_vm14 = vweird.f32 %v6352_v25 }
 0x2ba   : > { %v4320_v59 = vmul.f32 %v8409_v62, %v4284_v16  ;;  %v8693_v58 = vadd.f32 1.0, %v6354_v50  ;;  %v4796_v34 = vadd.f32 %v6350_v20, %v4795_v44  ;;  %vm4814_vm0 = vmor %vm4812_vm15, %vm4813_vm14 }
 0x2bb   : > { %v6152_v40 = vpack.c.bf16 %v5055_v3, %v5054_v30  ;;  %v4809_v35 = vsub.f32 1.0, %v4808_v24  ;;  %v4242_v17 = vpop.f32.mrf.mxu0 }
 0x2bc   : > { %v8696_v43 = vadd.f32 %v8429_v31, %v4320_v59  ;;  %6357 = vrcp.f32 %v8693_v58  ;;  %v4800_v54 = vsel %vm4799_vm13, %v6350_v20, %v4796_v34  ;;  %v2902_v22 = vpop.f32.mrf.mxu1  ;;  %v4831_v2 = vand.u32 2147483647, %v8693_v58 }
 0x2bd   : > { %v3865_v33 = vpop.f32.mrf.mxu3  ;;  %6207 = vst [vmem:[%s8038_s15 + $0x48] sm:$0xff] %v6152_v40   ;;  %v4810_v42 = vmul.f32 %v6352_v25, %v4809_v35  ;;  %v4805_v4 = vsel %vm8689_vm12, %v4804_v13, %v4800_v54  ;;  %vm4827_vm4 = vweird.f32 %v8693_v58  ;;  %v6194_v40 = vld [vmem:[%s7855_s12 + $0x58] sm:$0xff]  }
 0x2be   : > { %v6356_v53 = vpop.eup %6355  ;;  %v5908_v23 = vmul.f32 -1.442695, %v8696_v43  ;;  %v3908_v10 = vadd.f32 %v3865_v33, %v3275_v37  ;;  %v4992_v12 = vmul.f32 %v4805_v4, %v8628_v36  ;;  %v8892_v36 = vld [vmem:[#allocation7_spill] sm:$0xff]  ;;  %vm8727_vm6 = vcmp.eq.f32.partialorder %v4831_v2, 8.507059e+37  ;;  %v8895_v37 = vld [vmem:[#allocation8_spill] sm:$0xff] }
 0x2bf   : > { %v8707_v27 = vadd.f32 1.0, %v6356_v53  ;;  %v4811_v41 = vadd.f32 %v6352_v25, %v4810_v42  ;;  %v2943_v29 = vadd.f32 %v2902_v22, %v8892_v36  ;;  %v6086_v54 = vunpack.c.l.bf16 %v6194_v40 }
 0x2c0   : > { %6359 = vpow2.f32 %v5908_v23  ;;  %v4285_v32 = vadd.f32 %v4242_v17, %v3908_v10  ;;  %v3235_v21 = vpop.f32.mrf.mxu2  ;;  %v5056_v61 = vadd.f32 %v6082_v52, %v4992_v12  ;;  %v6087_v22 = vunpack.c.h.bf16 %v6194_v40 }
 0x2c1   : > { %6361 = vrcp.f32 %v8707_v27  ;;  %v4815_v63 = vsel %vm4814_vm0, %v6352_v25, %v4811_v41  ;;  %v3276_v48 = vadd.f32 %v3235_v21, %v2943_v29  ;;  %v4846_v44 = vand.u32 2147483647, %v8707_v27 }
 0x2c2   : > { %v4321_v28 = vmul.f32 %v8409_v62, %v4285_v32  ;;  %v6358_v55 = vpop.eup %6357  ;;  %v4820_v5 = vsel %vm4817_vm1, %v4819_v56, %v4815_v63  ;;  %v4848_v24 = vand.u32 2147483648, %v8707_v27  ;;  %vm4842_vm9 = vweird.f32 %v8707_v27 }
 0x2c3   : > { %v4993_v46 = vmul.f32 %v4820_v5, %v8640_v49  ;;  %v4823_v20 = vmul.f32 %v6358_v55, %v8693_v58  ;;  %v4833_v49 = vand.u32 2147483648, %v8693_v58  ;;  %vm4828_vm3 = vweird.f32 %v6358_v55 }
 0x2c4   : > { %v8717_v7 = vadd.f32 %v8429_v31, %v4321_v28  ;;  %v2904_v60 = vpop.f32.mrf.mxu1  ;;  %vm4829_vm7 = vmor %vm4827_vm4, %vm4828_vm3  ;;  %v4849_v23 = vor.u32 1.1754944e-38, %v4848_v24  ;;  %vm4847_vm11 = vcmp.eq.f32.partialorder %v4846_v44, 8.507059e+37 }
 0x2c5   : > { %v5057_v51 = vadd.f32 %v6083_v57, %v4993_v46  ;;  %v4824_v14 = vsub.f32 1.0, %v4823_v20  ;;  %v4834_v3 = vor.u32 1.1754944e-38, %v4833_v49  ;;  %v2944_v0 = vadd.f32 %v2904_v60, %v8895_v37 }
 0x2c6   : > { %v6360_v26 = vpop.eup %6359  ;;  %v5909_v15 = vmul.f32 -1.442695, %v8717_v7 }
 0x2c7   : > { %v6362_v45 = vpop.eup %6361  ;;  %v8723_v39 = vadd.f32 1.0, %v6360_v26  ;;  %v6157_v16 = vpack.c.bf16 %v5057_v51, %v5056_v61  ;;  %v4825_v19 = vmul.f32 %v6358_v55, %v4824_v14 }
 0x2c8   : > { %v4838_v18 = vmul.f32 %v6362_v45, %v8707_v27  ;;  %v3237_v58 = vpop.f32.mrf.mxu2  ;;  %vm4843_vm8 = vweird.f32 %v6362_v45 }
 0x2c9   : > { %6363 = vrcp.f32 %v8723_v39  ;;  %6208 = vst [vmem:[%s8038_s15 + $0x50] sm:$0xff] %v6157_v16   ;;  %v4826_v30 = vadd.f32 %v6358_v55, %v4825_v19  ;;  %v3277_v53 = vadd.f32 %v3237_v58, %v2944_v0  ;;  %vm4844_vm10 = vmor %vm4842_vm9, %vm4843_vm8  ;;  %v4863_v61 = vand.u32 2147483648, %v8723_v39  ;;  %v8896_v0 = vld [vmem:[#allocation9_spill] sm:$0xff] }
 0x2ca   : > { %v4839_v59 = vsub.f32 1.0, %v4838_v18  ;;  %6365 = vpow2.f32 %v5909_v15  ;;  %vm4857_vm5 = vweird.f32 %v8723_v39  ;;  %v4861_v2 = vand.u32 2147483647, %v8723_v39 }
 0x2cb   : > { %v4245_v1 = vpop.f32.mrf.mxu0  ;;  %v3868_v25 = vpop.f32.mrf.mxu3  ;;  %v4830_v34 = vsel %vm4829_vm7, %v6358_v55, %v4826_v30 }
 0x2cc   : > { %v3909_v50 = vadd.f32 %v3868_v25, %v3276_v48  ;;  %v4840_v13 = vmul.f32 %v6362_v45, %v4839_v59  ;;  %v4835_v8 = vsel %vm8727_vm6, %v4834_v3, %v4830_v34  ;;  %v4864_v48 = vor.u32 1.1754944e-38, %v4863_v61 }
 0x2cd   : > { %v4994_v42 = vmul.f32 %v4835_v8, %v8666_v6  ;;  %vm4862_vm13 = vcmp.eq.f32.partialorder %v4861_v2, 8.507059e+37 }
 0x2ce   : > { %v4286_v35 = vadd.f32 %v4245_v1, %v3909_v50  ;;  %v4841_v11 = vadd.f32 %v6362_v45, %v4840_v13 }
 0x2cf   : > { %v6364_v47 = vpop.eup %6363  ;;  %v5058_v6 = vadd.f32 %v6086_v54, %v4994_v42 }
 0x2d0   : > { %v4322_v33 = vmul.f32 %v8409_v62, %v4286_v35  ;;  %v6366_v10 = vpop.eup %6365  ;;  %v4845_v4 = vsel %vm4844_vm10, %v6362_v45, %v4841_v11  ;;  %v4853_v17 = vmul.f32 %v6364_v47, %v8723_v39  ;;  %vm4858_vm2 = vweird.f32 %v6364_v47  ;;  %v3240_v25 = vpop.f32.mrf.mxu2 }
 0x2d1   : > { %v4850_v41 = vsel %vm4847_vm11, %v4849_v23, %v4845_v4  ;;  %v4485_v32 = vadd.f32 1.0, %v6366_v10  ;;  %vm4859_vm12 = vmor %vm4857_vm5, %vm4858_vm2 }
 0x2d2   : > { %v8744_v27 = vadd.f32 %v8429_v31, %v4322_v33  ;;  %v4995_v12 = vmul.f32 %v4850_v41, %v8677_v38  ;;  %v4854_v56 = vsub.f32 1.0, %v4853_v17 }
 0x2d3   : > { %v3870_v52 = vpop.f32.mrf.mxu3  ;;  %6367 = vrcp.f32 %v4485_v32  ;;  %v4247_v57 = vpop.f32.mrf.mxu0  ;;  %v4878_v45 = vand.u32 2147483648, %v4485_v32  ;;  %v4876_v19 = vand.u32 2147483647, %v4485_v32  ;;  %vm4872_vm15 = vweird.f32 %v4485_v32 }
 0x2d4   : > { %v3910_v21 = vadd.f32 %v3870_v52, %v3277_v53  ;;  %v5059_v63 = vadd.f32 %v6087_v22, %v4995_v12  ;;  %v4855_v28 = vmul.f32 %v6364_v47, %v4854_v56  ;;  %v5910_v55 = vmul.f32 -1.442695, %v8744_v27 }
 0x2d5   : > { %v4879_v1 = vor.u32 1.1754944e-38, %v4878_v45  ;;  %vm4877_vm1 = vcmp.eq.f32.partialorder %v4876_v19, 8.507059e+37 }
 0x2d6   : > { %v4287_v5 = vadd.f32 %v4247_v57, %v3910_v21  ;;  %v6162_v46 = vpack.c.bf16 %v5059_v63, %v5058_v6  ;;  %6369 = vpow2.f32 %v5910_v55  ;;  %v4856_v36 = vadd.f32 %v6364_v47, %v4855_v28  ;;  %v8772_v6 = vld [vmem:[%s8824_s2] ss:$0 sm:$0xff] }
 0x2d8   : > { %v4323_v20 = vmul.f32 %v8409_v62, %v4287_v5  ;;  %6209 = vst [vmem:[%s8038_s15 + $0x58] sm:$0xff] %v6162_v46   ;;  %v4860_v62 = vsel %vm4859_vm12, %v6364_v47, %v4856_v36  ;;  %v2907_v18 = vpop.f32.mrf.mxu1  ;;  %v3242_v22 = vpop.f32.mrf.mxu2  ;;  %v6196_v46 = vld [vmem:[%s7855_s12 + $0x68] sm:$0xff]   ;;  %v8779_v36 = vld [vmem:[%s8825_s3] ss:$0 sm:$0xff] }
 0x2d9   : > { %v6368_v29 = vpop.eup %6367  ;;  %v4865_v60 = vsel %vm4862_vm13, %v4864_v48, %v4860_v62  ;;  %v2945_v58 = vadd.f32 %v2907_v18, %v8896_v0  ;;  %v6094_v62 = vunpack.c.l.bf16 %v6196_v46 }
 0x2da   : > { %v8751_v38 = vadd.f32 %v8429_v31, %v4323_v20  ;;  %v4868_v26 = vmul.f32 %v6368_v29, %v4485_v32  ;;  %v6195_v31 = vld [vmem:[%s7855_s12 + $0x60] sm:$0xff]   ;;  %vm4873_vm14 = vweird.f32 %v6368_v29  ;;  %v4996_v59 = vmul.f32 %v4865_v60, %v8696_v43 }
 0x2db   : > { %v6090_v9 = vunpack.c.l.bf16 %v6195_v31  ;;  %vm4874_vm0 = vmor %vm4872_vm15, %vm4873_vm14  ;;  %v6091_v50 = vunpack.c.h.bf16 %v6195_v31  ;;  %v3278_v8 = vadd.f32 %v3240_v25, %v2945_v58  ;;  %v8897_v32 = vld [vmem:[#allocation10_spill] sm:$0xff] }
 0x2dc   : > { %v5911_v51 = vmul.f32 -1.442695, %v8751_v38  ;;  %v6370_v14 = vpop.eup %6369  ;;  %v4869_v15 = vsub.f32 1.0, %v4868_v26 }
 0x2dd   : > { %v4486_v49 = vadd.f32 1.0, %v6370_v14  ;;  %v5060_v34 = vadd.f32 %v6090_v9, %v4996_v59 }
 0x2de   : > { %6371 = vpow2.f32 %v5911_v51  ;;  %v4870_v16 = vmul.f32 %v6368_v29, %v4869_v15  ;;  %v6095_v15 = vunpack.c.h.bf16 %v6196_v46 }
 0x2df   : > { %6373 = vrcp.f32 %v4486_v49  ;;  %vm4887_vm4 = vweird.f32 %v4486_v49  ;;  %v4893_v10 = vand.u32 2147483648, %v4486_v49 }
 0x2e0   : > { %v4871_v39 = vadd.f32 %v6368_v29, %v4870_v16  ;;  %v2909_v53 = vpop.f32.mrf.mxu1 }
 0x2e1   : > { %v2946_v52 = vadd.f32 %v2909_v53, %v8897_v32  ;;  %v4894_v28 = vor.u32 1.1754944e-38, %v4893_v10 }
 0x2e2   : > { %v4875_v3 = vsel %vm4874_vm0, %v6368_v29, %v4871_v39 }
 0x2e3   : > { %v4880_v44 = vsel %vm4877_vm1, %v4879_v1, %v4875_v3  ;;  %v3279_v63 = vadd.f32 %v3242_v22, %v2946_v52 }
 0x2e4   : > { %v6372_v30 = vpop.eup %6371  ;;  %v4997_v37 = vmul.f32 %v4880_v44, %v8717_v7  ;;  %v4891_v7 = vand.u32 2147483647, %v4486_v49  ;;  %v8900_v44 = vld [vmem:[#allocation11_spill] sm:$0xff] }
 0x2e5   : > { %v4487_v24 = vadd.f32 1.0, %v6372_v30  ;;  %v6374_v40 = vpop.eup %6373  ;;  %v3245_v30 = vpop.f32.mrf.mxu2 }
 0x2e6   : > { %v5061_v13 = vadd.f32 %v6091_v50, %v4997_v37  ;;  %v4883_v35 = vmul.f32 %v6374_v40, %v4486_v49  ;;  %v4250_v43 = vpop.f32.mrf.mxu0  ;;  %vm4888_vm3 = vweird.f32 %v6374_v40  ;;  %vm4892_vm7 = vcmp.eq.f32.partialorder %v4891_v7, 8.507059e+37 }
 0x2e7   : > { %6375 = vrcp.f32 %v4487_v24  ;;  %vm8763_vm6 = vmor %vm4887_vm4, %vm4888_vm3  ;;  %v4906_v55 = vand.u32 2147483647, %v4487_v24  ;;  %v4908_v5 = vand.u32 2147483648, %v4487_v24  ;;  %vm4902_vm9 = vweird.f32 %v4487_v24 }
 0x2e8   : > { %v6167_v11 = vpack.c.bf16 %v5061_v13, %v5060_v34  ;;  %v4884_v33 = vsub.f32 1.0, %v4883_v35 }
 0x2e9   : > { %vm4907_vm11 = vcmp.eq.f32.partialorder %v4906_v55, 8.507059e+37  ;;  %v4909_v48 = vor.u32 1.1754944e-38, %v4908_v5 }
 0x2ea   : > { %6210 = vst [vmem:[%s8038_s15 + $0x60] sm:$0xff] %v6167_v11   ;;  %v4885_v54 = vmul.f32 %v6374_v40, %v4884_v33  ;;  %v8901_v33 = vld [vmem:[#allocation12_spill] sm:$0xff] }
 0x2ec   : > { %v3873_v47 = vpop.f32.mrf.mxu3  ;;  %v4886_v4 = vadd.f32 %v6374_v40, %v4885_v54 }
 0x2ed   : > { %v3911_v42 = vadd.f32 %v3873_v47, %v3278_v8  ;;  %v6376_v23 = vpop.eup %6375  ;;  %v3247_v13 = vpop.f32.mrf.mxu2 }
 0x2ee   : > { %v4898_v17 = vmul.f32 %v6376_v23, %v4487_v24  ;;  %v4890_v56 = vsel %vm8763_vm6, %v6374_v40, %v4886_v4  ;;  %vm4903_vm8 = vweird.f32 %v6376_v23  ;;  %v4252_v45 = vpop.f32.mrf.mxu0 }
 0x2ef   : > { %v4288_v41 = vadd.f32 %v4250_v43, %v3911_v42  ;;  %v4895_v61 = vsel %vm4892_vm7, %v4894_v28, %v4890_v56  ;;  %vm4904_vm10 = vmor %vm4902_vm9, %vm4903_vm8 }
 0x2f0   : > { %v4899_v21 = vsub.f32 1.0, %v4898_v17  ;;  %v4998_v49 = vmul.f32 %v4895_v61, %v8744_v27  ;;  %v2912_v18 = vpop.f32.mrf.mxu1 }
 0x2f1   : > { %v4324_v57 = vmul.f32 %v8772_v6, %v4288_v41  ;;  %v2947_v24 = vadd.f32 %v2912_v18, %v8900_v44 }
 0x2f2   : > { %v4900_v20 = vmul.f32 %v6376_v23, %v4899_v21  ;;  %v5062_v9 = vadd.f32 %v6094_v62, %v4998_v49 }
 0x2f3   : > { %v8782_v29 = vadd.f32 %v8779_v36, %v4324_v57  ;;  %v3280_v37 = vadd.f32 %v3245_v30, %v2947_v24 }
 0x2f4   : > { %v3875_v2 = vpop.f32.mrf.mxu3  ;;  %v4901_v26 = vadd.f32 %v6376_v23, %v4900_v20  ;;  %v6197_v20 = vld [vmem:[%s7855_s12 + $0x70] sm:$0xff]  }
 0x2f5   : > { %v5912_v51 = vmul.f32 -1.442695, %v8782_v29  ;;  %v3912_v14 = vadd.f32 %v3875_v2, %v3279_v63 }
 0x2f6   : > { %v4905_v31 = vsel %vm4904_vm10, %v6376_v23, %v4901_v26 }
 0x2f7   : > { %6377 = vpow2.f32 %v5912_v51  ;;  %v4289_v16 = vadd.f32 %v4252_v45, %v3912_v14  ;;  %v4910_v19 = vsel %vm4907_vm11, %v4909_v48, %v4905_v31  ;;  %v6099_v45 = vunpack.c.h.bf16 %v6197_v20 }
 0x2f8   : > { %v4999_v60 = vmul.f32 %v4910_v19, %v8751_v38  ;;  %v2914_v38 = vpop.f32.mrf.mxu1 }
 0x2f9   : > { %v4325_v39 = vmul.f32 %v8772_v6, %v4289_v16  ;;  %v2948_v53 = vadd.f32 %v2914_v38, %v8901_v33 }
 0x2fa   : > { %v5063_v1 = vadd.f32 %v6095_v15, %v4999_v60  ;;  %v6098_v15 = vunpack.c.l.bf16 %v6197_v20 }
 0x2fb   : > { %v8789_v25 = vadd.f32 %v8779_v36, %v4325_v39  ;;  %v4255_v0 = vpop.f32.mrf.mxu0  ;;  %v3281_v47 = vadd.f32 %v3247_v13, %v2948_v53 }
 0x2fc   : > { %v6172_v50 = vpack.c.bf16 %v5063_v1, %v5062_v9 }
 0x2fd   : > { %v6378_v59 = vpop.eup %6377  ;;  %v5913_v27 = vmul.f32 -1.442695, %v8789_v25 }
 0x2fe   : > { %v4488_v3 = vadd.f32 1.0, %v6378_v59  ;;  %6211 = vst [vmem:[%s8038_s15 + $0x68] sm:$0xff] %v6172_v50  }
 0x2ff   : > { %6379 = vpow2.f32 %v5913_v27 }
 0x300   : > { %6381 = vrcp.f32 %v4488_v3  ;;  %v4923_v52 = vand.u32 2147483648, %v4488_v3  ;;  %vm4917_vm5 = vweird.f32 %v4488_v3  ;;  %v4921_v56 = vand.u32 2147483647, %v4488_v3 }
 0x301   : > { %v3878_v58 = vpop.f32.mrf.mxu3 }
 0x302   : > { %v3913_v40 = vadd.f32 %v3878_v58, %v3280_v37  ;;  %v4924_v55 = vor.u32 1.1754944e-38, %v4923_v52  ;;  %vm4922_vm13 = vcmp.eq.f32.partialorder %v4921_v56, 8.507059e+37  ;;  %v6198_v58 = vld [vmem:[%s7855_s12 + $0x78] sm:$0xff]  }
 0x303   : > { %v4257_v41 = vpop.f32.mrf.mxu0  ;;  %v6103_v53 = vunpack.c.h.bf16 %v6198_v58 }
 0x304   : > { %v4290_v11 = vadd.f32 %v4255_v0, %v3913_v40 }
 0x305   : > { %v6380_v34 = vpop.eup %6379 }
 0x306   : > { %v6382_v35 = vpop.eup %6381  ;;  %v4489_v8 = vadd.f32 1.0, %v6380_v34  ;;  %v4326_v42 = vmul.f32 %v8772_v6, %v4290_v11 }
 0x307   : > { %v4913_v43 = vmul.f32 %v6382_v35, %v4488_v3  ;;  %vm4918_vm2 = vweird.f32 %v6382_v35 }
 0x308   : > { %6383 = vrcp.f32 %v4489_v8  ;;  %v8797_v7 = vadd.f32 %v8779_v36, %v4326_v42  ;;  %vm4919_vm12 = vmor %vm4917_vm5, %vm4918_vm2  ;;  %v4938_v5 = vand.u32 2147483648, %v4489_v8  ;;  %v4936_v2 = vand.u32 2147483647, %v4489_v8 }
 0x309   : > { %v4914_v54 = vsub.f32 1.0, %v4913_v43  ;;  %v3880_v10 = vpop.f32.mrf.mxu3  ;;  %vm4932_vm15 = vweird.f32 %v4489_v8 }
 0x30a   : > { %v3914_v22 = vadd.f32 %v3880_v10, %v3281_v47  ;;  %v5914_v17 = vmul.f32 -1.442695, %v8797_v7  ;;  %vm4937_vm1 = vcmp.eq.f32.partialorder %v4936_v2, 8.507059e+37 }
 0x30b   : > { %v4915_v23 = vmul.f32 %v6382_v35, %v4914_v54 }
 0x30c   : > { %v4291_v12 = vadd.f32 %v4257_v41, %v3914_v22  ;;  %6385 = vpow2.f32 %v5914_v17 }
 0x30d   : > { %v4916_v4 = vadd.f32 %v6382_v35, %v4915_v23 }
 0x30e   : > { %v6384_v32 = vpop.eup %6383  ;;  %v4327_v57 = vmul.f32 %v8772_v6, %v4291_v12  ;;  %v4939_v6 = vor.u32 1.1754944e-38, %v4938_v5 }
 0x30f   : > { %v4928_v21 = vmul.f32 %v6384_v32, %v4489_v8  ;;  %v4920_v63 = vsel %vm4919_vm12, %v6382_v35, %v4916_v4  ;;  %vm4933_vm14 = vweird.f32 %v6384_v32  ;;  %v6102_v8 = vunpack.c.l.bf16 %v6198_v58 }
 0x310   : > { %v8802_v46 = vadd.f32 %v8779_v36, %v4327_v57  ;;  %v4925_v26 = vsel %vm4922_vm13, %v4924_v55, %v4920_v63  ;;  %vm4934_vm0 = vmor %vm4932_vm15, %vm4933_vm14 }
 0x311   : > { %v4929_v28 = vsub.f32 1.0, %v4928_v21  ;;  %v5000_v36 = vmul.f32 %v4925_v26, %v8782_v29 }
 0x312   : > { %v5915_v51 = vmul.f32 -1.442695, %v8802_v46  ;;  %v6386_v14 = vpop.eup %6385 }
 0x313   : > { %v4930_v61 = vmul.f32 %v6384_v32, %v4929_v28  ;;  %v4490_v48 = vadd.f32 1.0, %v6386_v14  ;;  %v5064_v19 = vadd.f32 %v6098_v15, %v5000_v36 }
 0x314   : > { %6387 = vpow2.f32 %v5915_v51 }
 0x315   : > { %v4931_v62 = vadd.f32 %v6384_v32, %v4930_v61  ;;  %6389 = vrcp.f32 %v4490_v48  ;;  %v4953_v3 = vand.u32 2147483648, %v4490_v48  ;;  %vm4947_vm4 = vweird.f32 %v4490_v48 }
 0x316   : > { %v4951_v44 = vand.u32 2147483647, %v4490_v48 }
 0x317   : > { %v4935_v49 = vsel %vm4934_vm0, %v6384_v32, %v4931_v62  ;;  %v4954_v38 = vor.u32 1.1754944e-38, %v4953_v3 }
 0x318   : > { %v4940_v31 = vsel %vm4937_vm1, %v4939_v6, %v4935_v49  ;;  %vm4952_vm7 = vcmp.eq.f32.partialorder %v4951_v44, 8.507059e+37 }
 0x319   : > { %v5001_v16 = vmul.f32 %v4940_v31, %v8789_v25 }
 0x31a   : > { %v6388_v60 = vpop.eup %6387 }
 0x31b   : > { %v5065_v18 = vadd.f32 %v6099_v45, %v5001_v16  ;;  %v4491_v9 = vadd.f32 1.0, %v6388_v60  ;;  %v6390_v1 = vpop.eup %6389 }
 0x31c   : > { %v4943_v30 = vmul.f32 %v6390_v1, %v4490_v48  ;;  %vm4948_vm3 = vweird.f32 %v6390_v1 }
 0x31d   : > { %v6177_v39 = vpack.c.bf16 %v5065_v18, %v5064_v19  ;;  %6391 = vrcp.f32 %v4491_v9  ;;  %vm4949_vm6 = vmor %vm4947_vm4, %vm4948_vm3  ;;  %v4968_v0 = vand.u32 2147483648, %v4491_v9  ;;  %v4966_v34 = vand.u32 2147483647, %v4491_v9 }
 0x31e   : > { %v4944_v59 = vsub.f32 1.0, %v4943_v30  ;;  %vm4962_vm9 = vweird.f32 %v4491_v9 }
 0x31f   : > { %6212 = vst [vmem:[%s8038_s15 + $0x70] sm:$0xff] %v6177_v39   ;;  %v4969_v11 = vor.u32 1.1754944e-38, %v4968_v0  ;;  %vm4967_vm11 = vcmp.eq.f32.partialorder %v4966_v34, 8.507059e+37 }
 0x320   : > { %v4945_v50 = vmul.f32 %v6390_v1, %v4944_v59 }
 0x322   : > { %v4946_v27 = vadd.f32 %v6390_v1, %v4945_v50 }
 0x323   : > { %v6392_v29 = vpop.eup %6391 }
 0x324   : > { %v4958_v24 = vmul.f32 %v6392_v29, %v4491_v9  ;;  %v4950_v25 = vsel %vm4949_vm6, %v6390_v1, %v4946_v27  ;;  %vm4963_vm8 = vweird.f32 %v6392_v29 }
 0x325   : > { %v4955_v13 = vsel %vm4952_vm7, %v4954_v38, %v4950_v25  ;;  %vm4964_vm10 = vmor %vm4962_vm9, %vm4963_vm8 }
 0x326   : > { %v4959_v37 = vsub.f32 1.0, %v4958_v24  ;;  %v5002_v33 = vmul.f32 %v4955_v13, %v8797_v7 }
 0x328   : > { %v4960_v40 = vmul.f32 %v6392_v29, %v4959_v37  ;;  %v5066_v42 = vadd.f32 %v6102_v8, %v5002_v33 }
 0x32a   : > { %v4961_v35 = vadd.f32 %v6392_v29, %v4960_v40 }
 0x32c   : > { %v4965_v43 = vsel %vm4964_vm10, %v6392_v29, %v4961_v35 }
 0x32d   : > { %v4970_v47 = vsel %vm4967_vm11, %v4969_v11, %v4965_v43 }
 0x32e   : > { %v5003_v54 = vmul.f32 %v4970_v47, %v8802_v46 }
 0x330   : > { %v5067_v23 = vadd.f32 %v6103_v53, %v5003_v54 }
 0x332   : > { %v6182_v10 = vpack.c.bf16 %v5067_v23, %v5066_v42 }
 0x334   : > { %6213 = vst [vmem:[%s8038_s15 + $0x78] sm:$0xff] %v6182_v10  }
 0x335 PF: > { %s15_s20 = sadd.s32 1, %s6498_s20   ;;  %s8902_s18 = smov %s6494_s19 }
 0x336   : > { %p12_p5 = scmp.ge.s32.totalorder %s15_s20, 4   ;;  %s8903_s19 = smov %s8905_s21 }
 0x338   :  { %14 = sbr.rel (!%p12_p5) target bundleno = 2 (0x2), region = 76 }

</bundles_post_ra>
